<compile_context>
chip_gen: v5e
topology: v5e:2x2
jax: 0.10.0
libtpu: 0.0.40
codegen_flags: <defaults>
</compile_context>

<pallas_src>
import functools

import jax
import jax.numpy as jnp
from jax.experimental import pallas as pl
from jax.experimental.pallas import tpu as pltpu

NUM_CLASSES = 2
EPS = 1e-5


def _round_up(x, m):
    return (x + m - 1) // m * m


# --------------------------------------------------------------------------
# Fused Pallas matmul: C = A @ B with bias (+ optional residual) (+ ReLU)
# applied in the epilogue of the K-reduction.  A is bf16, B is bf16 (pre-cast
# folded conv weights), accumulation is f32 in VMEM scratch.
# --------------------------------------------------------------------------
def _mm_bias_kernel(a_ref, b_ref, bias_ref, o_ref, acc_ref, *, relu):
    @pl.when(pl.program_id(2) == 0)
    def _():
        acc_ref[...] = jnp.zeros_like(acc_ref)

    acc_ref[...] += jnp.dot(a_ref[...], b_ref[...],
                            preferred_element_type=jnp.float32)

    @pl.when(pl.program_id(2) == pl.num_programs(2) - 1)
    def _():
        y = acc_ref[...] + bias_ref[...]
        if relu:
            y = jnp.maximum(y, 0.0)
        o_ref[...] = y.astype(o_ref.dtype)


def _mm_bias_res_kernel(a_ref, b_ref, bias_ref, r_ref, o_ref, acc_ref, *, relu):
    @pl.when(pl.program_id(2) == 0)
    def _():
        acc_ref[...] = jnp.zeros_like(acc_ref)

    acc_ref[...] += jnp.dot(a_ref[...], b_ref[...],
                            preferred_element_type=jnp.float32)

    @pl.when(pl.program_id(2) == pl.num_programs(2) - 1)
    def _():
        y = acc_ref[...] + bias_ref[...] + r_ref[...]
        if relu:
            y = jnp.maximum(y, 0.0)
        o_ref[...] = y.astype(o_ref.dtype)


def fused_matmul(a, w_mat, bias, *, relu=False, residual=None):
    """a: (M, K) f32/bf16.  w_mat: (K, Nc) bf16 (pre-folded / pre-padded).
    bias: (Nc,) f32.  residual: optional (M, Nc) f32 added before ReLU.
    Returns (M, Nc) f32."""
    M, K = a.shape
    K2, Nc = w_mat.shape
    assert K == K2

    # ---- tile selection (128-native works on v5e; 256-friendly dims use 256).
    if M >= 128:
        tm = 128
        Mp = _round_up(M, tm)
    else:
        Mp = _round_up(M, 8)
        tm = Mp

    if K % 256 == 0:
        tk = 256
    elif K % 128 == 0:
        tk = 128
    else:
        tk = K          # full-K block (allowed: equals full array dim)

    if Nc % 256 == 0:
        tn = 256
    elif Nc % 128 == 0:
        tn = 128
    else:
        tn = Nc         # full-N block (e.g. C_out = 64)

    a_p = a if Mp == M else jnp.pad(a, ((0, Mp - M), (0, 0)))
    a_p = a_p.astype(jnp.bfloat16)
    bias2 = bias.reshape(1, Nc).astype(jnp.float32)

    grid = (Mp // tm, Nc // tn, K // tk)

    in_specs = [
        pl.BlockSpec((tm, tk), lambda m, n, k: (m, k)),
        pl.BlockSpec((tk, tn), lambda m, n, k: (k, n)),
        pl.BlockSpec((1, tn), lambda m, n, k: (0, n)),
    ]
    args = [a_p, w_mat.astype(jnp.bfloat16), bias2]

    if residual is not None:
        r_p = residual if Mp == M else jnp.pad(residual, ((0, Mp - M), (0, 0)))
        # Same (m, n) block across the whole K loop -> fetched once per tile.
        in_specs.append(pl.BlockSpec((tm, tn), lambda m, n, k: (m, n)))
        args.append(r_p.astype(jnp.float32))
        kern = functools.partial(_mm_bias_res_kernel, relu=relu)
    else:
        kern = functools.partial(_mm_bias_kernel, relu=relu)

    out = pl.pallas_call(
        kern,
        out_shape=jax.ShapeDtypeStruct((Mp, Nc), jnp.float32),
        grid_spec=pltpu.PrefetchScalarGridSpec(
            num_scalar_prefetch=0,
            grid=grid,
            in_specs=in_specs,
            out_specs=pl.BlockSpec((tm, tn), lambda m, n, k: (m, n)),
            scratch_shapes=[pltpu.VMEM((tm, tn), jnp.float32)],
        ),
        compiler_params=pltpu.CompilerParams(
            dimension_semantics=("parallel", "parallel", "arbitrary")),
    )(*args)
    return out if Mp == M else out[:M]


# --------------------------------------------------------------------------
# Conv (+ folded BN) (+ residual) (+ ReLU) via im2col + fused Pallas matmul.
# --------------------------------------------------------------------------
def conv2d_bn(x, prep, stride, pad, *, relu, residual2d=None):
    """x: NHWC f32.  prep: {'w_mat': (k*k*C_in, C_out) bf16, 'bias': (C_out,)}."""
    N, H, W, C = x.shape
    K, C_out = prep["w_mat"].shape
    kk = K // C
    k = int(round(kk ** 0.5))
    assert k * k == kk
    Ho = (H + 2 * pad - k) // stride + 1
    Wo = (W + 2 * pad - k) // stride + 1

    if k == 1 and pad == 0:
        patches = x[:, ::stride, ::stride, :].reshape(N * Ho * Wo, C)
    else:
        # TODO(synk): im2col patches are still materialized; folding the k*k
        # taps into the K grid axis via data-dependent index_maps would remove
        # this extra activation copy entirely.
        xp = jnp.pad(x, ((0, 0), (pad, pad), (pad, pad), (0, 0)))
        cols = []
        for i in range(k):
            for j in range(k):
                cols.append(
                    xp[:, i:i + stride * Ho:stride, j:j + stride * Wo:stride, :])
        patches = jnp.concatenate(cols, axis=-1).reshape(N * Ho * Wo, K)

    out = fused_matmul(patches, prep["w_mat"], prep["bias"],
                       relu=relu, residual=residual2d)
    return out.reshape(N, Ho, Wo, C_out)


# --------------------------------------------------------------------------
# MaxPool2d(3, stride=2, padding=1): 9-way maximum tree in XLA (no stacked
# (9, M, C) HBM tensor, per performance review).
# --------------------------------------------------------------------------
def max_pool_3x3_s2(x):
    N, H, W, C = x.shape
    k, s, pad = 3, 2, 1
    Ho = (H + 2 * pad - k) // s + 1
    Wo = (W + 2 * pad - k) // s + 1
    xp = jnp.pad(x, ((0, 0), (pad, pad), (pad, pad), (0, 0)),
                 constant_values=-jnp.inf)
    out = None
    for i in range(k):
        for j in range(k):
            tap = xp[:, i:i + s * Ho:s, j:j + s * Wo:s, :]
            out = tap if out is None else jnp.maximum(out, tap)
    return out


# --------------------------------------------------------------------------
# Global average pool: Pallas reduction, gridded over batch (pipelined blocks).
# --------------------------------------------------------------------------
def _mean_pool_kernel(x_ref, o_ref, *, inv_hw):
    o_ref[...] = jnp.sum(x_ref[...], axis=1, keepdims=True) * inv_hw


def global_avg_pool(x):
    N, H, W, C = x.shape
    HW = H * W
    x3 = x.reshape(N, HW, C)
    out = pl.pallas_call(
        functools.partial(_mean_pool_kernel, inv_hw=1.0 / HW),
        out_shape=jax.ShapeDtypeStruct((N, 1, C), jnp.float32),
        grid_spec=pltpu.PrefetchScalarGridSpec(
            num_scalar_prefetch=0,
            grid=(N,),
            in_specs=[pl.BlockSpec((1, HW, C), lambda n: (n, 0, 0))],
            out_specs=pl.BlockSpec((1, 1, C), lambda n: (n, 0, 0)),
        ),
        compiler_params=pltpu.CompilerParams(dimension_semantics=("parallel",)),
    )(x3)
    return out.reshape(N, C)


# --------------------------------------------------------------------------
# ResNet-18 structure
# --------------------------------------------------------------------------
def basic_block(x, p, stride):
    out = conv2d_bn(x, p["conv1"], stride, 1, relu=True)
    if "ds" in p:
        ident4 = conv2d_bn(x, p["ds"], stride, 0, relu=False)
    else:
        ident4 = x
    N, Ho, Wo, Co = out.shape
    ident2 = ident4.reshape(N * Ho * Wo, Co)
    # conv2 + bn2 + residual add + relu fused into one Pallas matmul epilogue.
    return conv2d_bn(out, p["conv2"], 1, 1, relu=True, residual2d=ident2)


def custom_resnet_forward(x_nchw, prep):
    x = jnp.transpose(x_nchw, (0, 2, 3, 1)).astype(jnp.float32)  # -> NHWC
    x = conv2d_bn(x, prep["conv1"], 2, 3, relu=True)
    x = max_pool_3x3_s2(x)
    for li, layer in enumerate(prep["layers"]):
        for bi, blk in enumerate(layer):
            stride = 2 if (li > 0 and bi == 0) else 1
            x = basic_block(x, blk, stride)
    pooled = global_avg_pool(x)  # (N, 512)
    # Head: Dropout(0.5) in eval mode (identity), then Linear(512 -> 2).
    logits = fused_matmul(pooled, prep["fc"]["w_mat"], prep["fc"]["bias"],
                          relu=False)
    return logits[:, :NUM_CLASSES]


# --------------------------------------------------------------------------
# Parameter prep: fold eval-mode BN into conv weights, pre-transpose /
# pre-pad / pre-cast once (outside jit).
# --------------------------------------------------------------------------
def _fold_bn(w, bn):
    gamma, beta, mean, var = bn
    scale = gamma / jnp.sqrt(var + EPS)
    bias = beta - mean * scale
    w_f = w * scale[:, None, None, None]                  # scale along C_out
    C_out, C_in, kh, kw = w.shape
    w_mat = jnp.transpose(w_f, (2, 3, 1, 0)).reshape(kh * kw * C_in, C_out)
    return {"w_mat": w_mat.astype(jnp.bfloat16), "bias": bias.astype(jnp.float32)}


def prepare_params(raw):
    prep = {"conv1": _fold_bn(raw["conv1_w"], raw["bn1"])}
    layers = []
    for layer in raw["layers"]:
        blocks = []
        for blk in layer:
            b = {"conv1": _fold_bn(blk["conv1_w"], blk["bn1"]),
                 "conv2": _fold_bn(blk["conv2_w"], blk["bn2"])}
            if "ds_w" in blk:
                b["ds"] = _fold_bn(blk["ds_w"], blk["ds_bn"])
            blocks.append(b)
        layers.append(blocks)
    prep["layers"] = layers
    # FC head: pre-transpose and pad C_out (2) to 128 for lane-dense stores.
    n_pad = _round_up(NUM_CLASSES, 128)
    fc_w = jnp.zeros((raw["fc_w"].shape[1], n_pad), jnp.float32)
    fc_w = fc_w.at[:, :NUM_CLASSES].set(raw["fc_w"].T)
    fc_b = jnp.zeros((n_pad,), jnp.float32).at[:NUM_CLASSES].set(raw["fc_b"])
    prep["fc"] = {"w_mat": fc_w.astype(jnp.bfloat16), "bias": fc_b}
    return prep


# --------------------------------------------------------------------------
# Deterministic parameter init (same shapes as torchvision resnet18 + new fc)
# --------------------------------------------------------------------------
def init_params(key):
    keys = iter(jax.random.split(key, 256))

    def conv_w(cout, cin, k):
        fan_in = cin * k * k
        return (jax.random.normal(next(keys), (cout, cin, k, k), jnp.float32)
                * (1.0 / jnp.sqrt(fan_in)))

    def bn_p(c):
        gamma = 1.0 + 0.1 * jax.random.normal(next(keys), (c,), jnp.float32)
        beta = 0.1 * jax.random.normal(next(keys), (c,), jnp.float32)
        mean = 0.1 * jax.random.normal(next(keys), (c,), jnp.float32)
        var = 0.5 + jax.nn.sigmoid(jax.random.normal(next(keys), (c,), jnp.float32))
        return (gamma, beta, mean, var)

    params = {"conv1_w": conv_w(64, 3, 7), "bn1": bn_p(64)}
    layers = []
    in_c = 64
    for li, out_c in enumerate([64, 128, 256, 512]):
        blocks = []
        for bi in range(2):
            stride = 2 if (li > 0 and bi == 0) else 1
            blk = {
                "conv1_w": conv_w(out_c, in_c, 3),
                "bn1": bn_p(out_c),
                "conv2_w": conv_w(out_c, out_c, 3),
                "bn2": bn_p(out_c),
            }
            if stride != 1 or in_c != out_c:
                blk["ds_w"] = conv_w(out_c, in_c, 1)
                blk["ds_bn"] = bn_p(out_c)
            blocks.append(blk)
            in_c = out_c
        layers.append(blocks)
    params["layers"] = layers
    params["fc_w"] = 0.05 * jax.random.normal(next(keys), (NUM_CLASSES, 512), jnp.float32)
    params["fc_b"] = 0.01 * jax.random.normal(next(keys), (NUM_CLASSES,), jnp.float32)
    return params


if __name__ == "__main__":
    key = jax.random.PRNGKey(0)
    pkey, xkey = jax.random.split(key)
    raw_params = init_params(pkey)
    prep = prepare_params(raw_params)   # BN folding / padding / bf16 cast: once
    # NCHW input like PyTorch (32x32 -> 1x1 spatial after the 5 stride-2 stages)
    x = jax.random.normal(xkey, (2, 3, 32, 32), jnp.float32)
    logits = jax.jit(custom_resnet_forward)(x, prep)
    jax.block_until_ready(logits)
    assert logits.shape == (2, NUM_CLASSES) and logits.dtype == jnp.float32
    assert bool(jnp.all(jnp.isfinite(logits)))
    print("KERNEL_OK")
</pallas_src>

<mosaic_0001>
module attributes {stable_mosaic.version = 11 : i64} {
  func.func @_mm_bias_kernel(%arg0: i32, %arg1: i32, %arg2: i32, %arg3: memref<128x147xbf16, #tpu.memory_space<vmem>>, %arg4: memref<147x64xbf16, #tpu.memory_space<vmem>>, %arg5: memref<1x64xf32, #tpu.memory_space<vmem>>, %arg6: memref<128x64xf32, #tpu.memory_space<vmem>>, %arg7: memref<128x64xf32, #tpu.memory_space<vmem>>) attributes {dimension_semantics = [#tpu.dimension_semantics<parallel>, #tpu.dimension_semantics<parallel>, #tpu.dimension_semantics<arbitrary>], iteration_bounds = array<i64: 4, 1, 1>, scalar_prefetch = 0 : i64, scratch_operands = 1 : i64, tpu.core_type = #tpu.core_type<tc>, window_params = [{transform_indices = @transform_0, window_bounds = array<i64: 128, 147>}, {transform_indices = @transform_1, window_bounds = array<i64: 147, 64>}, {transform_indices = @transform_2, window_bounds = array<i64: 1, 64>}, {transform_indices = @transform_3, window_bounds = array<i64: 128, 64>}]} {
    %c0_i32 = arith.constant 0 : i32
    %0 = arith.cmpi eq, %arg2, %c0_i32 : i32
    %1 = arith.extui %0 : i1 to i32
    %c0_i32_0 = arith.constant 0 : i32
    %2 = arith.cmpi ne, %1, %c0_i32_0 : i32
    scf.if %2 {
      %cst_10 = arith.constant 0.000000e+00 : f32
      %12 = vector.broadcast %cst_10 : f32 to vector<128x64xf32>
      %c0_11 = arith.constant 0 : index
      %c0_12 = arith.constant 0 : index
      %13 = vector.load %arg7[%c0_11, %c0_12] : memref<128x64xf32, #tpu.memory_space<vmem>>, vector<128x64xf32>
      tpu.vector_store %arg7[%c0_11, %c0_12], %12 {strides = array<i32>} : memref<128x64xf32, #tpu.memory_space<vmem>>, vector<128x64xf32>,
    } else {
    }
    %c0 = arith.constant 0 : index
    %c0_1 = arith.constant 0 : index
    %3 = vector.load %arg7[%c0, %c0_1] : memref<128x64xf32, #tpu.memory_space<vmem>>, vector<128x64xf32>
    %c0_2 = arith.constant 0 : index
    %c0_3 = arith.constant 0 : index
    %4 = vector.load %arg3[%c0_2, %c0_3] : memref<128x147xbf16, #tpu.memory_space<vmem>>, vector<128x147xbf16>
    %c0_4 = arith.constant 0 : index
    %c0_5 = arith.constant 0 : index
    %5 = vector.load %arg4[%c0_4, %c0_5] : memref<147x64xbf16, #tpu.memory_space<vmem>>, vector<147x64xbf16>
    %cst = arith.constant dense<0.000000e+00> : vector<128x64xf32>
    %6 = tpu.matmul %4, %5, %cst {dimension_numbers = #tpu.dot_dimension_numbers<[1], [0], [0], [1], [0, 0, 1, 1], [], []>} : vector<128x147xbf16>, vector<147x64xbf16>, vector<128x64xf32> -> vector<128x64xf32>
    %7 = arith.addf %3, %6 : vector<128x64xf32>
    %c0_6 = arith.constant 0 : index
    %c0_7 = arith.constant 0 : index
    %8 = vector.load %arg7[%c0_6, %c0_7] : memref<128x64xf32, #tpu.memory_space<vmem>>, vector<128x64xf32>
    tpu.vector_store %arg7[%c0_6, %c0_7], %7 {strides = array<i32>} : memref<128x64xf32, #tpu.memory_space<vmem>>, vector<128x64xf32>,
    %c0_i32_8 = arith.constant 0 : i32
    %9 = arith.cmpi eq, %arg2, %c0_i32_8 : i32
    %10 = arith.extui %9 : i1 to i32
    %c0_i32_9 = arith.constant 0 : i32
    %11 = arith.cmpi ne, %10, %c0_i32_9 : i32
    scf.if %11 {
      %c0_10 = arith.constant 0 : index
      %c0_11 = arith.constant 0 : index
      %12 = vector.load %arg7[%c0_10, %c0_11] : memref<128x64xf32, #tpu.memory_space<vmem>>, vector<128x64xf32>
      %c0_12 = arith.constant 0 : index
      %c0_13 = arith.constant 0 : index
      %13 = vector.load %arg5[%c0_12, %c0_13] : memref<1x64xf32, #tpu.memory_space<vmem>>, vector<1x64xf32>
      %14 = vector.broadcast %13 : vector<1x64xf32> to vector<128x64xf32>
      %15 = arith.addf %12, %14 : vector<128x64xf32>
      %cst_14 = arith.constant 0.000000e+00 : f32
      %16 = vector.broadcast %cst_14 : f32 to vector<128x64xf32>
      %17 = arith.maximumf %15, %16 : vector<128x64xf32>
      %c0_15 = arith.constant 0 : index
      %c0_16 = arith.constant 0 : index
      %18 = vector.load %arg6[%c0_15, %c0_16] : memref<128x64xf32, #tpu.memory_space<vmem>>, vector<128x64xf32>
      tpu.vector_store %arg6[%c0_15, %c0_16], %17 {strides = array<i32>} : memref<128x64xf32, #tpu.memory_space<vmem>>, vector<128x64xf32>,
    } else {
    }
    return
  }
  func.func @transform_0(%arg0: i32, %arg1: i32, %arg2: i32) -> (i32, i32) {
    %c0_i32 = arith.constant 0 : i32
    return %arg0, %arg2 : i32, i32
  }
  func.func @transform_1(%arg0: i32, %arg1: i32, %arg2: i32) -> (i32, i32) {
    %c0_i32 = arith.constant 0 : i32
    return %arg2, %arg1 : i32, i32
  }
  func.func @transform_2(%arg0: i32, %arg1: i32, %arg2: i32) -> (i32, i32) {
    %c0_i32 = arith.constant 0 : i32
    %c0_i32_0 = arith.constant 0 : i32
    return %c0_i32, %arg1 : i32, i32
  }
  func.func @transform_3(%arg0: i32, %arg1: i32, %arg2: i32) -> (i32, i32) {
    %c0_i32 = arith.constant 0 : i32
    return %arg0, %arg1 : i32, i32
  }
}

module attributes {stable_mosaic.version = 11 : i64} {
  func.func @_mm_bias_kernel(%arg0: i32, %arg1: i32, %arg2: i32, %arg3: memref<128x576xbf16, #tpu.memory_space<vmem>>, %arg4: memref<576x64xbf16, #tpu.memory_space<vmem>>, %arg5: memref<1x64xf32, #tpu.memory_space<vmem>>, %arg6: memref<128x64xf32, #tpu.memory_space<vmem>>, %arg7: memref<128x64xf32, #tpu.memory_space<vmem>>) attributes {dimension_semantics = [#tpu.dimension_semantics<parallel>, #tpu.dimension_semantics<parallel>, #tpu.dimension_semantics<arbitrary>], iteration_bounds = array<i64: 1, 1, 1>, scalar_prefetch = 0 : i64, scratch_operands = 1 : i64, tpu.core_type = #tpu.core_type<tc>, window_params = [{transform_indices = @transform_0, window_bounds = array<i64: 128, 576>}, {transform_indices = @transform_1, window_bounds = array<i64: 576, 64>}, {transform_indices = @transform_2, window_bounds = array<i64: 1, 64>}, {transform_indices = @transform_3, window_bounds = array<i64: 128, 64>}]} {
    %c0_i32 = arith.constant 0 : i32
    %0 = arith.cmpi eq, %arg2, %c0_i32 : i32
    %1 = arith.extui %0 : i1 to i32
    %c0_i32_0 = arith.constant 0 : i32
    %2 = arith.cmpi ne, %1, %c0_i32_0 : i32
    scf.if %2 {
      %cst_10 = arith.constant 0.000000e+00 : f32
      %12 = vector.broadcast %cst_10 : f32 to vector<128x64xf32>
      %c0_11 = arith.constant 0 : index
      %c0_12 = arith.constant 0 : index
      %13 = vector.load %arg7[%c0_11, %c0_12] : memref<128x64xf32, #tpu.memory_space<vmem>>, vector<128x64xf32>
      tpu.vector_store %arg7[%c0_11, %c0_12], %12 {strides = array<i32>} : memref<128x64xf32, #tpu.memory_space<vmem>>, vector<128x64xf32>,
    } else {
    }
    %c0 = arith.constant 0 : index
    %c0_1 = arith.constant 0 : index
    %3 = vector.load %arg7[%c0, %c0_1] : memref<128x64xf32, #tpu.memory_space<vmem>>, vector<128x64xf32>
    %c0_2 = arith.constant 0 : index
    %c0_3 = arith.constant 0 : index
    %4 = vector.load %arg3[%c0_2, %c0_3] : memref<128x576xbf16, #tpu.memory_space<vmem>>, vector<128x576xbf16>
    %c0_4 = arith.constant 0 : index
    %c0_5 = arith.constant 0 : index
    %5 = vector.load %arg4[%c0_4, %c0_5] : memref<576x64xbf16, #tpu.memory_space<vmem>>, vector<576x64xbf16>
    %cst = arith.constant dense<0.000000e+00> : vector<128x64xf32>
    %6 = tpu.matmul %4, %5, %cst {dimension_numbers = #tpu.dot_dimension_numbers<[1], [0], [0], [1], [0, 0, 1, 1], [], []>} : vector<128x576xbf16>, vector<576x64xbf16>, vector<128x64xf32> -> vector<128x64xf32>
    %7 = arith.addf %3, %6 : vector<128x64xf32>
    %c0_6 = arith.constant 0 : index
    %c0_7 = arith.constant 0 : index
    %8 = vector.load %arg7[%c0_6, %c0_7] : memref<128x64xf32, #tpu.memory_space<vmem>>, vector<128x64xf32>
    tpu.vector_store %arg7[%c0_6, %c0_7], %7 {strides = array<i32>} : memref<128x64xf32, #tpu.memory_space<vmem>>, vector<128x64xf32>,
    %c0_i32_8 = arith.constant 0 : i32
    %9 = arith.cmpi eq, %arg2, %c0_i32_8 : i32
    %10 = arith.extui %9 : i1 to i32
    %c0_i32_9 = arith.constant 0 : i32
    %11 = arith.cmpi ne, %10, %c0_i32_9 : i32
    scf.if %11 {
      %c0_10 = arith.constant 0 : index
      %c0_11 = arith.constant 0 : index
      %12 = vector.load %arg7[%c0_10, %c0_11] : memref<128x64xf32, #tpu.memory_space<vmem>>, vector<128x64xf32>
      %c0_12 = arith.constant 0 : index
      %c0_13 = arith.constant 0 : index
      %13 = vector.load %arg5[%c0_12, %c0_13] : memref<1x64xf32, #tpu.memory_space<vmem>>, vector<1x64xf32>
      %14 = vector.broadcast %13 : vector<1x64xf32> to vector<128x64xf32>
      %15 = arith.addf %12, %14 : vector<128x64xf32>
      %cst_14 = arith.constant 0.000000e+00 : f32
      %16 = vector.broadcast %cst_14 : f32 to vector<128x64xf32>
      %17 = arith.maximumf %15, %16 : vector<128x64xf32>
      %c0_15 = arith.constant 0 : index
      %c0_16 = arith.constant 0 : index
      %18 = vector.load %arg6[%c0_15, %c0_16] : memref<128x64xf32, #tpu.memory_space<vmem>>, vector<128x64xf32>
      tpu.vector_store %arg6[%c0_15, %c0_16], %17 {strides = array<i32>} : memref<128x64xf32, #tpu.memory_space<vmem>>, vector<128x64xf32>,
    } else {
    }
    return
  }
  func.func @transform_0(%arg0: i32, %arg1: i32, %arg2: i32) -> (i32, i32) {
    %c0_i32 = arith.constant 0 : i32
    return %arg0, %arg2 : i32, i32
  }
  func.func @transform_1(%arg0: i32, %arg1: i32, %arg2: i32) -> (i32, i32) {
    %c0_i32 = arith.constant 0 : i32
    return %arg2, %arg1 : i32, i32
  }
  func.func @transform_2(%arg0: i32, %arg1: i32, %arg2: i32) -> (i32, i32) {
    %c0_i32 = arith.constant 0 : i32
    %c0_i32_0 = arith.constant 0 : i32
    return %c0_i32, %arg1 : i32, i32
  }
  func.func @transform_3(%arg0: i32, %arg1: i32, %arg2: i32) -> (i32, i32) {
    %c0_i32 = arith.constant 0 : i32
    return %arg0, %arg1 : i32, i32
  }
}

module attributes {stable_mosaic.version = 11 : i64} {
  func.func @_mm_bias_res_kernel(%arg0: i32, %arg1: i32, %arg2: i32, %arg3: memref<128x576xbf16, #tpu.memory_space<vmem>>, %arg4: memref<576x64xbf16, #tpu.memory_space<vmem>>, %arg5: memref<1x64xf32, #tpu.memory_space<vmem>>, %arg6: memref<128x64xf32, #tpu.memory_space<vmem>>, %arg7: memref<128x64xf32, #tpu.memory_space<vmem>>, %arg8: memref<128x64xf32, #tpu.memory_space<vmem>>) attributes {dimension_semantics = [#tpu.dimension_semantics<parallel>, #tpu.dimension_semantics<parallel>, #tpu.dimension_semantics<arbitrary>], iteration_bounds = array<i64: 1, 1, 1>, scalar_prefetch = 0 : i64, scratch_operands = 1 : i64, tpu.core_type = #tpu.core_type<tc>, window_params = [{transform_indices = @transform_0, window_bounds = array<i64: 128, 576>}, {transform_indices = @transform_1, window_bounds = array<i64: 576, 64>}, {transform_indices = @transform_2, window_bounds = array<i64: 1, 64>}, {transform_indices = @transform_3, window_bounds = array<i64: 128, 64>}, {transform_indices = @transform_4, window_bounds = array<i64: 128, 64>}]} {
    %c0_i32 = arith.constant 0 : i32
    %0 = arith.cmpi eq, %arg2, %c0_i32 : i32
    %1 = arith.extui %0 : i1 to i32
    %c0_i32_0 = arith.constant 0 : i32
    %2 = arith.cmpi ne, %1, %c0_i32_0 : i32
    scf.if %2 {
      %cst_10 = arith.constant 0.000000e+00 : f32
      %12 = vector.broadcast %cst_10 : f32 to vector<128x64xf32>
      %c0_11 = arith.constant 0 : index
      %c0_12 = arith.constant 0 : index
      %13 = vector.load %arg8[%c0_11, %c0_12] : memref<128x64xf32, #tpu.memory_space<vmem>>, vector<128x64xf32>
      tpu.vector_store %arg8[%c0_11, %c0_12], %12 {strides = array<i32>} : memref<128x64xf32, #tpu.memory_space<vmem>>, vector<128x64xf32>,
    } else {
    }
    %c0 = arith.constant 0 : index
    %c0_1 = arith.constant 0 : index
    %3 = vector.load %arg8[%c0, %c0_1] : memref<128x64xf32, #tpu.memory_space<vmem>>, vector<128x64xf32>
    %c0_2 = arith.constant 0 : index
    %c0_3 = arith.constant 0 : index
    %4 = vector.load %arg3[%c0_2, %c0_3] : memref<128x576xbf16, #tpu.memory_space<vmem>>, vector<128x576xbf16>
    %c0_4 = arith.constant 0 : index
    %c0_5 = arith.constant 0 : index
    %5 = vector.load %arg4[%c0_4, %c0_5] : memref<576x64xbf16, #tpu.memory_space<vmem>>, vector<576x64xbf16>
    %cst = arith.constant dense<0.000000e+00> : vector<128x64xf32>
    %6 = tpu.matmul %4, %5, %cst {dimension_numbers = #tpu.dot_dimension_numbers<[1], [0], [0], [1], [0, 0, 1, 1], [], []>} : vector<128x576xbf16>, vector<576x64xbf16>, vector<128x64xf32> -> vector<128x64xf32>
    %7 = arith.addf %3, %6 : vector<128x64xf32>
    %c0_6 = arith.constant 0 : index
    %c0_7 = arith.constant 0 : index
    %8 = vector.load %arg8[%c0_6, %c0_7] : memref<128x64xf32, #tpu.memory_space<vmem>>, vector<128x64xf32>
    tpu.vector_store %arg8[%c0_6, %c0_7], %7 {strides = array<i32>} : memref<128x64xf32, #tpu.memory_space<vmem>>, vector<128x64xf32>,
    %c0_i32_8 = arith.constant 0 : i32
    %9 = arith.cmpi eq, %arg2, %c0_i32_8 : i32
    %10 = arith.extui %9 : i1 to i32
    %c0_i32_9 = arith.constant 0 : i32
    %11 = arith.cmpi ne, %10, %c0_i32_9 : i32
    scf.if %11 {
      %c0_10 = arith.constant 0 : index
      %c0_11 = arith.constant 0 : index
      %12 = vector.load %arg8[%c0_10, %c0_11] : memref<128x64xf32, #tpu.memory_space<vmem>>, vector<128x64xf32>
      %c0_12 = arith.constant 0 : index
      %c0_13 = arith.constant 0 : index
      %13 = vector.load %arg5[%c0_12, %c0_13] : memref<1x64xf32, #tpu.memory_space<vmem>>, vector<1x64xf32>
      %14 = vector.broadcast %13 : vector<1x64xf32> to vector<128x64xf32>
      %15 = arith.addf %12, %14 : vector<128x64xf32>
      %c0_14 = arith.constant 0 : index
      %c0_15 = arith.constant 0 : index
      %16 = vector.load %arg6[%c0_14, %c0_15] : memref<128x64xf32, #tpu.memory_space<vmem>>, vector<128x64xf32>
      %17 = arith.addf %15, %16 : vector<128x64xf32>
      %cst_16 = arith.constant 0.000000e+00 : f32
      %18 = vector.broadcast %cst_16 : f32 to vector<128x64xf32>
      %19 = arith.maximumf %17, %18 : vector<128x64xf32>
      %c0_17 = arith.constant 0 : index
      %c0_18 = arith.constant 0 : index
      %20 = vector.load %arg7[%c0_17, %c0_18] : memref<128x64xf32, #tpu.memory_space<vmem>>, vector<128x64xf32>
      tpu.vector_store %arg7[%c0_17, %c0_18], %19 {strides = array<i32>} : memref<128x64xf32, #tpu.memory_space<vmem>>, vector<128x64xf32>,
    } else {
    }
    return
  }
  func.func @transform_0(%arg0: i32, %arg1: i32, %arg2: i32) -> (i32, i32) {
    %c0_i32 = arith.constant 0 : i32
    return %arg0, %arg2 : i32, i32
  }
  func.func @transform_1(%arg0: i32, %arg1: i32, %arg2: i32) -> (i32, i32) {
    %c0_i32 = arith.constant 0 : i32
    return %arg2, %arg1 : i32, i32
  }
  func.func @transform_2(%arg0: i32, %arg1: i32, %arg2: i32) -> (i32, i32) {
    %c0_i32 = arith.constant 0 : i32
    %c0_i32_0 = arith.constant 0 : i32
    return %c0_i32, %arg1 : i32, i32
  }
  func.func @transform_3(%arg0: i32, %arg1: i32, %arg2: i32) -> (i32, i32) {
    %c0_i32 = arith.constant 0 : i32
    return %arg0, %arg1 : i32, i32
  }
  func.func @transform_4(%arg0: i32, %arg1: i32, %arg2: i32) -> (i32, i32) {
    %c0_i32 = arith.constant 0 : i32
    return %arg0, %arg1 : i32, i32
  }
}

module attributes {stable_mosaic.version = 11 : i64} {
  func.func @_mm_bias_kernel(%arg0: i32, %arg1: i32, %arg2: i32, %arg3: memref<128x576xbf16, #tpu.memory_space<vmem>>, %arg4: memref<576x64xbf16, #tpu.memory_space<vmem>>, %arg5: memref<1x64xf32, #tpu.memory_space<vmem>>, %arg6: memref<128x64xf32, #tpu.memory_space<vmem>>, %arg7: memref<128x64xf32, #tpu.memory_space<vmem>>) attributes {dimension_semantics = [#tpu.dimension_semantics<parallel>, #tpu.dimension_semantics<parallel>, #tpu.dimension_semantics<arbitrary>], iteration_bounds = array<i64: 1, 1, 1>, scalar_prefetch = 0 : i64, scratch_operands = 1 : i64, tpu.core_type = #tpu.core_type<tc>, window_params = [{transform_indices = @transform_0, window_bounds = array<i64: 128, 576>}, {transform_indices = @transform_1, window_bounds = array<i64: 576, 64>}, {transform_indices = @transform_2, window_bounds = array<i64: 1, 64>}, {transform_indices = @transform_3, window_bounds = array<i64: 128, 64>}]} {
    %c0_i32 = arith.constant 0 : i32
    %0 = arith.cmpi eq, %arg2, %c0_i32 : i32
    %1 = arith.extui %0 : i1 to i32
    %c0_i32_0 = arith.constant 0 : i32
    %2 = arith.cmpi ne, %1, %c0_i32_0 : i32
    scf.if %2 {
      %cst_10 = arith.constant 0.000000e+00 : f32
      %12 = vector.broadcast %cst_10 : f32 to vector<128x64xf32>
      %c0_11 = arith.constant 0 : index
      %c0_12 = arith.constant 0 : index
      %13 = vector.load %arg7[%c0_11, %c0_12] : memref<128x64xf32, #tpu.memory_space<vmem>>, vector<128x64xf32>
      tpu.vector_store %arg7[%c0_11, %c0_12], %12 {strides = array<i32>} : memref<128x64xf32, #tpu.memory_space<vmem>>, vector<128x64xf32>,
    } else {
    }
    %c0 = arith.constant 0 : index
    %c0_1 = arith.constant 0 : index
    %3 = vector.load %arg7[%c0, %c0_1] : memref<128x64xf32, #tpu.memory_space<vmem>>, vector<128x64xf32>
    %c0_2 = arith.constant 0 : index
    %c0_3 = arith.constant 0 : index
    %4 = vector.load %arg3[%c0_2, %c0_3] : memref<128x576xbf16, #tpu.memory_space<vmem>>, vector<128x576xbf16>
    %c0_4 = arith.constant 0 : index
    %c0_5 = arith.constant 0 : index
    %5 = vector.load %arg4[%c0_4, %c0_5] : memref<576x64xbf16, #tpu.memory_space<vmem>>, vector<576x64xbf16>
    %cst = arith.constant dense<0.000000e+00> : vector<128x64xf32>
    %6 = tpu.matmul %4, %5, %cst {dimension_numbers = #tpu.dot_dimension_numbers<[1], [0], [0], [1], [0, 0, 1, 1], [], []>} : vector<128x576xbf16>, vector<576x64xbf16>, vector<128x64xf32> -> vector<128x64xf32>
    %7 = arith.addf %3, %6 : vector<128x64xf32>
    %c0_6 = arith.constant 0 : index
    %c0_7 = arith.constant 0 : index
    %8 = vector.load %arg7[%c0_6, %c0_7] : memref<128x64xf32, #tpu.memory_space<vmem>>, vector<128x64xf32>
    tpu.vector_store %arg7[%c0_6, %c0_7], %7 {strides = array<i32>} : memref<128x64xf32, #tpu.memory_space<vmem>>, vector<128x64xf32>,
    %c0_i32_8 = arith.constant 0 : i32
    %9 = arith.cmpi eq, %arg2, %c0_i32_8 : i32
    %10 = arith.extui %9 : i1 to i32
    %c0_i32_9 = arith.constant 0 : i32
    %11 = arith.cmpi ne, %10, %c0_i32_9 : i32
    scf.if %11 {
      %c0_10 = arith.constant 0 : index
      %c0_11 = arith.constant 0 : index
      %12 = vector.load %arg7[%c0_10, %c0_11] : memref<128x64xf32, #tpu.memory_space<vmem>>, vector<128x64xf32>
      %c0_12 = arith.constant 0 : index
      %c0_13 = arith.constant 0 : index
      %13 = vector.load %arg5[%c0_12, %c0_13] : memref<1x64xf32, #tpu.memory_space<vmem>>, vector<1x64xf32>
      %14 = vector.broadcast %13 : vector<1x64xf32> to vector<128x64xf32>
      %15 = arith.addf %12, %14 : vector<128x64xf32>
      %cst_14 = arith.constant 0.000000e+00 : f32
      %16 = vector.broadcast %cst_14 : f32 to vector<128x64xf32>
      %17 = arith.maximumf %15, %16 : vector<128x64xf32>
      %c0_15 = arith.constant 0 : index
      %c0_16 = arith.constant 0 : index
      %18 = vector.load %arg6[%c0_15, %c0_16] : memref<128x64xf32, #tpu.memory_space<vmem>>, vector<128x64xf32>
      tpu.vector_store %arg6[%c0_15, %c0_16], %17 {strides = array<i32>} : memref<128x64xf32, #tpu.memory_space<vmem>>, vector<128x64xf32>,
    } else {
    }
    return
  }
  func.func @transform_0(%arg0: i32, %arg1: i32, %arg2: i32) -> (i32, i32) {
    %c0_i32 = arith.constant 0 : i32
    return %arg0, %arg2 : i32, i32
  }
  func.func @transform_1(%arg0: i32, %arg1: i32, %arg2: i32) -> (i32, i32) {
    %c0_i32 = arith.constant 0 : i32
    return %arg2, %arg1 : i32, i32
  }
  func.func @transform_2(%arg0: i32, %arg1: i32, %arg2: i32) -> (i32, i32) {
    %c0_i32 = arith.constant 0 : i32
    %c0_i32_0 = arith.constant 0 : i32
    return %c0_i32, %arg1 : i32, i32
  }
  func.func @transform_3(%arg0: i32, %arg1: i32, %arg2: i32) -> (i32, i32) {
    %c0_i32 = arith.constant 0 : i32
    return %arg0, %arg1 : i32, i32
  }
}

module attributes {stable_mosaic.version = 11 : i64} {
  func.func @_mm_bias_res_kernel(%arg0: i32, %arg1: i32, %arg2: i32, %arg3: memref<128x576xbf16, #tpu.memory_space<vmem>>, %arg4: memref<576x64xbf16, #tpu.memory_space<vmem>>, %arg5: memref<1x64xf32, #tpu.memory_space<vmem>>, %arg6: memref<128x64xf32, #tpu.memory_space<vmem>>, %arg7: memref<128x64xf32, #tpu.memory_space<vmem>>, %arg8: memref<128x64xf32, #tpu.memory_space<vmem>>) attributes {dimension_semantics = [#tpu.dimension_semantics<parallel>, #tpu.dimension_semantics<parallel>, #tpu.dimension_semantics<arbitrary>], iteration_bounds = array<i64: 1, 1, 1>, scalar_prefetch = 0 : i64, scratch_operands = 1 : i64, tpu.core_type = #tpu.core_type<tc>, window_params = [{transform_indices = @transform_0, window_bounds = array<i64: 128, 576>}, {transform_indices = @transform_1, window_bounds = array<i64: 576, 64>}, {transform_indices = @transform_2, window_bounds = array<i64: 1, 64>}, {transform_indices = @transform_3, window_bounds = array<i64: 128, 64>}, {transform_indices = @transform_4, window_bounds = array<i64: 128, 64>}]} {
    %c0_i32 = arith.constant 0 : i32
    %0 = arith.cmpi eq, %arg2, %c0_i32 : i32
    %1 = arith.extui %0 : i1 to i32
    %c0_i32_0 = arith.constant 0 : i32
    %2 = arith.cmpi ne, %1, %c0_i32_0 : i32
    scf.if %2 {
      %cst_10 = arith.constant 0.000000e+00 : f32
      %12 = vector.broadcast %cst_10 : f32 to vector<128x64xf32>
      %c0_11 = arith.constant 0 : index
      %c0_12 = arith.constant 0 : index
      %13 = vector.load %arg8[%c0_11, %c0_12] : memref<128x64xf32, #tpu.memory_space<vmem>>, vector<128x64xf32>
      tpu.vector_store %arg8[%c0_11, %c0_12], %12 {strides = array<i32>} : memref<128x64xf32, #tpu.memory_space<vmem>>, vector<128x64xf32>,
    } else {
    }
    %c0 = arith.constant 0 : index
    %c0_1 = arith.constant 0 : index
    %3 = vector.load %arg8[%c0, %c0_1] : memref<128x64xf32, #tpu.memory_space<vmem>>, vector<128x64xf32>
    %c0_2 = arith.constant 0 : index
    %c0_3 = arith.constant 0 : index
    %4 = vector.load %arg3[%c0_2, %c0_3] : memref<128x576xbf16, #tpu.memory_space<vmem>>, vector<128x576xbf16>
    %c0_4 = arith.constant 0 : index
    %c0_5 = arith.constant 0 : index
    %5 = vector.load %arg4[%c0_4, %c0_5] : memref<576x64xbf16, #tpu.memory_space<vmem>>, vector<576x64xbf16>
    %cst = arith.constant dense<0.000000e+00> : vector<128x64xf32>
    %6 = tpu.matmul %4, %5, %cst {dimension_numbers = #tpu.dot_dimension_numbers<[1], [0], [0], [1], [0, 0, 1, 1], [], []>} : vector<128x576xbf16>, vector<576x64xbf16>, vector<128x64xf32> -> vector<128x64xf32>
    %7 = arith.addf %3, %6 : vector<128x64xf32>
    %c0_6 = arith.constant 0 : index
    %c0_7 = arith.constant 0 : index
    %8 = vector.load %arg8[%c0_6, %c0_7] : memref<128x64xf32, #tpu.memory_space<vmem>>, vector<128x64xf32>
    tpu.vector_store %arg8[%c0_6, %c0_7], %7 {strides = array<i32>} : memref<128x64xf32, #tpu.memory_space<vmem>>, vector<128x64xf32>,
    %c0_i32_8 = arith.constant 0 : i32
    %9 = arith.cmpi eq, %arg2, %c0_i32_8 : i32
    %10 = arith.extui %9 : i1 to i32
    %c0_i32_9 = arith.constant 0 : i32
    %11 = arith.cmpi ne, %10, %c0_i32_9 : i32
    scf.if %11 {
      %c0_10 = arith.constant 0 : index
      %c0_11 = arith.constant 0 : index
      %12 = vector.load %arg8[%c0_10, %c0_11] : memref<128x64xf32, #tpu.memory_space<vmem>>, vector<128x64xf32>
      %c0_12 = arith.constant 0 : index
      %c0_13 = arith.constant 0 : index
      %13 = vector.load %arg5[%c0_12, %c0_13] : memref<1x64xf32, #tpu.memory_space<vmem>>, vector<1x64xf32>
      %14 = vector.broadcast %13 : vector<1x64xf32> to vector<128x64xf32>
      %15 = arith.addf %12, %14 : vector<128x64xf32>
      %c0_14 = arith.constant 0 : index
      %c0_15 = arith.constant 0 : index
      %16 = vector.load %arg6[%c0_14, %c0_15] : memref<128x64xf32, #tpu.memory_space<vmem>>, vector<128x64xf32>
      %17 = arith.addf %15, %16 : vector<128x64xf32>
      %cst_16 = arith.constant 0.000000e+00 : f32
      %18 = vector.broadcast %cst_16 : f32 to vector<128x64xf32>
      %19 = arith.maximumf %17, %18 : vector<128x64xf32>
      %c0_17 = arith.constant 0 : index
      %c0_18 = arith.constant 0 : index
      %20 = vector.load %arg7[%c0_17, %c0_18] : memref<128x64xf32, #tpu.memory_space<vmem>>, vector<128x64xf32>
      tpu.vector_store %arg7[%c0_17, %c0_18], %19 {strides = array<i32>} : memref<128x64xf32, #tpu.memory_space<vmem>>, vector<128x64xf32>,
    } else {
    }
    return
  }
  func.func @transform_0(%arg0: i32, %arg1: i32, %arg2: i32) -> (i32, i32) {
    %c0_i32 = arith.constant 0 : i32
    return %arg0, %arg2 : i32, i32
  }
  func.func @transform_1(%arg0: i32, %arg1: i32, %arg2: i32) -> (i32, i32) {
    %c0_i32 = arith.constant 0 : i32
    return %arg2, %arg1 : i32, i32
  }
  func.func @transform_2(%arg0: i32, %arg1: i32, %arg2: i32) -> (i32, i32) {
    %c0_i32 = arith.constant 0 : i32
    %c0_i32_0 = arith.constant 0 : i32
    return %c0_i32, %arg1 : i32, i32
  }
  func.func @transform_3(%arg0: i32, %arg1: i32, %arg2: i32) -> (i32, i32) {
    %c0_i32 = arith.constant 0 : i32
    return %arg0, %arg1 : i32, i32
  }
  func.func @transform_4(%arg0: i32, %arg1: i32, %arg2: i32) -> (i32, i32) {
    %c0_i32 = arith.constant 0 : i32
    return %arg0, %arg1 : i32, i32
  }
}

module attributes {stable_mosaic.version = 11 : i64} {
  func.func @_mm_bias_kernel(%arg0: i32, %arg1: i32, %arg2: i32, %arg3: memref<32x576xbf16, #tpu.memory_space<vmem>>, %arg4: memref<576x128xbf16, #tpu.memory_space<vmem>>, %arg5: memref<1x128xf32, #tpu.memory_space<vmem>>, %arg6: memref<32x128xf32, #tpu.memory_space<vmem>>, %arg7: memref<32x128xf32, #tpu.memory_space<vmem>>) attributes {dimension_semantics = [#tpu.dimension_semantics<parallel>, #tpu.dimension_semantics<parallel>, #tpu.dimension_semantics<arbitrary>], iteration_bounds = array<i64: 1, 1, 1>, scalar_prefetch = 0 : i64, scratch_operands = 1 : i64, tpu.core_type = #tpu.core_type<tc>, window_params = [{transform_indices = @transform_0, window_bounds = array<i64: 32, 576>}, {transform_indices = @transform_1, window_bounds = array<i64: 576, 128>}, {transform_indices = @transform_2, window_bounds = array<i64: 1, 128>}, {transform_indices = @transform_3, window_bounds = array<i64: 32, 128>}]} {
    %c0_i32 = arith.constant 0 : i32
    %0 = arith.cmpi eq, %arg2, %c0_i32 : i32
    %1 = arith.extui %0 : i1 to i32
    %c0_i32_0 = arith.constant 0 : i32
    %2 = arith.cmpi ne, %1, %c0_i32_0 : i32
    scf.if %2 {
      %cst_10 = arith.constant 0.000000e+00 : f32
      %12 = vector.broadcast %cst_10 : f32 to vector<32x128xf32>
      %c0_11 = arith.constant 0 : index
      %c0_12 = arith.constant 0 : index
      %13 = vector.load %arg7[%c0_11, %c0_12] : memref<32x128xf32, #tpu.memory_space<vmem>>, vector<32x128xf32>
      tpu.vector_store %arg7[%c0_11, %c0_12], %12 {strides = array<i32>} : memref<32x128xf32, #tpu.memory_space<vmem>>, vector<32x128xf32>,
    } else {
    }
    %c0 = arith.constant 0 : index
    %c0_1 = arith.constant 0 : index
    %3 = vector.load %arg7[%c0, %c0_1] : memref<32x128xf32, #tpu.memory_space<vmem>>, vector<32x128xf32>
    %c0_2 = arith.constant 0 : index
    %c0_3 = arith.constant 0 : index
    %4 = vector.load %arg3[%c0_2, %c0_3] : memref<32x576xbf16, #tpu.memory_space<vmem>>, vector<32x576xbf16>
    %c0_4 = arith.constant 0 : index
    %c0_5 = arith.constant 0 : index
    %5 = vector.load %arg4[%c0_4, %c0_5] : memref<576x128xbf16, #tpu.memory_space<vmem>>, vector<576x128xbf16>
    %cst = arith.constant dense<0.000000e+00> : vector<32x128xf32>
    %6 = tpu.matmul %4, %5, %cst {dimension_numbers = #tpu.dot_dimension_numbers<[1], [0], [0], [1], [0, 0, 1, 1], [], []>} : vector<32x576xbf16>, vector<576x128xbf16>, vector<32x128xf32> -> vector<32x128xf32>
    %7 = arith.addf %3, %6 : vector<32x128xf32>
    %c0_6 = arith.constant 0 : index
    %c0_7 = arith.constant 0 : index
    %8 = vector.load %arg7[%c0_6, %c0_7] : memref<32x128xf32, #tpu.memory_space<vmem>>, vector<32x128xf32>
    tpu.vector_store %arg7[%c0_6, %c0_7], %7 {strides = array<i32>} : memref<32x128xf32, #tpu.memory_space<vmem>>, vector<32x128xf32>,
    %c0_i32_8 = arith.constant 0 : i32
    %9 = arith.cmpi eq, %arg2, %c0_i32_8 : i32
    %10 = arith.extui %9 : i1 to i32
    %c0_i32_9 = arith.constant 0 : i32
    %11 = arith.cmpi ne, %10, %c0_i32_9 : i32
    scf.if %11 {
      %c0_10 = arith.constant 0 : index
      %c0_11 = arith.constant 0 : index
      %12 = vector.load %arg7[%c0_10, %c0_11] : memref<32x128xf32, #tpu.memory_space<vmem>>, vector<32x128xf32>
      %c0_12 = arith.constant 0 : index
      %c0_13 = arith.constant 0 : index
      %13 = vector.load %arg5[%c0_12, %c0_13] : memref<1x128xf32, #tpu.memory_space<vmem>>, vector<1x128xf32>
      %14 = vector.broadcast %13 : vector<1x128xf32> to vector<32x128xf32>
      %15 = arith.addf %12, %14 : vector<32x128xf32>
      %cst_14 = arith.constant 0.000000e+00 : f32
      %16 = vector.broadcast %cst_14 : f32 to vector<32x128xf32>
      %17 = arith.maximumf %15, %16 : vector<32x128xf32>
      %c0_15 = arith.constant 0 : index
      %c0_16 = arith.constant 0 : index
      %18 = vector.load %arg6[%c0_15, %c0_16] : memref<32x128xf32, #tpu.memory_space<vmem>>, vector<32x128xf32>
      tpu.vector_store %arg6[%c0_15, %c0_16], %17 {strides = array<i32>} : memref<32x128xf32, #tpu.memory_space<vmem>>, vector<32x128xf32>,
    } else {
    }
    return
  }
  func.func @transform_0(%arg0: i32, %arg1: i32, %arg2: i32) -> (i32, i32) {
    %c0_i32 = arith.constant 0 : i32
    return %arg0, %arg2 : i32, i32
  }
  func.func @transform_1(%arg0: i32, %arg1: i32, %arg2: i32) -> (i32, i32) {
    %c0_i32 = arith.constant 0 : i32
    return %arg2, %arg1 : i32, i32
  }
  func.func @transform_2(%arg0: i32, %arg1: i32, %arg2: i32) -> (i32, i32) {
    %c0_i32 = arith.constant 0 : i32
    %c0_i32_0 = arith.constant 0 : i32
    return %c0_i32, %arg1 : i32, i32
  }
  func.func @transform_3(%arg0: i32, %arg1: i32, %arg2: i32) -> (i32, i32) {
    %c0_i32 = arith.constant 0 : i32
    return %arg0, %arg1 : i32, i32
  }
}

module attributes {stable_mosaic.version = 11 : i64} {
  func.func @_mm_bias_kernel(%arg0: i32, %arg1: i32, %arg2: i32, %arg3: memref<32x64xbf16, #tpu.memory_space<vmem>>, %arg4: memref<64x128xbf16, #tpu.memory_space<vmem>>, %arg5: memref<1x128xf32, #tpu.memory_space<vmem>>, %arg6: memref<32x128xf32, #tpu.memory_space<vmem>>, %arg7: memref<32x128xf32, #tpu.memory_space<vmem>>) attributes {dimension_semantics = [#tpu.dimension_semantics<parallel>, #tpu.dimension_semantics<parallel>, #tpu.dimension_semantics<arbitrary>], iteration_bounds = array<i64: 1, 1, 1>, scalar_prefetch = 0 : i64, scratch_operands = 1 : i64, tpu.core_type = #tpu.core_type<tc>, window_params = [{transform_indices = @transform_0, window_bounds = array<i64: 32, 64>}, {transform_indices = @transform_1, window_bounds = array<i64: 64, 128>}, {transform_indices = @transform_2, window_bounds = array<i64: 1, 128>}, {transform_indices = @transform_3, window_bounds = array<i64: 32, 128>}]} {
    %c0_i32 = arith.constant 0 : i32
    %0 = arith.cmpi eq, %arg2, %c0_i32 : i32
    %1 = arith.extui %0 : i1 to i32
    %c0_i32_0 = arith.constant 0 : i32
    %2 = arith.cmpi ne, %1, %c0_i32_0 : i32
    scf.if %2 {
      %cst_10 = arith.constant 0.000000e+00 : f32
      %12 = vector.broadcast %cst_10 : f32 to vector<32x128xf32>
      %c0_11 = arith.constant 0 : index
      %c0_12 = arith.constant 0 : index
      %13 = vector.load %arg7[%c0_11, %c0_12] : memref<32x128xf32, #tpu.memory_space<vmem>>, vector<32x128xf32>
      tpu.vector_store %arg7[%c0_11, %c0_12], %12 {strides = array<i32>} : memref<32x128xf32, #tpu.memory_space<vmem>>, vector<32x128xf32>,
    } else {
    }
    %c0 = arith.constant 0 : index
    %c0_1 = arith.constant 0 : index
    %3 = vector.load %arg7[%c0, %c0_1] : memref<32x128xf32, #tpu.memory_space<vmem>>, vector<32x128xf32>
    %c0_2 = arith.constant 0 : index
    %c0_3 = arith.constant 0 : index
    %4 = vector.load %arg3[%c0_2, %c0_3] : memref<32x64xbf16, #tpu.memory_space<vmem>>, vector<32x64xbf16>
    %c0_4 = arith.constant 0 : index
    %c0_5 = arith.constant 0 : index
    %5 = vector.load %arg4[%c0_4, %c0_5] : memref<64x128xbf16, #tpu.memory_space<vmem>>, vector<64x128xbf16>
    %cst = arith.constant dense<0.000000e+00> : vector<32x128xf32>
    %6 = tpu.matmul %4, %5, %cst {dimension_numbers = #tpu.dot_dimension_numbers<[1], [0], [0], [1], [0, 0, 1, 1], [], []>} : vector<32x64xbf16>, vector<64x128xbf16>, vector<32x128xf32> -> vector<32x128xf32>
    %7 = arith.addf %3, %6 : vector<32x128xf32>
    %c0_6 = arith.constant 0 : index
    %c0_7 = arith.constant 0 : index
    %8 = vector.load %arg7[%c0_6, %c0_7] : memref<32x128xf32, #tpu.memory_space<vmem>>, vector<32x128xf32>
    tpu.vector_store %arg7[%c0_6, %c0_7], %7 {strides = array<i32>} : memref<32x128xf32, #tpu.memory_space<vmem>>, vector<32x128xf32>,
    %c0_i32_8 = arith.constant 0 : i32
    %9 = arith.cmpi eq, %arg2, %c0_i32_8 : i32
    %10 = arith.extui %9 : i1 to i32
    %c0_i32_9 = arith.constant 0 : i32
    %11 = arith.cmpi ne, %10, %c0_i32_9 : i32
    scf.if %11 {
      %c0_10 = arith.constant 0 : index
      %c0_11 = arith.constant 0 : index
      %12 = vector.load %arg7[%c0_10, %c0_11] : memref<32x128xf32, #tpu.memory_space<vmem>>, vector<32x128xf32>
      %c0_12 = arith.constant 0 : index
      %c0_13 = arith.constant 0 : index
      %13 = vector.load %arg5[%c0_12, %c0_13] : memref<1x128xf32, #tpu.memory_space<vmem>>, vector<1x128xf32>
      %14 = vector.broadcast %13 : vector<1x128xf32> to vector<32x128xf32>
      %15 = arith.addf %12, %14 : vector<32x128xf32>
      %c0_14 = arith.constant 0 : index
      %c0_15 = arith.constant 0 : index
      %16 = vector.load %arg6[%c0_14, %c0_15] : memref<32x128xf32, #tpu.memory_space<vmem>>, vector<32x128xf32>
      tpu.vector_store %arg6[%c0_14, %c0_15], %15 {strides = array<i32>} : memref<32x128xf32, #tpu.memory_space<vmem>>, vector<32x128xf32>,
    } else {
    }
    return
  }
  func.func @transform_0(%arg0: i32, %arg1: i32, %arg2: i32) -> (i32, i32) {
    %c0_i32 = arith.constant 0 : i32
    return %arg0, %arg2 : i32, i32
  }
  func.func @transform_1(%arg0: i32, %arg1: i32, %arg2: i32) -> (i32, i32) {
    %c0_i32 = arith.constant 0 : i32
    return %arg2, %arg1 : i32, i32
  }
  func.func @transform_2(%arg0: i32, %arg1: i32, %arg2: i32) -> (i32, i32) {
    %c0_i32 = arith.constant 0 : i32
    %c0_i32_0 = arith.constant 0 : i32
    return %c0_i32, %arg1 : i32, i32
  }
  func.func @transform_3(%arg0: i32, %arg1: i32, %arg2: i32) -> (i32, i32) {
    %c0_i32 = arith.constant 0 : i32
    return %arg0, %arg1 : i32, i32
  }
}

module attributes {stable_mosaic.version = 11 : i64} {
  func.func @_mm_bias_res_kernel(%arg0: i32, %arg1: i32, %arg2: i32, %arg3: memref<32x128xbf16, #tpu.memory_space<vmem>>, %arg4: memref<128x128xbf16, #tpu.memory_space<vmem>>, %arg5: memref<1x128xf32, #tpu.memory_space<vmem>>, %arg6: memref<32x128xf32, #tpu.memory_space<vmem>>, %arg7: memref<32x128xf32, #tpu.memory_space<vmem>>, %arg8: memref<32x128xf32, #tpu.memory_space<vmem>>) attributes {dimension_semantics = [#tpu.dimension_semantics<parallel>, #tpu.dimension_semantics<parallel>, #tpu.dimension_semantics<arbitrary>], iteration_bounds = array<i64: 1, 1, 9>, scalar_prefetch = 0 : i64, scratch_operands = 1 : i64, tpu.core_type = #tpu.core_type<tc>, window_params = [{transform_indices = @transform_0, window_bounds = array<i64: 32, 128>}, {transform_indices = @transform_1, window_bounds = array<i64: 128, 128>}, {transform_indices = @transform_2, window_bounds = array<i64: 1, 128>}, {transform_indices = @transform_3, window_bounds = array<i64: 32, 128>}, {transform_indices = @transform_4, window_bounds = array<i64: 32, 128>}]} {
    %c0_i32 = arith.constant 0 : i32
    %0 = arith.cmpi eq, %arg2, %c0_i32 : i32
    %1 = arith.extui %0 : i1 to i32
    %c0_i32_0 = arith.constant 0 : i32
    %2 = arith.cmpi ne, %1, %c0_i32_0 : i32
    scf.if %2 {
      %cst_9 = arith.constant 0.000000e+00 : f32
      %12 = vector.broadcast %cst_9 : f32 to vector<32x128xf32>
      %c0_10 = arith.constant 0 : index
      %c0_11 = arith.constant 0 : index
      %13 = vector.load %arg8[%c0_10, %c0_11] : memref<32x128xf32, #tpu.memory_space<vmem>>, vector<32x128xf32>
      tpu.vector_store %arg8[%c0_10, %c0_11], %12 {strides = array<i32>} : memref<32x128xf32, #tpu.memory_space<vmem>>, vector<32x128xf32>,
    } else {
    }
    %c0 = arith.constant 0 : index
    %c0_1 = arith.constant 0 : index
    %3 = vector.load %arg8[%c0, %c0_1] : memref<32x128xf32, #tpu.memory_space<vmem>>, vector<32x128xf32>
    %c0_2 = arith.constant 0 : index
    %c0_3 = arith.constant 0 : index
    %4 = vector.load %arg3[%c0_2, %c0_3] : memref<32x128xbf16, #tpu.memory_space<vmem>>, vector<32x128xbf16>
    %c0_4 = arith.constant 0 : index
    %c0_5 = arith.constant 0 : index
    %5 = vector.load %arg4[%c0_4, %c0_5] : memref<128x128xbf16, #tpu.memory_space<vmem>>, vector<128x128xbf16>
    %cst = arith.constant dense<0.000000e+00> : vector<32x128xf32>
    %6 = tpu.matmul %4, %5, %cst {dimension_numbers = #tpu.dot_dimension_numbers<[1], [0], [0], [1], [0, 0, 1, 1], [], []>} : vector<32x128xbf16>, vector<128x128xbf16>, vector<32x128xf32> -> vector<32x128xf32>
    %7 = arith.addf %3, %6 : vector<32x128xf32>
    %c0_6 = arith.constant 0 : index
    %c0_7 = arith.constant 0 : index
    %8 = vector.load %arg8[%c0_6, %c0_7] : memref<32x128xf32, #tpu.memory_space<vmem>>, vector<32x128xf32>
    tpu.vector_store %arg8[%c0_6, %c0_7], %7 {strides = array<i32>} : memref<32x128xf32, #tpu.memory_space<vmem>>, vector<32x128xf32>,
    %c8_i32 = arith.constant 8 : i32
    %9 = arith.cmpi eq, %arg2, %c8_i32 : i32
    %10 = arith.extui %9 : i1 to i32
    %c0_i32_8 = arith.constant 0 : i32
    %11 = arith.cmpi ne, %10, %c0_i32_8 : i32
    scf.if %11 {
      %c0_9 = arith.constant 0 : index
      %c0_10 = arith.constant 0 : index
      %12 = vector.load %arg8[%c0_9, %c0_10] : memref<32x128xf32, #tpu.memory_space<vmem>>, vector<32x128xf32>
      %c0_11 = arith.constant 0 : index
      %c0_12 = arith.constant 0 : index
      %13 = vector.load %arg5[%c0_11, %c0_12] : memref<1x128xf32, #tpu.memory_space<vmem>>, vector<1x128xf32>
      %14 = vector.broadcast %13 : vector<1x128xf32> to vector<32x128xf32>
      %15 = arith.addf %12, %14 : vector<32x128xf32>
      %c0_13 = arith.constant 0 : index
      %c0_14 = arith.constant 0 : index
      %16 = vector.load %arg6[%c0_13, %c0_14] : memref<32x128xf32, #tpu.memory_space<vmem>>, vector<32x128xf32>
      %17 = arith.addf %15, %16 : vector<32x128xf32>
      %cst_15 = arith.constant 0.000000e+00 : f32
      %18 = vector.broadcast %cst_15 : f32 to vector<32x128xf32>
      %19 = arith.maximumf %17, %18 : vector<32x128xf32>
      %c0_16 = arith.constant 0 : index
      %c0_17 = arith.constant 0 : index
      %20 = vector.load %arg7[%c0_16, %c0_17] : memref<32x128xf32, #tpu.memory_space<vmem>>, vector<32x128xf32>
      tpu.vector_store %arg7[%c0_16, %c0_17], %19 {strides = array<i32>} : memref<32x128xf32, #tpu.memory_space<vmem>>, vector<32x128xf32>,
    } else {
    }
    return
  }
  func.func @transform_0(%arg0: i32, %arg1: i32, %arg2: i32) -> (i32, i32) {
    %c0_i32 = arith.constant 0 : i32
    return %arg0, %arg2 : i32, i32
  }
  func.func @transform_1(%arg0: i32, %arg1: i32, %arg2: i32) -> (i32, i32) {
    %c0_i32 = arith.constant 0 : i32
    return %arg2, %arg1 : i32, i32
  }
  func.func @transform_2(%arg0: i32, %arg1: i32, %arg2: i32) -> (i32, i32) {
    %c0_i32 = arith.constant 0 : i32
    %c0_i32_0 = arith.constant 0 : i32
    return %c0_i32, %arg1 : i32, i32
  }
  func.func @transform_3(%arg0: i32, %arg1: i32, %arg2: i32) -> (i32, i32) {
    %c0_i32 = arith.constant 0 : i32
    return %arg0, %arg1 : i32, i32
  }
  func.func @transform_4(%arg0: i32, %arg1: i32, %arg2: i32) -> (i32, i32) {
    %c0_i32 = arith.constant 0 : i32
    return %arg0, %arg1 : i32, i32
  }
}

module attributes {stable_mosaic.version = 11 : i64} {
  func.func @_mm_bias_kernel(%arg0: i32, %arg1: i32, %arg2: i32, %arg3: memref<32x128xbf16, #tpu.memory_space<vmem>>, %arg4: memref<128x128xbf16, #tpu.memory_space<vmem>>, %arg5: memref<1x128xf32, #tpu.memory_space<vmem>>, %arg6: memref<32x128xf32, #tpu.memory_space<vmem>>, %arg7: memref<32x128xf32, #tpu.memory_space<vmem>>) attributes {dimension_semantics = [#tpu.dimension_semantics<parallel>, #tpu.dimension_semantics<parallel>, #tpu.dimension_semantics<arbitrary>], iteration_bounds = array<i64: 1, 1, 9>, scalar_prefetch = 0 : i64, scratch_operands = 1 : i64, tpu.core_type = #tpu.core_type<tc>, window_params = [{transform_indices = @transform_0, window_bounds = array<i64: 32, 128>}, {transform_indices = @transform_1, window_bounds = array<i64: 128, 128>}, {transform_indices = @transform_2, window_bounds = array<i64: 1, 128>}, {transform_indices = @transform_3, window_bounds = array<i64: 32, 128>}]} {
    %c0_i32 = arith.constant 0 : i32
    %0 = arith.cmpi eq, %arg2, %c0_i32 : i32
    %1 = arith.extui %0 : i1 to i32
    %c0_i32_0 = arith.constant 0 : i32
    %2 = arith.cmpi ne, %1, %c0_i32_0 : i32
    scf.if %2 {
      %cst_9 = arith.constant 0.000000e+00 : f32
      %12 = vector.broadcast %cst_9 : f32 to vector<32x128xf32>
      %c0_10 = arith.constant 0 : index
      %c0_11 = arith.constant 0 : index
      %13 = vector.load %arg7[%c0_10, %c0_11] : memref<32x128xf32, #tpu.memory_space<vmem>>, vector<32x128xf32>
      tpu.vector_store %arg7[%c0_10, %c0_11], %12 {strides = array<i32>} : memref<32x128xf32, #tpu.memory_space<vmem>>, vector<32x128xf32>,
    } else {
    }
    %c0 = arith.constant 0 : index
    %c0_1 = arith.constant 0 : index
    %3 = vector.load %arg7[%c0, %c0_1] : memref<32x128xf32, #tpu.memory_space<vmem>>, vector<32x128xf32>
    %c0_2 = arith.constant 0 : index
    %c0_3 = arith.constant 0 : index
    %4 = vector.load %arg3[%c0_2, %c0_3] : memref<32x128xbf16, #tpu.memory_space<vmem>>, vector<32x128xbf16>
    %c0_4 = arith.constant 0 : index
    %c0_5 = arith.constant 0 : index
    %5 = vector.load %arg4[%c0_4, %c0_5] : memref<128x128xbf16, #tpu.memory_space<vmem>>, vector<128x128xbf16>
    %cst = arith.constant dense<0.000000e+00> : vector<32x128xf32>
    %6 = tpu.matmul %4, %5, %cst {dimension_numbers = #tpu.dot_dimension_numbers<[1], [0], [0], [1], [0, 0, 1, 1], [], []>} : vector<32x128xbf16>, vector<128x128xbf16>, vector<32x128xf32> -> vector<32x128xf32>
    %7 = arith.addf %3, %6 : vector<32x128xf32>
    %c0_6 = arith.constant 0 : index
    %c0_7 = arith.constant 0 : index
    %8 = vector.load %arg7[%c0_6, %c0_7] : memref<32x128xf32, #tpu.memory_space<vmem>>, vector<32x128xf32>
    tpu.vector_store %arg7[%c0_6, %c0_7], %7 {strides = array<i32>} : memref<32x128xf32, #tpu.memory_space<vmem>>, vector<32x128xf32>,
    %c8_i32 = arith.constant 8 : i32
    %9 = arith.cmpi eq, %arg2, %c8_i32 : i32
    %10 = arith.extui %9 : i1 to i32
    %c0_i32_8 = arith.constant 0 : i32
    %11 = arith.cmpi ne, %10, %c0_i32_8 : i32
    scf.if %11 {
      %c0_9 = arith.constant 0 : index
      %c0_10 = arith.constant 0 : index
      %12 = vector.load %arg7[%c0_9, %c0_10] : memref<32x128xf32, #tpu.memory_space<vmem>>, vector<32x128xf32>
      %c0_11 = arith.constant 0 : index
      %c0_12 = arith.constant 0 : index
      %13 = vector.load %arg5[%c0_11, %c0_12] : memref<1x128xf32, #tpu.memory_space<vmem>>, vector<1x128xf32>
      %14 = vector.broadcast %13 : vector<1x128xf32> to vector<32x128xf32>
      %15 = arith.addf %12, %14 : vector<32x128xf32>
      %cst_13 = arith.constant 0.000000e+00 : f32
      %16 = vector.broadcast %cst_13 : f32 to vector<32x128xf32>
      %17 = arith.maximumf %15, %16 : vector<32x128xf32>
      %c0_14 = arith.constant 0 : index
      %c0_15 = arith.constant 0 : index
      %18 = vector.load %arg6[%c0_14, %c0_15] : memref<32x128xf32, #tpu.memory_space<vmem>>, vector<32x128xf32>
      tpu.vector_store %arg6[%c0_14, %c0_15], %17 {strides = array<i32>} : memref<32x128xf32, #tpu.memory_space<vmem>>, vector<32x128xf32>,
    } else {
    }
    return
  }
  func.func @transform_0(%arg0: i32, %arg1: i32, %arg2: i32) -> (i32, i32) {
    %c0_i32 = arith.constant 0 : i32
    return %arg0, %arg2 : i32, i32
  }
  func.func @transform_1(%arg0: i32, %arg1: i32, %arg2: i32) -> (i32, i32) {
    %c0_i32 = arith.constant 0 : i32
    return %arg2, %arg1 : i32, i32
  }
  func.func @transform_2(%arg0: i32, %arg1: i32, %arg2: i32) -> (i32, i32) {
    %c0_i32 = arith.constant 0 : i32
    %c0_i32_0 = arith.constant 0 : i32
    return %c0_i32, %arg1 : i32, i32
  }
  func.func @transform_3(%arg0: i32, %arg1: i32, %arg2: i32) -> (i32, i32) {
    %c0_i32 = arith.constant 0 : i32
    return %arg0, %arg1 : i32, i32
  }
}

module attributes {stable_mosaic.version = 11 : i64} {
  func.func @_mm_bias_kernel(%arg0: i32, %arg1: i32, %arg2: i32, %arg3: memref<8x128xbf16, #tpu.memory_space<vmem>>, %arg4: memref<128x256xbf16, #tpu.memory_space<vmem>>, %arg5: memref<1x256xf32, #tpu.memory_space<vmem>>, %arg6: memref<8x256xf32, #tpu.memory_space<vmem>>, %arg7: memref<8x256xf32, #tpu.memory_space<vmem>>) attributes {dimension_semantics = [#tpu.dimension_semantics<parallel>, #tpu.dimension_semantics<parallel>, #tpu.dimension_semantics<arbitrary>], iteration_bounds = array<i64: 1, 1, 9>, scalar_prefetch = 0 : i64, scratch_operands = 1 : i64, tpu.core_type = #tpu.core_type<tc>, window_params = [{transform_indices = @transform_0, window_bounds = array<i64: 8, 128>}, {transform_indices = @transform_1, window_bounds = array<i64: 128, 256>}, {transform_indices = @transform_2, window_bounds = array<i64: 1, 256>}, {transform_indices = @transform_3, window_bounds = array<i64: 8, 256>}]} {
    %c0_i32 = arith.constant 0 : i32
    %0 = arith.cmpi eq, %arg2, %c0_i32 : i32
    %1 = arith.extui %0 : i1 to i32
    %c0_i32_0 = arith.constant 0 : i32
    %2 = arith.cmpi ne, %1, %c0_i32_0 : i32
    scf.if %2 {
      %cst_9 = arith.constant 0.000000e+00 : f32
      %12 = vector.broadcast %cst_9 : f32 to vector<8x256xf32>
      %c0_10 = arith.constant 0 : index
      %c0_11 = arith.constant 0 : index
      %13 = vector.load %arg7[%c0_10, %c0_11] : memref<8x256xf32, #tpu.memory_space<vmem>>, vector<8x256xf32>
      tpu.vector_store %arg7[%c0_10, %c0_11], %12 {strides = array<i32>} : memref<8x256xf32, #tpu.memory_space<vmem>>, vector<8x256xf32>,
    } else {
    }
    %c0 = arith.constant 0 : index
    %c0_1 = arith.constant 0 : index
    %3 = vector.load %arg7[%c0, %c0_1] : memref<8x256xf32, #tpu.memory_space<vmem>>, vector<8x256xf32>
    %c0_2 = arith.constant 0 : index
    %c0_3 = arith.constant 0 : index
    %4 = vector.load %arg3[%c0_2, %c0_3] : memref<8x128xbf16, #tpu.memory_space<vmem>>, vector<8x128xbf16>
    %c0_4 = arith.constant 0 : index
    %c0_5 = arith.constant 0 : index
    %5 = vector.load %arg4[%c0_4, %c0_5] : memref<128x256xbf16, #tpu.memory_space<vmem>>, vector<128x256xbf16>
    %cst = arith.constant dense<0.000000e+00> : vector<8x256xf32>
    %6 = tpu.matmul %4, %5, %cst {dimension_numbers = #tpu.dot_dimension_numbers<[1], [0], [0], [1], [0, 0, 1, 1], [], []>} : vector<8x128xbf16>, vector<128x256xbf16>, vector<8x256xf32> -> vector<8x256xf32>
    %7 = arith.addf %3, %6 : vector<8x256xf32>
    %c0_6 = arith.constant 0 : index
    %c0_7 = arith.constant 0 : index
    %8 = vector.load %arg7[%c0_6, %c0_7] : memref<8x256xf32, #tpu.memory_space<vmem>>, vector<8x256xf32>
    tpu.vector_store %arg7[%c0_6, %c0_7], %7 {strides = array<i32>} : memref<8x256xf32, #tpu.memory_space<vmem>>, vector<8x256xf32>,
    %c8_i32 = arith.constant 8 : i32
    %9 = arith.cmpi eq, %arg2, %c8_i32 : i32
    %10 = arith.extui %9 : i1 to i32
    %c0_i32_8 = arith.constant 0 : i32
    %11 = arith.cmpi ne, %10, %c0_i32_8 : i32
    scf.if %11 {
      %c0_9 = arith.constant 0 : index
      %c0_10 = arith.constant 0 : index
      %12 = vector.load %arg7[%c0_9, %c0_10] : memref<8x256xf32, #tpu.memory_space<vmem>>, vector<8x256xf32>
      %c0_11 = arith.constant 0 : index
      %c0_12 = arith.constant 0 : index
      %13 = vector.load %arg5[%c0_11, %c0_12] : memref<1x256xf32, #tpu.memory_space<vmem>>, vector<1x256xf32>
      %14 = vector.broadcast %13 : vector<1x256xf32> to vector<8x256xf32>
      %15 = arith.addf %12, %14 : vector<8x256xf32>
      %cst_13 = arith.constant 0.000000e+00 : f32
      %16 = vector.broadcast %cst_13 : f32 to vector<8x256xf32>
      %17 = arith.maximumf %15, %16 : vector<8x256xf32>
      %c0_14 = arith.constant 0 : index
      %c0_15 = arith.constant 0 : index
      %18 = vector.load %arg6[%c0_14, %c0_15] : memref<8x256xf32, #tpu.memory_space<vmem>>, vector<8x256xf32>
      tpu.vector_store %arg6[%c0_14, %c0_15], %17 {strides = array<i32>} : memref<8x256xf32, #tpu.memory_space<vmem>>, vector<8x256xf32>,
    } else {
    }
    return
  }
  func.func @transform_0(%arg0: i32, %arg1: i32, %arg2: i32) -> (i32, i32) {
    %c0_i32 = arith.constant 0 : i32
    return %arg0, %arg2 : i32, i32
  }
  func.func @transform_1(%arg0: i32, %arg1: i32, %arg2: i32) -> (i32, i32) {
    %c0_i32 = arith.constant 0 : i32
    return %arg2, %arg1 : i32, i32
  }
  func.func @transform_2(%arg0: i32, %arg1: i32, %arg2: i32) -> (i32, i32) {
    %c0_i32 = arith.constant 0 : i32
    %c0_i32_0 = arith.constant 0 : i32
    return %c0_i32, %arg1 : i32, i32
  }
  func.func @transform_3(%arg0: i32, %arg1: i32, %arg2: i32) -> (i32, i32) {
    %c0_i32 = arith.constant 0 : i32
    return %arg0, %arg1 : i32, i32
  }
}

module attributes {stable_mosaic.version = 11 : i64} {
  func.func @_mm_bias_kernel(%arg0: i32, %arg1: i32, %arg2: i32, %arg3: memref<8x256xbf16, #tpu.memory_space<vmem>>, %arg4: memref<256x256xbf16, #tpu.memory_space<vmem>>, %arg5: memref<1x256xf32, #tpu.memory_space<vmem>>, %arg6: memref<8x256xf32, #tpu.memory_space<vmem>>, %arg7: memref<8x256xf32, #tpu.memory_space<vmem>>) attributes {dimension_semantics = [#tpu.dimension_semantics<parallel>, #tpu.dimension_semantics<parallel>, #tpu.dimension_semantics<arbitrary>], iteration_bounds = array<i64: 1, 1, 9>, scalar_prefetch = 0 : i64, scratch_operands = 1 : i64, tpu.core_type = #tpu.core_type<tc>, window_params = [{transform_indices = @transform_0, window_bounds = array<i64: 8, 256>}, {transform_indices = @transform_1, window_bounds = array<i64: 256, 256>}, {transform_indices = @transform_2, window_bounds = array<i64: 1, 256>}, {transform_indices = @transform_3, window_bounds = array<i64: 8, 256>}]} {
    %c0_i32 = arith.constant 0 : i32
    %0 = arith.cmpi eq, %arg2, %c0_i32 : i32
    %1 = arith.extui %0 : i1 to i32
    %c0_i32_0 = arith.constant 0 : i32
    %2 = arith.cmpi ne, %1, %c0_i32_0 : i32
    scf.if %2 {
      %cst_9 = arith.constant 0.000000e+00 : f32
      %12 = vector.broadcast %cst_9 : f32 to vector<8x256xf32>
      %c0_10 = arith.constant 0 : index
      %c0_11 = arith.constant 0 : index
      %13 = vector.load %arg7[%c0_10, %c0_11] : memref<8x256xf32, #tpu.memory_space<vmem>>, vector<8x256xf32>
      tpu.vector_store %arg7[%c0_10, %c0_11], %12 {strides = array<i32>} : memref<8x256xf32, #tpu.memory_space<vmem>>, vector<8x256xf32>,
    } else {
    }
    %c0 = arith.constant 0 : index
    %c0_1 = arith.constant 0 : index
    %3 = vector.load %arg7[%c0, %c0_1] : memref<8x256xf32, #tpu.memory_space<vmem>>, vector<8x256xf32>
    %c0_2 = arith.constant 0 : index
    %c0_3 = arith.constant 0 : index
    %4 = vector.load %arg3[%c0_2, %c0_3] : memref<8x256xbf16, #tpu.memory_space<vmem>>, vector<8x256xbf16>
    %c0_4 = arith.constant 0 : index
    %c0_5 = arith.constant 0 : index
    %5 = vector.load %arg4[%c0_4, %c0_5] : memref<256x256xbf16, #tpu.memory_space<vmem>>, vector<256x256xbf16>
    %cst = arith.constant dense<0.000000e+00> : vector<8x256xf32>
    %6 = tpu.matmul %4, %5, %cst {dimension_numbers = #tpu.dot_dimension_numbers<[1], [0], [0], [1], [0, 0, 1, 1], [], []>} : vector<8x256xbf16>, vector<256x256xbf16>, vector<8x256xf32> -> vector<8x256xf32>
    %7 = arith.addf %3, %6 : vector<8x256xf32>
    %c0_6 = arith.constant 0 : index
    %c0_7 = arith.constant 0 : index
    %8 = vector.load %arg7[%c0_6, %c0_7] : memref<8x256xf32, #tpu.memory_space<vmem>>, vector<8x256xf32>
    tpu.vector_store %arg7[%c0_6, %c0_7], %7 {strides = array<i32>} : memref<8x256xf32, #tpu.memory_space<vmem>>, vector<8x256xf32>,
    %c8_i32 = arith.constant 8 : i32
    %9 = arith.cmpi eq, %arg2, %c8_i32 : i32
    %10 = arith.extui %9 : i1 to i32
    %c0_i32_8 = arith.constant 0 : i32
    %11 = arith.cmpi ne, %10, %c0_i32_8 : i32
    scf.if %11 {
      %c0_9 = arith.constant 0 : index
      %c0_10 = arith.constant 0 : index
      %12 = vector.load %arg7[%c0_9, %c0_10] : memref<8x256xf32, #tpu.memory_space<vmem>>, vector<8x256xf32>
      %c0_11 = arith.constant 0 : index
      %c0_12 = arith.constant 0 : index
      %13 = vector.load %arg5[%c0_11, %c0_12] : memref<1x256xf32, #tpu.memory_space<vmem>>, vector<1x256xf32>
      %14 = vector.broadcast %13 : vector<1x256xf32> to vector<8x256xf32>
      %15 = arith.addf %12, %14 : vector<8x256xf32>
      %cst_13 = arith.constant 0.000000e+00 : f32
      %16 = vector.broadcast %cst_13 : f32 to vector<8x256xf32>
      %17 = arith.maximumf %15, %16 : vector<8x256xf32>
      %c0_14 = arith.constant 0 : index
      %c0_15 = arith.constant 0 : index
      %18 = vector.load %arg6[%c0_14, %c0_15] : memref<8x256xf32, #tpu.memory_space<vmem>>, vector<8x256xf32>
      tpu.vector_store %arg6[%c0_14, %c0_15], %17 {strides = array<i32>} : memref<8x256xf32, #tpu.memory_space<vmem>>, vector<8x256xf32>,
    } else {
    }
    return
  }
  func.func @transform_0(%arg0: i32, %arg1: i32, %arg2: i32) -> (i32, i32) {
    %c0_i32 = arith.constant 0 : i32
    return %arg0, %arg2 : i32, i32
  }
  func.func @transform_1(%arg0: i32, %arg1: i32, %arg2: i32) -> (i32, i32) {
    %c0_i32 = arith.constant 0 : i32
    return %arg2, %arg1 : i32, i32
  }
  func.func @transform_2(%arg0: i32, %arg1: i32, %arg2: i32) -> (i32, i32) {
    %c0_i32 = arith.constant 0 : i32
    %c0_i32_0 = arith.constant 0 : i32
    return %c0_i32, %arg1 : i32, i32
  }
  func.func @transform_3(%arg0: i32, %arg1: i32, %arg2: i32) -> (i32, i32) {
    %c0_i32 = arith.constant 0 : i32
    return %arg0, %arg1 : i32, i32
  }
}

module attributes {stable_mosaic.version = 11 : i64} {
  func.func @_mm_bias_kernel(%arg0: i32, %arg1: i32, %arg2: i32, %arg3: memref<8x128xbf16, #tpu.memory_space<vmem>>, %arg4: memref<128x256xbf16, #tpu.memory_space<vmem>>, %arg5: memref<1x256xf32, #tpu.memory_space<vmem>>, %arg6: memref<8x256xf32, #tpu.memory_space<vmem>>, %arg7: memref<8x256xf32, #tpu.memory_space<vmem>>) attributes {dimension_semantics = [#tpu.dimension_semantics<parallel>, #tpu.dimension_semantics<parallel>, #tpu.dimension_semantics<arbitrary>], iteration_bounds = array<i64: 1, 1, 1>, scalar_prefetch = 0 : i64, scratch_operands = 1 : i64, tpu.core_type = #tpu.core_type<tc>, window_params = [{transform_indices = @transform_0, window_bounds = array<i64: 8, 128>}, {transform_indices = @transform_1, window_bounds = array<i64: 128, 256>}, {transform_indices = @transform_2, window_bounds = array<i64: 1, 256>}, {transform_indices = @transform_3, window_bounds = array<i64: 8, 256>}]} {
    %c0_i32 = arith.constant 0 : i32
    %0 = arith.cmpi eq, %arg2, %c0_i32 : i32
    %1 = arith.extui %0 : i1 to i32
    %c0_i32_0 = arith.constant 0 : i32
    %2 = arith.cmpi ne, %1, %c0_i32_0 : i32
    scf.if %2 {
      %cst_10 = arith.constant 0.000000e+00 : f32
      %12 = vector.broadcast %cst_10 : f32 to vector<8x256xf32>
      %c0_11 = arith.constant 0 : index
      %c0_12 = arith.constant 0 : index
      %13 = vector.load %arg7[%c0_11, %c0_12] : memref<8x256xf32, #tpu.memory_space<vmem>>, vector<8x256xf32>
      tpu.vector_store %arg7[%c0_11, %c0_12], %12 {strides = array<i32>} : memref<8x256xf32, #tpu.memory_space<vmem>>, vector<8x256xf32>,
    } else {
    }
    %c0 = arith.constant 0 : index
    %c0_1 = arith.constant 0 : index
    %3 = vector.load %arg7[%c0, %c0_1] : memref<8x256xf32, #tpu.memory_space<vmem>>, vector<8x256xf32>
    %c0_2 = arith.constant 0 : index
    %c0_3 = arith.constant 0 : index
    %4 = vector.load %arg3[%c0_2, %c0_3] : memref<8x128xbf16, #tpu.memory_space<vmem>>, vector<8x128xbf16>
    %c0_4 = arith.constant 0 : index
    %c0_5 = arith.constant 0 : index
    %5 = vector.load %arg4[%c0_4, %c0_5] : memref<128x256xbf16, #tpu.memory_space<vmem>>, vector<128x256xbf16>
    %cst = arith.constant dense<0.000000e+00> : vector<8x256xf32>
    %6 = tpu.matmul %4, %5, %cst {dimension_numbers = #tpu.dot_dimension_numbers<[1], [0], [0], [1], [0, 0, 1, 1], [], []>} : vector<8x128xbf16>, vector<128x256xbf16>, vector<8x256xf32> -> vector<8x256xf32>
    %7 = arith.addf %3, %6 : vector<8x256xf32>
    %c0_6 = arith.constant 0 : index
    %c0_7 = arith.constant 0 : index
    %8 = vector.load %arg7[%c0_6, %c0_7] : memref<8x256xf32, #tpu.memory_space<vmem>>, vector<8x256xf32>
    tpu.vector_store %arg7[%c0_6, %c0_7], %7 {strides = array<i32>} : memref<8x256xf32, #tpu.memory_space<vmem>>, vector<8x256xf32>,
    %c0_i32_8 = arith.constant 0 : i32
    %9 = arith.cmpi eq, %arg2, %c0_i32_8 : i32
    %10 = arith.extui %9 : i1 to i32
    %c0_i32_9 = arith.constant 0 : i32
    %11 = arith.cmpi ne, %10, %c0_i32_9 : i32
    scf.if %11 {
      %c0_10 = arith.constant 0 : index
      %c0_11 = arith.constant 0 : index
      %12 = vector.load %arg7[%c0_10, %c0_11] : memref<8x256xf32, #tpu.memory_space<vmem>>, vector<8x256xf32>
      %c0_12 = arith.constant 0 : index
      %c0_13 = arith.constant 0 : index
      %13 = vector.load %arg5[%c0_12, %c0_13] : memref<1x256xf32, #tpu.memory_space<vmem>>, vector<1x256xf32>
      %14 = vector.broadcast %13 : vector<1x256xf32> to vector<8x256xf32>
      %15 = arith.addf %12, %14 : vector<8x256xf32>
      %c0_14 = arith.constant 0 : index
      %c0_15 = arith.constant 0 : index
      %16 = vector.load %arg6[%c0_14, %c0_15] : memref<8x256xf32, #tpu.memory_space<vmem>>, vector<8x256xf32>
      tpu.vector_store %arg6[%c0_14, %c0_15], %15 {strides = array<i32>} : memref<8x256xf32, #tpu.memory_space<vmem>>, vector<8x256xf32>,
    } else {
    }
    return
  }
  func.func @transform_0(%arg0: i32, %arg1: i32, %arg2: i32) -> (i32, i32) {
    %c0_i32 = arith.constant 0 : i32
    return %arg0, %arg2 : i32, i32
  }
  func.func @transform_1(%arg0: i32, %arg1: i32, %arg2: i32) -> (i32, i32) {
    %c0_i32 = arith.constant 0 : i32
    return %arg2, %arg1 : i32, i32
  }
  func.func @transform_2(%arg0: i32, %arg1: i32, %arg2: i32) -> (i32, i32) {
    %c0_i32 = arith.constant 0 : i32
    %c0_i32_0 = arith.constant 0 : i32
    return %c0_i32, %arg1 : i32, i32
  }
  func.func @transform_3(%arg0: i32, %arg1: i32, %arg2: i32) -> (i32, i32) {
    %c0_i32 = arith.constant 0 : i32
    return %arg0, %arg1 : i32, i32
  }
}

module attributes {stable_mosaic.version = 11 : i64} {
  func.func @_mm_bias_res_kernel(%arg0: i32, %arg1: i32, %arg2: i32, %arg3: memref<8x256xbf16, #tpu.memory_space<vmem>>, %arg4: memref<256x256xbf16, #tpu.memory_space<vmem>>, %arg5: memref<1x256xf32, #tpu.memory_space<vmem>>, %arg6: memref<8x256xf32, #tpu.memory_space<vmem>>, %arg7: memref<8x256xf32, #tpu.memory_space<vmem>>, %arg8: memref<8x256xf32, #tpu.memory_space<vmem>>) attributes {dimension_semantics = [#tpu.dimension_semantics<parallel>, #tpu.dimension_semantics<parallel>, #tpu.dimension_semantics<arbitrary>], iteration_bounds = array<i64: 1, 1, 9>, scalar_prefetch = 0 : i64, scratch_operands = 1 : i64, tpu.core_type = #tpu.core_type<tc>, window_params = [{transform_indices = @transform_0, window_bounds = array<i64: 8, 256>}, {transform_indices = @transform_1, window_bounds = array<i64: 256, 256>}, {transform_indices = @transform_2, window_bounds = array<i64: 1, 256>}, {transform_indices = @transform_3, window_bounds = array<i64: 8, 256>}, {transform_indices = @transform_4, window_bounds = array<i64: 8, 256>}]} {
    %c0_i32 = arith.constant 0 : i32
    %0 = arith.cmpi eq, %arg2, %c0_i32 : i32
    %1 = arith.extui %0 : i1 to i32
    %c0_i32_0 = arith.constant 0 : i32
    %2 = arith.cmpi ne, %1, %c0_i32_0 : i32
    scf.if %2 {
      %cst_9 = arith.constant 0.000000e+00 : f32
      %12 = vector.broadcast %cst_9 : f32 to vector<8x256xf32>
      %c0_10 = arith.constant 0 : index
      %c0_11 = arith.constant 0 : index
      %13 = vector.load %arg8[%c0_10, %c0_11] : memref<8x256xf32, #tpu.memory_space<vmem>>, vector<8x256xf32>
      tpu.vector_store %arg8[%c0_10, %c0_11], %12 {strides = array<i32>} : memref<8x256xf32, #tpu.memory_space<vmem>>, vector<8x256xf32>,
    } else {
    }
    %c0 = arith.constant 0 : index
    %c0_1 = arith.constant 0 : index
    %3 = vector.load %arg8[%c0, %c0_1] : memref<8x256xf32, #tpu.memory_space<vmem>>, vector<8x256xf32>
    %c0_2 = arith.constant 0 : index
    %c0_3 = arith.constant 0 : index
    %4 = vector.load %arg3[%c0_2, %c0_3] : memref<8x256xbf16, #tpu.memory_space<vmem>>, vector<8x256xbf16>
    %c0_4 = arith.constant 0 : index
    %c0_5 = arith.constant 0 : index
    %5 = vector.load %arg4[%c0_4, %c0_5] : memref<256x256xbf16, #tpu.memory_space<vmem>>, vector<256x256xbf16>
    %cst = arith.constant dense<0.000000e+00> : vector<8x256xf32>
    %6 = tpu.matmul %4, %5, %cst {dimension_numbers = #tpu.dot_dimension_numbers<[1], [0], [0], [1], [0, 0, 1, 1], [], []>} : vector<8x256xbf16>, vector<256x256xbf16>, vector<8x256xf32> -> vector<8x256xf32>
    %7 = arith.addf %3, %6 : vector<8x256xf32>
    %c0_6 = arith.constant 0 : index
    %c0_7 = arith.constant 0 : index
    %8 = vector.load %arg8[%c0_6, %c0_7] : memref<8x256xf32, #tpu.memory_space<vmem>>, vector<8x256xf32>
    tpu.vector_store %arg8[%c0_6, %c0_7], %7 {strides = array<i32>} : memref<8x256xf32, #tpu.memory_space<vmem>>, vector<8x256xf32>,
    %c8_i32 = arith.constant 8 : i32
    %9 = arith.cmpi eq, %arg2, %c8_i32 : i32
    %10 = arith.extui %9 : i1 to i32
    %c0_i32_8 = arith.constant 0 : i32
    %11 = arith.cmpi ne, %10, %c0_i32_8 : i32
    scf.if %11 {
      %c0_9 = arith.constant 0 : index
      %c0_10 = arith.constant 0 : index
      %12 = vector.load %arg8[%c0_9, %c0_10] : memref<8x256xf32, #tpu.memory_space<vmem>>, vector<8x256xf32>
      %c0_11 = arith.constant 0 : index
      %c0_12 = arith.constant 0 : index
      %13 = vector.load %arg5[%c0_11, %c0_12] : memref<1x256xf32, #tpu.memory_space<vmem>>, vector<1x256xf32>
      %14 = vector.broadcast %13 : vector<1x256xf32> to vector<8x256xf32>
      %15 = arith.addf %12, %14 : vector<8x256xf32>
      %c0_13 = arith.constant 0 : index
      %c0_14 = arith.constant 0 : index
      %16 = vector.load %arg6[%c0_13, %c0_14] : memref<8x256xf32, #tpu.memory_space<vmem>>, vector<8x256xf32>
      %17 = arith.addf %15, %16 : vector<8x256xf32>
      %cst_15 = arith.constant 0.000000e+00 : f32
      %18 = vector.broadcast %cst_15 : f32 to vector<8x256xf32>
      %19 = arith.maximumf %17, %18 : vector<8x256xf32>
      %c0_16 = arith.constant 0 : index
      %c0_17 = arith.constant 0 : index
      %20 = vector.load %arg7[%c0_16, %c0_17] : memref<8x256xf32, #tpu.memory_space<vmem>>, vector<8x256xf32>
      tpu.vector_store %arg7[%c0_16, %c0_17], %19 {strides = array<i32>} : memref<8x256xf32, #tpu.memory_space<vmem>>, vector<8x256xf32>,
    } else {
    }
    return
  }
  func.func @transform_0(%arg0: i32, %arg1: i32, %arg2: i32) -> (i32, i32) {
    %c0_i32 = arith.constant 0 : i32
    return %arg0, %arg2 : i32, i32
  }
  func.func @transform_1(%arg0: i32, %arg1: i32, %arg2: i32) -> (i32, i32) {
    %c0_i32 = arith.constant 0 : i32
    return %arg2, %arg1 : i32, i32
  }
  func.func @transform_2(%arg0: i32, %arg1: i32, %arg2: i32) -> (i32, i32) {
    %c0_i32 = arith.constant 0 : i32
    %c0_i32_0 = arith.constant 0 : i32
    return %c0_i32, %arg1 : i32, i32
  }
  func.func @transform_3(%arg0: i32, %arg1: i32, %arg2: i32) -> (i32, i32) {
    %c0_i32 = arith.constant 0 : i32
    return %arg0, %arg1 : i32, i32
  }
  func.func @transform_4(%arg0: i32, %arg1: i32, %arg2: i32) -> (i32, i32) {
    %c0_i32 = arith.constant 0 : i32
    return %arg0, %arg1 : i32, i32
  }
}

module attributes {stable_mosaic.version = 11 : i64} {
  func.func @_mm_bias_kernel(%arg0: i32, %arg1: i32, %arg2: i32, %arg3: memref<8x256xbf16, #tpu.memory_space<vmem>>, %arg4: memref<256x256xbf16, #tpu.memory_space<vmem>>, %arg5: memref<1x256xf32, #tpu.memory_space<vmem>>, %arg6: memref<8x256xf32, #tpu.memory_space<vmem>>, %arg7: memref<8x256xf32, #tpu.memory_space<vmem>>) attributes {dimension_semantics = [#tpu.dimension_semantics<parallel>, #tpu.dimension_semantics<parallel>, #tpu.dimension_semantics<arbitrary>], iteration_bounds = array<i64: 1, 2, 9>, scalar_prefetch = 0 : i64, scratch_operands = 1 : i64, tpu.core_type = #tpu.core_type<tc>, window_params = [{transform_indices = @transform_0, window_bounds = array<i64: 8, 256>}, {transform_indices = @transform_1, window_bounds = array<i64: 256, 256>}, {transform_indices = @transform_2, window_bounds = array<i64: 1, 256>}, {transform_indices = @transform_3, window_bounds = array<i64: 8, 256>}]} {
    %c0_i32 = arith.constant 0 : i32
    %0 = arith.cmpi eq, %arg2, %c0_i32 : i32
    %1 = arith.extui %0 : i1 to i32
    %c0_i32_0 = arith.constant 0 : i32
    %2 = arith.cmpi ne, %1, %c0_i32_0 : i32
    scf.if %2 {
      %cst_9 = arith.constant 0.000000e+00 : f32
      %12 = vector.broadcast %cst_9 : f32 to vector<8x256xf32>
      %c0_10 = arith.constant 0 : index
      %c0_11 = arith.constant 0 : index
      %13 = vector.load %arg7[%c0_10, %c0_11] : memref<8x256xf32, #tpu.memory_space<vmem>>, vector<8x256xf32>
      tpu.vector_store %arg7[%c0_10, %c0_11], %12 {strides = array<i32>} : memref<8x256xf32, #tpu.memory_space<vmem>>, vector<8x256xf32>,
    } else {
    }
    %c0 = arith.constant 0 : index
    %c0_1 = arith.constant 0 : index
    %3 = vector.load %arg7[%c0, %c0_1] : memref<8x256xf32, #tpu.memory_space<vmem>>, vector<8x256xf32>
    %c0_2 = arith.constant 0 : index
    %c0_3 = arith.constant 0 : index
    %4 = vector.load %arg3[%c0_2, %c0_3] : memref<8x256xbf16, #tpu.memory_space<vmem>>, vector<8x256xbf16>
    %c0_4 = arith.constant 0 : index
    %c0_5 = arith.constant 0 : index
    %5 = vector.load %arg4[%c0_4, %c0_5] : memref<256x256xbf16, #tpu.memory_space<vmem>>, vector<256x256xbf16>
    %cst = arith.constant dense<0.000000e+00> : vector<8x256xf32>
    %6 = tpu.matmul %4, %5, %cst {dimension_numbers = #tpu.dot_dimension_numbers<[1], [0], [0], [1], [0, 0, 1, 1], [], []>} : vector<8x256xbf16>, vector<256x256xbf16>, vector<8x256xf32> -> vector<8x256xf32>
    %7 = arith.addf %3, %6 : vector<8x256xf32>
    %c0_6 = arith.constant 0 : index
    %c0_7 = arith.constant 0 : index
    %8 = vector.load %arg7[%c0_6, %c0_7] : memref<8x256xf32, #tpu.memory_space<vmem>>, vector<8x256xf32>
    tpu.vector_store %arg7[%c0_6, %c0_7], %7 {strides = array<i32>} : memref<8x256xf32, #tpu.memory_space<vmem>>, vector<8x256xf32>,
    %c8_i32 = arith.constant 8 : i32
    %9 = arith.cmpi eq, %arg2, %c8_i32 : i32
    %10 = arith.extui %9 : i1 to i32
    %c0_i32_8 = arith.constant 0 : i32
    %11 = arith.cmpi ne, %10, %c0_i32_8 : i32
    scf.if %11 {
      %c0_9 = arith.constant 0 : index
      %c0_10 = arith.constant 0 : index
      %12 = vector.load %arg7[%c0_9, %c0_10] : memref<8x256xf32, #tpu.memory_space<vmem>>, vector<8x256xf32>
      %c0_11 = arith.constant 0 : index
      %c0_12 = arith.constant 0 : index
      %13 = vector.load %arg5[%c0_11, %c0_12] : memref<1x256xf32, #tpu.memory_space<vmem>>, vector<1x256xf32>
      %14 = vector.broadcast %13 : vector<1x256xf32> to vector<8x256xf32>
      %15 = arith.addf %12, %14 : vector<8x256xf32>
      %cst_13 = arith.constant 0.000000e+00 : f32
      %16 = vector.broadcast %cst_13 : f32 to vector<8x256xf32>
      %17 = arith.maximumf %15, %16 : vector<8x256xf32>
      %c0_14 = arith.constant 0 : index
      %c0_15 = arith.constant 0 : index
      %18 = vector.load %arg6[%c0_14, %c0_15] : memref<8x256xf32, #tpu.memory_space<vmem>>, vector<8x256xf32>
      tpu.vector_store %arg6[%c0_14, %c0_15], %17 {strides = array<i32>} : memref<8x256xf32, #tpu.memory_space<vmem>>, vector<8x256xf32>,
    } else {
    }
    return
  }
  func.func @transform_0(%arg0: i32, %arg1: i32, %arg2: i32) -> (i32, i32) {
    %c0_i32 = arith.constant 0 : i32
    return %arg0, %arg2 : i32, i32
  }
  func.func @transform_1(%arg0: i32, %arg1: i32, %arg2: i32) -> (i32, i32) {
    %c0_i32 = arith.constant 0 : i32
    return %arg2, %arg1 : i32, i32
  }
  func.func @transform_2(%arg0: i32, %arg1: i32, %arg2: i32) -> (i32, i32) {
    %c0_i32 = arith.constant 0 : i32
    %c0_i32_0 = arith.constant 0 : i32
    return %c0_i32, %arg1 : i32, i32
  }
  func.func @transform_3(%arg0: i32, %arg1: i32, %arg2: i32) -> (i32, i32) {
    %c0_i32 = arith.constant 0 : i32
    return %arg0, %arg1 : i32, i32
  }
}

module attributes {stable_mosaic.version = 11 : i64} {
  func.func @_mm_bias_kernel(%arg0: i32, %arg1: i32, %arg2: i32, %arg3: memref<8x256xbf16, #tpu.memory_space<vmem>>, %arg4: memref<256x256xbf16, #tpu.memory_space<vmem>>, %arg5: memref<1x256xf32, #tpu.memory_space<vmem>>, %arg6: memref<8x256xf32, #tpu.memory_space<vmem>>, %arg7: memref<8x256xf32, #tpu.memory_space<vmem>>) attributes {dimension_semantics = [#tpu.dimension_semantics<parallel>, #tpu.dimension_semantics<parallel>, #tpu.dimension_semantics<arbitrary>], iteration_bounds = array<i64: 1, 2, 1>, scalar_prefetch = 0 : i64, scratch_operands = 1 : i64, tpu.core_type = #tpu.core_type<tc>, window_params = [{transform_indices = @transform_0, window_bounds = array<i64: 8, 256>}, {transform_indices = @transform_1, window_bounds = array<i64: 256, 256>}, {transform_indices = @transform_2, window_bounds = array<i64: 1, 256>}, {transform_indices = @transform_3, window_bounds = array<i64: 8, 256>}]} {
    %c0_i32 = arith.constant 0 : i32
    %0 = arith.cmpi eq, %arg2, %c0_i32 : i32
    %1 = arith.extui %0 : i1 to i32
    %c0_i32_0 = arith.constant 0 : i32
    %2 = arith.cmpi ne, %1, %c0_i32_0 : i32
    scf.if %2 {
      %cst_10 = arith.constant 0.000000e+00 : f32
      %12 = vector.broadcast %cst_10 : f32 to vector<8x256xf32>
      %c0_11 = arith.constant 0 : index
      %c0_12 = arith.constant 0 : index
      %13 = vector.load %arg7[%c0_11, %c0_12] : memref<8x256xf32, #tpu.memory_space<vmem>>, vector<8x256xf32>
      tpu.vector_store %arg7[%c0_11, %c0_12], %12 {strides = array<i32>} : memref<8x256xf32, #tpu.memory_space<vmem>>, vector<8x256xf32>,
    } else {
    }
    %c0 = arith.constant 0 : index
    %c0_1 = arith.constant 0 : index
    %3 = vector.load %arg7[%c0, %c0_1] : memref<8x256xf32, #tpu.memory_space<vmem>>, vector<8x256xf32>
    %c0_2 = arith.constant 0 : index
    %c0_3 = arith.constant 0 : index
    %4 = vector.load %arg3[%c0_2, %c0_3] : memref<8x256xbf16, #tpu.memory_space<vmem>>, vector<8x256xbf16>
    %c0_4 = arith.constant 0 : index
    %c0_5 = arith.constant 0 : index
    %5 = vector.load %arg4[%c0_4, %c0_5] : memref<256x256xbf16, #tpu.memory_space<vmem>>, vector<256x256xbf16>
    %cst = arith.constant dense<0.000000e+00> : vector<8x256xf32>
    %6 = tpu.matmul %4, %5, %cst {dimension_numbers = #tpu.dot_dimension_numbers<[1], [0], [0], [1], [0, 0, 1, 1], [], []>} : vector<8x256xbf16>, vector<256x256xbf16>, vector<8x256xf32> -> vector<8x256xf32>
    %7 = arith.addf %3, %6 : vector<8x256xf32>
    %c0_6 = arith.constant 0 : index
    %c0_7 = arith.constant 0 : index
    %8 = vector.load %arg7[%c0_6, %c0_7] : memref<8x256xf32, #tpu.memory_space<vmem>>, vector<8x256xf32>
    tpu.vector_store %arg7[%c0_6, %c0_7], %7 {strides = array<i32>} : memref<8x256xf32, #tpu.memory_space<vmem>>, vector<8x256xf32>,
    %c0_i32_8 = arith.constant 0 : i32
    %9 = arith.cmpi eq, %arg2, %c0_i32_8 : i32
    %10 = arith.extui %9 : i1 to i32
    %c0_i32_9 = arith.constant 0 : i32
    %11 = arith.cmpi ne, %10, %c0_i32_9 : i32
    scf.if %11 {
      %c0_10 = arith.constant 0 : index
      %c0_11 = arith.constant 0 : index
      %12 = vector.load %arg7[%c0_10, %c0_11] : memref<8x256xf32, #tpu.memory_space<vmem>>, vector<8x256xf32>
      %c0_12 = arith.constant 0 : index
      %c0_13 = arith.constant 0 : index
      %13 = vector.load %arg5[%c0_12, %c0_13] : memref<1x256xf32, #tpu.memory_space<vmem>>, vector<1x256xf32>
      %14 = vector.broadcast %13 : vector<1x256xf32> to vector<8x256xf32>
      %15 = arith.addf %12, %14 : vector<8x256xf32>
      %c0_14 = arith.constant 0 : index
      %c0_15 = arith.constant 0 : index
      %16 = vector.load %arg6[%c0_14, %c0_15] : memref<8x256xf32, #tpu.memory_space<vmem>>, vector<8x256xf32>
      tpu.vector_store %arg6[%c0_14, %c0_15], %15 {strides = array<i32>} : memref<8x256xf32, #tpu.memory_space<vmem>>, vector<8x256xf32>,
    } else {
    }
    return
  }
  func.func @transform_0(%arg0: i32, %arg1: i32, %arg2: i32) -> (i32, i32) {
    %c0_i32 = arith.constant 0 : i32
    return %arg0, %arg2 : i32, i32
  }
  func.func @transform_1(%arg0: i32, %arg1: i32, %arg2: i32) -> (i32, i32) {
    %c0_i32 = arith.constant 0 : i32
    return %arg2, %arg1 : i32, i32
  }
  func.func @transform_2(%arg0: i32, %arg1: i32, %arg2: i32) -> (i32, i32) {
    %c0_i32 = arith.constant 0 : i32
    %c0_i32_0 = arith.constant 0 : i32
    return %c0_i32, %arg1 : i32, i32
  }
  func.func @transform_3(%arg0: i32, %arg1: i32, %arg2: i32) -> (i32, i32) {
    %c0_i32 = arith.constant 0 : i32
    return %arg0, %arg1 : i32, i32
  }
}

module attributes {stable_mosaic.version = 11 : i64} {
  func.func @_mm_bias_kernel(%arg0: i32, %arg1: i32, %arg2: i32, %arg3: memref<8x256xbf16, #tpu.memory_space<vmem>>, %arg4: memref<256x256xbf16, #tpu.memory_space<vmem>>, %arg5: memref<1x256xf32, #tpu.memory_space<vmem>>, %arg6: memref<8x256xf32, #tpu.memory_space<vmem>>, %arg7: memref<8x256xf32, #tpu.memory_space<vmem>>) attributes {dimension_semantics = [#tpu.dimension_semantics<parallel>, #tpu.dimension_semantics<parallel>, #tpu.dimension_semantics<arbitrary>], iteration_bounds = array<i64: 1, 2, 18>, scalar_prefetch = 0 : i64, scratch_operands = 1 : i64, tpu.core_type = #tpu.core_type<tc>, window_params = [{transform_indices = @transform_0, window_bounds = array<i64: 8, 256>}, {transform_indices = @transform_1, window_bounds = array<i64: 256, 256>}, {transform_indices = @transform_2, window_bounds = array<i64: 1, 256>}, {transform_indices = @transform_3, window_bounds = array<i64: 8, 256>}]} {
    %c0_i32 = arith.constant 0 : i32
    %0 = arith.cmpi eq, %arg2, %c0_i32 : i32
    %1 = arith.extui %0 : i1 to i32
    %c0_i32_0 = arith.constant 0 : i32
    %2 = arith.cmpi ne, %1, %c0_i32_0 : i32
    scf.if %2 {
      %cst_9 = arith.constant 0.000000e+00 : f32
      %12 = vector.broadcast %cst_9 : f32 to vector<8x256xf32>
      %c0_10 = arith.constant 0 : index
      %c0_11 = arith.constant 0 : index
      %13 = vector.load %arg7[%c0_10, %c0_11] : memref<8x256xf32, #tpu.memory_space<vmem>>, vector<8x256xf32>
      tpu.vector_store %arg7[%c0_10, %c0_11], %12 {strides = array<i32>} : memref<8x256xf32, #tpu.memory_space<vmem>>, vector<8x256xf32>,
    } else {
    }
    %c0 = arith.constant 0 : index
    %c0_1 = arith.constant 0 : index
    %3 = vector.load %arg7[%c0, %c0_1] : memref<8x256xf32, #tpu.memory_space<vmem>>, vector<8x256xf32>
    %c0_2 = arith.constant 0 : index
    %c0_3 = arith.constant 0 : index
    %4 = vector.load %arg3[%c0_2, %c0_3] : memref<8x256xbf16, #tpu.memory_space<vmem>>, vector<8x256xbf16>
    %c0_4 = arith.constant 0 : index
    %c0_5 = arith.constant 0 : index
    %5 = vector.load %arg4[%c0_4, %c0_5] : memref<256x256xbf16, #tpu.memory_space<vmem>>, vector<256x256xbf16>
    %cst = arith.constant dense<0.000000e+00> : vector<8x256xf32>
    %6 = tpu.matmul %4, %5, %cst {dimension_numbers = #tpu.dot_dimension_numbers<[1], [0], [0], [1], [0, 0, 1, 1], [], []>} : vector<8x256xbf16>, vector<256x256xbf16>, vector<8x256xf32> -> vector<8x256xf32>
    %7 = arith.addf %3, %6 : vector<8x256xf32>
    %c0_6 = arith.constant 0 : index
    %c0_7 = arith.constant 0 : index
    %8 = vector.load %arg7[%c0_6, %c0_7] : memref<8x256xf32, #tpu.memory_space<vmem>>, vector<8x256xf32>
    tpu.vector_store %arg7[%c0_6, %c0_7], %7 {strides = array<i32>} : memref<8x256xf32, #tpu.memory_space<vmem>>, vector<8x256xf32>,
    %c17_i32 = arith.constant 17 : i32
    %9 = arith.cmpi eq, %arg2, %c17_i32 : i32
    %10 = arith.extui %9 : i1 to i32
    %c0_i32_8 = arith.constant 0 : i32
    %11 = arith.cmpi ne, %10, %c0_i32_8 : i32
    scf.if %11 {
      %c0_9 = arith.constant 0 : index
      %c0_10 = arith.constant 0 : index
      %12 = vector.load %arg7[%c0_9, %c0_10] : memref<8x256xf32, #tpu.memory_space<vmem>>, vector<8x256xf32>
      %c0_11 = arith.constant 0 : index
      %c0_12 = arith.constant 0 : index
      %13 = vector.load %arg5[%c0_11, %c0_12] : memref<1x256xf32, #tpu.memory_space<vmem>>, vector<1x256xf32>
      %14 = vector.broadcast %13 : vector<1x256xf32> to vector<8x256xf32>
      %15 = arith.addf %12, %14 : vector<8x256xf32>
      %cst_13 = arith.constant 0.000000e+00 : f32
      %16 = vector.broadcast %cst_13 : f32 to vector<8x256xf32>
      %17 = arith.maximumf %15, %16 : vector<8x256xf32>
      %c0_14 = arith.constant 0 : index
      %c0_15 = arith.constant 0 : index
      %18 = vector.load %arg6[%c0_14, %c0_15] : memref<8x256xf32, #tpu.memory_space<vmem>>, vector<8x256xf32>
      tpu.vector_store %arg6[%c0_14, %c0_15], %17 {strides = array<i32>} : memref<8x256xf32, #tpu.memory_space<vmem>>, vector<8x256xf32>,
    } else {
    }
    return
  }
  func.func @transform_0(%arg0: i32, %arg1: i32, %arg2: i32) -> (i32, i32) {
    %c0_i32 = arith.constant 0 : i32
    return %arg0, %arg2 : i32, i32
  }
  func.func @transform_1(%arg0: i32, %arg1: i32, %arg2: i32) -> (i32, i32) {
    %c0_i32 = arith.constant 0 : i32
    return %arg2, %arg1 : i32, i32
  }
  func.func @transform_2(%arg0: i32, %arg1: i32, %arg2: i32) -> (i32, i32) {
    %c0_i32 = arith.constant 0 : i32
    %c0_i32_0 = arith.constant 0 : i32
    return %c0_i32, %arg1 : i32, i32
  }
  func.func @transform_3(%arg0: i32, %arg1: i32, %arg2: i32) -> (i32, i32) {
    %c0_i32 = arith.constant 0 : i32
    return %arg0, %arg1 : i32, i32
  }
}

module attributes {stable_mosaic.version = 11 : i64} {
  func.func @_mm_bias_res_kernel(%arg0: i32, %arg1: i32, %arg2: i32, %arg3: memref<8x256xbf16, #tpu.memory_space<vmem>>, %arg4: memref<256x256xbf16, #tpu.memory_space<vmem>>, %arg5: memref<1x256xf32, #tpu.memory_space<vmem>>, %arg6: memref<8x256xf32, #tpu.memory_space<vmem>>, %arg7: memref<8x256xf32, #tpu.memory_space<vmem>>, %arg8: memref<8x256xf32, #tpu.memory_space<vmem>>) attributes {dimension_semantics = [#tpu.dimension_semantics<parallel>, #tpu.dimension_semantics<parallel>, #tpu.dimension_semantics<arbitrary>], iteration_bounds = array<i64: 1, 2, 18>, scalar_prefetch = 0 : i64, scratch_operands = 1 : i64, tpu.core_type = #tpu.core_type<tc>, window_params = [{transform_indices = @transform_0, window_bounds = array<i64: 8, 256>}, {transform_indices = @transform_1, window_bounds = array<i64: 256, 256>}, {transform_indices = @transform_2, window_bounds = array<i64: 1, 256>}, {transform_indices = @transform_3, window_bounds = array<i64: 8, 256>}, {transform_indices = @transform_4, window_bounds = array<i64: 8, 256>}]} {
    %c0_i32 = arith.constant 0 : i32
    %0 = arith.cmpi eq, %arg2, %c0_i32 : i32
    %1 = arith.extui %0 : i1 to i32
    %c0_i32_0 = arith.constant 0 : i32
    %2 = arith.cmpi ne, %1, %c0_i32_0 : i32
    scf.if %2 {
      %cst_9 = arith.constant 0.000000e+00 : f32
      %12 = vector.broadcast %cst_9 : f32 to vector<8x256xf32>
      %c0_10 = arith.constant 0 : index
      %c0_11 = arith.constant 0 : index
      %13 = vector.load %arg8[%c0_10, %c0_11] : memref<8x256xf32, #tpu.memory_space<vmem>>, vector<8x256xf32>
      tpu.vector_store %arg8[%c0_10, %c0_11], %12 {strides = array<i32>} : memref<8x256xf32, #tpu.memory_space<vmem>>, vector<8x256xf32>,
    } else {
    }
    %c0 = arith.constant 0 : index
    %c0_1 = arith.constant 0 : index
    %3 = vector.load %arg8[%c0, %c0_1] : memref<8x256xf32, #tpu.memory_space<vmem>>, vector<8x256xf32>
    %c0_2 = arith.constant 0 : index
    %c0_3 = arith.constant 0 : index
    %4 = vector.load %arg3[%c0_2, %c0_3] : memref<8x256xbf16, #tpu.memory_space<vmem>>, vector<8x256xbf16>
    %c0_4 = arith.constant 0 : index
    %c0_5 = arith.constant 0 : index
    %5 = vector.load %arg4[%c0_4, %c0_5] : memref<256x256xbf16, #tpu.memory_space<vmem>>, vector<256x256xbf16>
    %cst = arith.constant dense<0.000000e+00> : vector<8x256xf32>
    %6 = tpu.matmul %4, %5, %cst {dimension_numbers = #tpu.dot_dimension_numbers<[1], [0], [0], [1], [0, 0, 1, 1], [], []>} : vector<8x256xbf16>, vector<256x256xbf16>, vector<8x256xf32> -> vector<8x256xf32>
    %7 = arith.addf %3, %6 : vector<8x256xf32>
    %c0_6 = arith.constant 0 : index
    %c0_7 = arith.constant 0 : index
    %8 = vector.load %arg8[%c0_6, %c0_7] : memref<8x256xf32, #tpu.memory_space<vmem>>, vector<8x256xf32>
    tpu.vector_store %arg8[%c0_6, %c0_7], %7 {strides = array<i32>} : memref<8x256xf32, #tpu.memory_space<vmem>>, vector<8x256xf32>,
    %c17_i32 = arith.constant 17 : i32
    %9 = arith.cmpi eq, %arg2, %c17_i32 : i32
    %10 = arith.extui %9 : i1 to i32
    %c0_i32_8 = arith.constant 0 : i32
    %11 = arith.cmpi ne, %10, %c0_i32_8 : i32
    scf.if %11 {
      %c0_9 = arith.constant 0 : index
      %c0_10 = arith.constant 0 : index
      %12 = vector.load %arg8[%c0_9, %c0_10] : memref<8x256xf32, #tpu.memory_space<vmem>>, vector<8x256xf32>
      %c0_11 = arith.constant 0 : index
      %c0_12 = arith.constant 0 : index
      %13 = vector.load %arg5[%c0_11, %c0_12] : memref<1x256xf32, #tpu.memory_space<vmem>>, vector<1x256xf32>
      %14 = vector.broadcast %13 : vector<1x256xf32> to vector<8x256xf32>
      %15 = arith.addf %12, %14 : vector<8x256xf32>
      %c0_13 = arith.constant 0 : index
      %c0_14 = arith.constant 0 : index
      %16 = vector.load %arg6[%c0_13, %c0_14] : memref<8x256xf32, #tpu.memory_space<vmem>>, vector<8x256xf32>
      %17 = arith.addf %15, %16 : vector<8x256xf32>
      %cst_15 = arith.constant 0.000000e+00 : f32
      %18 = vector.broadcast %cst_15 : f32 to vector<8x256xf32>
      %19 = arith.maximumf %17, %18 : vector<8x256xf32>
      %c0_16 = arith.constant 0 : index
      %c0_17 = arith.constant 0 : index
      %20 = vector.load %arg7[%c0_16, %c0_17] : memref<8x256xf32, #tpu.memory_space<vmem>>, vector<8x256xf32>
      tpu.vector_store %arg7[%c0_16, %c0_17], %19 {strides = array<i32>} : memref<8x256xf32, #tpu.memory_space<vmem>>, vector<8x256xf32>,
    } else {
    }
    return
  }
  func.func @transform_0(%arg0: i32, %arg1: i32, %arg2: i32) -> (i32, i32) {
    %c0_i32 = arith.constant 0 : i32
    return %arg0, %arg2 : i32, i32
  }
  func.func @transform_1(%arg0: i32, %arg1: i32, %arg2: i32) -> (i32, i32) {
    %c0_i32 = arith.constant 0 : i32
    return %arg2, %arg1 : i32, i32
  }
  func.func @transform_2(%arg0: i32, %arg1: i32, %arg2: i32) -> (i32, i32) {
    %c0_i32 = arith.constant 0 : i32
    %c0_i32_0 = arith.constant 0 : i32
    return %c0_i32, %arg1 : i32, i32
  }
  func.func @transform_3(%arg0: i32, %arg1: i32, %arg2: i32) -> (i32, i32) {
    %c0_i32 = arith.constant 0 : i32
    return %arg0, %arg1 : i32, i32
  }
  func.func @transform_4(%arg0: i32, %arg1: i32, %arg2: i32) -> (i32, i32) {
    %c0_i32 = arith.constant 0 : i32
    return %arg0, %arg1 : i32, i32
  }
}

module attributes {stable_mosaic.version = 11 : i64} {
  func.func @_mean_pool_kernel(%arg0: i32, %arg1: memref<1x1x512xf32, #tpu.memory_space<vmem>>, %arg2: memref<1x1x512xf32, #tpu.memory_space<vmem>>) attributes {dimension_semantics = [#tpu.dimension_semantics<parallel>], iteration_bounds = array<i64: 2>, scalar_prefetch = 0 : i64, scratch_operands = 0 : i64, tpu.core_type = #tpu.core_type<tc>, window_params = [{transform_indices = @transform_0, window_bounds = array<i64: 1, 1, 512>}, {transform_indices = @transform_1, window_bounds = array<i64: 1, 1, 512>}]} {
    %c0 = arith.constant 0 : index
    %c0_0 = arith.constant 0 : index
    %c0_1 = arith.constant 0 : index
    %0 = vector.load %arg1[%c0, %c0_0, %c0_1] : memref<1x1x512xf32, #tpu.memory_space<vmem>>, vector<1x1x512xf32>
    %cst = arith.constant dense<0.000000e+00> : vector<1x512xf32>
    %1 = vector.multi_reduction <add>, %0, %cst [1] : vector<1x1x512xf32> to vector<1x512xf32>
    %2 = vector.shape_cast %1 : vector<1x512xf32> to vector<1x1x512xf32>
    %cst_2 = arith.constant 1.000000e+00 : f32
    %3 = vector.broadcast %cst_2 : f32 to vector<1x1x512xf32>
    %4 = arith.mulf %2, %3 : vector<1x1x512xf32>
    %c0_3 = arith.constant 0 : index
    %c0_4 = arith.constant 0 : index
    %c0_5 = arith.constant 0 : index
    %5 = vector.load %arg2[%c0_3, %c0_4, %c0_5] : memref<1x1x512xf32, #tpu.memory_space<vmem>>, vector<1x1x512xf32>
    tpu.vector_store %arg2[%c0_3, %c0_4, %c0_5], %4 {strides = array<i32>} : memref<1x1x512xf32, #tpu.memory_space<vmem>>, vector<1x1x512xf32>,
    return
  }
  func.func @transform_0(%arg0: i32) -> (i32, i32, i32) {
    %c0_i32 = arith.constant 0 : i32
    %c0_i32_0 = arith.constant 0 : i32
    %c0_i32_1 = arith.constant 0 : i32
    return %arg0, %c0_i32, %c0_i32_0 : i32, i32, i32
  }
  func.func @transform_1(%arg0: i32) -> (i32, i32, i32) {
    %c0_i32 = arith.constant 0 : i32
    %c0_i32_0 = arith.constant 0 : i32
    %c0_i32_1 = arith.constant 0 : i32
    return %arg0, %c0_i32, %c0_i32_0 : i32, i32, i32
  }
}

module attributes {stable_mosaic.version = 11 : i64} {
  func.func @_mm_bias_kernel(%arg0: i32, %arg1: i32, %arg2: i32, %arg3: memref<8x256xbf16, #tpu.memory_space<vmem>>, %arg4: memref<256x128xbf16, #tpu.memory_space<vmem>>, %arg5: memref<1x128xf32, #tpu.memory_space<vmem>>, %arg6: memref<8x128xf32, #tpu.memory_space<vmem>>, %arg7: memref<8x128xf32, #tpu.memory_space<vmem>>) attributes {dimension_semantics = [#tpu.dimension_semantics<parallel>, #tpu.dimension_semantics<parallel>, #tpu.dimension_semantics<arbitrary>], iteration_bounds = array<i64: 1, 1, 2>, scalar_prefetch = 0 : i64, scratch_operands = 1 : i64, tpu.core_type = #tpu.core_type<tc>, window_params = [{transform_indices = @transform_0, window_bounds = array<i64: 8, 256>}, {transform_indices = @transform_1, window_bounds = array<i64: 256, 128>}, {transform_indices = @transform_2, window_bounds = array<i64: 1, 128>}, {transform_indices = @transform_3, window_bounds = array<i64: 8, 128>}]} {
    %c0_i32 = arith.constant 0 : i32
    %0 = arith.cmpi eq, %arg2, %c0_i32 : i32
    %1 = arith.extui %0 : i1 to i32
    %c0_i32_0 = arith.constant 0 : i32
    %2 = arith.cmpi ne, %1, %c0_i32_0 : i32
    scf.if %2 {
      %cst_9 = arith.constant 0.000000e+00 : f32
      %12 = vector.broadcast %cst_9 : f32 to vector<8x128xf32>
      %c0_10 = arith.constant 0 : index
      %c0_11 = arith.constant 0 : index
      %13 = vector.load %arg7[%c0_10, %c0_11] : memref<8x128xf32, #tpu.memory_space<vmem>>, vector<8x128xf32>
      tpu.vector_store %arg7[%c0_10, %c0_11], %12 {strides = array<i32>} : memref<8x128xf32, #tpu.memory_space<vmem>>, vector<8x128xf32>,
    } else {
    }
    %c0 = arith.constant 0 : index
    %c0_1 = arith.constant 0 : index
    %3 = vector.load %arg7[%c0, %c0_1] : memref<8x128xf32, #tpu.memory_space<vmem>>, vector<8x128xf32>
    %c0_2 = arith.constant 0 : index
    %c0_3 = arith.constant 0 : index
    %4 = vector.load %arg3[%c0_2, %c0_3] : memref<8x256xbf16, #tpu.memory_space<vmem>>, vector<8x256xbf16>
    %c0_4 = arith.constant 0 : index
    %c0_5 = arith.constant 0 : index
    %5 = vector.load %arg4[%c0_4, %c0_5] : memref<256x128xbf16, #tpu.memory_space<vmem>>, vector<256x128xbf16>
    %cst = arith.constant dense<0.000000e+00> : vector<8x128xf32>
    %6 = tpu.matmul %4, %5, %cst {dimension_numbers = #tpu.dot_dimension_numbers<[1], [0], [0], [1], [0, 0, 1, 1], [], []>} : vector<8x256xbf16>, vector<256x128xbf16>, vector<8x128xf32> -> vector<8x128xf32>
    %7 = arith.addf %3, %6 : vector<8x128xf32>
    %c0_6 = arith.constant 0 : index
    %c0_7 = arith.constant 0 : index
    %8 = vector.load %arg7[%c0_6, %c0_7] : memref<8x128xf32, #tpu.memory_space<vmem>>, vector<8x128xf32>
    tpu.vector_store %arg7[%c0_6, %c0_7], %7 {strides = array<i32>} : memref<8x128xf32, #tpu.memory_space<vmem>>, vector<8x128xf32>,
    %c1_i32 = arith.constant 1 : i32
    %9 = arith.cmpi eq, %arg2, %c1_i32 : i32
    %10 = arith.extui %9 : i1 to i32
    %c0_i32_8 = arith.constant 0 : i32
    %11 = arith.cmpi ne, %10, %c0_i32_8 : i32
    scf.if %11 {
      %c0_9 = arith.constant 0 : index
      %c0_10 = arith.constant 0 : index
      %12 = vector.load %arg7[%c0_9, %c0_10] : memref<8x128xf32, #tpu.memory_space<vmem>>, vector<8x128xf32>
      %c0_11 = arith.constant 0 : index
      %c0_12 = arith.constant 0 : index
      %13 = vector.load %arg5[%c0_11, %c0_12] : memref<1x128xf32, #tpu.memory_space<vmem>>, vector<1x128xf32>
      %14 = vector.broadcast %13 : vector<1x128xf32> to vector<8x128xf32>
      %15 = arith.addf %12, %14 : vector<8x128xf32>
      %c0_13 = arith.constant 0 : index
      %c0_14 = arith.constant 0 : index
      %16 = vector.load %arg6[%c0_13, %c0_14] : memref<8x128xf32, #tpu.memory_space<vmem>>, vector<8x128xf32>
      tpu.vector_store %arg6[%c0_13, %c0_14], %15 {strides = array<i32>} : memref<8x128xf32, #tpu.memory_space<vmem>>, vector<8x128xf32>,
    } else {
    }
    return
  }
  func.func @transform_0(%arg0: i32, %arg1: i32, %arg2: i32) -> (i32, i32) {
    %c0_i32 = arith.constant 0 : i32
    return %arg0, %arg2 : i32, i32
  }
  func.func @transform_1(%arg0: i32, %arg1: i32, %arg2: i32) -> (i32, i32) {
    %c0_i32 = arith.constant 0 : i32
    return %arg2, %arg1 : i32, i32
  }
  func.func @transform_2(%arg0: i32, %arg1: i32, %arg2: i32) -> (i32, i32) {
    %c0_i32 = arith.constant 0 : i32
    %c0_i32_0 = arith.constant 0 : i32
    return %c0_i32, %arg1 : i32, i32
  }
  func.func @transform_3(%arg0: i32, %arg1: i32, %arg2: i32) -> (i32, i32) {
    %c0_i32 = arith.constant 0 : i32
    return %arg0, %arg1 : i32, i32
  }
}

</mosaic_0001>

<bundles_post_ra>
// kernel: custom_resnet_forward.22
= control target key start
LH: loop header
LB: loop body
LE: loop exit
PB: predicated region body
PF: predicated region fallthrough
CT: control target
= control target key end

     0   :  { %s1048_s12 = smov 0   ;;  %s1050_s13 = smov 0   ;;  %s1253_s0 = inlined_call_operand.vmem [shape: bf16[512,147], index: 0, kind: input, shape index: {}]   ;;  %s1254_s1 = inlined_call_operand.vmem [shape: bf16[147,64], index: 1, kind: input, shape index: {}]   ;;  %s1255_s2 = inlined_call_operand.vmem [shape: f32[1,64], index: 2, kind: input, shape index: {}]   ;;  %s1256_s3 = inlined_call_operand.vmem [shape: f32[512,64], index: 3, kind: output, shape index: {}]  }
   0x1   :  { %s1052_s14 = smov 0  }
   0x2 LB: > { %s32_s15 = sadd.s32 1, %s1020_s13  ;;  %p823_p0 = scmp.ge.s32.totalorder %s1024_s14, 1  ;;  %s1024_s14 = sphi %s1052_s14, %s13_s14   ;;  %s1020_s13 = sphi %s1050_s13, %s1258_s13   ;;  %s1016_s12 = sphi %s1048_s12, %s1257_s12  }
   0x3   : > { %p34_p1 = scmp.ge.s32.totalorder %s32_s15, 4  ;;  %p191_p2 = scmp.lt.s32.totalorder %s1024_s14, 5 }
   0x5   : > { %s1260_s15 = smov (%p34_p1, %s32_s15), 0  ;;  %p192_p3 = pnand %p823_p0, %p191_p2 }
   0x6   : > { %s824_s20 = sshll.u32 (!%p192_p3), %s1016_s12, 4 }
   0x7   : > { %195 = sbr.rel (%p192_p3) target bundleno = 249 (0xf9), region = 32  ;;  %p236_p4 = scmp.lt.s32.totalorder (!%p192_p3), %s824_s20, 63 }
   0xc   : > { %v963_v0 = vld [vmem:[%s1254_s1 + $0x38] sm:$0xff]  ;;  %v339_v1 = vld [vmem:[%s1254_s1 + $0x48] sm:$0x3]  ;;  %vm494_vm0 = vcmask 1040384   ;;  %vm495_vm1 = vcmask 1041408   ;;  %v962_v3 = vld [vmem:[%s1254_s1 + $0x30] sm:$0xff] }
   0xd   : > { %v449_v2 = vunpack.c.l.b16 %v339_v1  ;;  %501 = vmatpush.bf16.msra.mxu0 %v963_v0  ;;  %965 = vmatpush.bf16.msra.mxu2 %v963_v0  ;;  %v1026_v4 = vmov 65535   ;;  %s1262_s20 = smov (!%p236_p4, %s824_s20), 63  ;;  %v961_v9 = vld [vmem:[%s1254_s1 + $0x28] sm:$0xff]  ;;  %v964_v10 = vld [vmem:[%s1254_s1 + $0x40] sm:$0xff]  ;;  %vm469_vm2 = vcmask 154624   ;;  %v959_v18 = vld [vmem:[%s1254_s1 + $0x18] sm:$0xff] }
   0xe   : > { %v496_v5 = vsel %vm494_vm0, 4294967295, %v1026_v4  ;;  %s939_s25 = sshll.u32 %s1262_s20, 3  ;;  %v960_v14 = vld [vmem:[%s1254_s1 + $0x20] sm:$0xff]  ;;  %v958_v19 = vld [vmem:[%s1254_s1 + $0x10] sm:$0xff]  ;;  %v957_v20 = vld [vmem:[%s1254_s1 + $0x8] sm:$0xff]  ;;  %vm272_vm3 = vcmask 523264  }
   0xf   : > { %v459_v6 = vpack.c.b16 %v449_v2, %v449_v2  ;;  %v497_v7 = vsel %vm495_vm1, %v496_v5, 0  ;;  %s1089_s30 = scalar_lea.vmem %s1253_s0, %s939_s25  ;;  %v956_v26 = vld [vmem:[%s1254_s1] sm:$0xff]  ;;  %v1027_v0 = vmov 0.0   ;;  %s1177_s22 = scalar_lea.vmem %s1256_s3, %s939_s25 }
  0x10   : > { %v940_v11 = vld [vmem:[%s1089_s30 + $0x4] sm:$0xf]  ;;  %v833_v12 = vld [vmem:[%s1089_s30 + $0x8] sm:$0xf0]  ;;  %v950_v15 = vld [vmem:[%s1089_s30 + $0x54] sm:$0xf] }
  0x11   : > { %v499_v8 = vand.u32 %v497_v7, %v459_v6  ;;  %502 = vmatpush.bf16.msra.mxu0 %v962_v3  ;;  %966 = vmatpush.bf16.msra.mxu2 %v962_v3  ;;  %v836_v13 = vor.u32 %v940_v11, %v833_v12  ;;  %v873_v16 = vld [vmem:[%s1089_s30 + $0x58] sm:$0xf0]  ;;  %v942_v21 = vld [vmem:[%s1089_s30 + $0x14] sm:$0xf]  ;;  %v952_v23 = vld [vmem:[%s1089_s30 + $0x64] sm:$0xf] }
  0x12   : > { %v876_v17 = vor.u32 %v950_v15, %v873_v16  ;;  %v841_v22 = vld [vmem:[%s1089_s30 + $0x18] sm:$0xf0]  ;;  %v881_v24 = vld [vmem:[%s1089_s30 + $0x68] sm:$0xf0]  ;;  %v831_v27 = vld [vmem:[%s1089_s30] sm:$0xf] }
  0x13   : > { %556 = vmatpush.bf16.msra.mxu1 %v499_v8  ;;  %973 = vmatpush.bf16.msra.mxu3 %v499_v8  ;;  %v844_v25 = vor.u32 %v942_v21, %v841_v22  ;;  %v941_v28 = vld [vmem:[%s1089_s30 + $0x4] sm:$0xf0]  ;;  %v863_v29 = vld [vmem:[%s1089_s30 + $0x40] sm:$0xf]  ;;  %v884_v31 = vor.u32 %v952_v23, %v881_v24  ;;  %v944_v34 = vld [vmem:[%s1089_s30 + $0x24] sm:$0xf] }
  0x14   : > { %v949_v30 = vld [vmem:[%s1089_s30 + $0x44] sm:$0xf0]  ;;  %v832_v32 = vor.u32 %v941_v28, %v831_v27  ;;  %v849_v35 = vld [vmem:[%s1089_s30 + $0x28] sm:$0xf0]  ;;  %v954_v36 = vld [vmem:[%s1089_s30 + $0x74] sm:$0xf] }
  0x15   : > { %503 = vmatpush.bf16.msra.mxu0 %v961_v9  ;;  %967 = vmatpush.bf16.msra.mxu2 %v961_v9  ;;  %v864_v33 = vor.u32 %v949_v30, %v863_v29  ;;  %v889_v37 = vld [vmem:[%s1089_s30 + $0x78] sm:$0xf0]  ;;  %v852_v38 = vor.u32 %v944_v34, %v849_v35  ;;  %v839_v39 = vld [vmem:[%s1089_s30 + $0x10] sm:$0xf]  ;;  %v943_v40 = vld [vmem:[%s1089_s30 + $0x14] sm:$0xf0] }
  0x16   : > { %v871_v41 = vld [vmem:[%s1089_s30 + $0x50] sm:$0xf]  ;;  %v951_v42 = vld [vmem:[%s1089_s30 + $0x54] sm:$0xf0]  ;;  %v892_v43 = vor.u32 %v954_v36, %v889_v37  ;;  %v840_v44 = vor.u32 %v943_v40, %v839_v39  ;;  %v946_v46 = vld [vmem:[%s1089_s30 + $0x34] sm:$0xf] }
  0x17   : > { %557 = vmatpush.bf16.msra.mxu1 %v964_v10  ;;  %974 = vmatpush.bf16.msra.mxu3 %v964_v10  ;;  %v872_v45 = vor.u32 %v951_v42, %v871_v41  ;;  %v857_v47 = vld [vmem:[%s1089_s30 + $0x38] sm:$0xf0]  ;;  %v847_v49 = vld [vmem:[%s1089_s30 + $0x20] sm:$0xf]  ;;  %v945_v50 = vld [vmem:[%s1089_s30 + $0x24] sm:$0xf0] }
  0x18   : > { %v860_v48 = vor.u32 %v946_v46, %v857_v47  ;;  %v879_v51 = vld [vmem:[%s1089_s30 + $0x60] sm:$0xf]  ;;  %v953_v52 = vld [vmem:[%s1089_s30 + $0x64] sm:$0xf0]  ;;  %v848_v53 = vor.u32 %v945_v50, %v847_v49  ;;  %v948_v55 = vld [vmem:[%s1089_s30 + $0x44] sm:$0xf] }
  0x19   : > { %504 = vmatpush.bf16.msra.mxu0 %v960_v14  ;;  %968 = vmatpush.bf16.msra.mxu2 %v960_v14  ;;  %v880_v54 = vor.u32 %v953_v52, %v879_v51  ;;  %v865_v56 = vld [vmem:[%s1089_s30 + $0x48] sm:$0xf0]  ;;  %v855_v58 = vld [vmem:[%s1089_s30 + $0x30] sm:$0xf]  ;;  %v947_v59 = vld [vmem:[%s1089_s30 + $0x34] sm:$0xf0] }
  0x1a   : > { %929 = vmatmul.msk.bf16.vlgmr.msra.gmra.mxu1 %vm469_vm2, %v836_v13  ;;  %934 = vmatmul.msk.bf16.vlgmr.msra.gmra.mxu3 %vm469_vm2, %v876_v17  ;;  %v868_v57 = vor.u32 %v948_v55, %v865_v56  ;;  %v887_v60 = vld [vmem:[%s1089_s30 + $0x70] sm:$0xf]  ;;  %v955_v61 = vld [vmem:[%s1089_s30 + $0x74] sm:$0xf0]  ;;  %v856_v62 = vor.u32 %v947_v59, %v855_v58  ;;  %273 = vst.msk [vmem:[#allocation2] sm:$0xff] %vm272_vm3, %v1027_v0 }
  0x1b   : > { %v888_v63 = vor.u32 %v955_v61, %v887_v60  ;;  %274 = vst.msk [vmem:[#allocation2 + $0x8] sm:$0xff] %vm272_vm3, %v1027_v0  ;;  %v1168_v12 = vld [vmem:[%s1255_s2] ss:$0 sm:$0xff] }
  0x1c   : > { %275 = vst.msk [vmem:[#allocation2 + $0x10] sm:$0xff] %vm272_vm3, %v1027_v0 }
  0x1d   : > { %505 = vmatpush.bf16.msra.mxu0 %v959_v18  ;;  %969 = vmatpush.bf16.msra.mxu2 %v959_v18  ;;  %276 = vst.msk [vmem:[#allocation2 + $0x18] sm:$0xff] %vm272_vm3, %v1027_v0 }
  0x1e   : > { %277 = vst.msk [vmem:[#allocation2 + $0x20] sm:$0xff] %vm272_vm3, %v1027_v0 }
  0x1f   : > { %278 = vst.msk [vmem:[#allocation2 + $0x28] sm:$0xff] %vm272_vm3, %v1027_v0 }
  0x20   : > { %279 = vst.msk [vmem:[#allocation2 + $0x30] sm:$0xff] %vm272_vm3, %v1027_v0 }
  0x21   : > { %506 = vmatpush.bf16.msra.mxu0 %v958_v19  ;;  %970 = vmatpush.bf16.msra.mxu2 %v958_v19  ;;  %280 = vst.msk [vmem:[#allocation2 + $0x38] sm:$0xff] %vm272_vm3, %v1027_v0  ;;  %v289_v4 = vld [vmem:[#allocation2] sm:$0xff] }
  0x22   : > { %281 = vst.msk [vmem:[#allocation2 + $0x40] sm:$0xff] %vm272_vm3, %v1027_v0  ;;  %v290_v10 = vld [vmem:[#allocation2 + $0x8] sm:$0xff] }
  0x23   : > { %282 = vst.msk [vmem:[#allocation2 + $0x48] sm:$0xff] %vm272_vm3, %v1027_v0  ;;  %v291_v21 = vld [vmem:[#allocation2 + $0x10] sm:$0xff] }
  0x24   : > { %283 = vst.msk [vmem:[#allocation2 + $0x50] sm:$0xff] %vm272_vm3, %v1027_v0 }
  0x25   : > { %507 = vmatpush.bf16.msra.mxu0 %v957_v20  ;;  %971 = vmatpush.bf16.msra.mxu2 %v957_v20  ;;  %284 = vst.msk [vmem:[#allocation2 + $0x58] sm:$0xff] %vm272_vm3, %v1027_v0 }
  0x26   : > { %285 = vst.msk [vmem:[#allocation2 + $0x60] sm:$0xff] %vm272_vm3, %v1027_v0  ;;  %v294_v61 = vld [vmem:[#allocation2 + $0x28] sm:$0xff] }
  0x27   : > { %286 = vst.msk [vmem:[#allocation2 + $0x68] sm:$0xff] %vm272_vm3, %v1027_v0 }
  0x28   : > { %287 = vst.msk [vmem:[#allocation2 + $0x70] sm:$0xff] %vm272_vm3, %v1027_v0 }
  0x29   : > { %508 = vmatpush.bf16.msra.mxu0 %v956_v26  ;;  %972 = vmatpush.bf16.msra.mxu2 %v956_v26  ;;  %288 = vst.msk [vmem:[#allocation2 + $0x78] sm:$0xff] %vm272_vm3, %v1027_v0 }
  0x2a   : > { %930 = vmatmul.msk.bf16.gmra.mxu1 %vm469_vm2, %v844_v25  ;;  %935 = vmatmul.msk.bf16.gmra.mxu3 %vm469_vm2, %v884_v31 }
  0x2b   : > { %v299_v29 = vld [vmem:[#allocation2 + $0x50] sm:$0xff] }
  0x2c   : > { %509 = vmatmul.bf16.vlgmr.msra.gmra.mxu0 %v832_v32  ;;  %529 = vmatmul.bf16.vlgmr.msra.gmra.mxu2 %v864_v33  ;;  %v292_v33 = vld [vmem:[#allocation2 + $0x18] sm:$0xff] }
  0x2d   : > { %v300_v42 = vld [vmem:[#allocation2 + $0x58] sm:$0xff]  ;;  %v301_v58 = vld [vmem:[#allocation2 + $0x60] sm:$0xff] }
  0x3a   : > { %931 = vmatmul.msk.bf16.gmra.mxu1 %vm469_vm2, %v852_v38  ;;  %936 = vmatmul.msk.bf16.gmra.mxu3 %vm469_vm2, %v892_v43 }
  0x3c   : > { %514 = vmatmul.bf16.gmra.mxu0 %v840_v44  ;;  %534 = vmatmul.bf16.gmra.mxu2 %v872_v45  ;;  %v293_v45 = vld [vmem:[#allocation2 + $0x20] sm:$0xff] }
  0x4a   : > { %932 = vmatmul.msk.bf16.gmra.mxu1 %vm469_vm2, %v860_v48 }
  0x4c   : > { %519 = vmatmul.bf16.gmra.mxu0 %v848_v53  ;;  %539 = vmatmul.bf16.gmra.mxu2 %v880_v54 }
  0x5a   : > { %933 = vmatmul.msk.bf16.gmra.mxu1 %vm469_vm2, %v868_v57 }
  0x5c   : > { %524 = vmatmul.bf16.gmra.mxu0 %v856_v62  ;;  %544 = vmatmul.bf16.gmra.mxu2 %v888_v63 }
  0x97   : > { %v559_v1 = vpop.f32.mrf.mxu1 }
  0x9d   : > { %v584_v18 = vpop.f32.mrf.mxu3 }
  0x9f   : > { %v561_v2 = vpop.f32.mrf.mxu1 }
  0xa5   : > { %v586_v31 = vpop.f32.mrf.mxu3 }
  0xa7   : > { %v564_v3 = vpop.f32.mrf.mxu1 }
  0xa9   : > { %v510_v5 = vpop.f32.mrf.mxu0 }
  0xaa   : > { %v560_v6 = vadd.f32 %v559_v1, %v510_v5 }
  0xac   : > { %v599_v7 = vadd.f32 %v560_v6, %v289_v4 }
  0xad   : > { %v589_v47 = vpop.f32.mrf.mxu3 }
  0xae   : > { %616 = vst.msk [vmem:[#allocation2] sm:$0xff] %vm272_vm3, %v599_v7  ;;  %v297_v7 = vld [vmem:[#allocation2 + $0x40] sm:$0xff] }
  0xaf   : > { %v566_v8 = vpop.f32.mrf.mxu1  ;;  %v1163_v9 = vpop.f32.mrf.mxu2 }
  0xb1   : > { %v512_v11 = vpop.f32.mrf.mxu0 }
  0xb2   : > { %v562_v13 = vadd.f32 %v561_v2, %v512_v11 }
  0xb4   : > { %v600_v14 = vadd.f32 %v562_v13, %v290_v10 }
  0xb5   : > { %v635_v15 = vld [vmem:[#allocation2] sm:$0xff]  ;;  %v591_v2 = vpop.f32.mrf.mxu3 }
  0xb6   : > { %v655_v16 = vadd.f32 %v1168_v12, %v635_v15  ;;  %617 = vst.msk [vmem:[#allocation2 + $0x8] sm:$0xff] %vm272_vm3, %v600_v14  ;;  %v302_v14 = vld [vmem:[#allocation2 + $0x68] sm:$0xff] }
  0xb7   : > { %v569_v17 = vpop.f32.mrf.mxu1  ;;  %v1179_v20 = vpop.f32.mrf.mxu2 }
  0xb8   : > { %v671_v19 = vmax.f32 %v655_v16, 0.0 }
  0xb9   : > { %v515_v22 = vpop.f32.mrf.mxu0 }
  0xba   : > { %687 = vst.msk [vmem:[%s1177_s22] sm:$0xff] %vm272_vm3, %v671_v19  ;;  %v565_v23 = vadd.f32 %v564_v3, %v515_v22 }
  0xbc   : > { %v601_v24 = vadd.f32 %v565_v23, %v291_v21 }
  0xbd   : > { %v636_v25 = vld [vmem:[#allocation2 + $0x8] sm:$0xff] }
  0xbe   : > { %v656_v26 = vadd.f32 %v1168_v12, %v636_v25  ;;  %618 = vst.msk [vmem:[#allocation2 + $0x10] sm:$0xff] %vm272_vm3, %v601_v24 }
  0xbf   : > { %v571_v27 = vpop.f32.mrf.mxu1  ;;  %v535_v30 = vpop.f32.mrf.mxu2 }
  0xc0   : > { %v672_v28 = vmax.f32 %v656_v26, 0.0  ;;  %v585_v32 = vadd.f32 %v584_v18, %v535_v30  ;;  %v295_v18 = vld [vmem:[#allocation2 + $0x30] sm:$0xff] }
  0xc1   : > { %v517_v34 = vpop.f32.mrf.mxu0 }
  0xc2   : > { %688 = vst.msk [vmem:[%s1177_s22 + $0x8] sm:$0xff] %vm272_vm3, %v672_v28  ;;  %v567_v35 = vadd.f32 %v566_v8, %v517_v34  ;;  %v609_v36 = vadd.f32 %v585_v32, %v299_v29  ;;  %v298_v28 = vld [vmem:[#allocation2 + $0x48] sm:$0xff] }
  0xc4   : > { %v602_v37 = vadd.f32 %v567_v35, %v292_v33  ;;  %626 = vst.msk [vmem:[#allocation2 + $0x50] sm:$0xff] %vm272_vm3, %v609_v36  ;;  %v303_v33 = vld [vmem:[#allocation2 + $0x70] sm:$0xff] }
  0xc5   : > { %v637_v38 = vld [vmem:[#allocation2 + $0x10] sm:$0xff] }
  0xc6   : > { %v657_v39 = vadd.f32 %v1168_v12, %v637_v38  ;;  %619 = vst.msk [vmem:[#allocation2 + $0x18] sm:$0xff] %vm272_vm3, %v602_v37  ;;  %v296_v37 = vld [vmem:[#allocation2 + $0x38] sm:$0xff] }
  0xc7   : > { %v574_v40 = vpop.f32.mrf.mxu1  ;;  %v537_v43 = vpop.f32.mrf.mxu2 }
  0xc8   : > { %v673_v41 = vmax.f32 %v657_v39, 0.0  ;;  %v587_v44 = vadd.f32 %v586_v31, %v537_v43 }
  0xc9   : > { %v520_v46 = vpop.f32.mrf.mxu0 }
  0xca   : > { %689 = vst.msk [vmem:[%s1177_s22 + $0x10] sm:$0xff] %vm272_vm3, %v673_v41  ;;  %v570_v48 = vadd.f32 %v569_v17, %v520_v46  ;;  %v610_v49 = vadd.f32 %v587_v44, %v300_v42 }
  0xcb   : > { %v645_v50 = vld [vmem:[#allocation2 + $0x50] sm:$0xff] }
  0xcc   : > { %v603_v51 = vadd.f32 %v570_v48, %v293_v45  ;;  %v665_v52 = vadd.f32 %v1168_v12, %v645_v50  ;;  %627 = vst.msk [vmem:[#allocation2 + $0x58] sm:$0xff] %vm272_vm3, %v610_v49 }
  0xcd   : > { %v638_v53 = vld [vmem:[#allocation2 + $0x18] sm:$0xff] }
  0xce   : > { %v658_v54 = vadd.f32 %v1168_v12, %v638_v53  ;;  %620 = vst.msk [vmem:[#allocation2 + $0x20] sm:$0xff] %vm272_vm3, %v603_v51  ;;  %v681_v56 = vmax.f32 %v665_v52, 0.0  ;;  %v304_v51 = vld [vmem:[#allocation2 + $0x78] sm:$0xff] }
  0xcf   : > { %v576_v55 = vpop.f32.mrf.mxu1  ;;  %v540_v59 = vpop.f32.mrf.mxu2 }
  0xd0   : > { %v674_v57 = vmax.f32 %v658_v54, 0.0  ;;  %697 = vst.msk [vmem:[%s1177_s22 + $0x50] sm:$0xff] %vm272_vm3, %v681_v56  ;;  %v590_v60 = vadd.f32 %v589_v47, %v540_v59 }
  0xd1   : > { %v522_v62 = vpop.f32.mrf.mxu0 }
  0xd2   : > { %690 = vst.msk [vmem:[%s1177_s22 + $0x18] sm:$0xff] %vm272_vm3, %v674_v57  ;;  %v572_v63 = vadd.f32 %v571_v27, %v522_v62  ;;  %v611_v0 = vadd.f32 %v590_v60, %v301_v58  ;;  %v594_v27 = vpop.f32.mrf.mxu3 }
  0xd3   : > { %v646_v1 = vld [vmem:[#allocation2 + $0x58] sm:$0xff] }
  0xd4   : > { %v604_v3 = vadd.f32 %v572_v63, %v294_v61  ;;  %v666_v4 = vadd.f32 %v1168_v12, %v646_v1  ;;  %628 = vst.msk [vmem:[#allocation2 + $0x60] sm:$0xff] %vm272_vm3, %v611_v0 }
  0xd5   : > { %v639_v5 = vld [vmem:[#allocation2 + $0x20] sm:$0xff] }
  0xd6   : > { %v659_v6 = vadd.f32 %v1168_v12, %v639_v5  ;;  %621 = vst.msk [vmem:[#allocation2 + $0x28] sm:$0xff] %vm272_vm3, %v604_v3  ;;  %v682_v10 = vmax.f32 %v666_v4, 0.0 }
  0xd7   : > { %v579_v8 = vpop.f32.mrf.mxu1  ;;  %v542_v15 = vpop.f32.mrf.mxu2 }
  0xd8   : > { %v580_v11 = vadd.f32 %v579_v8, %v1163_v9  ;;  %v675_v13 = vmax.f32 %v659_v6, 0.0  ;;  %698 = vst.msk [vmem:[%s1177_s22 + $0x58] sm:$0xff] %vm272_vm3, %v682_v10  ;;  %v592_v17 = vadd.f32 %v591_v2, %v542_v15 }
  0xd9   : > { %v525_v19 = vpop.f32.mrf.mxu0 }
  0xda   : > { %v607_v16 = vadd.f32 %v580_v11, %v297_v7  ;;  %691 = vst.msk [vmem:[%s1177_s22 + $0x20] sm:$0xff] %vm272_vm3, %v675_v13  ;;  %v575_v21 = vadd.f32 %v574_v40, %v525_v19  ;;  %v612_v22 = vadd.f32 %v592_v17, %v302_v14  ;;  %v596_v50 = vpop.f32.mrf.mxu3 }
  0xdb   : > { %v647_v23 = vld [vmem:[#allocation2 + $0x60] sm:$0xff] }
  0xdc   : > { %624 = vst.msk [vmem:[#allocation2 + $0x40] sm:$0xff] %vm272_vm3, %v607_v16  ;;  %v605_v24 = vadd.f32 %v575_v21, %v295_v18  ;;  %v667_v9 = vadd.f32 %v1168_v12, %v647_v23 }
  0xdd   : > { %v640_v25 = vld [vmem:[#allocation2 + $0x28] sm:$0xff]  ;;  %629 = vst.msk [vmem:[#allocation2 + $0x68] sm:$0xff] %vm272_vm3, %v612_v22 }
  0xde   : > { %v660_v26 = vadd.f32 %v1168_v12, %v640_v25  ;;  %622 = vst.msk [vmem:[#allocation2 + $0x30] sm:$0xff] %vm272_vm3, %v605_v24  ;;  %v683_v30 = vmax.f32 %v667_v9, 0.0 }
  0xdf   : > { %v581_v29 = vpop.f32.mrf.mxu1  ;;  %v545_v34 = vpop.f32.mrf.mxu2 }
  0xe0   : > { %v582_v31 = vadd.f32 %v581_v29, %v1179_v20  ;;  %v676_v32 = vmax.f32 %v660_v26, 0.0  ;;  %699 = vst.msk [vmem:[%s1177_s22 + $0x60] sm:$0xff] %vm272_vm3, %v683_v30  ;;  %v595_v36 = vadd.f32 %v594_v27, %v545_v34 }
  0xe1   : > { %v527_v38 = vpop.f32.mrf.mxu0 }
  0xe2   : > { %v608_v35 = vadd.f32 %v582_v31, %v298_v28  ;;  %692 = vst.msk [vmem:[%s1177_s22 + $0x28] sm:$0xff] %vm272_vm3, %v676_v32  ;;  %v577_v40 = vadd.f32 %v576_v55, %v527_v38  ;;  %v613_v20 = vadd.f32 %v595_v36, %v303_v33 }
  0xe3   : > { %v643_v39 = vld [vmem:[#allocation2 + $0x40] sm:$0xff] }
  0xe4   : > { %v663_v41 = vadd.f32 %v1168_v12, %v643_v39  ;;  %625 = vst.msk [vmem:[#allocation2 + $0x48] sm:$0xff] %vm272_vm3, %v608_v35  ;;  %v648_v42 = vld [vmem:[#allocation2 + $0x68] sm:$0xff]  ;;  %v606_v43 = vadd.f32 %v577_v40, %v296_v37 }
  0xe5   : > { %v668_v45 = vadd.f32 %v1168_v12, %v648_v42  ;;  %v641_v46 = vld [vmem:[#allocation2 + $0x30] sm:$0xff]  ;;  %630 = vst.msk [vmem:[#allocation2 + $0x70] sm:$0xff] %vm272_vm3, %v613_v20 }
  0xe6   : > { %v679_v44 = vmax.f32 %v663_v41, 0.0  ;;  %v661_v47 = vadd.f32 %v1168_v12, %v641_v46  ;;  %623 = vst.msk [vmem:[#allocation2 + $0x38] sm:$0xff] %vm272_vm3, %v606_v43 }
  0xe7   : > { %v684_v48 = vmax.f32 %v668_v45, 0.0  ;;  %v547_v52 = vpop.f32.mrf.mxu2 }
  0xe8   : > { %695 = vst.msk [vmem:[%s1177_s22 + $0x40] sm:$0xff] %vm272_vm3, %v679_v44  ;;  %v677_v49 = vmax.f32 %v661_v47, 0.0  ;;  %v597_v53 = vadd.f32 %v596_v50, %v547_v52 }
  0xe9   : > { %700 = vst.msk [vmem:[%s1177_s22 + $0x68] sm:$0xff] %vm272_vm3, %v684_v48 }
  0xea   : > { %693 = vst.msk [vmem:[%s1177_s22 + $0x30] sm:$0xff] %vm272_vm3, %v677_v49  ;;  %v614_v56 = vadd.f32 %v597_v53, %v304_v51 }
  0xeb   : > { %v644_v54 = vld [vmem:[#allocation2 + $0x48] sm:$0xff] }
  0xec   : > { %v664_v55 = vadd.f32 %v1168_v12, %v644_v54  ;;  %v649_v57 = vld [vmem:[#allocation2 + $0x70] sm:$0xff]  ;;  %631 = vst.msk [vmem:[#allocation2 + $0x78] sm:$0xff] %vm272_vm3, %v614_v56 }
  0xed   : > { %v669_v59 = vadd.f32 %v1168_v12, %v649_v57  ;;  %v642_v60 = vld [vmem:[#allocation2 + $0x38] sm:$0xff] }
  0xee   : > { %v680_v58 = vmax.f32 %v664_v55, 0.0  ;;  %v662_v61 = vadd.f32 %v1168_v12, %v642_v60 }
  0xef   : > { %v685_v62 = vmax.f32 %v669_v59, 0.0 }
  0xf0   : > { %696 = vst.msk [vmem:[%s1177_s22 + $0x48] sm:$0xff] %vm272_vm3, %v680_v58  ;;  %v678_v63 = vmax.f32 %v662_v61, 0.0 }
  0xf1   : > { %701 = vst.msk [vmem:[%s1177_s22 + $0x70] sm:$0xff] %vm272_vm3, %v685_v62 }
  0xf2   : > { %694 = vst.msk [vmem:[%s1177_s22 + $0x38] sm:$0xff] %vm272_vm3, %v678_v63 }
  0xf3   : > { %v650_v0 = vld [vmem:[#allocation2 + $0x78] sm:$0xff] }
  0xf4   : > { %v670_v1 = vadd.f32 %v1168_v12, %v650_v0 }
  0xf6   : > { %v686_v2 = vmax.f32 %v670_v1, 0.0 }
  0xf8   : > { %702 = vst.msk [vmem:[%s1177_s22 + $0x78] sm:$0xff] %vm272_vm3, %v686_v2 }
  0xf9 PF: > { %s13_s14 = sadd.s32 1, %s1024_s14   ;;  %s1257_s12 = smov %s1020_s13 }
  0xfa   : > { %p10_p5 = scmp.ge.s32.totalorder %s13_s14, 6   ;;  %s1258_s13 = smov %s1260_s15 }
  0xfc   :  { %12 = sbr.rel (!%p10_p5) target bundleno = 2 (0x2), region = 76 }

// kernel: custom_resnet_forward.23
= control target key start
LH: loop header
LB: loop body
LE: loop exit
PB: predicated region body
PF: predicated region fallthrough
CT: control target
= control target key end

     0   :  { %vm19_vm0 = vcmask 523264   ;;  %s1909_s1 = inlined_call_operand.vmem [shape: bf16[576,64], index: 1, kind: input, shape index: {}]   ;;  %s1910_s0 = inlined_call_operand.vmem [shape: bf16[128,576], index: 0, kind: input, shape index: {}]   ;;  %s1911_s2 = inlined_call_operand.vmem [shape: f32[1,64], index: 2, kind: input, shape index: {}]   ;;  %s1912_s3 = inlined_call_operand.vmem [shape: f32[128,64], index: 3, kind: output, shape index: {}]  }
   0x1   :  { %v1324_v0 = vld [vmem:[%s1909_s1 + $0x38] sm:$0xff]  ;;  %v1323_v1 = vld [vmem:[%s1909_s1 + $0x30] sm:$0xff]  ;;  %v1322_v2 = vld [vmem:[%s1909_s1 + $0x28] sm:$0xff] }
   0x2   :  { %1353 = vmatpush.bf16.msra.mxu1 %v1324_v0  ;;  %1354 = vmatpush.bf16.msra.mxu2 %v1324_v0  ;;  %v1321_v3 = vld [vmem:[%s1909_s1 + $0x20] sm:$0xff]  ;;  %v1320_v4 = vld [vmem:[%s1909_s1 + $0x18] sm:$0xff]  ;;  %v1319_v5 = vld [vmem:[%s1909_s1 + $0x10] sm:$0xff] }
   0x3   :  { %1355 = vmatpush.bf16.msra.mxu3 %v1324_v0  ;;  %613 = vmatpush.bf16.msra.mxu0 %v1324_v0  ;;  %v1318_v6 = vld [vmem:[%s1909_s1 + $0x8] sm:$0xff]  ;;  %v1317_v7 = vld [vmem:[%s1909_s1] sm:$0xff]  ;;  %v1007_v8 = vld [vmem:[%s1910_s0 + $0x50] sm:$0xf] }
   0x4   :  { %v1289_v9 = vld [vmem:[%s1910_s0 + $0x60] sm:$0xf0]  ;;  %v1047_v10 = vld [vmem:[%s1910_s0 + $0xa0] sm:$0xf]  ;;  %v1299_v11 = vld [vmem:[%s1910_s0 + $0xb0] sm:$0xf0] }
   0x5   :  { %v1087_v12 = vld [vmem:[%s1910_s0 + $0xf0] sm:$0xf]  ;;  %v1309_v13 = vld [vmem:[%s1910_s0 + $0x100] sm:$0xf0]  ;;  %v967_v14 = vld [vmem:[%s1910_s0] sm:$0xf]  ;;  %v1008_v18 = vor.u32 %v1289_v9, %v1007_v8  ;;  %v1048_v19 = vor.u32 %v1299_v11, %v1047_v10 }
   0x6   :  { %1356 = vmatpush.bf16.msra.mxu1 %v1323_v1  ;;  %1357 = vmatpush.bf16.msra.mxu2 %v1323_v1  ;;  %v1279_v15 = vld [vmem:[%s1910_s0 + $0x10] sm:$0xf0]  ;;  %v1340_v16 = vld [vmem:[%s1909_s1 + $0xb8] sm:$0xff]  ;;  %v1088_v20 = vor.u32 %v1309_v13, %v1087_v12  ;;  %v1338_v28 = vld [vmem:[%s1909_s1 + $0xa8] sm:$0xff] }
   0x7   :  { %1358 = vmatpush.bf16.msra.mxu3 %v1323_v1  ;;  %614 = vmatpush.bf16.msra.mxu0 %v1323_v1  ;;  %v1332_v17 = vld [vmem:[%s1909_s1 + $0x78] sm:$0xff]  ;;  %v968_v21 = vor.u32 %v1279_v15, %v967_v14  ;;  %v1339_v24 = vld [vmem:[%s1909_s1 + $0xb0] sm:$0xff]  ;;  %v1330_v29 = vld [vmem:[%s1909_s1 + $0x68] sm:$0xff] }
   0x8   :  { %v1348_v22 = vld [vmem:[%s1909_s1 + $0xf8] sm:$0xff]  ;;  %v1331_v25 = vld [vmem:[%s1909_s1 + $0x70] sm:$0xff]  ;;  %v1346_v30 = vld [vmem:[%s1909_s1 + $0xe8] sm:$0xff] }
   0x9   :  { %v1352_v23 = vld [vmem:[%s1909_s1 + $0x118] sm:$0xff]  ;;  %v1347_v26 = vld [vmem:[%s1909_s1 + $0xf0] sm:$0xff]  ;;  %v1350_v31 = vld [vmem:[%s1909_s1 + $0x108] sm:$0xff] }
   0xa   :  { %1359 = vmatpush.bf16.msra.mxu1 %v1322_v2  ;;  %1360 = vmatpush.bf16.msra.mxu2 %v1322_v2  ;;  %v1351_v27 = vld [vmem:[%s1909_s1 + $0x110] sm:$0xff]  ;;  %v1337_v32 = vld [vmem:[%s1909_s1 + $0xa0] sm:$0xff]  ;;  %v1027_v35 = vld [vmem:[%s1910_s0 + $0x78] sm:$0xf] }
   0xb   :  { %1361 = vmatpush.bf16.msra.mxu3 %v1322_v2  ;;  %615 = vmatpush.bf16.msra.mxu0 %v1322_v2  ;;  %v1329_v33 = vld [vmem:[%s1909_s1 + $0x60] sm:$0xff]  ;;  %v1294_v36 = vld [vmem:[%s1910_s0 + $0x88] sm:$0xf0]  ;;  %v1067_v37 = vld [vmem:[%s1910_s0 + $0xc8] sm:$0xf] }
   0xc   :  { %v1345_v34 = vld [vmem:[%s1909_s1 + $0xe0] sm:$0xff]  ;;  %v1304_v38 = vld [vmem:[%s1910_s0 + $0xd8] sm:$0xf0]  ;;  %v1107_v39 = vld [vmem:[%s1910_s0 + $0x118] sm:$0xf]  ;;  %v1028_v46 = vor.u32 %v1294_v36, %v1027_v35 }
   0xd   :  { %v1314_v40 = vld [vmem:[%s1910_s0 + $0x128] sm:$0xf0]  ;;  %v987_v41 = vld [vmem:[%s1910_s0 + $0x28] sm:$0xf]  ;;  %v1284_v42 = vld [vmem:[%s1910_s0 + $0x38] sm:$0xf0]  ;;  %v1068_v47 = vor.u32 %v1304_v38, %v1067_v37 }
   0xe   :  { %1362 = vmatpush.bf16.msra.mxu1 %v1321_v3  ;;  %1363 = vmatpush.bf16.msra.mxu2 %v1321_v3  ;;  %v1349_v43 = vld [vmem:[%s1909_s1 + $0x100] sm:$0xff]  ;;  %v1336_v44 = vld [vmem:[%s1909_s1 + $0x98] sm:$0xff]  ;;  %v1108_v48 = vor.u32 %v1314_v40, %v1107_v39  ;;  %v988_v49 = vor.u32 %v1284_v42, %v987_v41  ;;  %v1335_v51 = vld [vmem:[%s1909_s1 + $0x90] sm:$0xff] }
   0xf   :  { %1364 = vmatpush.bf16.msra.mxu3 %v1321_v3  ;;  %616 = vmatpush.bf16.msra.mxu0 %v1321_v3  ;;  %v1328_v45 = vld [vmem:[%s1909_s1 + $0x58] sm:$0xff]  ;;  %v1327_v52 = vld [vmem:[%s1909_s1 + $0x50] sm:$0xff]  ;;  %v1334_v54 = vld [vmem:[%s1909_s1 + $0x88] sm:$0xff] }
  0x10   :  { %v1344_v50 = vld [vmem:[%s1909_s1 + $0xd8] sm:$0xff]  ;;  %v1343_v53 = vld [vmem:[%s1909_s1 + $0xd0] sm:$0xff]  ;;  %v1326_v55 = vld [vmem:[%s1909_s1 + $0x48] sm:$0xff] }
  0x11   :  { %v1342_v56 = vld [vmem:[%s1909_s1 + $0xc8] sm:$0xff]  ;;  %v1333_v57 = vld [vmem:[%s1909_s1 + $0x80] sm:$0xff]  ;;  %v969_v61 = vld [vmem:[%s1910_s0 + $0x14] sm:$0xf0] }
  0x12   :  { %1365 = vmatpush.bf16.msra.mxu1 %v1320_v4  ;;  %1366 = vmatpush.bf16.msra.mxu2 %v1320_v4  ;;  %v1325_v58 = vld [vmem:[%s1909_s1 + $0x40] sm:$0xff]  ;;  %v975_v62 = vld [vmem:[%s1910_s0 + $0x8] sm:$0xf]  ;;  %v1280_v63 = vld [vmem:[%s1910_s0 + $0x18] sm:$0xf0] }
  0x13   :  { %1367 = vmatpush.bf16.msra.mxu3 %v1320_v4  ;;  %617 = vmatpush.bf16.msra.mxu0 %v1320_v4  ;;  %v1341_v59 = vld [vmem:[%s1909_s1 + $0xc0] sm:$0xff]  ;;  %v1278_v0 = vld [vmem:[%s1910_s0 + $0xc] sm:$0xf]  ;;  %v983_v2 = vld [vmem:[%s1910_s0 + $0x10] sm:$0xf] }
  0x14   :  { %v1277_v60 = vld [vmem:[%s1910_s0 + $0x4] sm:$0xf]  ;;  %v977_v1 = vld [vmem:[%s1910_s0 + $0x1c] sm:$0xf0]  ;;  %v1282_v8 = vld [vmem:[%s1910_s0 + $0x2c] sm:$0xf] }
  0x15   :  { %v1281_v3 = vld [vmem:[%s1910_s0 + $0x20] sm:$0xf0]  ;;  %v972_v4 = vor.u32 %v1277_v60, %v969_v61  ;;  %v989_v9 = vld [vmem:[%s1910_s0 + $0x3c] sm:$0xf0]  ;;  %v995_v10 = vld [vmem:[%s1910_s0 + $0x30] sm:$0xf] }
  0x16   :  { %1368 = vmatpush.bf16.msra.mxu1 %v1319_v5  ;;  %1369 = vmatpush.bf16.msra.mxu2 %v1319_v5  ;;  %v1285_v11 = vld [vmem:[%s1910_s0 + $0x40] sm:$0xf0]  ;;  %v1283_v12 = vld [vmem:[%s1910_s0 + $0x34] sm:$0xf]  ;;  %v997_v13 = vld [vmem:[%s1910_s0 + $0x44] sm:$0xf0] }
  0x17   :  { %1370 = vmatpush.bf16.msra.mxu3 %v1319_v5  ;;  %618 = vmatpush.bf16.msra.mxu0 %v1319_v5  ;;  %v976_v5 = vor.u32 %v1280_v63, %v975_v62  ;;  %v1003_v14 = vld [vmem:[%s1910_s0 + $0x38] sm:$0xf]  ;;  %v1286_v15 = vld [vmem:[%s1910_s0 + $0x48] sm:$0xf0]  ;;  %v1295_v35 = vld [vmem:[%s1910_s0 + $0x90] sm:$0xf0] }
  0x18   :  { %v1293_v36 = vld [vmem:[%s1910_s0 + $0x84] sm:$0xf]  ;;  %v1037_v37 = vld [vmem:[%s1910_s0 + $0x94] sm:$0xf0]  ;;  %v1043_v38 = vld [vmem:[%s1910_s0 + $0x88] sm:$0xf] }
  0x19   :  { %v1296_v39 = vld [vmem:[%s1910_s0 + $0x98] sm:$0xf0]  ;;  %v1040_v42 = vor.u32 %v1293_v36, %v1037_v37  ;;  %v1303_v60 = vld [vmem:[%s1910_s0 + $0xd4] sm:$0xf]  ;;  %v1077_v61 = vld [vmem:[%s1910_s0 + $0xe4] sm:$0xf0] }
  0x1a   :  { %1371 = vmatpush.bf16.msra.mxu1 %v1318_v6  ;;  %1372 = vmatpush.bf16.msra.mxu2 %v1318_v6  ;;  %v1083_v62 = vld [vmem:[%s1910_s0 + $0xd8] sm:$0xf]  ;;  %v1306_v63 = vld [vmem:[%s1910_s0 + $0xe8] sm:$0xf0] }
  0x1b   :  { %1373 = vmatpush.bf16.msra.mxu3 %v1318_v6  ;;  %619 = vmatpush.bf16.msra.mxu0 %v1318_v6  ;;  %v980_v6 = vor.u32 %v1278_v0, %v977_v1 }
  0x1e   :  { %1374 = vmatpush.bf16.msra.mxu1 %v1317_v7  ;;  %1375 = vmatpush.bf16.msra.mxu2 %v1317_v7 }
  0x1f   :  { %1376 = vmatpush.bf16.msra.mxu3 %v1317_v7  ;;  %620 = vmatpush.bf16.msra.mxu0 %v1317_v7  ;;  %v984_v7 = vor.u32 %v1281_v3, %v983_v2  ;;  %v1080_v2 = vor.u32 %v1303_v60, %v1077_v61  ;;  %v1084_v3 = vor.u32 %v1306_v63, %v1083_v62 }
  0x21   :  { %631 = vmatmul.bf16.vlgmr.msra.gmra.mxu1 %v1008_v18  ;;  %641 = vmatmul.bf16.vlgmr.msra.gmra.mxu2 %v1048_v19  ;;  %v1000_v18 = vor.u32 %v1283_v12, %v997_v13  ;;  %v1004_v19 = vor.u32 %v1286_v15, %v1003_v14 }
  0x22   :  { %711 = vmatpush.bf16.msrb.mxu2 %v1340_v16  ;;  %662 = vmatpush.bf16.msrb.mxu1 %v1332_v17  ;;  %v992_v16 = vor.u32 %v1282_v8, %v989_v9  ;;  %v996_v17 = vor.u32 %v1285_v11, %v995_v10  ;;  %v1308_v8 = vld [vmem:[%s1910_s0 + $0xfc] sm:$0xf]  ;;  %v1097_v9 = vld [vmem:[%s1910_s0 + $0x10c] sm:$0xf0]  ;;  %v1103_v10 = vld [vmem:[%s1910_s0 + $0x100] sm:$0xf] }
  0x23   :  { %651 = vmatmul.bf16.vlgmr.msra.gmra.mxu3 %v1088_v20  ;;  %621 = vmatmul.bf16.vlgmr.msra.gmra.mxu0 %v968_v21  ;;  %v1287_v20 = vld [vmem:[%s1910_s0 + $0x54] sm:$0xf]  ;;  %v1009_v21 = vld [vmem:[%s1910_s0 + $0x64] sm:$0xf0]  ;;  %v1100_v15 = vor.u32 %v1308_v8, %v1097_v9 }
  0x24   :  { %760 = vmatpush.bf16.msrb.mxu3 %v1348_v22  ;;  %813 = vmatpush.bf16.msrb.mxu0 %v1352_v23  ;;  %v1015_v22 = vld [vmem:[%s1910_s0 + $0x58] sm:$0xf]  ;;  %v1290_v23 = vld [vmem:[%s1910_s0 + $0x68] sm:$0xf0]  ;;  %v1311_v11 = vld [vmem:[%s1910_s0 + $0x110] sm:$0xf0] }
  0x26   :  { %712 = vmatpush.bf16.msrb.mxu2 %v1339_v24  ;;  %663 = vmatpush.bf16.msrb.mxu1 %v1331_v25  ;;  %v1288_v24 = vld [vmem:[%s1910_s0 + $0x5c] sm:$0xf]  ;;  %v1017_v25 = vld [vmem:[%s1910_s0 + $0x6c] sm:$0xf0] }
  0x28   :  { %761 = vmatpush.bf16.msrb.mxu3 %v1347_v26  ;;  %814 = vmatpush.bf16.msrb.mxu0 %v1351_v27  ;;  %v1023_v26 = vld [vmem:[%s1910_s0 + $0x60] sm:$0xf]  ;;  %v1291_v27 = vld [vmem:[%s1910_s0 + $0x70] sm:$0xf0] }
  0x2a   :  { %713 = vmatpush.bf16.msrb.mxu2 %v1338_v28  ;;  %664 = vmatpush.bf16.msrb.mxu1 %v1330_v29  ;;  %v1012_v28 = vor.u32 %v1287_v20, %v1009_v21  ;;  %v1016_v29 = vor.u32 %v1290_v23, %v1015_v22  ;;  %v1312_v23 = vld [vmem:[%s1910_s0 + $0x11c] sm:$0xf] }
  0x2c   :  { %762 = vmatpush.bf16.msrb.mxu3 %v1346_v30  ;;  %815 = vmatpush.bf16.msrb.mxu0 %v1350_v31  ;;  %v1020_v30 = vor.u32 %v1288_v24, %v1017_v25  ;;  %v1024_v31 = vor.u32 %v1291_v27, %v1023_v26  ;;  %v1109_v24 = vld [vmem:[%s1910_s0 + $0x12c] sm:$0xf0]  ;;  %v1115_v25 = vld [vmem:[%s1910_s0 + $0x120] sm:$0xf]  ;;  %v1315_v26 = vld [vmem:[%s1910_s0 + $0x130] sm:$0xf0] }
  0x2d   :  { %v1313_v27 = vld [vmem:[%s1910_s0 + $0x124] sm:$0xf] }
  0x2e   :  { %714 = vmatpush.bf16.msrb.mxu2 %v1337_v32  ;;  %665 = vmatpush.bf16.msrb.mxu1 %v1329_v33  ;;  %v1292_v32 = vld [vmem:[%s1910_s0 + $0x7c] sm:$0xf]  ;;  %v1029_v33 = vld [vmem:[%s1910_s0 + $0x8c] sm:$0xf0] }
  0x2f   :  { %v1032_v40 = vor.u32 %v1292_v32, %v1029_v33  ;;  %v1112_v33 = vor.u32 %v1312_v23, %v1109_v24 }
  0x30   :  { %763 = vmatpush.bf16.msrb.mxu3 %v1345_v34  ;;  %816 = vmatpush.bf16.msrb.mxu0 %v1349_v43  ;;  %v1035_v34 = vld [vmem:[%s1910_s0 + $0x80] sm:$0xf]  ;;  %v1044_v43 = vor.u32 %v1296_v39, %v1043_v38 }
  0x31   :  { %636 = vmatmul.bf16.gmra.mxu1 %v1028_v46  ;;  %646 = vmatmul.bf16.gmra.mxu2 %v1068_v47  ;;  %v1036_v41 = vor.u32 %v1295_v35, %v1035_v34  ;;  %v1055_v46 = vld [vmem:[%s1910_s0 + $0xa8] sm:$0xf]  ;;  %v1300_v47 = vld [vmem:[%s1910_s0 + $0xb8] sm:$0xf0]  ;;  %v1116_v34 = vor.u32 %v1315_v26, %v1115_v25 }
  0x32   :  { %715 = vmatpush.bf16.msrb.mxu2 %v1336_v44  ;;  %666 = vmatpush.bf16.msrb.mxu1 %v1328_v45  ;;  %v1297_v44 = vld [vmem:[%s1910_s0 + $0xa4] sm:$0xf]  ;;  %v1049_v45 = vld [vmem:[%s1910_s0 + $0xb4] sm:$0xf0] }
  0x33   :  { %656 = vmatmul.bf16.gmra.mxu3 %v1108_v48  ;;  %626 = vmatmul.bf16.gmra.mxu0 %v988_v49  ;;  %v1298_v48 = vld [vmem:[%s1910_s0 + $0xac] sm:$0xf]  ;;  %v1057_v49 = vld [vmem:[%s1910_s0 + $0xbc] sm:$0xf0] }
  0x34   :  { %764 = vmatpush.bf16.msrb.mxu3 %v1344_v50  ;;  %v1063_v50 = vld [vmem:[%s1910_s0 + $0xb0] sm:$0xf] }
  0x36   :  { %716 = vmatpush.bf16.msrb.mxu2 %v1335_v51  ;;  %667 = vmatpush.bf16.msrb.mxu1 %v1327_v52  ;;  %v1301_v51 = vld [vmem:[%s1910_s0 + $0xc0] sm:$0xf0]  ;;  %v1052_v52 = vor.u32 %v1297_v44, %v1049_v45 }
  0x38   :  { %765 = vmatpush.bf16.msrb.mxu3 %v1343_v53  ;;  %v1056_v53 = vor.u32 %v1300_v47, %v1055_v46 }
  0x3a   :  { %717 = vmatpush.bf16.msrb.mxu2 %v1334_v54  ;;  %668 = vmatpush.bf16.msrb.mxu1 %v1326_v55  ;;  %v1060_v54 = vor.u32 %v1298_v48, %v1057_v49  ;;  %v1064_v55 = vor.u32 %v1301_v51, %v1063_v50 }
  0x3c   :  { %766 = vmatpush.bf16.msrb.mxu3 %v1342_v56  ;;  %v1302_v56 = vld [vmem:[%s1910_s0 + $0xcc] sm:$0xf] }
  0x3e   :  { %718 = vmatpush.bf16.msrb.mxu2 %v1333_v57  ;;  %669 = vmatpush.bf16.msrb.mxu1 %v1325_v58  ;;  %v1069_v57 = vld [vmem:[%s1910_s0 + $0xdc] sm:$0xf0]  ;;  %v1075_v58 = vld [vmem:[%s1910_s0 + $0xd0] sm:$0xf] }
  0x3f   :  { %v1072_v0 = vor.u32 %v1302_v56, %v1069_v57 }
  0x40   :  { %767 = vmatpush.bf16.msrb.mxu3 %v1341_v59  ;;  %v1305_v59 = vld [vmem:[%s1910_s0 + $0xe0] sm:$0xf0] }
  0x41   :  { %670 = vmatmul.bf16.vlgmr.msrb.gmra.mxu1 %v972_v4  ;;  %719 = vmatmul.bf16.vlgmr.msrb.gmra.mxu2 %v976_v5  ;;  %v1076_v1 = vor.u32 %v1305_v59, %v1075_v58  ;;  %v1307_v4 = vld [vmem:[%s1910_s0 + $0xf4] sm:$0xf]  ;;  %v1089_v5 = vld [vmem:[%s1910_s0 + $0x104] sm:$0xf0] }
  0x42   :  { %v1092_v12 = vor.u32 %v1307_v4, %v1089_v5 }
  0x43   :  { %768 = vmatmul.bf16.vlgmr.msrb.gmra.mxu3 %v980_v6  ;;  %1269 = vmatmul.msk.bf16.vlgmr.msrb.gmra.mxu0 %vm19_vm0, %v984_v7  ;;  %v1095_v6 = vld [vmem:[%s1910_s0 + $0xf8] sm:$0xf]  ;;  %v1310_v7 = vld [vmem:[%s1910_s0 + $0x108] sm:$0xf0] }
  0x44   :  { %v1096_v13 = vor.u32 %v1310_v7, %v1095_v6 }
  0x51   :  { %675 = vmatmul.bf16.gmra.mxu1 %v992_v16  ;;  %724 = vmatmul.bf16.gmra.mxu2 %v996_v17  ;;  %v1104_v16 = vor.u32 %v1311_v11, %v1103_v10 }
  0x53   :  { %773 = vmatmul.bf16.gmra.mxu3 %v1000_v18  ;;  %1270 = vmatmul.msk.bf16.gmra.mxu0 %vm19_vm0, %v1004_v19  ;;  %v1379_v19 = vmov 0.0  }
  0x54   :  { %20 = vst.msk [vmem:[#allocation2] sm:$0xff] %vm19_vm0, %v1379_v19 }
  0x55   :  { %21 = vst.msk [vmem:[#allocation2 + $0x8] sm:$0xff] %vm19_vm0, %v1379_v19 }
  0x56   :  { %22 = vst.msk [vmem:[#allocation2 + $0x10] sm:$0xff] %vm19_vm0, %v1379_v19 }
  0x57   :  { %23 = vst.msk [vmem:[#allocation2 + $0x18] sm:$0xff] %vm19_vm0, %v1379_v19 }
  0x58   :  { %24 = vst.msk [vmem:[#allocation2 + $0x20] sm:$0xff] %vm19_vm0, %v1379_v19 }
  0x59   :  { %25 = vst.msk [vmem:[#allocation2 + $0x28] sm:$0xff] %vm19_vm0, %v1379_v19 }
  0x5a   :  { %26 = vst.msk [vmem:[#allocation2 + $0x30] sm:$0xff] %vm19_vm0, %v1379_v19 }
  0x5b   :  { %27 = vst.msk [vmem:[#allocation2 + $0x38] sm:$0xff] %vm19_vm0, %v1379_v19 }
  0x5c   :  { %28 = vst.msk [vmem:[#allocation2 + $0x40] sm:$0xff] %vm19_vm0, %v1379_v19 }
  0x5d   :  { %29 = vst.msk [vmem:[#allocation2 + $0x48] sm:$0xff] %vm19_vm0, %v1379_v19 }
  0x5e   :  { %30 = vst.msk [vmem:[#allocation2 + $0x50] sm:$0xff] %vm19_vm0, %v1379_v19 }
  0x5f   :  { %31 = vst.msk [vmem:[#allocation2 + $0x58] sm:$0xff] %vm19_vm0, %v1379_v19 }
  0x60   :  { %32 = vst.msk [vmem:[#allocation2 + $0x60] sm:$0xff] %vm19_vm0, %v1379_v19 }
  0x61   :  { %680 = vmatmul.bf16.gmra.mxu1 %v1012_v28  ;;  %729 = vmatmul.bf16.gmra.mxu2 %v1016_v29  ;;  %v1117_v28 = vld [vmem:[%s1910_s0 + $0x134] sm:$0xf0]  ;;  %v1123_v29 = vld [vmem:[%s1910_s0 + $0x128] sm:$0xf]  ;;  %33 = vst.msk [vmem:[#allocation2 + $0x68] sm:$0xff] %vm19_vm0, %v1379_v19 }
  0x62   :  { %v1120_v36 = vor.u32 %v1313_v27, %v1117_v28  ;;  %34 = vst.msk [vmem:[#allocation2 + $0x70] sm:$0xff] %vm19_vm0, %v1379_v19 }
  0x63   :  { %778 = vmatmul.bf16.gmra.mxu3 %v1020_v30  ;;  %1271 = vmatmul.msk.bf16.gmra.mxu0 %vm19_vm0, %v1024_v31  ;;  %v1316_v30 = vld [vmem:[%s1910_s0 + $0x138] sm:$0xf0]  ;;  %35 = vst.msk [vmem:[#allocation2 + $0x78] sm:$0xff] %vm19_vm0, %v1379_v19 }
  0x64   :  { %v1124_v37 = vor.u32 %v1316_v30, %v1123_v29 }
  0x71   :  { %685 = vmatmul.bf16.gmra.mxu1 %v1032_v40  ;;  %734 = vmatmul.bf16.gmra.mxu2 %v1036_v41 }
  0x73   :  { %783 = vmatmul.bf16.gmra.mxu3 %v1040_v42  ;;  %1272 = vmatmul.msk.bf16.gmra.mxu0 %vm19_vm0, %v1044_v43 }
  0x81   :  { %690 = vmatmul.bf16.gmra.mxu1 %v1052_v52  ;;  %739 = vmatmul.bf16.gmra.mxu2 %v1056_v53 }
  0x83   :  { %788 = vmatmul.bf16.gmra.mxu3 %v1060_v54  ;;  %1273 = vmatmul.msk.bf16.gmra.mxu0 %vm19_vm0, %v1064_v55  ;;  %v36_v54 = vld [vmem:[#allocation2] sm:$0xff] }
  0x91   :  { %695 = vmatmul.bf16.gmra.mxu1 %v1072_v0  ;;  %744 = vmatmul.bf16.gmra.mxu2 %v1076_v1  ;;  %v37_v0 = vld [vmem:[#allocation2 + $0x8] sm:$0xff]  ;;  %v1800_v1 = vld [vmem:[%s1911_s2] ss:$0 sm:$0xff] }
  0x93   :  { %793 = vmatmul.bf16.gmra.mxu3 %v1080_v2  ;;  %1274 = vmatmul.msk.bf16.gmra.mxu0 %vm19_vm0, %v1084_v3 }
  0x9e   :  { %v1730_v14 = vpop.f32.mrf.mxu1 }
  0xa0   :  { %v622_v17 = vpop.f32.mrf.mxu0 }
  0xa1   :  { %700 = vmatmul.bf16.gmra.mxu1 %v1092_v12  ;;  %749 = vmatmul.bf16.gmra.mxu2 %v1096_v13 }
  0xa3   :  { %798 = vmatmul.bf16.gmra.mxu3 %v1100_v15  ;;  %1275 = vmatmul.msk.bf16.gmra.mxu0 %vm19_vm0, %v1104_v16  ;;  %v38_v15 = vld [vmem:[#allocation2 + $0x10] sm:$0xff] }
  0xa4   :  { %v1733_v18 = vpop.f32.mrf.mxu2 }
  0xa6   :  { %v1736_v20 = vpop.f32.mrf.mxu3  ;;  %v1739_v21 = vpop.f32.mrf.mxu1 }
  0xa8   :  { %v624_v22 = vpop.f32.mrf.mxu0 }
  0xac   :  { %v1771_v31 = vpop.f32.mrf.mxu2 }
  0xae   :  { %v1774_v32 = vpop.f32.mrf.mxu3  ;;  %v1777_v35 = vpop.f32.mrf.mxu1 }
  0xb0   :  { %v627_v38 = vpop.f32.mrf.mxu0 }
  0xb1   :  { %705 = vmatmul.bf16.gmra.mxu1 %v1112_v33  ;;  %754 = vmatmul.bf16.gmra.mxu2 %v1116_v34  ;;  %v39_v33 = vld [vmem:[#allocation2 + $0x18] sm:$0xff] }
  0xb3   :  { %803 = vmatmul.bf16.gmra.mxu3 %v1120_v36  ;;  %1276 = vmatmul.msk.bf16.gmra.mxu0 %vm19_vm0, %v1124_v37 }
  0xb4   :  { %v1786_v39 = vpop.f32.mrf.mxu2 }
  0xb6   :  { %v1788_v40 = vpop.f32.mrf.mxu3  ;;  %v1790_v41 = vpop.f32.mrf.mxu1 }
  0xb8   :  { %v629_v42 = vpop.f32.mrf.mxu0 }
  0xbc   :  { %v1792_v43 = vpop.f32.mrf.mxu2 }
  0xbe   :  { %v1794_v44 = vpop.f32.mrf.mxu3  ;;  %v671_v45 = vpop.f32.mrf.mxu1 }
  0xbf   :  { %v672_v47 = vadd.f32 %v671_v45, %v622_v17 }
  0xc0   :  { %v818_v46 = vpop.f32.mrf.mxu0 }
  0xc4   :  { %v720_v48 = vpop.f32.mrf.mxu2 }
  0xc5   :  { %v721_v49 = vadd.f32 %v720_v48, %v672_v47 }
  0xc6   :  { %v769_v50 = vpop.f32.mrf.mxu3  ;;  %v673_v51 = vpop.f32.mrf.mxu1 }
  0xc7   :  { %v770_v52 = vadd.f32 %v769_v50, %v721_v49  ;;  %v674_v57 = vadd.f32 %v673_v51, %v624_v22 }
  0xc8   :  { %v820_v53 = vpop.f32.mrf.mxu0 }
  0xc9   :  { %v819_v55 = vadd.f32 %v818_v46, %v770_v52  ;;  %v40_v52 = vld [vmem:[#allocation2 + $0x20] sm:$0xff] }
  0xcb   :  { %v858_v56 = vadd.f32 %v819_v55, %v36_v54 }
  0xcc   :  { %v722_v58 = vpop.f32.mrf.mxu2 }
  0xcd   :  { %874 = vst.msk [vmem:[#allocation2] sm:$0xff] %vm19_vm0, %v858_v56  ;;  %v723_v59 = vadd.f32 %v722_v58, %v674_v57 }
  0xce   :  { %v771_v60 = vpop.f32.mrf.mxu3  ;;  %v676_v61 = vpop.f32.mrf.mxu1 }
  0xcf   :  { %v772_v62 = vadd.f32 %v771_v60, %v723_v59  ;;  %v677_v4 = vadd.f32 %v676_v61, %v627_v38 }
  0xd0   :  { %v823_v63 = vpop.f32.mrf.mxu0 }
  0xd1   :  { %v821_v2 = vadd.f32 %v820_v53, %v772_v62 }
  0xd3   :  { %v859_v3 = vadd.f32 %v821_v2, %v37_v0  ;;  %v41_v0 = vld [vmem:[#allocation2 + $0x28] sm:$0xff] }
  0xd4   :  { %v893_v5 = vld [vmem:[#allocation2] sm:$0xff]  ;;  %v725_v6 = vpop.f32.mrf.mxu2 }
  0xd5   :  { %v913_v7 = vadd.f32 %v1800_v1, %v893_v5  ;;  %875 = vst.msk [vmem:[#allocation2 + $0x8] sm:$0xff] %vm19_vm0, %v859_v3  ;;  %v726_v8 = vadd.f32 %v725_v6, %v677_v4 }
  0xd6   :  { %v774_v9 = vpop.f32.mrf.mxu3  ;;  %v678_v10 = vpop.f32.mrf.mxu1 }
  0xd7   :  { %v929_v11 = vmax.f32 %v913_v7, 0.0  ;;  %v775_v12 = vadd.f32 %v774_v9, %v726_v8  ;;  %v679_v19 = vadd.f32 %v678_v10, %v629_v42 }
  0xd8   :  { %v825_v13 = vpop.f32.mrf.mxu0 }
  0xd9   :  { %945 = vst.msk [vmem:[%s1912_s3] sm:$0xff] %vm19_vm0, %v929_v11  ;;  %v824_v16 = vadd.f32 %v823_v63, %v775_v12 }
  0xdb   :  { %v860_v17 = vadd.f32 %v824_v16, %v38_v15 }
  0xdc   :  { %v894_v22 = vld [vmem:[#allocation2 + $0x8] sm:$0xff]  ;;  %v727_v23 = vpop.f32.mrf.mxu2 }
  0xdd   :  { %v914_v24 = vadd.f32 %v1800_v1, %v894_v22  ;;  %876 = vst.msk [vmem:[#allocation2 + $0x10] sm:$0xff] %vm19_vm0, %v860_v17  ;;  %v728_v25 = vadd.f32 %v727_v23, %v679_v19 }
  0xde   :  { %v776_v26 = vpop.f32.mrf.mxu3  ;;  %v681_v27 = vpop.f32.mrf.mxu1 }
  0xdf   :  { %v930_v28 = vmax.f32 %v914_v24, 0.0  ;;  %v777_v29 = vadd.f32 %v776_v26, %v728_v25  ;;  %v682_v37 = vadd.f32 %v681_v27, %v1730_v14 }
  0xe0   :  { %v828_v30 = vpop.f32.mrf.mxu0 }
  0xe1   :  { %946 = vst.msk [vmem:[%s1912_s3 + $0x8] sm:$0xff] %vm19_vm0, %v930_v28  ;;  %v826_v34 = vadd.f32 %v825_v13, %v777_v29  ;;  %v42_v13 = vld [vmem:[#allocation2 + $0x30] sm:$0xff]  ;;  %v43_v29 = vld [vmem:[#allocation2 + $0x38] sm:$0xff] }
  0xe3   :  { %v861_v36 = vadd.f32 %v826_v34, %v39_v33 }
  0xe4   :  { %v895_v38 = vld [vmem:[#allocation2 + $0x10] sm:$0xff]  ;;  %v730_v42 = vpop.f32.mrf.mxu2 }
  0xe5   :  { %v915_v45 = vadd.f32 %v1800_v1, %v895_v38  ;;  %877 = vst.msk [vmem:[#allocation2 + $0x18] sm:$0xff] %vm19_vm0, %v861_v36  ;;  %v731_v46 = vadd.f32 %v730_v42, %v682_v37 }
  0xe6   :  { %v779_v47 = vpop.f32.mrf.mxu3  ;;  %v683_v48 = vpop.f32.mrf.mxu1 }
  0xe7   :  { %v931_v49 = vmax.f32 %v915_v45, 0.0  ;;  %v780_v50 = vadd.f32 %v779_v47, %v731_v46  ;;  %v684_v54 = vadd.f32 %v683_v48, %v1739_v21 }
  0xe8   :  { %v830_v51 = vpop.f32.mrf.mxu0 }
  0xe9   :  { %947 = vst.msk [vmem:[%s1912_s3 + $0x10] sm:$0xff] %vm19_vm0, %v931_v49  ;;  %v829_v53 = vadd.f32 %v828_v30, %v780_v50  ;;  %v44_v49 = vld [vmem:[#allocation2 + $0x40] sm:$0xff] }
  0xeb   :  { %v862_v14 = vadd.f32 %v829_v53, %v40_v52 }
  0xec   :  { %v896_v55 = vld [vmem:[#allocation2 + $0x18] sm:$0xff]  ;;  %v732_v56 = vpop.f32.mrf.mxu2 }
  0xed   :  { %v916_v57 = vadd.f32 %v1800_v1, %v896_v55  ;;  %878 = vst.msk [vmem:[#allocation2 + $0x20] sm:$0xff] %vm19_vm0, %v862_v14  ;;  %v733_v58 = vadd.f32 %v732_v56, %v684_v54 }
  0xee   :  { %v781_v59 = vpop.f32.mrf.mxu3  ;;  %v686_v60 = vpop.f32.mrf.mxu1 }
  0xef   :  { %v932_v61 = vmax.f32 %v916_v57, 0.0  ;;  %v782_v62 = vadd.f32 %v781_v59, %v733_v58  ;;  %v687_v3 = vadd.f32 %v686_v60, %v1777_v35  ;;  %v45_v60 = vld [vmem:[#allocation2 + $0x48] sm:$0xff] }
  0xf0   :  { %v833_v63 = vpop.f32.mrf.mxu0 }
  0xf1   :  { %948 = vst.msk [vmem:[%s1912_s3 + $0x18] sm:$0xff] %vm19_vm0, %v932_v61  ;;  %v831_v2 = vadd.f32 %v830_v51, %v782_v62 }
  0xf3   :  { %v863_v21 = vadd.f32 %v831_v2, %v41_v0 }
  0xf4   :  { %v897_v4 = vld [vmem:[#allocation2 + $0x20] sm:$0xff]  ;;  %v735_v5 = vpop.f32.mrf.mxu2 }
  0xf5   :  { %v917_v6 = vadd.f32 %v1800_v1, %v897_v4  ;;  %879 = vst.msk [vmem:[#allocation2 + $0x28] sm:$0xff] %vm19_vm0, %v863_v21  ;;  %v736_v7 = vadd.f32 %v735_v5, %v687_v3 }
  0xf6   :  { %v784_v8 = vpop.f32.mrf.mxu3  ;;  %v688_v9 = vpop.f32.mrf.mxu1 }
  0xf7   :  { %v933_v10 = vmax.f32 %v917_v6, 0.0  ;;  %v785_v11 = vadd.f32 %v784_v8, %v736_v7  ;;  %v689_v16 = vadd.f32 %v688_v9, %v1790_v41  ;;  %v46_v7 = vld [vmem:[#allocation2 + $0x50] sm:$0xff] }
  0xf8   :  { %v835_v12 = vpop.f32.mrf.mxu0 }
  0xf9   :  { %949 = vst.msk [vmem:[%s1912_s3 + $0x20] sm:$0xff] %vm19_vm0, %v933_v10  ;;  %v834_v15 = vadd.f32 %v833_v63, %v785_v11 }
  0xfb   :  { %v864_v35 = vadd.f32 %v834_v15, %v42_v13 }
  0xfc   :  { %v898_v17 = vld [vmem:[#allocation2 + $0x28] sm:$0xff]  ;;  %v737_v19 = vpop.f32.mrf.mxu2 }
  0xfd   :  { %v918_v22 = vadd.f32 %v1800_v1, %v898_v17  ;;  %880 = vst.msk [vmem:[#allocation2 + $0x30] sm:$0xff] %vm19_vm0, %v864_v35  ;;  %v738_v23 = vadd.f32 %v737_v19, %v689_v16 }
  0xfe   :  { %v786_v24 = vpop.f32.mrf.mxu3  ;;  %v691_v25 = vpop.f32.mrf.mxu1 }
  0xff   :  { %v934_v26 = vmax.f32 %v918_v22, 0.0  ;;  %v787_v27 = vadd.f32 %v786_v24, %v738_v23  ;;  %v692_v33 = vadd.f32 %v691_v25, %v1733_v18  ;;  %v47_v22 = vld [vmem:[#allocation2 + $0x58] sm:$0xff] }
 0x100   :  { %v838_v28 = vpop.f32.mrf.mxu0 }
 0x101   :  { %950 = vst.msk [vmem:[%s1912_s3 + $0x28] sm:$0xff] %vm19_vm0, %v934_v26  ;;  %v836_v30 = vadd.f32 %v835_v12, %v787_v27 }
 0x103   :  { %v865_v41 = vadd.f32 %v836_v30, %v43_v29 }
 0x104   :  { %v899_v34 = vld [vmem:[#allocation2 + $0x30] sm:$0xff]  ;;  %v740_v36 = vpop.f32.mrf.mxu2 }
 0x105   :  { %v919_v37 = vadd.f32 %v1800_v1, %v899_v34  ;;  %881 = vst.msk [vmem:[#allocation2 + $0x38] sm:$0xff] %vm19_vm0, %v865_v41  ;;  %v741_v38 = vadd.f32 %v740_v36, %v692_v33  ;;  %v48_v36 = vld [vmem:[#allocation2 + $0x60] sm:$0xff] }
 0x106   :  { %v789_v42 = vpop.f32.mrf.mxu3  ;;  %v693_v45 = vpop.f32.mrf.mxu1 }
 0x107   :  { %v935_v46 = vmax.f32 %v919_v37, 0.0  ;;  %v790_v47 = vadd.f32 %v789_v42, %v741_v38  ;;  %v694_v51 = vadd.f32 %v693_v45, %v1771_v31 }
 0x108   :  { %v840_v48 = vpop.f32.mrf.mxu0 }
 0x109   :  { %951 = vst.msk [vmem:[%s1912_s3 + $0x30] sm:$0xff] %vm19_vm0, %v935_v46  ;;  %v839_v50 = vadd.f32 %v838_v28, %v790_v47 }
 0x10b   :  { %v866_v18 = vadd.f32 %v839_v50, %v44_v49 }
 0x10c   :  { %v900_v52 = vld [vmem:[#allocation2 + $0x38] sm:$0xff]  ;;  %v742_v53 = vpop.f32.mrf.mxu2 }
 0x10d   :  { %v920_v14 = vadd.f32 %v1800_v1, %v900_v52  ;;  %882 = vst.msk [vmem:[#allocation2 + $0x40] sm:$0xff] %vm19_vm0, %v866_v18  ;;  %v743_v54 = vadd.f32 %v742_v53, %v694_v51  ;;  %v49_v52 = vld [vmem:[#allocation2 + $0x68] sm:$0xff] }
 0x10e   :  { %v791_v55 = vpop.f32.mrf.mxu3  ;;  %v696_v56 = vpop.f32.mrf.mxu1 }
 0x10f   :  { %v936_v57 = vmax.f32 %v920_v14, 0.0  ;;  %v792_v58 = vadd.f32 %v791_v55, %v743_v54  ;;  %v697_v62 = vadd.f32 %v696_v56, %v1786_v39 }
 0x110   :  { %v843_v59 = vpop.f32.mrf.mxu0 }
 0x111   :  { %952 = vst.msk [vmem:[%s1912_s3 + $0x38] sm:$0xff] %vm19_vm0, %v936_v57  ;;  %v841_v61 = vadd.f32 %v840_v48, %v792_v58 }
 0x113   :  { %v867_v31 = vadd.f32 %v841_v61, %v45_v60 }
 0x114   :  { %v901_v63 = vld [vmem:[#allocation2 + $0x40] sm:$0xff]  ;;  %v745_v0 = vpop.f32.mrf.mxu2 }
 0x115   :  { %v921_v2 = vadd.f32 %v1800_v1, %v901_v63  ;;  %883 = vst.msk [vmem:[#allocation2 + $0x48] sm:$0xff] %vm19_vm0, %v867_v31  ;;  %v746_v21 = vadd.f32 %v745_v0, %v697_v62  ;;  %v50_v31 = vld [vmem:[#allocation2 + $0x70] sm:$0xff] }
 0x116   :  { %v794_v3 = vpop.f32.mrf.mxu3  ;;  %v698_v4 = vpop.f32.mrf.mxu1 }
 0x117   :  { %v937_v5 = vmax.f32 %v921_v2, 0.0  ;;  %v795_v6 = vadd.f32 %v794_v3, %v746_v21  ;;  %v699_v10 = vadd.f32 %v698_v4, %v1792_v43 }
 0x118   :  { %v845_v8 = vpop.f32.mrf.mxu0 }
 0x119   :  { %953 = vst.msk [vmem:[%s1912_s3 + $0x40] sm:$0xff] %vm19_vm0, %v937_v5  ;;  %v844_v9 = vadd.f32 %v843_v59, %v795_v6 }
 0x11b   :  { %v868_v39 = vadd.f32 %v844_v9, %v46_v7  ;;  %v51_v9 = vld [vmem:[#allocation2 + $0x78] sm:$0xff] }
 0x11c   :  { %v902_v11 = vld [vmem:[#allocation2 + $0x48] sm:$0xff]  ;;  %v747_v12 = vpop.f32.mrf.mxu2 }
 0x11d   :  { %v922_v13 = vadd.f32 %v1800_v1, %v902_v11  ;;  %884 = vst.msk [vmem:[#allocation2 + $0x50] sm:$0xff] %vm19_vm0, %v868_v39  ;;  %v748_v15 = vadd.f32 %v747_v12, %v699_v10 }
 0x11e   :  { %v796_v35 = vpop.f32.mrf.mxu3  ;;  %v701_v16 = vpop.f32.mrf.mxu1 }
 0x11f   :  { %v938_v17 = vmax.f32 %v922_v13, 0.0  ;;  %v797_v19 = vadd.f32 %v796_v35, %v748_v15  ;;  %v702_v25 = vadd.f32 %v701_v16, %v1736_v20 }
 0x120   :  { %v848_v24 = vpop.f32.mrf.mxu0 }
 0x121   :  { %954 = vst.msk [vmem:[%s1912_s3 + $0x48] sm:$0xff] %vm19_vm0, %v938_v17  ;;  %v846_v23 = vadd.f32 %v845_v8, %v797_v19 }
 0x123   :  { %v869_v43 = vadd.f32 %v846_v23, %v47_v22 }
 0x124   :  { %v903_v26 = vld [vmem:[#allocation2 + $0x50] sm:$0xff]  ;;  %v750_v27 = vpop.f32.mrf.mxu2 }
 0x125   :  { %v923_v28 = vadd.f32 %v1800_v1, %v903_v26  ;;  %885 = vst.msk [vmem:[#allocation2 + $0x58] sm:$0xff] %vm19_vm0, %v869_v43  ;;  %v751_v29 = vadd.f32 %v750_v27, %v702_v25 }
 0x126   :  { %v799_v30 = vpop.f32.mrf.mxu3  ;;  %v703_v41 = vpop.f32.mrf.mxu1 }
 0x127   :  { %v939_v33 = vmax.f32 %v923_v28, 0.0  ;;  %v800_v34 = vadd.f32 %v799_v30, %v751_v29  ;;  %v704_v20 = vadd.f32 %v703_v41, %v1774_v32 }
 0x128   :  { %v850_v45 = vpop.f32.mrf.mxu0 }
 0x129   :  { %955 = vst.msk [vmem:[%s1912_s3 + $0x50] sm:$0xff] %vm19_vm0, %v939_v33  ;;  %v849_v37 = vadd.f32 %v848_v24, %v800_v34 }
 0x12b   :  { %v870_v38 = vadd.f32 %v849_v37, %v48_v36 }
 0x12c   :  { %v904_v42 = vld [vmem:[#allocation2 + $0x58] sm:$0xff]  ;;  %v752_v46 = vpop.f32.mrf.mxu2 }
 0x12d   :  { %v924_v47 = vadd.f32 %v1800_v1, %v904_v42  ;;  %886 = vst.msk [vmem:[#allocation2 + $0x60] sm:$0xff] %vm19_vm0, %v870_v38  ;;  %v753_v48 = vadd.f32 %v752_v46, %v704_v20 }
 0x12e   :  { %v801_v49 = vpop.f32.mrf.mxu3  ;;  %v706_v50 = vpop.f32.mrf.mxu1 }
 0x12f   :  { %v940_v18 = vmax.f32 %v924_v47, 0.0  ;;  %v802_v51 = vadd.f32 %v801_v49, %v753_v48  ;;  %v707_v14 = vadd.f32 %v706_v50, %v1788_v40 }
 0x130   :  { %v853_v59 = vpop.f32.mrf.mxu0 }
 0x131   :  { %956 = vst.msk [vmem:[%s1912_s3 + $0x58] sm:$0xff] %vm19_vm0, %v940_v18  ;;  %v851_v53 = vadd.f32 %v850_v45, %v802_v51 }
 0x133   :  { %v871_v32 = vadd.f32 %v851_v53, %v49_v52 }
 0x134   :  { %v905_v54 = vld [vmem:[#allocation2 + $0x60] sm:$0xff]  ;;  %v755_v55 = vpop.f32.mrf.mxu2 }
 0x135   :  { %v925_v56 = vadd.f32 %v1800_v1, %v905_v54  ;;  %887 = vst.msk [vmem:[#allocation2 + $0x68] sm:$0xff] %vm19_vm0, %v871_v32  ;;  %v756_v57 = vadd.f32 %v755_v55, %v707_v14 }
 0x136   :  { %v804_v58 = vpop.f32.mrf.mxu3  ;;  %v708_v62 = vpop.f32.mrf.mxu1 }
 0x137   :  { %v941_v60 = vmax.f32 %v925_v56, 0.0  ;;  %v805_v61 = vadd.f32 %v804_v58, %v756_v57  ;;  %v709_v0 = vadd.f32 %v708_v62, %v1794_v44 }
 0x138   :  { %v855_v8 = vpop.f32.mrf.mxu0 }
 0x139   :  { %957 = vst.msk [vmem:[%s1912_s3 + $0x60] sm:$0xff] %vm19_vm0, %v941_v60  ;;  %v854_v63 = vadd.f32 %v853_v59, %v805_v61 }
 0x13b   :  { %v872_v40 = vadd.f32 %v854_v63, %v50_v31 }
 0x13c   :  { %v906_v2 = vld [vmem:[#allocation2 + $0x68] sm:$0xff]  ;;  %v757_v21 = vpop.f32.mrf.mxu2 }
 0x13d   :  { %v926_v3 = vadd.f32 %v1800_v1, %v906_v2  ;;  %888 = vst.msk [vmem:[#allocation2 + $0x70] sm:$0xff] %vm19_vm0, %v872_v40  ;;  %v758_v4 = vadd.f32 %v757_v21, %v709_v0 }
 0x13e   :  { %v806_v5 = vpop.f32.mrf.mxu3 }
 0x13f   :  { %v942_v6 = vmax.f32 %v926_v3, 0.0  ;;  %v807_v7 = vadd.f32 %v806_v5, %v758_v4 }
 0x141   :  { %958 = vst.msk [vmem:[%s1912_s3 + $0x68] sm:$0xff] %vm19_vm0, %v942_v6  ;;  %v856_v39 = vadd.f32 %v855_v8, %v807_v7 }
 0x143   :  { %v873_v10 = vadd.f32 %v856_v39, %v51_v9 }
 0x144   :  { %v907_v44 = vld [vmem:[#allocation2 + $0x70] sm:$0xff] }
 0x145   :  { %v927_v11 = vadd.f32 %v1800_v1, %v907_v44  ;;  %889 = vst.msk [vmem:[#allocation2 + $0x78] sm:$0xff] %vm19_vm0, %v873_v10 }
 0x147   :  { %v943_v12 = vmax.f32 %v927_v11, 0.0 }
 0x149   :  { %959 = vst.msk [vmem:[%s1912_s3 + $0x70] sm:$0xff] %vm19_vm0, %v943_v12 }
 0x14c   :  { %v908_v13 = vld [vmem:[#allocation2 + $0x78] sm:$0xff] }
 0x14d   :  { %v928_v15 = vadd.f32 %v1800_v1, %v908_v13 }
 0x14f   :  { %v944_v35 = vmax.f32 %v928_v15, 0.0 }
 0x151   :  { %960 = vst.msk [vmem:[%s1912_s3 + $0x78] sm:$0xff] %vm19_vm0, %v944_v35 }

// kernel: custom_resnet_forward.24
= control target key start
LH: loop header
LB: loop body
LE: loop exit
PB: predicated region body
PF: predicated region fallthrough
CT: control target
= control target key end

     0   :  { %vm22_vm0 = vcmask 523264   ;;  %s1997_s1 = inlined_call_operand.vmem [shape: bf16[576,64], index: 1, kind: input, shape index: {}]   ;;  %s1998_s0 = inlined_call_operand.vmem [shape: bf16[128,576], index: 0, kind: input, shape index: {}]   ;;  %s1999_s2 = inlined_call_operand.vmem [shape: f32[1,64], index: 2, kind: input, shape index: {}]   ;;  %s2000_s3 = inlined_call_operand.vmem [shape: f32[128,64], index: 3, kind: input, shape index: {}]   ;;  %s2001_s4 = inlined_call_operand.vmem [shape: f32[128,64], index: 4, kind: output, shape index: {}]  }
   0x1   :  { %v1359_v0 = vld [vmem:[%s1997_s1 + $0x38] sm:$0xff]  ;;  %v1358_v1 = vld [vmem:[%s1997_s1 + $0x30] sm:$0xff]  ;;  %v1357_v2 = vld [vmem:[%s1997_s1 + $0x28] sm:$0xff] }
   0x2   :  { %1388 = vmatpush.bf16.msra.mxu1 %v1359_v0  ;;  %1389 = vmatpush.bf16.msra.mxu2 %v1359_v0  ;;  %v1356_v3 = vld [vmem:[%s1997_s1 + $0x20] sm:$0xff]  ;;  %v1355_v4 = vld [vmem:[%s1997_s1 + $0x18] sm:$0xff]  ;;  %v1354_v5 = vld [vmem:[%s1997_s1 + $0x10] sm:$0xff] }
   0x3   :  { %1390 = vmatpush.bf16.msra.mxu3 %v1359_v0  ;;  %616 = vmatpush.bf16.msra.mxu0 %v1359_v0  ;;  %v1353_v6 = vld [vmem:[%s1997_s1 + $0x8] sm:$0xff]  ;;  %v1352_v7 = vld [vmem:[%s1997_s1] sm:$0xff]  ;;  %v1042_v8 = vld [vmem:[%s1998_s0 + $0x50] sm:$0xf] }
   0x4   :  { %v1324_v9 = vld [vmem:[%s1998_s0 + $0x60] sm:$0xf0]  ;;  %v1082_v10 = vld [vmem:[%s1998_s0 + $0xa0] sm:$0xf]  ;;  %v1334_v11 = vld [vmem:[%s1998_s0 + $0xb0] sm:$0xf0] }
   0x5   :  { %v1122_v12 = vld [vmem:[%s1998_s0 + $0xf0] sm:$0xf]  ;;  %v1344_v13 = vld [vmem:[%s1998_s0 + $0x100] sm:$0xf0]  ;;  %v1002_v14 = vld [vmem:[%s1998_s0] sm:$0xf]  ;;  %v1043_v18 = vor.u32 %v1324_v9, %v1042_v8  ;;  %v1083_v19 = vor.u32 %v1334_v11, %v1082_v10 }
   0x6   :  { %1391 = vmatpush.bf16.msra.mxu1 %v1358_v1  ;;  %1392 = vmatpush.bf16.msra.mxu2 %v1358_v1  ;;  %v1314_v15 = vld [vmem:[%s1998_s0 + $0x10] sm:$0xf0]  ;;  %v1375_v16 = vld [vmem:[%s1997_s1 + $0xb8] sm:$0xff]  ;;  %v1123_v20 = vor.u32 %v1344_v13, %v1122_v12  ;;  %v1373_v28 = vld [vmem:[%s1997_s1 + $0xa8] sm:$0xff] }
   0x7   :  { %1393 = vmatpush.bf16.msra.mxu3 %v1358_v1  ;;  %617 = vmatpush.bf16.msra.mxu0 %v1358_v1  ;;  %v1367_v17 = vld [vmem:[%s1997_s1 + $0x78] sm:$0xff]  ;;  %v1003_v21 = vor.u32 %v1314_v15, %v1002_v14  ;;  %v1374_v24 = vld [vmem:[%s1997_s1 + $0xb0] sm:$0xff]  ;;  %v1365_v29 = vld [vmem:[%s1997_s1 + $0x68] sm:$0xff] }
   0x8   :  { %v1383_v22 = vld [vmem:[%s1997_s1 + $0xf8] sm:$0xff]  ;;  %v1366_v25 = vld [vmem:[%s1997_s1 + $0x70] sm:$0xff]  ;;  %v1381_v30 = vld [vmem:[%s1997_s1 + $0xe8] sm:$0xff] }
   0x9   :  { %v1387_v23 = vld [vmem:[%s1997_s1 + $0x118] sm:$0xff]  ;;  %v1382_v26 = vld [vmem:[%s1997_s1 + $0xf0] sm:$0xff]  ;;  %v1385_v31 = vld [vmem:[%s1997_s1 + $0x108] sm:$0xff] }
   0xa   :  { %1394 = vmatpush.bf16.msra.mxu1 %v1357_v2  ;;  %1395 = vmatpush.bf16.msra.mxu2 %v1357_v2  ;;  %v1386_v27 = vld [vmem:[%s1997_s1 + $0x110] sm:$0xff]  ;;  %v1372_v32 = vld [vmem:[%s1997_s1 + $0xa0] sm:$0xff]  ;;  %v1062_v35 = vld [vmem:[%s1998_s0 + $0x78] sm:$0xf] }
   0xb   :  { %1396 = vmatpush.bf16.msra.mxu3 %v1357_v2  ;;  %618 = vmatpush.bf16.msra.mxu0 %v1357_v2  ;;  %v1364_v33 = vld [vmem:[%s1997_s1 + $0x60] sm:$0xff]  ;;  %v1329_v36 = vld [vmem:[%s1998_s0 + $0x88] sm:$0xf0]  ;;  %v1102_v37 = vld [vmem:[%s1998_s0 + $0xc8] sm:$0xf] }
   0xc   :  { %v1380_v34 = vld [vmem:[%s1997_s1 + $0xe0] sm:$0xff]  ;;  %v1339_v38 = vld [vmem:[%s1998_s0 + $0xd8] sm:$0xf0]  ;;  %v1142_v39 = vld [vmem:[%s1998_s0 + $0x118] sm:$0xf]  ;;  %v1063_v46 = vor.u32 %v1329_v36, %v1062_v35 }
   0xd   :  { %v1349_v40 = vld [vmem:[%s1998_s0 + $0x128] sm:$0xf0]  ;;  %v1022_v41 = vld [vmem:[%s1998_s0 + $0x28] sm:$0xf]  ;;  %v1319_v42 = vld [vmem:[%s1998_s0 + $0x38] sm:$0xf0]  ;;  %v1103_v47 = vor.u32 %v1339_v38, %v1102_v37 }
   0xe   :  { %1397 = vmatpush.bf16.msra.mxu1 %v1356_v3  ;;  %1398 = vmatpush.bf16.msra.mxu2 %v1356_v3  ;;  %v1384_v43 = vld [vmem:[%s1997_s1 + $0x100] sm:$0xff]  ;;  %v1371_v44 = vld [vmem:[%s1997_s1 + $0x98] sm:$0xff]  ;;  %v1143_v48 = vor.u32 %v1349_v40, %v1142_v39  ;;  %v1023_v49 = vor.u32 %v1319_v42, %v1022_v41  ;;  %v1370_v51 = vld [vmem:[%s1997_s1 + $0x90] sm:$0xff] }
   0xf   :  { %1399 = vmatpush.bf16.msra.mxu3 %v1356_v3  ;;  %619 = vmatpush.bf16.msra.mxu0 %v1356_v3  ;;  %v1363_v45 = vld [vmem:[%s1997_s1 + $0x58] sm:$0xff]  ;;  %v1362_v52 = vld [vmem:[%s1997_s1 + $0x50] sm:$0xff]  ;;  %v1369_v54 = vld [vmem:[%s1997_s1 + $0x88] sm:$0xff] }
  0x10   :  { %v1379_v50 = vld [vmem:[%s1997_s1 + $0xd8] sm:$0xff]  ;;  %v1378_v53 = vld [vmem:[%s1997_s1 + $0xd0] sm:$0xff]  ;;  %v1361_v55 = vld [vmem:[%s1997_s1 + $0x48] sm:$0xff] }
  0x11   :  { %v1377_v56 = vld [vmem:[%s1997_s1 + $0xc8] sm:$0xff]  ;;  %v1368_v57 = vld [vmem:[%s1997_s1 + $0x80] sm:$0xff]  ;;  %v1004_v61 = vld [vmem:[%s1998_s0 + $0x14] sm:$0xf0] }
  0x12   :  { %1400 = vmatpush.bf16.msra.mxu1 %v1355_v4  ;;  %1401 = vmatpush.bf16.msra.mxu2 %v1355_v4  ;;  %v1360_v58 = vld [vmem:[%s1997_s1 + $0x40] sm:$0xff]  ;;  %v1010_v62 = vld [vmem:[%s1998_s0 + $0x8] sm:$0xf]  ;;  %v1315_v63 = vld [vmem:[%s1998_s0 + $0x18] sm:$0xf0] }
  0x13   :  { %1402 = vmatpush.bf16.msra.mxu3 %v1355_v4  ;;  %620 = vmatpush.bf16.msra.mxu0 %v1355_v4  ;;  %v1376_v59 = vld [vmem:[%s1997_s1 + $0xc0] sm:$0xff]  ;;  %v1313_v0 = vld [vmem:[%s1998_s0 + $0xc] sm:$0xf]  ;;  %v1018_v2 = vld [vmem:[%s1998_s0 + $0x10] sm:$0xf] }
  0x14   :  { %v1312_v60 = vld [vmem:[%s1998_s0 + $0x4] sm:$0xf]  ;;  %v1012_v1 = vld [vmem:[%s1998_s0 + $0x1c] sm:$0xf0]  ;;  %v1317_v8 = vld [vmem:[%s1998_s0 + $0x2c] sm:$0xf] }
  0x15   :  { %v1316_v3 = vld [vmem:[%s1998_s0 + $0x20] sm:$0xf0]  ;;  %v1007_v4 = vor.u32 %v1312_v60, %v1004_v61  ;;  %v1024_v9 = vld [vmem:[%s1998_s0 + $0x3c] sm:$0xf0]  ;;  %v1030_v10 = vld [vmem:[%s1998_s0 + $0x30] sm:$0xf] }
  0x16   :  { %1403 = vmatpush.bf16.msra.mxu1 %v1354_v5  ;;  %1404 = vmatpush.bf16.msra.mxu2 %v1354_v5  ;;  %v1320_v11 = vld [vmem:[%s1998_s0 + $0x40] sm:$0xf0]  ;;  %v1318_v12 = vld [vmem:[%s1998_s0 + $0x34] sm:$0xf]  ;;  %v1032_v13 = vld [vmem:[%s1998_s0 + $0x44] sm:$0xf0] }
  0x17   :  { %1405 = vmatpush.bf16.msra.mxu3 %v1354_v5  ;;  %621 = vmatpush.bf16.msra.mxu0 %v1354_v5  ;;  %v1011_v5 = vor.u32 %v1315_v63, %v1010_v62  ;;  %v1038_v14 = vld [vmem:[%s1998_s0 + $0x38] sm:$0xf]  ;;  %v1321_v15 = vld [vmem:[%s1998_s0 + $0x48] sm:$0xf0]  ;;  %v1330_v35 = vld [vmem:[%s1998_s0 + $0x90] sm:$0xf0] }
  0x18   :  { %v1328_v36 = vld [vmem:[%s1998_s0 + $0x84] sm:$0xf]  ;;  %v1072_v37 = vld [vmem:[%s1998_s0 + $0x94] sm:$0xf0]  ;;  %v1078_v38 = vld [vmem:[%s1998_s0 + $0x88] sm:$0xf] }
  0x19   :  { %v1331_v39 = vld [vmem:[%s1998_s0 + $0x98] sm:$0xf0]  ;;  %v1075_v42 = vor.u32 %v1328_v36, %v1072_v37  ;;  %v1338_v60 = vld [vmem:[%s1998_s0 + $0xd4] sm:$0xf]  ;;  %v1112_v61 = vld [vmem:[%s1998_s0 + $0xe4] sm:$0xf0] }
  0x1a   :  { %1406 = vmatpush.bf16.msra.mxu1 %v1353_v6  ;;  %1407 = vmatpush.bf16.msra.mxu2 %v1353_v6  ;;  %v1118_v62 = vld [vmem:[%s1998_s0 + $0xd8] sm:$0xf]  ;;  %v1341_v63 = vld [vmem:[%s1998_s0 + $0xe8] sm:$0xf0] }
  0x1b   :  { %1408 = vmatpush.bf16.msra.mxu3 %v1353_v6  ;;  %622 = vmatpush.bf16.msra.mxu0 %v1353_v6  ;;  %v1015_v6 = vor.u32 %v1313_v0, %v1012_v1 }
  0x1e   :  { %1409 = vmatpush.bf16.msra.mxu1 %v1352_v7  ;;  %1410 = vmatpush.bf16.msra.mxu2 %v1352_v7 }
  0x1f   :  { %1411 = vmatpush.bf16.msra.mxu3 %v1352_v7  ;;  %623 = vmatpush.bf16.msra.mxu0 %v1352_v7  ;;  %v1019_v7 = vor.u32 %v1316_v3, %v1018_v2  ;;  %v1115_v2 = vor.u32 %v1338_v60, %v1112_v61  ;;  %v1119_v3 = vor.u32 %v1341_v63, %v1118_v62 }
  0x21   :  { %634 = vmatmul.bf16.vlgmr.msra.gmra.mxu1 %v1043_v18  ;;  %644 = vmatmul.bf16.vlgmr.msra.gmra.mxu2 %v1083_v19  ;;  %v1035_v18 = vor.u32 %v1318_v12, %v1032_v13  ;;  %v1039_v19 = vor.u32 %v1321_v15, %v1038_v14 }
  0x22   :  { %714 = vmatpush.bf16.msrb.mxu2 %v1375_v16  ;;  %665 = vmatpush.bf16.msrb.mxu1 %v1367_v17  ;;  %v1027_v16 = vor.u32 %v1317_v8, %v1024_v9  ;;  %v1031_v17 = vor.u32 %v1320_v11, %v1030_v10  ;;  %v1343_v8 = vld [vmem:[%s1998_s0 + $0xfc] sm:$0xf]  ;;  %v1132_v9 = vld [vmem:[%s1998_s0 + $0x10c] sm:$0xf0]  ;;  %v1138_v10 = vld [vmem:[%s1998_s0 + $0x100] sm:$0xf] }
  0x23   :  { %654 = vmatmul.bf16.vlgmr.msra.gmra.mxu3 %v1123_v20  ;;  %624 = vmatmul.bf16.vlgmr.msra.gmra.mxu0 %v1003_v21  ;;  %v1322_v20 = vld [vmem:[%s1998_s0 + $0x54] sm:$0xf]  ;;  %v1044_v21 = vld [vmem:[%s1998_s0 + $0x64] sm:$0xf0]  ;;  %v1135_v15 = vor.u32 %v1343_v8, %v1132_v9 }
  0x24   :  { %763 = vmatpush.bf16.msrb.mxu3 %v1383_v22  ;;  %816 = vmatpush.bf16.msrb.mxu0 %v1387_v23  ;;  %v1050_v22 = vld [vmem:[%s1998_s0 + $0x58] sm:$0xf]  ;;  %v1325_v23 = vld [vmem:[%s1998_s0 + $0x68] sm:$0xf0]  ;;  %v1346_v11 = vld [vmem:[%s1998_s0 + $0x110] sm:$0xf0] }
  0x26   :  { %715 = vmatpush.bf16.msrb.mxu2 %v1374_v24  ;;  %666 = vmatpush.bf16.msrb.mxu1 %v1366_v25  ;;  %v1323_v24 = vld [vmem:[%s1998_s0 + $0x5c] sm:$0xf]  ;;  %v1052_v25 = vld [vmem:[%s1998_s0 + $0x6c] sm:$0xf0] }
  0x28   :  { %764 = vmatpush.bf16.msrb.mxu3 %v1382_v26  ;;  %817 = vmatpush.bf16.msrb.mxu0 %v1386_v27  ;;  %v1058_v26 = vld [vmem:[%s1998_s0 + $0x60] sm:$0xf]  ;;  %v1326_v27 = vld [vmem:[%s1998_s0 + $0x70] sm:$0xf0] }
  0x2a   :  { %716 = vmatpush.bf16.msrb.mxu2 %v1373_v28  ;;  %667 = vmatpush.bf16.msrb.mxu1 %v1365_v29  ;;  %v1047_v28 = vor.u32 %v1322_v20, %v1044_v21  ;;  %v1051_v29 = vor.u32 %v1325_v23, %v1050_v22  ;;  %v1347_v23 = vld [vmem:[%s1998_s0 + $0x11c] sm:$0xf] }
  0x2c   :  { %765 = vmatpush.bf16.msrb.mxu3 %v1381_v30  ;;  %818 = vmatpush.bf16.msrb.mxu0 %v1385_v31  ;;  %v1055_v30 = vor.u32 %v1323_v24, %v1052_v25  ;;  %v1059_v31 = vor.u32 %v1326_v27, %v1058_v26  ;;  %v1144_v24 = vld [vmem:[%s1998_s0 + $0x12c] sm:$0xf0]  ;;  %v1150_v25 = vld [vmem:[%s1998_s0 + $0x120] sm:$0xf]  ;;  %v1350_v26 = vld [vmem:[%s1998_s0 + $0x130] sm:$0xf0] }
  0x2d   :  { %v1348_v27 = vld [vmem:[%s1998_s0 + $0x124] sm:$0xf] }
  0x2e   :  { %717 = vmatpush.bf16.msrb.mxu2 %v1372_v32  ;;  %668 = vmatpush.bf16.msrb.mxu1 %v1364_v33  ;;  %v1327_v32 = vld [vmem:[%s1998_s0 + $0x7c] sm:$0xf]  ;;  %v1064_v33 = vld [vmem:[%s1998_s0 + $0x8c] sm:$0xf0] }
  0x2f   :  { %v1067_v40 = vor.u32 %v1327_v32, %v1064_v33  ;;  %v1147_v33 = vor.u32 %v1347_v23, %v1144_v24 }
  0x30   :  { %766 = vmatpush.bf16.msrb.mxu3 %v1380_v34  ;;  %819 = vmatpush.bf16.msrb.mxu0 %v1384_v43  ;;  %v1070_v34 = vld [vmem:[%s1998_s0 + $0x80] sm:$0xf]  ;;  %v1079_v43 = vor.u32 %v1331_v39, %v1078_v38 }
  0x31   :  { %639 = vmatmul.bf16.gmra.mxu1 %v1063_v46  ;;  %649 = vmatmul.bf16.gmra.mxu2 %v1103_v47  ;;  %v1071_v41 = vor.u32 %v1330_v35, %v1070_v34  ;;  %v1090_v46 = vld [vmem:[%s1998_s0 + $0xa8] sm:$0xf]  ;;  %v1335_v47 = vld [vmem:[%s1998_s0 + $0xb8] sm:$0xf0]  ;;  %v1151_v34 = vor.u32 %v1350_v26, %v1150_v25 }
  0x32   :  { %718 = vmatpush.bf16.msrb.mxu2 %v1371_v44  ;;  %669 = vmatpush.bf16.msrb.mxu1 %v1363_v45  ;;  %v1332_v44 = vld [vmem:[%s1998_s0 + $0xa4] sm:$0xf]  ;;  %v1084_v45 = vld [vmem:[%s1998_s0 + $0xb4] sm:$0xf0]  ;;  %v933_v25 = vld [vmem:[%s2000_s3 + $0x8] sm:$0xff] }
  0x33   :  { %659 = vmatmul.bf16.gmra.mxu3 %v1143_v48  ;;  %629 = vmatmul.bf16.gmra.mxu0 %v1023_v49  ;;  %v1333_v48 = vld [vmem:[%s1998_s0 + $0xac] sm:$0xf]  ;;  %v1092_v49 = vld [vmem:[%s1998_s0 + $0xbc] sm:$0xf0] }
  0x34   :  { %767 = vmatpush.bf16.msrb.mxu3 %v1379_v50  ;;  %v1098_v50 = vld [vmem:[%s1998_s0 + $0xb0] sm:$0xf] }
  0x36   :  { %719 = vmatpush.bf16.msrb.mxu2 %v1370_v51  ;;  %670 = vmatpush.bf16.msrb.mxu1 %v1362_v52  ;;  %v1336_v51 = vld [vmem:[%s1998_s0 + $0xc0] sm:$0xf0]  ;;  %v1087_v52 = vor.u32 %v1332_v44, %v1084_v45 }
  0x38   :  { %768 = vmatpush.bf16.msrb.mxu3 %v1378_v53  ;;  %v1091_v53 = vor.u32 %v1335_v47, %v1090_v46 }
  0x3a   :  { %720 = vmatpush.bf16.msrb.mxu2 %v1369_v54  ;;  %671 = vmatpush.bf16.msrb.mxu1 %v1361_v55  ;;  %v1095_v54 = vor.u32 %v1333_v48, %v1092_v49  ;;  %v1099_v55 = vor.u32 %v1336_v51, %v1098_v50 }
  0x3c   :  { %769 = vmatpush.bf16.msrb.mxu3 %v1377_v56  ;;  %v1337_v56 = vld [vmem:[%s1998_s0 + $0xcc] sm:$0xf] }
  0x3e   :  { %721 = vmatpush.bf16.msrb.mxu2 %v1368_v57  ;;  %672 = vmatpush.bf16.msrb.mxu1 %v1360_v58  ;;  %v1104_v57 = vld [vmem:[%s1998_s0 + $0xdc] sm:$0xf0]  ;;  %v1110_v58 = vld [vmem:[%s1998_s0 + $0xd0] sm:$0xf] }
  0x3f   :  { %v1107_v0 = vor.u32 %v1337_v56, %v1104_v57 }
  0x40   :  { %770 = vmatpush.bf16.msrb.mxu3 %v1376_v59  ;;  %v1340_v59 = vld [vmem:[%s1998_s0 + $0xe0] sm:$0xf0] }
  0x41   :  { %673 = vmatmul.bf16.vlgmr.msrb.gmra.mxu1 %v1007_v4  ;;  %722 = vmatmul.bf16.vlgmr.msrb.gmra.mxu2 %v1011_v5  ;;  %v1111_v1 = vor.u32 %v1340_v59, %v1110_v58  ;;  %v1342_v4 = vld [vmem:[%s1998_s0 + $0xf4] sm:$0xf]  ;;  %v1124_v5 = vld [vmem:[%s1998_s0 + $0x104] sm:$0xf0] }
  0x42   :  { %v1127_v12 = vor.u32 %v1342_v4, %v1124_v5 }
  0x43   :  { %771 = vmatmul.bf16.vlgmr.msrb.gmra.mxu3 %v1015_v6  ;;  %1304 = vmatmul.msk.bf16.vlgmr.msrb.gmra.mxu0 %vm22_vm0, %v1019_v7  ;;  %v1130_v6 = vld [vmem:[%s1998_s0 + $0xf8] sm:$0xf]  ;;  %v1345_v7 = vld [vmem:[%s1998_s0 + $0x108] sm:$0xf0] }
  0x44   :  { %v1131_v13 = vor.u32 %v1345_v7, %v1130_v6  ;;  %v932_v6 = vld [vmem:[%s2000_s3] sm:$0xff] }
  0x51   :  { %678 = vmatmul.bf16.gmra.mxu1 %v1027_v16  ;;  %727 = vmatmul.bf16.gmra.mxu2 %v1031_v17  ;;  %v1139_v16 = vor.u32 %v1346_v11, %v1138_v10 }
  0x53   :  { %776 = vmatmul.bf16.gmra.mxu3 %v1035_v18  ;;  %1305 = vmatmul.msk.bf16.gmra.mxu0 %vm22_vm0, %v1039_v19  ;;  %v1414_v19 = vmov 0.0  }
  0x54   :  { %23 = vst.msk [vmem:[#allocation2] sm:$0xff] %vm22_vm0, %v1414_v19 }
  0x55   :  { %24 = vst.msk [vmem:[#allocation2 + $0x8] sm:$0xff] %vm22_vm0, %v1414_v19 }
  0x56   :  { %25 = vst.msk [vmem:[#allocation2 + $0x10] sm:$0xff] %vm22_vm0, %v1414_v19 }
  0x57   :  { %26 = vst.msk [vmem:[#allocation2 + $0x18] sm:$0xff] %vm22_vm0, %v1414_v19 }
  0x58   :  { %27 = vst.msk [vmem:[#allocation2 + $0x20] sm:$0xff] %vm22_vm0, %v1414_v19 }
  0x59   :  { %28 = vst.msk [vmem:[#allocation2 + $0x28] sm:$0xff] %vm22_vm0, %v1414_v19 }
  0x5a   :  { %29 = vst.msk [vmem:[#allocation2 + $0x30] sm:$0xff] %vm22_vm0, %v1414_v19 }
  0x5b   :  { %30 = vst.msk [vmem:[#allocation2 + $0x38] sm:$0xff] %vm22_vm0, %v1414_v19 }
  0x5c   :  { %31 = vst.msk [vmem:[#allocation2 + $0x40] sm:$0xff] %vm22_vm0, %v1414_v19 }
  0x5d   :  { %32 = vst.msk [vmem:[#allocation2 + $0x48] sm:$0xff] %vm22_vm0, %v1414_v19 }
  0x5e   :  { %33 = vst.msk [vmem:[#allocation2 + $0x50] sm:$0xff] %vm22_vm0, %v1414_v19 }
  0x5f   :  { %34 = vst.msk [vmem:[#allocation2 + $0x58] sm:$0xff] %vm22_vm0, %v1414_v19 }
  0x60   :  { %35 = vst.msk [vmem:[#allocation2 + $0x60] sm:$0xff] %vm22_vm0, %v1414_v19 }
  0x61   :  { %683 = vmatmul.bf16.gmra.mxu1 %v1047_v28  ;;  %732 = vmatmul.bf16.gmra.mxu2 %v1051_v29  ;;  %v1152_v28 = vld [vmem:[%s1998_s0 + $0x134] sm:$0xf0]  ;;  %v1158_v29 = vld [vmem:[%s1998_s0 + $0x128] sm:$0xf]  ;;  %36 = vst.msk [vmem:[#allocation2 + $0x68] sm:$0xff] %vm22_vm0, %v1414_v19 }
  0x62   :  { %v1155_v36 = vor.u32 %v1348_v27, %v1152_v28  ;;  %37 = vst.msk [vmem:[#allocation2 + $0x70] sm:$0xff] %vm22_vm0, %v1414_v19 }
  0x63   :  { %781 = vmatmul.bf16.gmra.mxu3 %v1055_v30  ;;  %1306 = vmatmul.msk.bf16.gmra.mxu0 %vm22_vm0, %v1059_v31  ;;  %v1351_v30 = vld [vmem:[%s1998_s0 + $0x138] sm:$0xf0]  ;;  %38 = vst.msk [vmem:[#allocation2 + $0x78] sm:$0xff] %vm22_vm0, %v1414_v19 }
  0x64   :  { %v1159_v37 = vor.u32 %v1351_v30, %v1158_v29 }
  0x71   :  { %688 = vmatmul.bf16.gmra.mxu1 %v1067_v40  ;;  %737 = vmatmul.bf16.gmra.mxu2 %v1071_v41 }
  0x73   :  { %786 = vmatmul.bf16.gmra.mxu3 %v1075_v42  ;;  %1307 = vmatmul.msk.bf16.gmra.mxu0 %vm22_vm0, %v1079_v43 }
  0x81   :  { %693 = vmatmul.bf16.gmra.mxu1 %v1087_v52  ;;  %742 = vmatmul.bf16.gmra.mxu2 %v1091_v53 }
  0x83   :  { %791 = vmatmul.bf16.gmra.mxu3 %v1095_v54  ;;  %1308 = vmatmul.msk.bf16.gmra.mxu0 %vm22_vm0, %v1099_v55  ;;  %v39_v54 = vld [vmem:[#allocation2] sm:$0xff] }
  0x91   :  { %698 = vmatmul.bf16.gmra.mxu1 %v1107_v0  ;;  %747 = vmatmul.bf16.gmra.mxu2 %v1111_v1  ;;  %v40_v0 = vld [vmem:[#allocation2 + $0x8] sm:$0xff]  ;;  %v1840_v1 = vld [vmem:[%s1999_s2] ss:$0 sm:$0xff] }
  0x93   :  { %796 = vmatmul.bf16.gmra.mxu3 %v1115_v2  ;;  %1309 = vmatmul.msk.bf16.gmra.mxu0 %vm22_vm0, %v1119_v3 }
  0x9e   :  { %v1770_v14 = vpop.f32.mrf.mxu1 }
  0xa0   :  { %v625_v17 = vpop.f32.mrf.mxu0 }
  0xa1   :  { %703 = vmatmul.bf16.gmra.mxu1 %v1127_v12  ;;  %752 = vmatmul.bf16.gmra.mxu2 %v1131_v13 }
  0xa3   :  { %801 = vmatmul.bf16.gmra.mxu3 %v1135_v15  ;;  %1310 = vmatmul.msk.bf16.gmra.mxu0 %vm22_vm0, %v1139_v16  ;;  %v41_v16 = vld [vmem:[#allocation2 + $0x10] sm:$0xff] }
  0xa4   :  { %v1773_v18 = vpop.f32.mrf.mxu2 }
  0xa6   :  { %v1776_v20 = vpop.f32.mrf.mxu3  ;;  %v1779_v21 = vpop.f32.mrf.mxu1 }
  0xa8   :  { %v627_v22 = vpop.f32.mrf.mxu0 }
  0xac   :  { %v1811_v31 = vpop.f32.mrf.mxu2 }
  0xae   :  { %v1814_v32 = vpop.f32.mrf.mxu3  ;;  %v1817_v35 = vpop.f32.mrf.mxu1 }
  0xb0   :  { %v630_v38 = vpop.f32.mrf.mxu0 }
  0xb1   :  { %708 = vmatmul.bf16.gmra.mxu1 %v1147_v33  ;;  %757 = vmatmul.bf16.gmra.mxu2 %v1151_v34 }
  0xb3   :  { %806 = vmatmul.bf16.gmra.mxu3 %v1155_v36  ;;  %1311 = vmatmul.msk.bf16.gmra.mxu0 %vm22_vm0, %v1159_v37  ;;  %v42_v37 = vld [vmem:[#allocation2 + $0x18] sm:$0xff] }
  0xb4   :  { %v1826_v39 = vpop.f32.mrf.mxu2 }
  0xb6   :  { %v1828_v40 = vpop.f32.mrf.mxu3  ;;  %v1830_v41 = vpop.f32.mrf.mxu1 }
  0xb8   :  { %v632_v42 = vpop.f32.mrf.mxu0 }
  0xbc   :  { %v1832_v43 = vpop.f32.mrf.mxu2 }
  0xbe   :  { %v1834_v44 = vpop.f32.mrf.mxu3  ;;  %v674_v45 = vpop.f32.mrf.mxu1 }
  0xbf   :  { %v675_v47 = vadd.f32 %v674_v45, %v625_v17 }
  0xc0   :  { %v821_v46 = vpop.f32.mrf.mxu0 }
  0xc4   :  { %v723_v48 = vpop.f32.mrf.mxu2 }
  0xc5   :  { %v724_v49 = vadd.f32 %v723_v48, %v675_v47  ;;  %v934_v48 = vld [vmem:[%s2000_s3 + $0x10] sm:$0xff] }
  0xc6   :  { %v772_v50 = vpop.f32.mrf.mxu3  ;;  %v676_v51 = vpop.f32.mrf.mxu1 }
  0xc7   :  { %v773_v52 = vadd.f32 %v772_v50, %v724_v49  ;;  %v677_v57 = vadd.f32 %v676_v51, %v627_v22 }
  0xc8   :  { %v823_v53 = vpop.f32.mrf.mxu0 }
  0xc9   :  { %v822_v55 = vadd.f32 %v821_v46, %v773_v52 }
  0xcb   :  { %v861_v56 = vadd.f32 %v822_v55, %v39_v54 }
  0xcc   :  { %v725_v58 = vpop.f32.mrf.mxu2 }
  0xcd   :  { %877 = vst.msk [vmem:[#allocation2] sm:$0xff] %vm22_vm0, %v861_v56  ;;  %v726_v59 = vadd.f32 %v725_v58, %v677_v57  ;;  %v43_v57 = vld [vmem:[#allocation2 + $0x20] sm:$0xff] }
  0xce   :  { %v774_v60 = vpop.f32.mrf.mxu3  ;;  %v679_v61 = vpop.f32.mrf.mxu1 }
  0xcf   :  { %v775_v62 = vadd.f32 %v774_v60, %v726_v59  ;;  %v680_v4 = vadd.f32 %v679_v61, %v630_v38 }
  0xd0   :  { %v826_v63 = vpop.f32.mrf.mxu0 }
  0xd1   :  { %v824_v2 = vadd.f32 %v823_v53, %v775_v62  ;;  %v935_v62 = vld [vmem:[%s2000_s3 + $0x18] sm:$0xff] }
  0xd3   :  { %v862_v3 = vadd.f32 %v824_v2, %v40_v0 }
  0xd4   :  { %v896_v5 = vld [vmem:[#allocation2] sm:$0xff]  ;;  %v728_v7 = vpop.f32.mrf.mxu2 }
  0xd5   :  { %v916_v8 = vadd.f32 %v1840_v1, %v896_v5  ;;  %878 = vst.msk [vmem:[#allocation2 + $0x8] sm:$0xff] %vm22_vm0, %v862_v3  ;;  %v729_v9 = vadd.f32 %v728_v7, %v680_v4 }
  0xd6   :  { %v777_v10 = vpop.f32.mrf.mxu3  ;;  %v681_v11 = vpop.f32.mrf.mxu1 }
  0xd7   :  { %v948_v12 = vadd.f32 %v932_v6, %v916_v8  ;;  %v778_v13 = vadd.f32 %v777_v10, %v729_v9  ;;  %v682_v23 = vadd.f32 %v681_v11, %v632_v42  ;;  %v44_v8 = vld [vmem:[#allocation2 + $0x28] sm:$0xff] }
  0xd8   :  { %v828_v15 = vpop.f32.mrf.mxu0 }
  0xd9   :  { %v964_v17 = vmax.f32 %v948_v12, 0.0  ;;  %v827_v19 = vadd.f32 %v826_v63, %v778_v13  ;;  %v936_v13 = vld [vmem:[%s2000_s3 + $0x20] sm:$0xff] }
  0xdb   :  { %980 = vst.msk [vmem:[%s2001_s4] sm:$0xff] %vm22_vm0, %v964_v17  ;;  %v863_v22 = vadd.f32 %v827_v19, %v41_v16 }
  0xdc   :  { %v897_v24 = vld [vmem:[#allocation2 + $0x8] sm:$0xff]  ;;  %v730_v26 = vpop.f32.mrf.mxu2 }
  0xdd   :  { %v917_v27 = vadd.f32 %v1840_v1, %v897_v24  ;;  %879 = vst.msk [vmem:[#allocation2 + $0x10] sm:$0xff] %vm22_vm0, %v863_v22  ;;  %v731_v28 = vadd.f32 %v730_v26, %v682_v23  ;;  %v45_v26 = vld [vmem:[#allocation2 + $0x30] sm:$0xff] }
  0xde   :  { %v779_v29 = vpop.f32.mrf.mxu3  ;;  %v684_v30 = vpop.f32.mrf.mxu1 }
  0xdf   :  { %v949_v33 = vadd.f32 %v933_v25, %v917_v27  ;;  %v780_v34 = vadd.f32 %v779_v29, %v731_v28  ;;  %v685_v46 = vadd.f32 %v684_v30, %v1770_v14 }
  0xe0   :  { %v831_v36 = vpop.f32.mrf.mxu0 }
  0xe1   :  { %v965_v38 = vmax.f32 %v949_v33, 0.0  ;;  %v829_v45 = vadd.f32 %v828_v15, %v780_v34  ;;  %v937_v33 = vld [vmem:[%s2000_s3 + $0x28] sm:$0xff] }
  0xe3   :  { %981 = vst.msk [vmem:[%s2001_s4 + $0x8] sm:$0xff] %vm22_vm0, %v965_v38  ;;  %v864_v42 = vadd.f32 %v829_v45, %v42_v37 }
  0xe4   :  { %v898_v47 = vld [vmem:[#allocation2 + $0x10] sm:$0xff]  ;;  %v733_v49 = vpop.f32.mrf.mxu2 }
  0xe5   :  { %v918_v50 = vadd.f32 %v1840_v1, %v898_v47  ;;  %880 = vst.msk [vmem:[#allocation2 + $0x18] sm:$0xff] %vm22_vm0, %v864_v42  ;;  %v734_v51 = vadd.f32 %v733_v49, %v685_v46 }
  0xe6   :  { %v782_v52 = vpop.f32.mrf.mxu3  ;;  %v686_v53 = vpop.f32.mrf.mxu1 }
  0xe7   :  { %v950_v54 = vadd.f32 %v934_v48, %v918_v50  ;;  %v783_v55 = vadd.f32 %v782_v52, %v734_v51  ;;  %v687_v60 = vadd.f32 %v686_v53, %v1779_v21  ;;  %v46_v48 = vld [vmem:[#allocation2 + $0x38] sm:$0xff]  ;;  %v938_v53 = vld [vmem:[%s2000_s3 + $0x30] sm:$0xff] }
  0xe8   :  { %v833_v56 = vpop.f32.mrf.mxu0 }
  0xe9   :  { %v966_v58 = vmax.f32 %v950_v54, 0.0  ;;  %v832_v59 = vadd.f32 %v831_v36, %v783_v55 }
  0xeb   :  { %982 = vst.msk [vmem:[%s2001_s4 + $0x10] sm:$0xff] %vm22_vm0, %v966_v58  ;;  %v865_v14 = vadd.f32 %v832_v59, %v43_v57 }
  0xec   :  { %v899_v61 = vld [vmem:[#allocation2 + $0x18] sm:$0xff]  ;;  %v735_v63 = vpop.f32.mrf.mxu2 }
  0xed   :  { %v919_v0 = vadd.f32 %v1840_v1, %v899_v61  ;;  %881 = vst.msk [vmem:[#allocation2 + $0x20] sm:$0xff] %vm22_vm0, %v865_v14  ;;  %v736_v2 = vadd.f32 %v735_v63, %v687_v60  ;;  %v47_v61 = vld [vmem:[#allocation2 + $0x40] sm:$0xff] }
  0xee   :  { %v784_v3 = vpop.f32.mrf.mxu3  ;;  %v689_v4 = vpop.f32.mrf.mxu1 }
  0xef   :  { %v951_v5 = vadd.f32 %v935_v62, %v919_v0  ;;  %v785_v6 = vadd.f32 %v784_v3, %v736_v2  ;;  %v690_v11 = vadd.f32 %v689_v4, %v1817_v35  ;;  %v939_v3 = vld [vmem:[%s2000_s3 + $0x38] sm:$0xff] }
  0xf0   :  { %v836_v7 = vpop.f32.mrf.mxu0 }
  0xf1   :  { %v967_v9 = vmax.f32 %v951_v5, 0.0  ;;  %v834_v10 = vadd.f32 %v833_v56, %v785_v6 }
  0xf3   :  { %983 = vst.msk [vmem:[%s2001_s4 + $0x18] sm:$0xff] %vm22_vm0, %v967_v9  ;;  %v866_v21 = vadd.f32 %v834_v10, %v44_v8 }
  0xf4   :  { %v900_v12 = vld [vmem:[#allocation2 + $0x20] sm:$0xff]  ;;  %v738_v15 = vpop.f32.mrf.mxu2 }
  0xf5   :  { %v920_v16 = vadd.f32 %v1840_v1, %v900_v12  ;;  %882 = vst.msk [vmem:[#allocation2 + $0x28] sm:$0xff] %vm22_vm0, %v866_v21  ;;  %v739_v17 = vadd.f32 %v738_v15, %v690_v11  ;;  %v48_v11 = vld [vmem:[#allocation2 + $0x48] sm:$0xff] }
  0xf6   :  { %v787_v19 = vpop.f32.mrf.mxu3  ;;  %v691_v22 = vpop.f32.mrf.mxu1 }
  0xf7   :  { %v952_v23 = vadd.f32 %v936_v13, %v920_v16  ;;  %v788_v24 = vadd.f32 %v787_v19, %v739_v17  ;;  %v692_v29 = vadd.f32 %v691_v22, %v1830_v41  ;;  %v940_v17 = vld [vmem:[%s2000_s3 + $0x40] sm:$0xff] }
  0xf8   :  { %v838_v25 = vpop.f32.mrf.mxu0 }
  0xf9   :  { %v968_v27 = vmax.f32 %v952_v23, 0.0  ;;  %v837_v28 = vadd.f32 %v836_v7, %v788_v24 }
  0xfb   :  { %984 = vst.msk [vmem:[%s2001_s4 + $0x20] sm:$0xff] %vm22_vm0, %v968_v27  ;;  %v867_v35 = vadd.f32 %v837_v28, %v45_v26  ;;  %v49_v28 = vld [vmem:[#allocation2 + $0x50] sm:$0xff] }
  0xfc   :  { %v901_v30 = vld [vmem:[#allocation2 + $0x28] sm:$0xff]  ;;  %v740_v34 = vpop.f32.mrf.mxu2 }
  0xfd   :  { %v921_v36 = vadd.f32 %v1840_v1, %v901_v30  ;;  %883 = vst.msk [vmem:[#allocation2 + $0x30] sm:$0xff] %vm22_vm0, %v867_v35  ;;  %v741_v37 = vadd.f32 %v740_v34, %v692_v29 }
  0xfe   :  { %v789_v38 = vpop.f32.mrf.mxu3  ;;  %v694_v45 = vpop.f32.mrf.mxu1 }
  0xff   :  { %v953_v42 = vadd.f32 %v937_v33, %v921_v36  ;;  %v790_v46 = vadd.f32 %v789_v38, %v741_v37  ;;  %v695_v51 = vadd.f32 %v694_v45, %v1773_v18  ;;  %v941_v36 = vld [vmem:[%s2000_s3 + $0x48] sm:$0xff] }
 0x100   :  { %v841_v47 = vpop.f32.mrf.mxu0 }
 0x101   :  { %v969_v49 = vmax.f32 %v953_v42, 0.0  ;;  %v839_v50 = vadd.f32 %v838_v25, %v790_v46 }
 0x103   :  { %985 = vst.msk [vmem:[%s2001_s4 + $0x28] sm:$0xff] %vm22_vm0, %v969_v49  ;;  %v868_v41 = vadd.f32 %v839_v50, %v46_v48  ;;  %v50_v49 = vld [vmem:[#allocation2 + $0x58] sm:$0xff] }
 0x104   :  { %v902_v52 = vld [vmem:[#allocation2 + $0x30] sm:$0xff]  ;;  %v743_v54 = vpop.f32.mrf.mxu2 }
 0x105   :  { %v922_v55 = vadd.f32 %v1840_v1, %v902_v52  ;;  %884 = vst.msk [vmem:[#allocation2 + $0x38] sm:$0xff] %vm22_vm0, %v868_v41  ;;  %v744_v56 = vadd.f32 %v743_v54, %v695_v51  ;;  %v942_v54 = vld [vmem:[%s2000_s3 + $0x50] sm:$0xff] }
 0x106   :  { %v792_v57 = vpop.f32.mrf.mxu3  ;;  %v696_v58 = vpop.f32.mrf.mxu1 }
 0x107   :  { %v954_v59 = vadd.f32 %v938_v53, %v922_v55  ;;  %v793_v14 = vadd.f32 %v792_v57, %v744_v56  ;;  %v697_v0 = vadd.f32 %v696_v58, %v1811_v31 }
 0x108   :  { %v843_v60 = vpop.f32.mrf.mxu0 }
 0x109   :  { %v970_v62 = vmax.f32 %v954_v59, 0.0  ;;  %v842_v63 = vadd.f32 %v841_v47, %v793_v14 }
 0x10b   :  { %986 = vst.msk [vmem:[%s2001_s4 + $0x30] sm:$0xff] %vm22_vm0, %v970_v62  ;;  %v869_v18 = vadd.f32 %v842_v63, %v47_v61  ;;  %v51_v61 = vld [vmem:[#allocation2 + $0x60] sm:$0xff] }
 0x10c   :  { %v903_v2 = vld [vmem:[#allocation2 + $0x38] sm:$0xff]  ;;  %v745_v4 = vpop.f32.mrf.mxu2 }
 0x10d   :  { %v923_v5 = vadd.f32 %v1840_v1, %v903_v2  ;;  %885 = vst.msk [vmem:[#allocation2 + $0x40] sm:$0xff] %vm22_vm0, %v869_v18  ;;  %v746_v6 = vadd.f32 %v745_v4, %v697_v0  ;;  %v943_v2 = vld [vmem:[%s2000_s3 + $0x58] sm:$0xff] }
 0x10e   :  { %v794_v7 = vpop.f32.mrf.mxu3  ;;  %v699_v8 = vpop.f32.mrf.mxu1 }
 0x10f   :  { %v955_v9 = vadd.f32 %v939_v3, %v923_v5  ;;  %v795_v10 = vadd.f32 %v794_v7, %v746_v6  ;;  %v700_v15 = vadd.f32 %v699_v8, %v1826_v39 }
 0x110   :  { %v846_v21 = vpop.f32.mrf.mxu0 }
 0x111   :  { %v971_v12 = vmax.f32 %v955_v9, 0.0  ;;  %v844_v13 = vadd.f32 %v843_v60, %v795_v10 }
 0x113   :  { %987 = vst.msk [vmem:[%s2001_s4 + $0x38] sm:$0xff] %vm22_vm0, %v971_v12  ;;  %v870_v31 = vadd.f32 %v844_v13, %v48_v11 }
 0x114   :  { %v904_v16 = vld [vmem:[#allocation2 + $0x40] sm:$0xff]  ;;  %v748_v19 = vpop.f32.mrf.mxu2 }
 0x115   :  { %v924_v22 = vadd.f32 %v1840_v1, %v904_v16  ;;  %886 = vst.msk [vmem:[#allocation2 + $0x48] sm:$0xff] %vm22_vm0, %v870_v31  ;;  %v749_v23 = vadd.f32 %v748_v19, %v700_v15  ;;  %v944_v15 = vld [vmem:[%s2000_s3 + $0x60] sm:$0xff] }
 0x116   :  { %v797_v24 = vpop.f32.mrf.mxu3  ;;  %v701_v25 = vpop.f32.mrf.mxu1 }
 0x117   :  { %v956_v26 = vadd.f32 %v940_v17, %v924_v22  ;;  %v798_v27 = vadd.f32 %v797_v24, %v749_v23  ;;  %v702_v33 = vadd.f32 %v701_v25, %v1832_v43 }
 0x118   :  { %v848_v35 = vpop.f32.mrf.mxu0 }
 0x119   :  { %v972_v29 = vmax.f32 %v956_v26, 0.0  ;;  %v847_v30 = vadd.f32 %v846_v21, %v798_v27  ;;  %v52_v21 = vld [vmem:[#allocation2 + $0x68] sm:$0xff]  ;;  %v53_v26 = vld [vmem:[#allocation2 + $0x70] sm:$0xff] }
 0x11b   :  { %988 = vst.msk [vmem:[%s2001_s4 + $0x40] sm:$0xff] %vm22_vm0, %v972_v29  ;;  %v871_v39 = vadd.f32 %v847_v30, %v49_v28 }
 0x11c   :  { %v905_v34 = vld [vmem:[#allocation2 + $0x48] sm:$0xff]  ;;  %v750_v37 = vpop.f32.mrf.mxu2 }
 0x11d   :  { %v925_v38 = vadd.f32 %v1840_v1, %v905_v34  ;;  %887 = vst.msk [vmem:[#allocation2 + $0x50] sm:$0xff] %vm22_vm0, %v871_v39  ;;  %v751_v45 = vadd.f32 %v750_v37, %v702_v33  ;;  %v945_v39 = vld [vmem:[%s2000_s3 + $0x68] sm:$0xff] }
 0x11e   :  { %v799_v42 = vpop.f32.mrf.mxu3  ;;  %v704_v46 = vpop.f32.mrf.mxu1 }
 0x11f   :  { %v957_v47 = vadd.f32 %v941_v36, %v925_v38  ;;  %v800_v48 = vadd.f32 %v799_v42, %v751_v45  ;;  %v705_v52 = vadd.f32 %v704_v46, %v1776_v20  ;;  %v54_v46 = vld [vmem:[#allocation2 + $0x78] sm:$0xff] }
 0x120   :  { %v851_v51 = vpop.f32.mrf.mxu0 }
 0x121   :  { %v973_v50 = vmax.f32 %v957_v47, 0.0  ;;  %v849_v41 = vadd.f32 %v848_v35, %v800_v48 }
 0x123   :  { %989 = vst.msk [vmem:[%s2001_s4 + $0x48] sm:$0xff] %vm22_vm0, %v973_v50  ;;  %v872_v43 = vadd.f32 %v849_v41, %v50_v49  ;;  %v946_v50 = vld [vmem:[%s2000_s3 + $0x70] sm:$0xff] }
 0x124   :  { %v906_v53 = vld [vmem:[#allocation2 + $0x50] sm:$0xff]  ;;  %v753_v55 = vpop.f32.mrf.mxu2 }
 0x125   :  { %v926_v56 = vadd.f32 %v1840_v1, %v906_v53  ;;  %888 = vst.msk [vmem:[#allocation2 + $0x58] sm:$0xff] %vm22_vm0, %v872_v43  ;;  %v754_v57 = vadd.f32 %v753_v55, %v705_v52  ;;  %v947_v53 = vld [vmem:[%s2000_s3 + $0x78] sm:$0xff] }
 0x126   :  { %v802_v58 = vpop.f32.mrf.mxu3  ;;  %v706_v59 = vpop.f32.mrf.mxu1 }
 0x127   :  { %v958_v14 = vadd.f32 %v942_v54, %v926_v56  ;;  %v803_v60 = vadd.f32 %v802_v58, %v754_v57  ;;  %v707_v18 = vadd.f32 %v706_v59, %v1814_v32 }
 0x128   :  { %v853_v3 = vpop.f32.mrf.mxu0 }
 0x129   :  { %v974_v62 = vmax.f32 %v958_v14, 0.0  ;;  %v852_v63 = vadd.f32 %v851_v51, %v803_v60 }
 0x12b   :  { %990 = vst.msk [vmem:[%s2001_s4 + $0x50] sm:$0xff] %vm22_vm0, %v974_v62  ;;  %v873_v20 = vadd.f32 %v852_v63, %v51_v61 }
 0x12c   :  { %v907_v0 = vld [vmem:[#allocation2 + $0x58] sm:$0xff]  ;;  %v755_v4 = vpop.f32.mrf.mxu2 }
 0x12d   :  { %v927_v5 = vadd.f32 %v1840_v1, %v907_v0  ;;  %889 = vst.msk [vmem:[#allocation2 + $0x60] sm:$0xff] %vm22_vm0, %v873_v20  ;;  %v756_v6 = vadd.f32 %v755_v4, %v707_v18 }
 0x12e   :  { %v804_v7 = vpop.f32.mrf.mxu3  ;;  %v709_v8 = vpop.f32.mrf.mxu1 }
 0x12f   :  { %v959_v9 = vadd.f32 %v943_v2, %v927_v5  ;;  %v805_v10 = vadd.f32 %v804_v7, %v756_v6  ;;  %v710_v13 = vadd.f32 %v709_v8, %v1828_v40 }
 0x130   :  { %v856_v23 = vpop.f32.mrf.mxu0 }
 0x131   :  { %v975_v11 = vmax.f32 %v959_v9, 0.0  ;;  %v854_v12 = vadd.f32 %v853_v3, %v805_v10 }
 0x133   :  { %991 = vst.msk [vmem:[%s2001_s4 + $0x58] sm:$0xff] %vm22_vm0, %v975_v11  ;;  %v874_v32 = vadd.f32 %v854_v12, %v52_v21 }
 0x134   :  { %v908_v31 = vld [vmem:[#allocation2 + $0x60] sm:$0xff]  ;;  %v758_v16 = vpop.f32.mrf.mxu2 }
 0x135   :  { %v928_v17 = vadd.f32 %v1840_v1, %v908_v31  ;;  %890 = vst.msk [vmem:[#allocation2 + $0x68] sm:$0xff] %vm22_vm0, %v874_v32  ;;  %v759_v19 = vadd.f32 %v758_v16, %v710_v13 }
 0x136   :  { %v807_v22 = vpop.f32.mrf.mxu3  ;;  %v711_v27 = vpop.f32.mrf.mxu1 }
 0x137   :  { %v960_v24 = vadd.f32 %v944_v15, %v928_v17  ;;  %v808_v25 = vadd.f32 %v807_v22, %v759_v19  ;;  %v712_v29 = vadd.f32 %v711_v27, %v1834_v44 }
 0x138   :  { %v858_v42 = vpop.f32.mrf.mxu0 }
 0x139   :  { %v976_v28 = vmax.f32 %v960_v24, 0.0  ;;  %v857_v35 = vadd.f32 %v856_v23, %v808_v25 }
 0x13b   :  { %992 = vst.msk [vmem:[%s2001_s4 + $0x60] sm:$0xff] %vm22_vm0, %v976_v28  ;;  %v875_v40 = vadd.f32 %v857_v35, %v53_v26 }
 0x13c   :  { %v909_v30 = vld [vmem:[#allocation2 + $0x68] sm:$0xff]  ;;  %v760_v33 = vpop.f32.mrf.mxu2 }
 0x13d   :  { %v929_v34 = vadd.f32 %v1840_v1, %v909_v30  ;;  %891 = vst.msk [vmem:[#allocation2 + $0x70] sm:$0xff] %vm22_vm0, %v875_v40  ;;  %v761_v36 = vadd.f32 %v760_v33, %v712_v29 }
 0x13e   :  { %v809_v37 = vpop.f32.mrf.mxu3 }
 0x13f   :  { %v961_v38 = vadd.f32 %v945_v39, %v929_v34  ;;  %v810_v45 = vadd.f32 %v809_v37, %v761_v36 }
 0x141   :  { %v977_v47 = vmax.f32 %v961_v38, 0.0  ;;  %v859_v48 = vadd.f32 %v858_v42, %v810_v45 }
 0x143   :  { %993 = vst.msk [vmem:[%s2001_s4 + $0x68] sm:$0xff] %vm22_vm0, %v977_v47  ;;  %v876_v44 = vadd.f32 %v859_v48, %v54_v46 }
 0x144   :  { %v910_v49 = vld [vmem:[#allocation2 + $0x70] sm:$0xff] }
 0x145   :  { %v930_v41 = vadd.f32 %v1840_v1, %v910_v49  ;;  %892 = vst.msk [vmem:[#allocation2 + $0x78] sm:$0xff] %vm22_vm0, %v876_v44 }
 0x147   :  { %v962_v51 = vadd.f32 %v946_v50, %v930_v41 }
 0x149   :  { %v978_v43 = vmax.f32 %v962_v51, 0.0 }
 0x14b   :  { %994 = vst.msk [vmem:[%s2001_s4 + $0x70] sm:$0xff] %vm22_vm0, %v978_v43 }
 0x14c   :  { %v911_v52 = vld [vmem:[#allocation2 + $0x78] sm:$0xff] }
 0x14d   :  { %v931_v54 = vadd.f32 %v1840_v1, %v911_v52 }
 0x14f   :  { %v963_v55 = vadd.f32 %v947_v53, %v931_v54 }
 0x151   :  { %v979_v56 = vmax.f32 %v963_v55, 0.0 }
 0x153   :  { %995 = vst.msk [vmem:[%s2001_s4 + $0x78] sm:$0xff] %vm22_vm0, %v979_v56 }

// kernel: custom_resnet_forward.25
= control target key start
LH: loop header
LB: loop body
LE: loop exit
PB: predicated region body
PF: predicated region fallthrough
CT: control target
= control target key end

     0   :  { %8 = vsyncpa [#allocation4], 0  ;;  %s1421_s15 = smov [#allocation3]   ;;  %s1952_s0 = inlined_call_operand.vmem [shape: bf16[128,576], index: 0, kind: input, shape index: {}]   ;;  %s1953_s1 = inlined_call_operand.vmem [shape: bf16[576,64], index: 1, kind: input, shape index: {}]   ;;  %s1954_s2 = inlined_call_operand.hbm [shape: f32[1,64], index: 2, kind: input, shape index: {}]   ;;  %s1955_s3 = inlined_call_operand.vmem [shape: f32[128,64], index: 3, kind: output, shape index: {}]  }
   0x1   :  { %s18_s14 = sshll.u32 %s1954_s2, 4  ;;  %s20_s16 = sshll.u32 %s1421_s15, 4  ;;  %s19_s14 = int_to_ptr.hbm [resolvable:$true] %s18_s14  ;;  %s21_s16 = int_to_ptr.vmem [resolvable:$true] %s20_s16 }
   0x2   :  { %23 = dma.hbm_to_vmem [thread:$0]  %s19_s14, 16, %s21_s16, [#allocation4]  }
   0x3   :  { %1419 = dma.done.wait [#allocation4], 16  }
   0x4   :  { %1420 = vsyncadd [#allocation4], 4294967280  ;;  %v1339_v0 = vld [vmem:[%s1953_s1 + $0x38] sm:$0xff]  ;;  %v1338_v1 = vld [vmem:[%s1953_s1 + $0x30] sm:$0xff]  ;;  %vm33_vm0 = vcmask 523264  }
   0x5   :  { %1368 = vmatpush.bf16.msra.mxu1 %v1339_v0  ;;  %1369 = vmatpush.bf16.msra.mxu2 %v1339_v0  ;;  %v1337_v2 = vld [vmem:[%s1953_s1 + $0x28] sm:$0xff]  ;;  %v1336_v3 = vld [vmem:[%s1953_s1 + $0x20] sm:$0xff]  ;;  %v1335_v4 = vld [vmem:[%s1953_s1 + $0x18] sm:$0xff] }
   0x6   :  { %1370 = vmatpush.bf16.msra.mxu3 %v1339_v0  ;;  %627 = vmatpush.bf16.msra.mxu0 %v1339_v0  ;;  %v1334_v5 = vld [vmem:[%s1953_s1 + $0x10] sm:$0xff]  ;;  %v1333_v6 = vld [vmem:[%s1953_s1 + $0x8] sm:$0xff]  ;;  %v1332_v7 = vld [vmem:[%s1953_s1] sm:$0xff] }
   0x7   :  { %v1022_v8 = vld [vmem:[%s1952_s0 + $0x50] sm:$0xf]  ;;  %v1304_v9 = vld [vmem:[%s1952_s0 + $0x60] sm:$0xf0]  ;;  %v1062_v10 = vld [vmem:[%s1952_s0 + $0xa0] sm:$0xf] }
   0x8   :  { %v1314_v11 = vld [vmem:[%s1952_s0 + $0xb0] sm:$0xf0]  ;;  %v1102_v12 = vld [vmem:[%s1952_s0 + $0xf0] sm:$0xf]  ;;  %v1324_v13 = vld [vmem:[%s1952_s0 + $0x100] sm:$0xf0]  ;;  %v1023_v18 = vor.u32 %v1304_v9, %v1022_v8 }
   0x9   :  { %1371 = vmatpush.bf16.msra.mxu1 %v1338_v1  ;;  %1372 = vmatpush.bf16.msra.mxu2 %v1338_v1  ;;  %v982_v14 = vld [vmem:[%s1952_s0] sm:$0xf]  ;;  %v1294_v15 = vld [vmem:[%s1952_s0 + $0x10] sm:$0xf0]  ;;  %v1355_v16 = vld [vmem:[%s1953_s1 + $0xb8] sm:$0xff]  ;;  %v1063_v19 = vor.u32 %v1314_v11, %v1062_v10  ;;  %v1103_v20 = vor.u32 %v1324_v13, %v1102_v12 }
   0xa   :  { %1373 = vmatpush.bf16.msra.mxu3 %v1338_v1  ;;  %628 = vmatpush.bf16.msra.mxu0 %v1338_v1  ;;  %v1347_v17 = vld [vmem:[%s1953_s1 + $0x78] sm:$0xff]  ;;  %v983_v21 = vor.u32 %v1294_v15, %v982_v14  ;;  %v1354_v24 = vld [vmem:[%s1953_s1 + $0xb0] sm:$0xff]  ;;  %v1353_v28 = vld [vmem:[%s1953_s1 + $0xa8] sm:$0xff] }
   0xb   :  { %v1363_v22 = vld [vmem:[%s1953_s1 + $0xf8] sm:$0xff]  ;;  %v1346_v25 = vld [vmem:[%s1953_s1 + $0x70] sm:$0xff]  ;;  %v1345_v29 = vld [vmem:[%s1953_s1 + $0x68] sm:$0xff] }
   0xc   :  { %v1367_v23 = vld [vmem:[%s1953_s1 + $0x118] sm:$0xff]  ;;  %v1362_v26 = vld [vmem:[%s1953_s1 + $0xf0] sm:$0xff]  ;;  %v1361_v30 = vld [vmem:[%s1953_s1 + $0xe8] sm:$0xff] }
   0xd   :  { %1374 = vmatpush.bf16.msra.mxu1 %v1337_v2  ;;  %1375 = vmatpush.bf16.msra.mxu2 %v1337_v2  ;;  %v1366_v27 = vld [vmem:[%s1953_s1 + $0x110] sm:$0xff]  ;;  %v1365_v31 = vld [vmem:[%s1953_s1 + $0x108] sm:$0xff]  ;;  %v1352_v32 = vld [vmem:[%s1953_s1 + $0xa0] sm:$0xff] }
   0xe   :  { %1376 = vmatpush.bf16.msra.mxu3 %v1337_v2  ;;  %629 = vmatpush.bf16.msra.mxu0 %v1337_v2  ;;  %v1344_v33 = vld [vmem:[%s1953_s1 + $0x60] sm:$0xff]  ;;  %v1042_v35 = vld [vmem:[%s1952_s0 + $0x78] sm:$0xf]  ;;  %v1309_v36 = vld [vmem:[%s1952_s0 + $0x88] sm:$0xf0] }
   0xf   :  { %v1360_v34 = vld [vmem:[%s1953_s1 + $0xe0] sm:$0xff]  ;;  %v1082_v37 = vld [vmem:[%s1952_s0 + $0xc8] sm:$0xf]  ;;  %v1319_v38 = vld [vmem:[%s1952_s0 + $0xd8] sm:$0xf0]  ;;  %v1043_v46 = vor.u32 %v1309_v36, %v1042_v35 }
  0x10   :  { %v1122_v39 = vld [vmem:[%s1952_s0 + $0x118] sm:$0xf]  ;;  %v1329_v40 = vld [vmem:[%s1952_s0 + $0x128] sm:$0xf0]  ;;  %v1002_v41 = vld [vmem:[%s1952_s0 + $0x28] sm:$0xf]  ;;  %v1083_v47 = vor.u32 %v1319_v38, %v1082_v37 }
  0x11   :  { %1377 = vmatpush.bf16.msra.mxu1 %v1336_v3  ;;  %1378 = vmatpush.bf16.msra.mxu2 %v1336_v3  ;;  %v1299_v42 = vld [vmem:[%s1952_s0 + $0x38] sm:$0xf0]  ;;  %v1364_v43 = vld [vmem:[%s1953_s1 + $0x100] sm:$0xff]  ;;  %v1123_v48 = vor.u32 %v1329_v40, %v1122_v39  ;;  %v1350_v51 = vld [vmem:[%s1953_s1 + $0x90] sm:$0xff] }
  0x12   :  { %1379 = vmatpush.bf16.msra.mxu3 %v1336_v3  ;;  %630 = vmatpush.bf16.msra.mxu0 %v1336_v3  ;;  %v1351_v44 = vld [vmem:[%s1953_s1 + $0x98] sm:$0xff]  ;;  %v1003_v49 = vor.u32 %v1299_v42, %v1002_v41  ;;  %v1342_v52 = vld [vmem:[%s1953_s1 + $0x50] sm:$0xff]  ;;  %v1349_v54 = vld [vmem:[%s1953_s1 + $0x88] sm:$0xff] }
  0x13   :  { %v1343_v45 = vld [vmem:[%s1953_s1 + $0x58] sm:$0xff]  ;;  %v1358_v53 = vld [vmem:[%s1953_s1 + $0xd0] sm:$0xff]  ;;  %v1341_v55 = vld [vmem:[%s1953_s1 + $0x48] sm:$0xff] }
  0x14   :  { %v1359_v50 = vld [vmem:[%s1953_s1 + $0xd8] sm:$0xff]  ;;  %v1357_v56 = vld [vmem:[%s1953_s1 + $0xc8] sm:$0xff]  ;;  %v1348_v57 = vld [vmem:[%s1953_s1 + $0x80] sm:$0xff] }
  0x15   :  { %1380 = vmatpush.bf16.msra.mxu1 %v1335_v4  ;;  %1381 = vmatpush.bf16.msra.mxu2 %v1335_v4  ;;  %v1340_v58 = vld [vmem:[%s1953_s1 + $0x40] sm:$0xff]  ;;  %v984_v61 = vld [vmem:[%s1952_s0 + $0x14] sm:$0xf0]  ;;  %v990_v62 = vld [vmem:[%s1952_s0 + $0x8] sm:$0xf] }
  0x16   :  { %1382 = vmatpush.bf16.msra.mxu3 %v1335_v4  ;;  %631 = vmatpush.bf16.msra.mxu0 %v1335_v4  ;;  %v1356_v59 = vld [vmem:[%s1953_s1 + $0xc0] sm:$0xff]  ;;  %v1295_v63 = vld [vmem:[%s1952_s0 + $0x18] sm:$0xf0]  ;;  %v1293_v0 = vld [vmem:[%s1952_s0 + $0xc] sm:$0xf] }
  0x17   :  { %v1292_v60 = vld [vmem:[%s1952_s0 + $0x4] sm:$0xf]  ;;  %v992_v1 = vld [vmem:[%s1952_s0 + $0x1c] sm:$0xf0]  ;;  %v998_v2 = vld [vmem:[%s1952_s0 + $0x10] sm:$0xf] }
  0x18   :  { %v1296_v3 = vld [vmem:[%s1952_s0 + $0x20] sm:$0xf0]  ;;  %v987_v4 = vor.u32 %v1292_v60, %v984_v61  ;;  %v1297_v8 = vld [vmem:[%s1952_s0 + $0x2c] sm:$0xf]  ;;  %v1004_v9 = vld [vmem:[%s1952_s0 + $0x3c] sm:$0xf0] }
  0x19   :  { %1383 = vmatpush.bf16.msra.mxu1 %v1334_v5  ;;  %1384 = vmatpush.bf16.msra.mxu2 %v1334_v5  ;;  %v1010_v10 = vld [vmem:[%s1952_s0 + $0x30] sm:$0xf]  ;;  %v1300_v11 = vld [vmem:[%s1952_s0 + $0x40] sm:$0xf0]  ;;  %v1298_v12 = vld [vmem:[%s1952_s0 + $0x34] sm:$0xf] }
  0x1a   :  { %1385 = vmatpush.bf16.msra.mxu3 %v1334_v5  ;;  %632 = vmatpush.bf16.msra.mxu0 %v1334_v5  ;;  %v991_v5 = vor.u32 %v1295_v63, %v990_v62  ;;  %v1012_v13 = vld [vmem:[%s1952_s0 + $0x44] sm:$0xf0]  ;;  %v1018_v14 = vld [vmem:[%s1952_s0 + $0x38] sm:$0xf]  ;;  %v1301_v15 = vld [vmem:[%s1952_s0 + $0x48] sm:$0xf0] }
  0x1b   :  { %v1310_v35 = vld [vmem:[%s1952_s0 + $0x90] sm:$0xf0]  ;;  %v1308_v36 = vld [vmem:[%s1952_s0 + $0x84] sm:$0xf]  ;;  %v1052_v37 = vld [vmem:[%s1952_s0 + $0x94] sm:$0xf0] }
  0x1c   :  { %v1058_v38 = vld [vmem:[%s1952_s0 + $0x88] sm:$0xf]  ;;  %v1311_v39 = vld [vmem:[%s1952_s0 + $0x98] sm:$0xf0]  ;;  %v1055_v42 = vor.u32 %v1308_v36, %v1052_v37  ;;  %v1318_v60 = vld [vmem:[%s1952_s0 + $0xd4] sm:$0xf] }
  0x1d   :  { %1386 = vmatpush.bf16.msra.mxu1 %v1333_v6  ;;  %1387 = vmatpush.bf16.msra.mxu2 %v1333_v6  ;;  %v1092_v61 = vld [vmem:[%s1952_s0 + $0xe4] sm:$0xf0]  ;;  %v1098_v62 = vld [vmem:[%s1952_s0 + $0xd8] sm:$0xf]  ;;  %v1321_v63 = vld [vmem:[%s1952_s0 + $0xe8] sm:$0xf0] }
  0x1e   :  { %1388 = vmatpush.bf16.msra.mxu3 %v1333_v6  ;;  %633 = vmatpush.bf16.msra.mxu0 %v1333_v6  ;;  %v995_v6 = vor.u32 %v1293_v0, %v992_v1 }
  0x21   :  { %1389 = vmatpush.bf16.msra.mxu1 %v1332_v7  ;;  %1390 = vmatpush.bf16.msra.mxu2 %v1332_v7 }
  0x22   :  { %1391 = vmatpush.bf16.msra.mxu3 %v1332_v7  ;;  %634 = vmatpush.bf16.msra.mxu0 %v1332_v7  ;;  %v999_v7 = vor.u32 %v1296_v3, %v998_v2  ;;  %v1095_v2 = vor.u32 %v1318_v60, %v1092_v61  ;;  %v1099_v3 = vor.u32 %v1321_v63, %v1098_v62 }
  0x24   :  { %645 = vmatmul.bf16.vlgmr.msra.gmra.mxu1 %v1023_v18  ;;  %655 = vmatmul.bf16.vlgmr.msra.gmra.mxu2 %v1063_v19  ;;  %v1015_v18 = vor.u32 %v1298_v12, %v1012_v13  ;;  %v1019_v19 = vor.u32 %v1301_v15, %v1018_v14 }
  0x25   :  { %725 = vmatpush.bf16.msrb.mxu2 %v1355_v16  ;;  %676 = vmatpush.bf16.msrb.mxu1 %v1347_v17  ;;  %v1007_v16 = vor.u32 %v1297_v8, %v1004_v9  ;;  %v1011_v17 = vor.u32 %v1300_v11, %v1010_v10  ;;  %v1323_v8 = vld [vmem:[%s1952_s0 + $0xfc] sm:$0xf]  ;;  %v1112_v9 = vld [vmem:[%s1952_s0 + $0x10c] sm:$0xf0]  ;;  %v1118_v10 = vld [vmem:[%s1952_s0 + $0x100] sm:$0xf] }
  0x26   :  { %665 = vmatmul.bf16.vlgmr.msra.gmra.mxu3 %v1103_v20  ;;  %635 = vmatmul.bf16.vlgmr.msra.gmra.mxu0 %v983_v21  ;;  %v1302_v20 = vld [vmem:[%s1952_s0 + $0x54] sm:$0xf]  ;;  %v1024_v21 = vld [vmem:[%s1952_s0 + $0x64] sm:$0xf0]  ;;  %v1115_v15 = vor.u32 %v1323_v8, %v1112_v9 }
  0x27   :  { %774 = vmatpush.bf16.msrb.mxu3 %v1363_v22  ;;  %827 = vmatpush.bf16.msrb.mxu0 %v1367_v23  ;;  %v1030_v22 = vld [vmem:[%s1952_s0 + $0x58] sm:$0xf]  ;;  %v1305_v23 = vld [vmem:[%s1952_s0 + $0x68] sm:$0xf0]  ;;  %v1326_v11 = vld [vmem:[%s1952_s0 + $0x110] sm:$0xf0] }
  0x29   :  { %726 = vmatpush.bf16.msrb.mxu2 %v1354_v24  ;;  %677 = vmatpush.bf16.msrb.mxu1 %v1346_v25  ;;  %v1303_v24 = vld [vmem:[%s1952_s0 + $0x5c] sm:$0xf]  ;;  %v1032_v25 = vld [vmem:[%s1952_s0 + $0x6c] sm:$0xf0] }
  0x2b   :  { %775 = vmatpush.bf16.msrb.mxu3 %v1362_v26  ;;  %828 = vmatpush.bf16.msrb.mxu0 %v1366_v27  ;;  %v1038_v26 = vld [vmem:[%s1952_s0 + $0x60] sm:$0xf]  ;;  %v1306_v27 = vld [vmem:[%s1952_s0 + $0x70] sm:$0xf0] }
  0x2d   :  { %727 = vmatpush.bf16.msrb.mxu2 %v1353_v28  ;;  %678 = vmatpush.bf16.msrb.mxu1 %v1345_v29  ;;  %v1027_v28 = vor.u32 %v1302_v20, %v1024_v21  ;;  %v1031_v29 = vor.u32 %v1305_v23, %v1030_v22  ;;  %v1327_v23 = vld [vmem:[%s1952_s0 + $0x11c] sm:$0xf] }
  0x2f   :  { %776 = vmatpush.bf16.msrb.mxu3 %v1361_v30  ;;  %829 = vmatpush.bf16.msrb.mxu0 %v1365_v31  ;;  %v1035_v30 = vor.u32 %v1303_v24, %v1032_v25  ;;  %v1039_v31 = vor.u32 %v1306_v27, %v1038_v26  ;;  %v1124_v24 = vld [vmem:[%s1952_s0 + $0x12c] sm:$0xf0]  ;;  %v1130_v25 = vld [vmem:[%s1952_s0 + $0x120] sm:$0xf]  ;;  %v1330_v26 = vld [vmem:[%s1952_s0 + $0x130] sm:$0xf0] }
  0x30   :  { %v1328_v27 = vld [vmem:[%s1952_s0 + $0x124] sm:$0xf] }
  0x31   :  { %728 = vmatpush.bf16.msrb.mxu2 %v1352_v32  ;;  %679 = vmatpush.bf16.msrb.mxu1 %v1344_v33  ;;  %v1307_v32 = vld [vmem:[%s1952_s0 + $0x7c] sm:$0xf]  ;;  %v1044_v33 = vld [vmem:[%s1952_s0 + $0x8c] sm:$0xf0] }
  0x32   :  { %v1047_v40 = vor.u32 %v1307_v32, %v1044_v33  ;;  %v1127_v33 = vor.u32 %v1327_v23, %v1124_v24 }
  0x33   :  { %777 = vmatpush.bf16.msrb.mxu3 %v1360_v34  ;;  %830 = vmatpush.bf16.msrb.mxu0 %v1364_v43  ;;  %v1050_v34 = vld [vmem:[%s1952_s0 + $0x80] sm:$0xf]  ;;  %v1059_v43 = vor.u32 %v1311_v39, %v1058_v38 }
  0x34   :  { %650 = vmatmul.bf16.gmra.mxu1 %v1043_v46  ;;  %660 = vmatmul.bf16.gmra.mxu2 %v1083_v47  ;;  %v1051_v41 = vor.u32 %v1310_v35, %v1050_v34  ;;  %v1070_v46 = vld [vmem:[%s1952_s0 + $0xa8] sm:$0xf]  ;;  %v1315_v47 = vld [vmem:[%s1952_s0 + $0xb8] sm:$0xf0]  ;;  %v1131_v34 = vor.u32 %v1330_v26, %v1130_v25 }
  0x35   :  { %729 = vmatpush.bf16.msrb.mxu2 %v1351_v44  ;;  %680 = vmatpush.bf16.msrb.mxu1 %v1343_v45  ;;  %v1312_v44 = vld [vmem:[%s1952_s0 + $0xa4] sm:$0xf]  ;;  %v1064_v45 = vld [vmem:[%s1952_s0 + $0xb4] sm:$0xf0] }
  0x36   :  { %670 = vmatmul.bf16.gmra.mxu3 %v1123_v48  ;;  %640 = vmatmul.bf16.gmra.mxu0 %v1003_v49  ;;  %v1313_v48 = vld [vmem:[%s1952_s0 + $0xac] sm:$0xf]  ;;  %v1072_v49 = vld [vmem:[%s1952_s0 + $0xbc] sm:$0xf0] }
  0x37   :  { %778 = vmatpush.bf16.msrb.mxu3 %v1359_v50  ;;  %v1078_v50 = vld [vmem:[%s1952_s0 + $0xb0] sm:$0xf] }
  0x39   :  { %730 = vmatpush.bf16.msrb.mxu2 %v1350_v51  ;;  %681 = vmatpush.bf16.msrb.mxu1 %v1342_v52  ;;  %v1316_v51 = vld [vmem:[%s1952_s0 + $0xc0] sm:$0xf0]  ;;  %v1067_v52 = vor.u32 %v1312_v44, %v1064_v45 }
  0x3b   :  { %779 = vmatpush.bf16.msrb.mxu3 %v1358_v53  ;;  %v1071_v53 = vor.u32 %v1315_v47, %v1070_v46 }
  0x3d   :  { %731 = vmatpush.bf16.msrb.mxu2 %v1349_v54  ;;  %682 = vmatpush.bf16.msrb.mxu1 %v1341_v55  ;;  %v1075_v54 = vor.u32 %v1313_v48, %v1072_v49  ;;  %v1079_v55 = vor.u32 %v1316_v51, %v1078_v50 }
  0x3f   :  { %780 = vmatpush.bf16.msrb.mxu3 %v1357_v56  ;;  %v1317_v56 = vld [vmem:[%s1952_s0 + $0xcc] sm:$0xf] }
  0x41   :  { %732 = vmatpush.bf16.msrb.mxu2 %v1348_v57  ;;  %683 = vmatpush.bf16.msrb.mxu1 %v1340_v58  ;;  %v1084_v57 = vld [vmem:[%s1952_s0 + $0xdc] sm:$0xf0]  ;;  %v1090_v58 = vld [vmem:[%s1952_s0 + $0xd0] sm:$0xf] }
  0x42   :  { %v1087_v0 = vor.u32 %v1317_v56, %v1084_v57 }
  0x43   :  { %781 = vmatpush.bf16.msrb.mxu3 %v1356_v59  ;;  %v1320_v59 = vld [vmem:[%s1952_s0 + $0xe0] sm:$0xf0] }
  0x44   :  { %684 = vmatmul.bf16.vlgmr.msrb.gmra.mxu1 %v987_v4  ;;  %733 = vmatmul.bf16.vlgmr.msrb.gmra.mxu2 %v991_v5  ;;  %v1091_v1 = vor.u32 %v1320_v59, %v1090_v58  ;;  %v1322_v4 = vld [vmem:[%s1952_s0 + $0xf4] sm:$0xf]  ;;  %v1104_v5 = vld [vmem:[%s1952_s0 + $0x104] sm:$0xf0] }
  0x45   :  { %v1107_v12 = vor.u32 %v1322_v4, %v1104_v5 }
  0x46   :  { %782 = vmatmul.bf16.vlgmr.msrb.gmra.mxu3 %v995_v6  ;;  %1284 = vmatmul.msk.bf16.vlgmr.msrb.gmra.mxu0 %vm33_vm0, %v999_v7  ;;  %v1110_v6 = vld [vmem:[%s1952_s0 + $0xf8] sm:$0xf]  ;;  %v1325_v7 = vld [vmem:[%s1952_s0 + $0x108] sm:$0xf0] }
  0x47   :  { %v1111_v13 = vor.u32 %v1325_v7, %v1110_v6 }
  0x54   :  { %689 = vmatmul.bf16.gmra.mxu1 %v1007_v16  ;;  %738 = vmatmul.bf16.gmra.mxu2 %v1011_v17  ;;  %v1119_v16 = vor.u32 %v1326_v11, %v1118_v10 }
  0x56   :  { %787 = vmatmul.bf16.gmra.mxu3 %v1015_v18  ;;  %1285 = vmatmul.msk.bf16.gmra.mxu0 %vm33_vm0, %v1019_v19  ;;  %v1422_v19 = vmov 0.0  }
  0x57   :  { %34 = vst.msk [vmem:[#allocation2] sm:$0xff] %vm33_vm0, %v1422_v19 }
  0x58   :  { %35 = vst.msk [vmem:[#allocation2 + $0x8] sm:$0xff] %vm33_vm0, %v1422_v19 }
  0x59   :  { %36 = vst.msk [vmem:[#allocation2 + $0x10] sm:$0xff] %vm33_vm0, %v1422_v19 }
  0x5a   :  { %37 = vst.msk [vmem:[#allocation2 + $0x18] sm:$0xff] %vm33_vm0, %v1422_v19 }
  0x5b   :  { %38 = vst.msk [vmem:[#allocation2 + $0x20] sm:$0xff] %vm33_vm0, %v1422_v19 }
  0x5c   :  { %39 = vst.msk [vmem:[#allocation2 + $0x28] sm:$0xff] %vm33_vm0, %v1422_v19 }
  0x5d   :  { %40 = vst.msk [vmem:[#allocation2 + $0x30] sm:$0xff] %vm33_vm0, %v1422_v19 }
  0x5e   :  { %41 = vst.msk [vmem:[#allocation2 + $0x38] sm:$0xff] %vm33_vm0, %v1422_v19 }
  0x5f   :  { %42 = vst.msk [vmem:[#allocation2 + $0x40] sm:$0xff] %vm33_vm0, %v1422_v19 }
  0x60   :  { %43 = vst.msk [vmem:[#allocation2 + $0x48] sm:$0xff] %vm33_vm0, %v1422_v19 }
  0x61   :  { %44 = vst.msk [vmem:[#allocation2 + $0x50] sm:$0xff] %vm33_vm0, %v1422_v19 }
  0x62   :  { %45 = vst.msk [vmem:[#allocation2 + $0x58] sm:$0xff] %vm33_vm0, %v1422_v19 }
  0x63   :  { %46 = vst.msk [vmem:[#allocation2 + $0x60] sm:$0xff] %vm33_vm0, %v1422_v19 }
  0x64   :  { %694 = vmatmul.bf16.gmra.mxu1 %v1027_v28  ;;  %743 = vmatmul.bf16.gmra.mxu2 %v1031_v29  ;;  %v1132_v28 = vld [vmem:[%s1952_s0 + $0x134] sm:$0xf0]  ;;  %v1138_v29 = vld [vmem:[%s1952_s0 + $0x128] sm:$0xf]  ;;  %47 = vst.msk [vmem:[#allocation2 + $0x68] sm:$0xff] %vm33_vm0, %v1422_v19 }
  0x65   :  { %v1135_v36 = vor.u32 %v1328_v27, %v1132_v28  ;;  %48 = vst.msk [vmem:[#allocation2 + $0x70] sm:$0xff] %vm33_vm0, %v1422_v19 }
  0x66   :  { %792 = vmatmul.bf16.gmra.mxu3 %v1035_v30  ;;  %1286 = vmatmul.msk.bf16.gmra.mxu0 %vm33_vm0, %v1039_v31  ;;  %v1331_v30 = vld [vmem:[%s1952_s0 + $0x138] sm:$0xf0]  ;;  %49 = vst.msk [vmem:[#allocation2 + $0x78] sm:$0xff] %vm33_vm0, %v1422_v19 }
  0x67   :  { %v1139_v37 = vor.u32 %v1331_v30, %v1138_v29 }
  0x74   :  { %699 = vmatmul.bf16.gmra.mxu1 %v1047_v40  ;;  %748 = vmatmul.bf16.gmra.mxu2 %v1051_v41 }
  0x76   :  { %797 = vmatmul.bf16.gmra.mxu3 %v1055_v42  ;;  %1287 = vmatmul.msk.bf16.gmra.mxu0 %vm33_vm0, %v1059_v43 }
  0x84   :  { %704 = vmatmul.bf16.gmra.mxu1 %v1067_v52  ;;  %753 = vmatmul.bf16.gmra.mxu2 %v1071_v53 }
  0x86   :  { %802 = vmatmul.bf16.gmra.mxu3 %v1075_v54  ;;  %1288 = vmatmul.msk.bf16.gmra.mxu0 %vm33_vm0, %v1079_v55  ;;  %v50_v54 = vld [vmem:[#allocation2] sm:$0xff] }
  0x94   :  { %709 = vmatmul.bf16.gmra.mxu1 %v1087_v0  ;;  %758 = vmatmul.bf16.gmra.mxu2 %v1091_v1  ;;  %v51_v0 = vld [vmem:[#allocation2 + $0x8] sm:$0xff]  ;;  %v1843_v1 = vld [vmem:[#allocation3] ss:$0 sm:$0xff] }
  0x96   :  { %807 = vmatmul.bf16.gmra.mxu3 %v1095_v2  ;;  %1289 = vmatmul.msk.bf16.gmra.mxu0 %vm33_vm0, %v1099_v3 }
  0xa1   :  { %v1776_v14 = vpop.f32.mrf.mxu1 }
  0xa3   :  { %v636_v17 = vpop.f32.mrf.mxu0 }
  0xa4   :  { %714 = vmatmul.bf16.gmra.mxu1 %v1107_v12  ;;  %763 = vmatmul.bf16.gmra.mxu2 %v1111_v13 }
  0xa6   :  { %812 = vmatmul.bf16.gmra.mxu3 %v1115_v15  ;;  %1290 = vmatmul.msk.bf16.gmra.mxu0 %vm33_vm0, %v1119_v16  ;;  %v52_v15 = vld [vmem:[#allocation2 + $0x10] sm:$0xff] }
  0xa7   :  { %v1779_v18 = vpop.f32.mrf.mxu2 }
  0xa9   :  { %v1782_v20 = vpop.f32.mrf.mxu3  ;;  %v1785_v21 = vpop.f32.mrf.mxu1 }
  0xab   :  { %v638_v22 = vpop.f32.mrf.mxu0 }
  0xaf   :  { %v1817_v31 = vpop.f32.mrf.mxu2 }
  0xb1   :  { %v1820_v32 = vpop.f32.mrf.mxu3  ;;  %v1823_v35 = vpop.f32.mrf.mxu1 }
  0xb3   :  { %v641_v38 = vpop.f32.mrf.mxu0 }
  0xb4   :  { %719 = vmatmul.bf16.gmra.mxu1 %v1127_v33  ;;  %768 = vmatmul.bf16.gmra.mxu2 %v1131_v34  ;;  %v53_v33 = vld [vmem:[#allocation2 + $0x18] sm:$0xff] }
  0xb6   :  { %817 = vmatmul.bf16.gmra.mxu3 %v1135_v36  ;;  %1291 = vmatmul.msk.bf16.gmra.mxu0 %vm33_vm0, %v1139_v37 }
  0xb7   :  { %v1832_v39 = vpop.f32.mrf.mxu2 }
  0xb9   :  { %v1834_v40 = vpop.f32.mrf.mxu3  ;;  %v1836_v41 = vpop.f32.mrf.mxu1 }
  0xbb   :  { %v643_v42 = vpop.f32.mrf.mxu0 }
  0xbf   :  { %v1838_v43 = vpop.f32.mrf.mxu2 }
  0xc1   :  { %v1840_v44 = vpop.f32.mrf.mxu3  ;;  %v685_v45 = vpop.f32.mrf.mxu1 }
  0xc2   :  { %v686_v47 = vadd.f32 %v685_v45, %v636_v17 }
  0xc3   :  { %v832_v46 = vpop.f32.mrf.mxu0 }
  0xc7   :  { %v734_v48 = vpop.f32.mrf.mxu2 }
  0xc8   :  { %v735_v49 = vadd.f32 %v734_v48, %v686_v47 }
  0xc9   :  { %v783_v50 = vpop.f32.mrf.mxu3  ;;  %v687_v51 = vpop.f32.mrf.mxu1 }
  0xca   :  { %v784_v52 = vadd.f32 %v783_v50, %v735_v49  ;;  %v688_v57 = vadd.f32 %v687_v51, %v638_v22 }
  0xcb   :  { %v834_v53 = vpop.f32.mrf.mxu0 }
  0xcc   :  { %v833_v55 = vadd.f32 %v832_v46, %v784_v52  ;;  %v54_v52 = vld [vmem:[#allocation2 + $0x20] sm:$0xff] }
  0xce   :  { %v872_v56 = vadd.f32 %v833_v55, %v50_v54 }
  0xcf   :  { %v736_v58 = vpop.f32.mrf.mxu2 }
  0xd0   :  { %888 = vst.msk [vmem:[#allocation2] sm:$0xff] %vm33_vm0, %v872_v56  ;;  %v737_v59 = vadd.f32 %v736_v58, %v688_v57 }
  0xd1   :  { %v785_v60 = vpop.f32.mrf.mxu3  ;;  %v690_v61 = vpop.f32.mrf.mxu1 }
  0xd2   :  { %v786_v62 = vadd.f32 %v785_v60, %v737_v59  ;;  %v691_v4 = vadd.f32 %v690_v61, %v641_v38 }
  0xd3   :  { %v837_v63 = vpop.f32.mrf.mxu0 }
  0xd4   :  { %v835_v2 = vadd.f32 %v834_v53, %v786_v62 }
  0xd6   :  { %v873_v3 = vadd.f32 %v835_v2, %v51_v0  ;;  %v55_v0 = vld [vmem:[#allocation2 + $0x28] sm:$0xff] }
  0xd7   :  { %v907_v5 = vld [vmem:[#allocation2] sm:$0xff]  ;;  %v739_v6 = vpop.f32.mrf.mxu2 }
  0xd8   :  { %v927_v7 = vadd.f32 %v1843_v1, %v907_v5  ;;  %889 = vst.msk [vmem:[#allocation2 + $0x8] sm:$0xff] %vm33_vm0, %v873_v3  ;;  %v740_v8 = vadd.f32 %v739_v6, %v691_v4 }
  0xd9   :  { %v788_v9 = vpop.f32.mrf.mxu3  ;;  %v692_v10 = vpop.f32.mrf.mxu1 }
  0xda   :  { %v943_v11 = vmax.f32 %v927_v7, 0.0  ;;  %v789_v12 = vadd.f32 %v788_v9, %v740_v8  ;;  %v693_v19 = vadd.f32 %v692_v10, %v643_v42 }
  0xdb   :  { %v839_v13 = vpop.f32.mrf.mxu0 }
  0xdc   :  { %959 = vst.msk [vmem:[%s1955_s3] sm:$0xff] %vm33_vm0, %v943_v11  ;;  %v838_v16 = vadd.f32 %v837_v63, %v789_v12 }
  0xde   :  { %v874_v17 = vadd.f32 %v838_v16, %v52_v15 }
  0xdf   :  { %v908_v22 = vld [vmem:[#allocation2 + $0x8] sm:$0xff]  ;;  %v741_v23 = vpop.f32.mrf.mxu2 }
  0xe0   :  { %v928_v24 = vadd.f32 %v1843_v1, %v908_v22  ;;  %890 = vst.msk [vmem:[#allocation2 + $0x10] sm:$0xff] %vm33_vm0, %v874_v17  ;;  %v742_v25 = vadd.f32 %v741_v23, %v693_v19 }
  0xe1   :  { %v790_v26 = vpop.f32.mrf.mxu3  ;;  %v695_v27 = vpop.f32.mrf.mxu1 }
  0xe2   :  { %v944_v28 = vmax.f32 %v928_v24, 0.0  ;;  %v791_v29 = vadd.f32 %v790_v26, %v742_v25  ;;  %v696_v37 = vadd.f32 %v695_v27, %v1776_v14 }
  0xe3   :  { %v842_v30 = vpop.f32.mrf.mxu0 }
  0xe4   :  { %960 = vst.msk [vmem:[%s1955_s3 + $0x8] sm:$0xff] %vm33_vm0, %v944_v28  ;;  %v840_v34 = vadd.f32 %v839_v13, %v791_v29  ;;  %v56_v13 = vld [vmem:[#allocation2 + $0x30] sm:$0xff]  ;;  %v57_v29 = vld [vmem:[#allocation2 + $0x38] sm:$0xff] }
  0xe6   :  { %v875_v36 = vadd.f32 %v840_v34, %v53_v33 }
  0xe7   :  { %v909_v38 = vld [vmem:[#allocation2 + $0x10] sm:$0xff]  ;;  %v744_v42 = vpop.f32.mrf.mxu2 }
  0xe8   :  { %v929_v45 = vadd.f32 %v1843_v1, %v909_v38  ;;  %891 = vst.msk [vmem:[#allocation2 + $0x18] sm:$0xff] %vm33_vm0, %v875_v36  ;;  %v745_v46 = vadd.f32 %v744_v42, %v696_v37 }
  0xe9   :  { %v793_v47 = vpop.f32.mrf.mxu3  ;;  %v697_v48 = vpop.f32.mrf.mxu1 }
  0xea   :  { %v945_v49 = vmax.f32 %v929_v45, 0.0  ;;  %v794_v50 = vadd.f32 %v793_v47, %v745_v46  ;;  %v698_v54 = vadd.f32 %v697_v48, %v1785_v21 }
  0xeb   :  { %v844_v51 = vpop.f32.mrf.mxu0 }
  0xec   :  { %961 = vst.msk [vmem:[%s1955_s3 + $0x10] sm:$0xff] %vm33_vm0, %v945_v49  ;;  %v843_v53 = vadd.f32 %v842_v30, %v794_v50  ;;  %v58_v49 = vld [vmem:[#allocation2 + $0x40] sm:$0xff] }
  0xee   :  { %v876_v14 = vadd.f32 %v843_v53, %v54_v52 }
  0xef   :  { %v910_v55 = vld [vmem:[#allocation2 + $0x18] sm:$0xff]  ;;  %v746_v56 = vpop.f32.mrf.mxu2 }
  0xf0   :  { %v930_v57 = vadd.f32 %v1843_v1, %v910_v55  ;;  %892 = vst.msk [vmem:[#allocation2 + $0x20] sm:$0xff] %vm33_vm0, %v876_v14  ;;  %v747_v58 = vadd.f32 %v746_v56, %v698_v54 }
  0xf1   :  { %v795_v59 = vpop.f32.mrf.mxu3  ;;  %v700_v60 = vpop.f32.mrf.mxu1 }
  0xf2   :  { %v946_v61 = vmax.f32 %v930_v57, 0.0  ;;  %v796_v62 = vadd.f32 %v795_v59, %v747_v58  ;;  %v701_v3 = vadd.f32 %v700_v60, %v1823_v35  ;;  %v59_v60 = vld [vmem:[#allocation2 + $0x48] sm:$0xff] }
  0xf3   :  { %v847_v63 = vpop.f32.mrf.mxu0 }
  0xf4   :  { %962 = vst.msk [vmem:[%s1955_s3 + $0x18] sm:$0xff] %vm33_vm0, %v946_v61  ;;  %v845_v2 = vadd.f32 %v844_v51, %v796_v62 }
  0xf6   :  { %v877_v21 = vadd.f32 %v845_v2, %v55_v0 }
  0xf7   :  { %v911_v4 = vld [vmem:[#allocation2 + $0x20] sm:$0xff]  ;;  %v749_v5 = vpop.f32.mrf.mxu2 }
  0xf8   :  { %v931_v6 = vadd.f32 %v1843_v1, %v911_v4  ;;  %893 = vst.msk [vmem:[#allocation2 + $0x28] sm:$0xff] %vm33_vm0, %v877_v21  ;;  %v750_v7 = vadd.f32 %v749_v5, %v701_v3 }
  0xf9   :  { %v798_v8 = vpop.f32.mrf.mxu3  ;;  %v702_v9 = vpop.f32.mrf.mxu1 }
  0xfa   :  { %v947_v10 = vmax.f32 %v931_v6, 0.0  ;;  %v799_v11 = vadd.f32 %v798_v8, %v750_v7  ;;  %v703_v16 = vadd.f32 %v702_v9, %v1836_v41  ;;  %v60_v7 = vld [vmem:[#allocation2 + $0x50] sm:$0xff] }
  0xfb   :  { %v849_v12 = vpop.f32.mrf.mxu0 }
  0xfc   :  { %963 = vst.msk [vmem:[%s1955_s3 + $0x20] sm:$0xff] %vm33_vm0, %v947_v10  ;;  %v848_v15 = vadd.f32 %v847_v63, %v799_v11 }
  0xfe   :  { %v878_v35 = vadd.f32 %v848_v15, %v56_v13 }
  0xff   :  { %v912_v17 = vld [vmem:[#allocation2 + $0x28] sm:$0xff]  ;;  %v751_v19 = vpop.f32.mrf.mxu2 }
 0x100   :  { %v932_v22 = vadd.f32 %v1843_v1, %v912_v17  ;;  %894 = vst.msk [vmem:[#allocation2 + $0x30] sm:$0xff] %vm33_vm0, %v878_v35  ;;  %v752_v23 = vadd.f32 %v751_v19, %v703_v16 }
 0x101   :  { %v800_v24 = vpop.f32.mrf.mxu3  ;;  %v705_v25 = vpop.f32.mrf.mxu1 }
 0x102   :  { %v948_v26 = vmax.f32 %v932_v22, 0.0  ;;  %v801_v27 = vadd.f32 %v800_v24, %v752_v23  ;;  %v706_v33 = vadd.f32 %v705_v25, %v1779_v18  ;;  %v61_v22 = vld [vmem:[#allocation2 + $0x58] sm:$0xff] }
 0x103   :  { %v852_v28 = vpop.f32.mrf.mxu0 }
 0x104   :  { %964 = vst.msk [vmem:[%s1955_s3 + $0x28] sm:$0xff] %vm33_vm0, %v948_v26  ;;  %v850_v30 = vadd.f32 %v849_v12, %v801_v27 }
 0x106   :  { %v879_v41 = vadd.f32 %v850_v30, %v57_v29 }
 0x107   :  { %v913_v34 = vld [vmem:[#allocation2 + $0x30] sm:$0xff]  ;;  %v754_v36 = vpop.f32.mrf.mxu2 }
 0x108   :  { %v933_v37 = vadd.f32 %v1843_v1, %v913_v34  ;;  %895 = vst.msk [vmem:[#allocation2 + $0x38] sm:$0xff] %vm33_vm0, %v879_v41  ;;  %v755_v38 = vadd.f32 %v754_v36, %v706_v33  ;;  %v62_v36 = vld [vmem:[#allocation2 + $0x60] sm:$0xff] }
 0x109   :  { %v803_v42 = vpop.f32.mrf.mxu3  ;;  %v707_v45 = vpop.f32.mrf.mxu1 }
 0x10a   :  { %v949_v46 = vmax.f32 %v933_v37, 0.0  ;;  %v804_v47 = vadd.f32 %v803_v42, %v755_v38  ;;  %v708_v51 = vadd.f32 %v707_v45, %v1817_v31 }
 0x10b   :  { %v854_v48 = vpop.f32.mrf.mxu0 }
 0x10c   :  { %965 = vst.msk [vmem:[%s1955_s3 + $0x30] sm:$0xff] %vm33_vm0, %v949_v46  ;;  %v853_v50 = vadd.f32 %v852_v28, %v804_v47 }
 0x10e   :  { %v880_v18 = vadd.f32 %v853_v50, %v58_v49 }
 0x10f   :  { %v914_v52 = vld [vmem:[#allocation2 + $0x38] sm:$0xff]  ;;  %v756_v53 = vpop.f32.mrf.mxu2 }
 0x110   :  { %v934_v14 = vadd.f32 %v1843_v1, %v914_v52  ;;  %896 = vst.msk [vmem:[#allocation2 + $0x40] sm:$0xff] %vm33_vm0, %v880_v18  ;;  %v757_v54 = vadd.f32 %v756_v53, %v708_v51  ;;  %v63_v52 = vld [vmem:[#allocation2 + $0x68] sm:$0xff] }
 0x111   :  { %v805_v55 = vpop.f32.mrf.mxu3  ;;  %v710_v56 = vpop.f32.mrf.mxu1 }
 0x112   :  { %v950_v57 = vmax.f32 %v934_v14, 0.0  ;;  %v806_v58 = vadd.f32 %v805_v55, %v757_v54  ;;  %v711_v62 = vadd.f32 %v710_v56, %v1832_v39 }
 0x113   :  { %v857_v59 = vpop.f32.mrf.mxu0 }
 0x114   :  { %966 = vst.msk [vmem:[%s1955_s3 + $0x38] sm:$0xff] %vm33_vm0, %v950_v57  ;;  %v855_v61 = vadd.f32 %v854_v48, %v806_v58 }
 0x116   :  { %v881_v31 = vadd.f32 %v855_v61, %v59_v60 }
 0x117   :  { %v915_v63 = vld [vmem:[#allocation2 + $0x40] sm:$0xff]  ;;  %v759_v0 = vpop.f32.mrf.mxu2 }
 0x118   :  { %v935_v2 = vadd.f32 %v1843_v1, %v915_v63  ;;  %897 = vst.msk [vmem:[#allocation2 + $0x48] sm:$0xff] %vm33_vm0, %v881_v31  ;;  %v760_v21 = vadd.f32 %v759_v0, %v711_v62  ;;  %v64_v31 = vld [vmem:[#allocation2 + $0x70] sm:$0xff] }
 0x119   :  { %v808_v3 = vpop.f32.mrf.mxu3  ;;  %v712_v4 = vpop.f32.mrf.mxu1 }
 0x11a   :  { %v951_v5 = vmax.f32 %v935_v2, 0.0  ;;  %v809_v6 = vadd.f32 %v808_v3, %v760_v21  ;;  %v713_v10 = vadd.f32 %v712_v4, %v1838_v43 }
 0x11b   :  { %v859_v8 = vpop.f32.mrf.mxu0 }
 0x11c   :  { %967 = vst.msk [vmem:[%s1955_s3 + $0x40] sm:$0xff] %vm33_vm0, %v951_v5  ;;  %v858_v9 = vadd.f32 %v857_v59, %v809_v6 }
 0x11e   :  { %v882_v39 = vadd.f32 %v858_v9, %v60_v7  ;;  %v65_v9 = vld [vmem:[#allocation2 + $0x78] sm:$0xff] }
 0x11f   :  { %v916_v11 = vld [vmem:[#allocation2 + $0x48] sm:$0xff]  ;;  %v761_v12 = vpop.f32.mrf.mxu2 }
 0x120   :  { %v936_v13 = vadd.f32 %v1843_v1, %v916_v11  ;;  %898 = vst.msk [vmem:[#allocation2 + $0x50] sm:$0xff] %vm33_vm0, %v882_v39  ;;  %v762_v15 = vadd.f32 %v761_v12, %v713_v10 }
 0x121   :  { %v810_v35 = vpop.f32.mrf.mxu3  ;;  %v715_v16 = vpop.f32.mrf.mxu1 }
 0x122   :  { %v952_v17 = vmax.f32 %v936_v13, 0.0  ;;  %v811_v19 = vadd.f32 %v810_v35, %v762_v15  ;;  %v716_v25 = vadd.f32 %v715_v16, %v1782_v20 }
 0x123   :  { %v862_v24 = vpop.f32.mrf.mxu0 }
 0x124   :  { %968 = vst.msk [vmem:[%s1955_s3 + $0x48] sm:$0xff] %vm33_vm0, %v952_v17  ;;  %v860_v23 = vadd.f32 %v859_v8, %v811_v19 }
 0x126   :  { %v883_v43 = vadd.f32 %v860_v23, %v61_v22 }
 0x127   :  { %v917_v26 = vld [vmem:[#allocation2 + $0x50] sm:$0xff]  ;;  %v764_v27 = vpop.f32.mrf.mxu2 }
 0x128   :  { %v937_v28 = vadd.f32 %v1843_v1, %v917_v26  ;;  %899 = vst.msk [vmem:[#allocation2 + $0x58] sm:$0xff] %vm33_vm0, %v883_v43  ;;  %v765_v29 = vadd.f32 %v764_v27, %v716_v25 }
 0x129   :  { %v813_v30 = vpop.f32.mrf.mxu3  ;;  %v717_v41 = vpop.f32.mrf.mxu1 }
 0x12a   :  { %v953_v33 = vmax.f32 %v937_v28, 0.0  ;;  %v814_v34 = vadd.f32 %v813_v30, %v765_v29  ;;  %v718_v20 = vadd.f32 %v717_v41, %v1820_v32 }
 0x12b   :  { %v864_v45 = vpop.f32.mrf.mxu0 }
 0x12c   :  { %969 = vst.msk [vmem:[%s1955_s3 + $0x50] sm:$0xff] %vm33_vm0, %v953_v33  ;;  %v863_v37 = vadd.f32 %v862_v24, %v814_v34 }
 0x12e   :  { %v884_v38 = vadd.f32 %v863_v37, %v62_v36 }
 0x12f   :  { %v918_v42 = vld [vmem:[#allocation2 + $0x58] sm:$0xff]  ;;  %v766_v46 = vpop.f32.mrf.mxu2 }
 0x130   :  { %v938_v47 = vadd.f32 %v1843_v1, %v918_v42  ;;  %900 = vst.msk [vmem:[#allocation2 + $0x60] sm:$0xff] %vm33_vm0, %v884_v38  ;;  %v767_v48 = vadd.f32 %v766_v46, %v718_v20 }
 0x131   :  { %v815_v49 = vpop.f32.mrf.mxu3  ;;  %v720_v50 = vpop.f32.mrf.mxu1 }
 0x132   :  { %v954_v18 = vmax.f32 %v938_v47, 0.0  ;;  %v816_v51 = vadd.f32 %v815_v49, %v767_v48  ;;  %v721_v14 = vadd.f32 %v720_v50, %v1834_v40 }
 0x133   :  { %v867_v59 = vpop.f32.mrf.mxu0 }
 0x134   :  { %970 = vst.msk [vmem:[%s1955_s3 + $0x58] sm:$0xff] %vm33_vm0, %v954_v18  ;;  %v865_v53 = vadd.f32 %v864_v45, %v816_v51 }
 0x136   :  { %v885_v32 = vadd.f32 %v865_v53, %v63_v52 }
 0x137   :  { %v919_v54 = vld [vmem:[#allocation2 + $0x60] sm:$0xff]  ;;  %v769_v55 = vpop.f32.mrf.mxu2 }
 0x138   :  { %v939_v56 = vadd.f32 %v1843_v1, %v919_v54  ;;  %901 = vst.msk [vmem:[#allocation2 + $0x68] sm:$0xff] %vm33_vm0, %v885_v32  ;;  %v770_v57 = vadd.f32 %v769_v55, %v721_v14 }
 0x139   :  { %v818_v58 = vpop.f32.mrf.mxu3  ;;  %v722_v62 = vpop.f32.mrf.mxu1 }
 0x13a   :  { %v955_v60 = vmax.f32 %v939_v56, 0.0  ;;  %v819_v61 = vadd.f32 %v818_v58, %v770_v57  ;;  %v723_v0 = vadd.f32 %v722_v62, %v1840_v44 }
 0x13b   :  { %v869_v8 = vpop.f32.mrf.mxu0 }
 0x13c   :  { %971 = vst.msk [vmem:[%s1955_s3 + $0x60] sm:$0xff] %vm33_vm0, %v955_v60  ;;  %v868_v63 = vadd.f32 %v867_v59, %v819_v61 }
 0x13e   :  { %v886_v40 = vadd.f32 %v868_v63, %v64_v31 }
 0x13f   :  { %v920_v2 = vld [vmem:[#allocation2 + $0x68] sm:$0xff]  ;;  %v771_v21 = vpop.f32.mrf.mxu2 }
 0x140   :  { %v940_v3 = vadd.f32 %v1843_v1, %v920_v2  ;;  %902 = vst.msk [vmem:[#allocation2 + $0x70] sm:$0xff] %vm33_vm0, %v886_v40  ;;  %v772_v4 = vadd.f32 %v771_v21, %v723_v0 }
 0x141   :  { %v820_v5 = vpop.f32.mrf.mxu3 }
 0x142   :  { %v956_v6 = vmax.f32 %v940_v3, 0.0  ;;  %v821_v7 = vadd.f32 %v820_v5, %v772_v4 }
 0x144   :  { %972 = vst.msk [vmem:[%s1955_s3 + $0x68] sm:$0xff] %vm33_vm0, %v956_v6  ;;  %v870_v39 = vadd.f32 %v869_v8, %v821_v7 }
 0x146   :  { %v887_v10 = vadd.f32 %v870_v39, %v65_v9 }
 0x147   :  { %v921_v44 = vld [vmem:[#allocation2 + $0x70] sm:$0xff] }
 0x148   :  { %v941_v11 = vadd.f32 %v1843_v1, %v921_v44  ;;  %903 = vst.msk [vmem:[#allocation2 + $0x78] sm:$0xff] %vm33_vm0, %v887_v10 }
 0x14a   :  { %v957_v12 = vmax.f32 %v941_v11, 0.0 }
 0x14c   :  { %973 = vst.msk [vmem:[%s1955_s3 + $0x70] sm:$0xff] %vm33_vm0, %v957_v12 }
 0x14f   :  { %v922_v13 = vld [vmem:[#allocation2 + $0x78] sm:$0xff] }
 0x150   :  { %v942_v15 = vadd.f32 %v1843_v1, %v922_v13 }
 0x152   :  { %v958_v35 = vmax.f32 %v942_v15, 0.0 }
 0x154   :  { %974 = vst.msk [vmem:[%s1955_s3 + $0x78] sm:$0xff] %vm33_vm0, %v958_v35 }
 0x155   :  { %979 = vsyncpa [#allocation4], 1 }

// kernel: custom_resnet_forward.26
= control target key start
LH: loop header
LB: loop body
LE: loop exit
PB: predicated region body
PF: predicated region fallthrough
CT: control target
= control target key end

     0   :  { %9 = vsyncpa [#allocation4], 0  ;;  %s1456_s18 = smov [#allocation3]   ;;  %s2040_s0 = inlined_call_operand.vmem [shape: bf16[128,576], index: 0, kind: input, shape index: {}]   ;;  %s2041_s1 = inlined_call_operand.vmem [shape: bf16[576,64], index: 1, kind: input, shape index: {}]   ;;  %s2042_s2 = inlined_call_operand.hbm [shape: f32[1,64], index: 2, kind: input, shape index: {}]   ;;  %s2043_s3 = inlined_call_operand.vmem [shape: f32[128,64], index: 3, kind: input, shape index: {}]   ;;  %s2044_s4 = inlined_call_operand.vmem [shape: f32[128,64], index: 4, kind: output, shape index: {}]  }
   0x1   :  { %s19_s17 = sshll.u32 %s2042_s2, 4  ;;  %s21_s19 = sshll.u32 %s1456_s18, 4  ;;  %s20_s17 = int_to_ptr.hbm [resolvable:$true] %s19_s17  ;;  %s22_s19 = int_to_ptr.vmem [resolvable:$true] %s21_s19 }
   0x2   :  { %24 = dma.hbm_to_vmem [thread:$0]  %s20_s17, 16, %s22_s19, [#allocation4]  }
   0x3   :  { %1454 = dma.done.wait [#allocation4], 16  }
   0x4   :  { %1455 = vsyncadd [#allocation4], 4294967280  ;;  %v1374_v0 = vld [vmem:[%s2041_s1 + $0x38] sm:$0xff]  ;;  %v1373_v1 = vld [vmem:[%s2041_s1 + $0x30] sm:$0xff]  ;;  %vm36_vm0 = vcmask 523264  }
   0x5   :  { %1403 = vmatpush.bf16.msra.mxu1 %v1374_v0  ;;  %1404 = vmatpush.bf16.msra.mxu2 %v1374_v0  ;;  %v1372_v2 = vld [vmem:[%s2041_s1 + $0x28] sm:$0xff]  ;;  %v1371_v3 = vld [vmem:[%s2041_s1 + $0x20] sm:$0xff]  ;;  %v1370_v4 = vld [vmem:[%s2041_s1 + $0x18] sm:$0xff] }
   0x6   :  { %1405 = vmatpush.bf16.msra.mxu3 %v1374_v0  ;;  %630 = vmatpush.bf16.msra.mxu0 %v1374_v0  ;;  %v1369_v5 = vld [vmem:[%s2041_s1 + $0x10] sm:$0xff]  ;;  %v1368_v6 = vld [vmem:[%s2041_s1 + $0x8] sm:$0xff]  ;;  %v1367_v7 = vld [vmem:[%s2041_s1] sm:$0xff] }
   0x7   :  { %v1057_v8 = vld [vmem:[%s2040_s0 + $0x50] sm:$0xf]  ;;  %v1339_v9 = vld [vmem:[%s2040_s0 + $0x60] sm:$0xf0]  ;;  %v1097_v10 = vld [vmem:[%s2040_s0 + $0xa0] sm:$0xf] }
   0x8   :  { %v1349_v11 = vld [vmem:[%s2040_s0 + $0xb0] sm:$0xf0]  ;;  %v1137_v12 = vld [vmem:[%s2040_s0 + $0xf0] sm:$0xf]  ;;  %v1359_v13 = vld [vmem:[%s2040_s0 + $0x100] sm:$0xf0]  ;;  %v1058_v18 = vor.u32 %v1339_v9, %v1057_v8 }
   0x9   :  { %1406 = vmatpush.bf16.msra.mxu1 %v1373_v1  ;;  %1407 = vmatpush.bf16.msra.mxu2 %v1373_v1  ;;  %v1017_v14 = vld [vmem:[%s2040_s0] sm:$0xf]  ;;  %v1329_v15 = vld [vmem:[%s2040_s0 + $0x10] sm:$0xf0]  ;;  %v1390_v16 = vld [vmem:[%s2041_s1 + $0xb8] sm:$0xff]  ;;  %v1098_v19 = vor.u32 %v1349_v11, %v1097_v10  ;;  %v1138_v20 = vor.u32 %v1359_v13, %v1137_v12 }
   0xa   :  { %1408 = vmatpush.bf16.msra.mxu3 %v1373_v1  ;;  %631 = vmatpush.bf16.msra.mxu0 %v1373_v1  ;;  %v1382_v17 = vld [vmem:[%s2041_s1 + $0x78] sm:$0xff]  ;;  %v1018_v21 = vor.u32 %v1329_v15, %v1017_v14  ;;  %v1389_v24 = vld [vmem:[%s2041_s1 + $0xb0] sm:$0xff]  ;;  %v1388_v28 = vld [vmem:[%s2041_s1 + $0xa8] sm:$0xff] }
   0xb   :  { %v1398_v22 = vld [vmem:[%s2041_s1 + $0xf8] sm:$0xff]  ;;  %v1381_v25 = vld [vmem:[%s2041_s1 + $0x70] sm:$0xff]  ;;  %v1380_v29 = vld [vmem:[%s2041_s1 + $0x68] sm:$0xff] }
   0xc   :  { %v1402_v23 = vld [vmem:[%s2041_s1 + $0x118] sm:$0xff]  ;;  %v1397_v26 = vld [vmem:[%s2041_s1 + $0xf0] sm:$0xff]  ;;  %v1396_v30 = vld [vmem:[%s2041_s1 + $0xe8] sm:$0xff] }
   0xd   :  { %1409 = vmatpush.bf16.msra.mxu1 %v1372_v2  ;;  %1410 = vmatpush.bf16.msra.mxu2 %v1372_v2  ;;  %v1401_v27 = vld [vmem:[%s2041_s1 + $0x110] sm:$0xff]  ;;  %v1400_v31 = vld [vmem:[%s2041_s1 + $0x108] sm:$0xff]  ;;  %v1387_v32 = vld [vmem:[%s2041_s1 + $0xa0] sm:$0xff] }
   0xe   :  { %1411 = vmatpush.bf16.msra.mxu3 %v1372_v2  ;;  %632 = vmatpush.bf16.msra.mxu0 %v1372_v2  ;;  %v1379_v33 = vld [vmem:[%s2041_s1 + $0x60] sm:$0xff]  ;;  %v1077_v35 = vld [vmem:[%s2040_s0 + $0x78] sm:$0xf]  ;;  %v1344_v36 = vld [vmem:[%s2040_s0 + $0x88] sm:$0xf0] }
   0xf   :  { %v1395_v34 = vld [vmem:[%s2041_s1 + $0xe0] sm:$0xff]  ;;  %v1117_v37 = vld [vmem:[%s2040_s0 + $0xc8] sm:$0xf]  ;;  %v1354_v38 = vld [vmem:[%s2040_s0 + $0xd8] sm:$0xf0]  ;;  %v1078_v46 = vor.u32 %v1344_v36, %v1077_v35 }
  0x10   :  { %v1157_v39 = vld [vmem:[%s2040_s0 + $0x118] sm:$0xf]  ;;  %v1364_v40 = vld [vmem:[%s2040_s0 + $0x128] sm:$0xf0]  ;;  %v1037_v41 = vld [vmem:[%s2040_s0 + $0x28] sm:$0xf]  ;;  %v1118_v47 = vor.u32 %v1354_v38, %v1117_v37 }
  0x11   :  { %1412 = vmatpush.bf16.msra.mxu1 %v1371_v3  ;;  %1413 = vmatpush.bf16.msra.mxu2 %v1371_v3  ;;  %v1334_v42 = vld [vmem:[%s2040_s0 + $0x38] sm:$0xf0]  ;;  %v1399_v43 = vld [vmem:[%s2041_s1 + $0x100] sm:$0xff]  ;;  %v1158_v48 = vor.u32 %v1364_v40, %v1157_v39  ;;  %v1385_v51 = vld [vmem:[%s2041_s1 + $0x90] sm:$0xff] }
  0x12   :  { %1414 = vmatpush.bf16.msra.mxu3 %v1371_v3  ;;  %633 = vmatpush.bf16.msra.mxu0 %v1371_v3  ;;  %v1386_v44 = vld [vmem:[%s2041_s1 + $0x98] sm:$0xff]  ;;  %v1038_v49 = vor.u32 %v1334_v42, %v1037_v41  ;;  %v1377_v52 = vld [vmem:[%s2041_s1 + $0x50] sm:$0xff]  ;;  %v1384_v54 = vld [vmem:[%s2041_s1 + $0x88] sm:$0xff] }
  0x13   :  { %v1378_v45 = vld [vmem:[%s2041_s1 + $0x58] sm:$0xff]  ;;  %v1393_v53 = vld [vmem:[%s2041_s1 + $0xd0] sm:$0xff]  ;;  %v1376_v55 = vld [vmem:[%s2041_s1 + $0x48] sm:$0xff] }
  0x14   :  { %v1394_v50 = vld [vmem:[%s2041_s1 + $0xd8] sm:$0xff]  ;;  %v1392_v56 = vld [vmem:[%s2041_s1 + $0xc8] sm:$0xff]  ;;  %v1383_v57 = vld [vmem:[%s2041_s1 + $0x80] sm:$0xff] }
  0x15   :  { %1415 = vmatpush.bf16.msra.mxu1 %v1370_v4  ;;  %1416 = vmatpush.bf16.msra.mxu2 %v1370_v4  ;;  %v1375_v58 = vld [vmem:[%s2041_s1 + $0x40] sm:$0xff]  ;;  %v1019_v61 = vld [vmem:[%s2040_s0 + $0x14] sm:$0xf0]  ;;  %v1025_v62 = vld [vmem:[%s2040_s0 + $0x8] sm:$0xf] }
  0x16   :  { %1417 = vmatpush.bf16.msra.mxu3 %v1370_v4  ;;  %634 = vmatpush.bf16.msra.mxu0 %v1370_v4  ;;  %v1391_v59 = vld [vmem:[%s2041_s1 + $0xc0] sm:$0xff]  ;;  %v1330_v63 = vld [vmem:[%s2040_s0 + $0x18] sm:$0xf0]  ;;  %v1328_v0 = vld [vmem:[%s2040_s0 + $0xc] sm:$0xf] }
  0x17   :  { %v1327_v60 = vld [vmem:[%s2040_s0 + $0x4] sm:$0xf]  ;;  %v1027_v1 = vld [vmem:[%s2040_s0 + $0x1c] sm:$0xf0]  ;;  %v1033_v2 = vld [vmem:[%s2040_s0 + $0x10] sm:$0xf] }
  0x18   :  { %v1331_v3 = vld [vmem:[%s2040_s0 + $0x20] sm:$0xf0]  ;;  %v1022_v4 = vor.u32 %v1327_v60, %v1019_v61  ;;  %v1332_v8 = vld [vmem:[%s2040_s0 + $0x2c] sm:$0xf]  ;;  %v1039_v9 = vld [vmem:[%s2040_s0 + $0x3c] sm:$0xf0] }
  0x19   :  { %1418 = vmatpush.bf16.msra.mxu1 %v1369_v5  ;;  %1419 = vmatpush.bf16.msra.mxu2 %v1369_v5  ;;  %v1045_v10 = vld [vmem:[%s2040_s0 + $0x30] sm:$0xf]  ;;  %v1335_v11 = vld [vmem:[%s2040_s0 + $0x40] sm:$0xf0]  ;;  %v1333_v12 = vld [vmem:[%s2040_s0 + $0x34] sm:$0xf] }
  0x1a   :  { %1420 = vmatpush.bf16.msra.mxu3 %v1369_v5  ;;  %635 = vmatpush.bf16.msra.mxu0 %v1369_v5  ;;  %v1026_v5 = vor.u32 %v1330_v63, %v1025_v62  ;;  %v1047_v13 = vld [vmem:[%s2040_s0 + $0x44] sm:$0xf0]  ;;  %v1053_v14 = vld [vmem:[%s2040_s0 + $0x38] sm:$0xf]  ;;  %v1336_v15 = vld [vmem:[%s2040_s0 + $0x48] sm:$0xf0] }
  0x1b   :  { %v1345_v35 = vld [vmem:[%s2040_s0 + $0x90] sm:$0xf0]  ;;  %v1343_v36 = vld [vmem:[%s2040_s0 + $0x84] sm:$0xf]  ;;  %v1087_v37 = vld [vmem:[%s2040_s0 + $0x94] sm:$0xf0] }
  0x1c   :  { %v1093_v38 = vld [vmem:[%s2040_s0 + $0x88] sm:$0xf]  ;;  %v1346_v39 = vld [vmem:[%s2040_s0 + $0x98] sm:$0xf0]  ;;  %v1090_v42 = vor.u32 %v1343_v36, %v1087_v37  ;;  %v1353_v60 = vld [vmem:[%s2040_s0 + $0xd4] sm:$0xf] }
  0x1d   :  { %1421 = vmatpush.bf16.msra.mxu1 %v1368_v6  ;;  %1422 = vmatpush.bf16.msra.mxu2 %v1368_v6  ;;  %v1127_v61 = vld [vmem:[%s2040_s0 + $0xe4] sm:$0xf0]  ;;  %v1133_v62 = vld [vmem:[%s2040_s0 + $0xd8] sm:$0xf]  ;;  %v1356_v63 = vld [vmem:[%s2040_s0 + $0xe8] sm:$0xf0] }
  0x1e   :  { %1423 = vmatpush.bf16.msra.mxu3 %v1368_v6  ;;  %636 = vmatpush.bf16.msra.mxu0 %v1368_v6  ;;  %v1030_v6 = vor.u32 %v1328_v0, %v1027_v1 }
  0x21   :  { %1424 = vmatpush.bf16.msra.mxu1 %v1367_v7  ;;  %1425 = vmatpush.bf16.msra.mxu2 %v1367_v7 }
  0x22   :  { %1426 = vmatpush.bf16.msra.mxu3 %v1367_v7  ;;  %637 = vmatpush.bf16.msra.mxu0 %v1367_v7  ;;  %v1034_v7 = vor.u32 %v1331_v3, %v1033_v2  ;;  %v1130_v2 = vor.u32 %v1353_v60, %v1127_v61  ;;  %v1134_v3 = vor.u32 %v1356_v63, %v1133_v62 }
  0x24   :  { %648 = vmatmul.bf16.vlgmr.msra.gmra.mxu1 %v1058_v18  ;;  %658 = vmatmul.bf16.vlgmr.msra.gmra.mxu2 %v1098_v19  ;;  %v1050_v18 = vor.u32 %v1333_v12, %v1047_v13  ;;  %v1054_v19 = vor.u32 %v1336_v15, %v1053_v14 }
  0x25   :  { %728 = vmatpush.bf16.msrb.mxu2 %v1390_v16  ;;  %679 = vmatpush.bf16.msrb.mxu1 %v1382_v17  ;;  %v1042_v16 = vor.u32 %v1332_v8, %v1039_v9  ;;  %v1046_v17 = vor.u32 %v1335_v11, %v1045_v10  ;;  %v1358_v8 = vld [vmem:[%s2040_s0 + $0xfc] sm:$0xf]  ;;  %v1147_v9 = vld [vmem:[%s2040_s0 + $0x10c] sm:$0xf0]  ;;  %v1153_v10 = vld [vmem:[%s2040_s0 + $0x100] sm:$0xf] }
  0x26   :  { %668 = vmatmul.bf16.vlgmr.msra.gmra.mxu3 %v1138_v20  ;;  %638 = vmatmul.bf16.vlgmr.msra.gmra.mxu0 %v1018_v21  ;;  %v1337_v20 = vld [vmem:[%s2040_s0 + $0x54] sm:$0xf]  ;;  %v1059_v21 = vld [vmem:[%s2040_s0 + $0x64] sm:$0xf0]  ;;  %v1150_v15 = vor.u32 %v1358_v8, %v1147_v9 }
  0x27   :  { %777 = vmatpush.bf16.msrb.mxu3 %v1398_v22  ;;  %830 = vmatpush.bf16.msrb.mxu0 %v1402_v23  ;;  %v1065_v22 = vld [vmem:[%s2040_s0 + $0x58] sm:$0xf]  ;;  %v1340_v23 = vld [vmem:[%s2040_s0 + $0x68] sm:$0xf0]  ;;  %v1361_v11 = vld [vmem:[%s2040_s0 + $0x110] sm:$0xf0] }
  0x29   :  { %729 = vmatpush.bf16.msrb.mxu2 %v1389_v24  ;;  %680 = vmatpush.bf16.msrb.mxu1 %v1381_v25  ;;  %v1338_v24 = vld [vmem:[%s2040_s0 + $0x5c] sm:$0xf]  ;;  %v1067_v25 = vld [vmem:[%s2040_s0 + $0x6c] sm:$0xf0] }
  0x2b   :  { %778 = vmatpush.bf16.msrb.mxu3 %v1397_v26  ;;  %831 = vmatpush.bf16.msrb.mxu0 %v1401_v27  ;;  %v1073_v26 = vld [vmem:[%s2040_s0 + $0x60] sm:$0xf]  ;;  %v1341_v27 = vld [vmem:[%s2040_s0 + $0x70] sm:$0xf0] }
  0x2d   :  { %730 = vmatpush.bf16.msrb.mxu2 %v1388_v28  ;;  %681 = vmatpush.bf16.msrb.mxu1 %v1380_v29  ;;  %v1062_v28 = vor.u32 %v1337_v20, %v1059_v21  ;;  %v1066_v29 = vor.u32 %v1340_v23, %v1065_v22  ;;  %v1362_v23 = vld [vmem:[%s2040_s0 + $0x11c] sm:$0xf] }
  0x2f   :  { %779 = vmatpush.bf16.msrb.mxu3 %v1396_v30  ;;  %832 = vmatpush.bf16.msrb.mxu0 %v1400_v31  ;;  %v1070_v30 = vor.u32 %v1338_v24, %v1067_v25  ;;  %v1074_v31 = vor.u32 %v1341_v27, %v1073_v26  ;;  %v1159_v24 = vld [vmem:[%s2040_s0 + $0x12c] sm:$0xf0]  ;;  %v1165_v25 = vld [vmem:[%s2040_s0 + $0x120] sm:$0xf]  ;;  %v1365_v26 = vld [vmem:[%s2040_s0 + $0x130] sm:$0xf0] }
  0x30   :  { %v1363_v27 = vld [vmem:[%s2040_s0 + $0x124] sm:$0xf] }
  0x31   :  { %731 = vmatpush.bf16.msrb.mxu2 %v1387_v32  ;;  %682 = vmatpush.bf16.msrb.mxu1 %v1379_v33  ;;  %v1342_v32 = vld [vmem:[%s2040_s0 + $0x7c] sm:$0xf]  ;;  %v1079_v33 = vld [vmem:[%s2040_s0 + $0x8c] sm:$0xf0] }
  0x32   :  { %v1082_v40 = vor.u32 %v1342_v32, %v1079_v33  ;;  %v1162_v33 = vor.u32 %v1362_v23, %v1159_v24 }
  0x33   :  { %780 = vmatpush.bf16.msrb.mxu3 %v1395_v34  ;;  %833 = vmatpush.bf16.msrb.mxu0 %v1399_v43  ;;  %v1085_v34 = vld [vmem:[%s2040_s0 + $0x80] sm:$0xf]  ;;  %v1094_v43 = vor.u32 %v1346_v39, %v1093_v38 }
  0x34   :  { %653 = vmatmul.bf16.gmra.mxu1 %v1078_v46  ;;  %663 = vmatmul.bf16.gmra.mxu2 %v1118_v47  ;;  %v1086_v41 = vor.u32 %v1345_v35, %v1085_v34  ;;  %v1105_v46 = vld [vmem:[%s2040_s0 + $0xa8] sm:$0xf]  ;;  %v1350_v47 = vld [vmem:[%s2040_s0 + $0xb8] sm:$0xf0]  ;;  %v1166_v34 = vor.u32 %v1365_v26, %v1165_v25 }
  0x35   :  { %732 = vmatpush.bf16.msrb.mxu2 %v1386_v44  ;;  %683 = vmatpush.bf16.msrb.mxu1 %v1378_v45  ;;  %v1347_v44 = vld [vmem:[%s2040_s0 + $0xa4] sm:$0xf]  ;;  %v1099_v45 = vld [vmem:[%s2040_s0 + $0xb4] sm:$0xf0]  ;;  %v947_v25 = vld [vmem:[%s2043_s3 + $0x8] sm:$0xff] }
  0x36   :  { %673 = vmatmul.bf16.gmra.mxu3 %v1158_v48  ;;  %643 = vmatmul.bf16.gmra.mxu0 %v1038_v49  ;;  %v1348_v48 = vld [vmem:[%s2040_s0 + $0xac] sm:$0xf]  ;;  %v1107_v49 = vld [vmem:[%s2040_s0 + $0xbc] sm:$0xf0] }
  0x37   :  { %781 = vmatpush.bf16.msrb.mxu3 %v1394_v50  ;;  %v1113_v50 = vld [vmem:[%s2040_s0 + $0xb0] sm:$0xf] }
  0x39   :  { %733 = vmatpush.bf16.msrb.mxu2 %v1385_v51  ;;  %684 = vmatpush.bf16.msrb.mxu1 %v1377_v52  ;;  %v1351_v51 = vld [vmem:[%s2040_s0 + $0xc0] sm:$0xf0]  ;;  %v1102_v52 = vor.u32 %v1347_v44, %v1099_v45 }
  0x3b   :  { %782 = vmatpush.bf16.msrb.mxu3 %v1393_v53  ;;  %v1106_v53 = vor.u32 %v1350_v47, %v1105_v46 }
  0x3d   :  { %734 = vmatpush.bf16.msrb.mxu2 %v1384_v54  ;;  %685 = vmatpush.bf16.msrb.mxu1 %v1376_v55  ;;  %v1110_v54 = vor.u32 %v1348_v48, %v1107_v49  ;;  %v1114_v55 = vor.u32 %v1351_v51, %v1113_v50 }
  0x3f   :  { %783 = vmatpush.bf16.msrb.mxu3 %v1392_v56  ;;  %v1352_v56 = vld [vmem:[%s2040_s0 + $0xcc] sm:$0xf] }
  0x41   :  { %735 = vmatpush.bf16.msrb.mxu2 %v1383_v57  ;;  %686 = vmatpush.bf16.msrb.mxu1 %v1375_v58  ;;  %v1119_v57 = vld [vmem:[%s2040_s0 + $0xdc] sm:$0xf0]  ;;  %v1125_v58 = vld [vmem:[%s2040_s0 + $0xd0] sm:$0xf] }
  0x42   :  { %v1122_v0 = vor.u32 %v1352_v56, %v1119_v57 }
  0x43   :  { %784 = vmatpush.bf16.msrb.mxu3 %v1391_v59  ;;  %v1355_v59 = vld [vmem:[%s2040_s0 + $0xe0] sm:$0xf0] }
  0x44   :  { %687 = vmatmul.bf16.vlgmr.msrb.gmra.mxu1 %v1022_v4  ;;  %736 = vmatmul.bf16.vlgmr.msrb.gmra.mxu2 %v1026_v5  ;;  %v1126_v1 = vor.u32 %v1355_v59, %v1125_v58  ;;  %v1357_v4 = vld [vmem:[%s2040_s0 + $0xf4] sm:$0xf]  ;;  %v1139_v5 = vld [vmem:[%s2040_s0 + $0x104] sm:$0xf0] }
  0x45   :  { %v1142_v12 = vor.u32 %v1357_v4, %v1139_v5 }
  0x46   :  { %785 = vmatmul.bf16.vlgmr.msrb.gmra.mxu3 %v1030_v6  ;;  %1319 = vmatmul.msk.bf16.vlgmr.msrb.gmra.mxu0 %vm36_vm0, %v1034_v7  ;;  %v1145_v6 = vld [vmem:[%s2040_s0 + $0xf8] sm:$0xf]  ;;  %v1360_v7 = vld [vmem:[%s2040_s0 + $0x108] sm:$0xf0] }
  0x47   :  { %v1146_v13 = vor.u32 %v1360_v7, %v1145_v6  ;;  %v946_v6 = vld [vmem:[%s2043_s3] sm:$0xff] }
  0x54   :  { %692 = vmatmul.bf16.gmra.mxu1 %v1042_v16  ;;  %741 = vmatmul.bf16.gmra.mxu2 %v1046_v17  ;;  %v1154_v16 = vor.u32 %v1361_v11, %v1153_v10 }
  0x56   :  { %790 = vmatmul.bf16.gmra.mxu3 %v1050_v18  ;;  %1320 = vmatmul.msk.bf16.gmra.mxu0 %vm36_vm0, %v1054_v19  ;;  %v1457_v19 = vmov 0.0  }
  0x57   :  { %37 = vst.msk [vmem:[#allocation2] sm:$0xff] %vm36_vm0, %v1457_v19 }
  0x58   :  { %38 = vst.msk [vmem:[#allocation2 + $0x8] sm:$0xff] %vm36_vm0, %v1457_v19 }
  0x59   :  { %39 = vst.msk [vmem:[#allocation2 + $0x10] sm:$0xff] %vm36_vm0, %v1457_v19 }
  0x5a   :  { %40 = vst.msk [vmem:[#allocation2 + $0x18] sm:$0xff] %vm36_vm0, %v1457_v19 }
  0x5b   :  { %41 = vst.msk [vmem:[#allocation2 + $0x20] sm:$0xff] %vm36_vm0, %v1457_v19 }
  0x5c   :  { %42 = vst.msk [vmem:[#allocation2 + $0x28] sm:$0xff] %vm36_vm0, %v1457_v19 }
  0x5d   :  { %43 = vst.msk [vmem:[#allocation2 + $0x30] sm:$0xff] %vm36_vm0, %v1457_v19 }
  0x5e   :  { %44 = vst.msk [vmem:[#allocation2 + $0x38] sm:$0xff] %vm36_vm0, %v1457_v19 }
  0x5f   :  { %45 = vst.msk [vmem:[#allocation2 + $0x40] sm:$0xff] %vm36_vm0, %v1457_v19 }
  0x60   :  { %46 = vst.msk [vmem:[#allocation2 + $0x48] sm:$0xff] %vm36_vm0, %v1457_v19 }
  0x61   :  { %47 = vst.msk [vmem:[#allocation2 + $0x50] sm:$0xff] %vm36_vm0, %v1457_v19 }
  0x62   :  { %48 = vst.msk [vmem:[#allocation2 + $0x58] sm:$0xff] %vm36_vm0, %v1457_v19 }
  0x63   :  { %49 = vst.msk [vmem:[#allocation2 + $0x60] sm:$0xff] %vm36_vm0, %v1457_v19 }
  0x64   :  { %697 = vmatmul.bf16.gmra.mxu1 %v1062_v28  ;;  %746 = vmatmul.bf16.gmra.mxu2 %v1066_v29  ;;  %v1167_v28 = vld [vmem:[%s2040_s0 + $0x134] sm:$0xf0]  ;;  %v1173_v29 = vld [vmem:[%s2040_s0 + $0x128] sm:$0xf]  ;;  %50 = vst.msk [vmem:[#allocation2 + $0x68] sm:$0xff] %vm36_vm0, %v1457_v19 }
  0x65   :  { %v1170_v36 = vor.u32 %v1363_v27, %v1167_v28  ;;  %51 = vst.msk [vmem:[#allocation2 + $0x70] sm:$0xff] %vm36_vm0, %v1457_v19 }
  0x66   :  { %795 = vmatmul.bf16.gmra.mxu3 %v1070_v30  ;;  %1321 = vmatmul.msk.bf16.gmra.mxu0 %vm36_vm0, %v1074_v31  ;;  %v1366_v30 = vld [vmem:[%s2040_s0 + $0x138] sm:$0xf0]  ;;  %52 = vst.msk [vmem:[#allocation2 + $0x78] sm:$0xff] %vm36_vm0, %v1457_v19 }
  0x67   :  { %v1174_v37 = vor.u32 %v1366_v30, %v1173_v29 }
  0x74   :  { %702 = vmatmul.bf16.gmra.mxu1 %v1082_v40  ;;  %751 = vmatmul.bf16.gmra.mxu2 %v1086_v41 }
  0x76   :  { %800 = vmatmul.bf16.gmra.mxu3 %v1090_v42  ;;  %1322 = vmatmul.msk.bf16.gmra.mxu0 %vm36_vm0, %v1094_v43 }
  0x84   :  { %707 = vmatmul.bf16.gmra.mxu1 %v1102_v52  ;;  %756 = vmatmul.bf16.gmra.mxu2 %v1106_v53 }
  0x86   :  { %805 = vmatmul.bf16.gmra.mxu3 %v1110_v54  ;;  %1323 = vmatmul.msk.bf16.gmra.mxu0 %vm36_vm0, %v1114_v55  ;;  %v53_v54 = vld [vmem:[#allocation2] sm:$0xff] }
  0x94   :  { %712 = vmatmul.bf16.gmra.mxu1 %v1122_v0  ;;  %761 = vmatmul.bf16.gmra.mxu2 %v1126_v1  ;;  %v54_v0 = vld [vmem:[#allocation2 + $0x8] sm:$0xff]  ;;  %v1883_v1 = vld [vmem:[#allocation3] ss:$0 sm:$0xff] }
  0x96   :  { %810 = vmatmul.bf16.gmra.mxu3 %v1130_v2  ;;  %1324 = vmatmul.msk.bf16.gmra.mxu0 %vm36_vm0, %v1134_v3 }
  0xa1   :  { %v1816_v14 = vpop.f32.mrf.mxu1 }
  0xa3   :  { %v639_v17 = vpop.f32.mrf.mxu0 }
  0xa4   :  { %717 = vmatmul.bf16.gmra.mxu1 %v1142_v12  ;;  %766 = vmatmul.bf16.gmra.mxu2 %v1146_v13 }
  0xa6   :  { %815 = vmatmul.bf16.gmra.mxu3 %v1150_v15  ;;  %1325 = vmatmul.msk.bf16.gmra.mxu0 %vm36_vm0, %v1154_v16  ;;  %v55_v16 = vld [vmem:[#allocation2 + $0x10] sm:$0xff] }
  0xa7   :  { %v1819_v18 = vpop.f32.mrf.mxu2 }
  0xa9   :  { %v1822_v20 = vpop.f32.mrf.mxu3  ;;  %v1825_v21 = vpop.f32.mrf.mxu1 }
  0xab   :  { %v641_v22 = vpop.f32.mrf.mxu0 }
  0xaf   :  { %v1857_v31 = vpop.f32.mrf.mxu2 }
  0xb1   :  { %v1860_v32 = vpop.f32.mrf.mxu3  ;;  %v1863_v35 = vpop.f32.mrf.mxu1 }
  0xb3   :  { %v644_v38 = vpop.f32.mrf.mxu0 }
  0xb4   :  { %722 = vmatmul.bf16.gmra.mxu1 %v1162_v33  ;;  %771 = vmatmul.bf16.gmra.mxu2 %v1166_v34 }
  0xb6   :  { %820 = vmatmul.bf16.gmra.mxu3 %v1170_v36  ;;  %1326 = vmatmul.msk.bf16.gmra.mxu0 %vm36_vm0, %v1174_v37  ;;  %v56_v37 = vld [vmem:[#allocation2 + $0x18] sm:$0xff] }
  0xb7   :  { %v1872_v39 = vpop.f32.mrf.mxu2 }
  0xb9   :  { %v1874_v40 = vpop.f32.mrf.mxu3  ;;  %v1876_v41 = vpop.f32.mrf.mxu1 }
  0xbb   :  { %v646_v42 = vpop.f32.mrf.mxu0 }
  0xbf   :  { %v1878_v43 = vpop.f32.mrf.mxu2 }
  0xc1   :  { %v1880_v44 = vpop.f32.mrf.mxu3  ;;  %v688_v45 = vpop.f32.mrf.mxu1 }
  0xc2   :  { %v689_v47 = vadd.f32 %v688_v45, %v639_v17 }
  0xc3   :  { %v835_v46 = vpop.f32.mrf.mxu0 }
  0xc7   :  { %v737_v48 = vpop.f32.mrf.mxu2 }
  0xc8   :  { %v738_v49 = vadd.f32 %v737_v48, %v689_v47  ;;  %v948_v48 = vld [vmem:[%s2043_s3 + $0x10] sm:$0xff] }
  0xc9   :  { %v786_v50 = vpop.f32.mrf.mxu3  ;;  %v690_v51 = vpop.f32.mrf.mxu1 }
  0xca   :  { %v787_v52 = vadd.f32 %v786_v50, %v738_v49  ;;  %v691_v57 = vadd.f32 %v690_v51, %v641_v22 }
  0xcb   :  { %v837_v53 = vpop.f32.mrf.mxu0 }
  0xcc   :  { %v836_v55 = vadd.f32 %v835_v46, %v787_v52 }
  0xce   :  { %v875_v56 = vadd.f32 %v836_v55, %v53_v54 }
  0xcf   :  { %v739_v58 = vpop.f32.mrf.mxu2 }
  0xd0   :  { %891 = vst.msk [vmem:[#allocation2] sm:$0xff] %vm36_vm0, %v875_v56  ;;  %v740_v59 = vadd.f32 %v739_v58, %v691_v57  ;;  %v57_v57 = vld [vmem:[#allocation2 + $0x20] sm:$0xff] }
  0xd1   :  { %v788_v60 = vpop.f32.mrf.mxu3  ;;  %v693_v61 = vpop.f32.mrf.mxu1 }
  0xd2   :  { %v789_v62 = vadd.f32 %v788_v60, %v740_v59  ;;  %v694_v4 = vadd.f32 %v693_v61, %v644_v38 }
  0xd3   :  { %v840_v63 = vpop.f32.mrf.mxu0 }
  0xd4   :  { %v838_v2 = vadd.f32 %v837_v53, %v789_v62  ;;  %v949_v62 = vld [vmem:[%s2043_s3 + $0x18] sm:$0xff] }
  0xd6   :  { %v876_v3 = vadd.f32 %v838_v2, %v54_v0 }
  0xd7   :  { %v910_v5 = vld [vmem:[#allocation2] sm:$0xff]  ;;  %v742_v7 = vpop.f32.mrf.mxu2 }
  0xd8   :  { %v930_v8 = vadd.f32 %v1883_v1, %v910_v5  ;;  %892 = vst.msk [vmem:[#allocation2 + $0x8] sm:$0xff] %vm36_vm0, %v876_v3  ;;  %v743_v9 = vadd.f32 %v742_v7, %v694_v4 }
  0xd9   :  { %v791_v10 = vpop.f32.mrf.mxu3  ;;  %v695_v11 = vpop.f32.mrf.mxu1 }
  0xda   :  { %v962_v12 = vadd.f32 %v946_v6, %v930_v8  ;;  %v792_v13 = vadd.f32 %v791_v10, %v743_v9  ;;  %v696_v23 = vadd.f32 %v695_v11, %v646_v42  ;;  %v58_v8 = vld [vmem:[#allocation2 + $0x28] sm:$0xff] }
  0xdb   :  { %v842_v15 = vpop.f32.mrf.mxu0 }
  0xdc   :  { %v978_v17 = vmax.f32 %v962_v12, 0.0  ;;  %v841_v19 = vadd.f32 %v840_v63, %v792_v13  ;;  %v950_v13 = vld [vmem:[%s2043_s3 + $0x20] sm:$0xff] }
  0xde   :  { %994 = vst.msk [vmem:[%s2044_s4] sm:$0xff] %vm36_vm0, %v978_v17  ;;  %v877_v22 = vadd.f32 %v841_v19, %v55_v16 }
  0xdf   :  { %v911_v24 = vld [vmem:[#allocation2 + $0x8] sm:$0xff]  ;;  %v744_v26 = vpop.f32.mrf.mxu2 }
  0xe0   :  { %v931_v27 = vadd.f32 %v1883_v1, %v911_v24  ;;  %893 = vst.msk [vmem:[#allocation2 + $0x10] sm:$0xff] %vm36_vm0, %v877_v22  ;;  %v745_v28 = vadd.f32 %v744_v26, %v696_v23  ;;  %v59_v26 = vld [vmem:[#allocation2 + $0x30] sm:$0xff] }
  0xe1   :  { %v793_v29 = vpop.f32.mrf.mxu3  ;;  %v698_v30 = vpop.f32.mrf.mxu1 }
  0xe2   :  { %v963_v33 = vadd.f32 %v947_v25, %v931_v27  ;;  %v794_v34 = vadd.f32 %v793_v29, %v745_v28  ;;  %v699_v46 = vadd.f32 %v698_v30, %v1816_v14 }
  0xe3   :  { %v845_v36 = vpop.f32.mrf.mxu0 }
  0xe4   :  { %v979_v38 = vmax.f32 %v963_v33, 0.0  ;;  %v843_v45 = vadd.f32 %v842_v15, %v794_v34  ;;  %v951_v33 = vld [vmem:[%s2043_s3 + $0x28] sm:$0xff] }
  0xe6   :  { %995 = vst.msk [vmem:[%s2044_s4 + $0x8] sm:$0xff] %vm36_vm0, %v979_v38  ;;  %v878_v42 = vadd.f32 %v843_v45, %v56_v37 }
  0xe7   :  { %v912_v47 = vld [vmem:[#allocation2 + $0x10] sm:$0xff]  ;;  %v747_v49 = vpop.f32.mrf.mxu2 }
  0xe8   :  { %v932_v50 = vadd.f32 %v1883_v1, %v912_v47  ;;  %894 = vst.msk [vmem:[#allocation2 + $0x18] sm:$0xff] %vm36_vm0, %v878_v42  ;;  %v748_v51 = vadd.f32 %v747_v49, %v699_v46 }
  0xe9   :  { %v796_v52 = vpop.f32.mrf.mxu3  ;;  %v700_v53 = vpop.f32.mrf.mxu1 }
  0xea   :  { %v964_v54 = vadd.f32 %v948_v48, %v932_v50  ;;  %v797_v55 = vadd.f32 %v796_v52, %v748_v51  ;;  %v701_v60 = vadd.f32 %v700_v53, %v1825_v21  ;;  %v60_v48 = vld [vmem:[#allocation2 + $0x38] sm:$0xff]  ;;  %v952_v53 = vld [vmem:[%s2043_s3 + $0x30] sm:$0xff] }
  0xeb   :  { %v847_v56 = vpop.f32.mrf.mxu0 }
  0xec   :  { %v980_v58 = vmax.f32 %v964_v54, 0.0  ;;  %v846_v59 = vadd.f32 %v845_v36, %v797_v55 }
  0xee   :  { %996 = vst.msk [vmem:[%s2044_s4 + $0x10] sm:$0xff] %vm36_vm0, %v980_v58  ;;  %v879_v14 = vadd.f32 %v846_v59, %v57_v57 }
  0xef   :  { %v913_v61 = vld [vmem:[#allocation2 + $0x18] sm:$0xff]  ;;  %v749_v63 = vpop.f32.mrf.mxu2 }
  0xf0   :  { %v933_v0 = vadd.f32 %v1883_v1, %v913_v61  ;;  %895 = vst.msk [vmem:[#allocation2 + $0x20] sm:$0xff] %vm36_vm0, %v879_v14  ;;  %v750_v2 = vadd.f32 %v749_v63, %v701_v60  ;;  %v61_v61 = vld [vmem:[#allocation2 + $0x40] sm:$0xff] }
  0xf1   :  { %v798_v3 = vpop.f32.mrf.mxu3  ;;  %v703_v4 = vpop.f32.mrf.mxu1 }
  0xf2   :  { %v965_v5 = vadd.f32 %v949_v62, %v933_v0  ;;  %v799_v6 = vadd.f32 %v798_v3, %v750_v2  ;;  %v704_v11 = vadd.f32 %v703_v4, %v1863_v35  ;;  %v953_v3 = vld [vmem:[%s2043_s3 + $0x38] sm:$0xff] }
  0xf3   :  { %v850_v7 = vpop.f32.mrf.mxu0 }
  0xf4   :  { %v981_v9 = vmax.f32 %v965_v5, 0.0  ;;  %v848_v10 = vadd.f32 %v847_v56, %v799_v6 }
  0xf6   :  { %997 = vst.msk [vmem:[%s2044_s4 + $0x18] sm:$0xff] %vm36_vm0, %v981_v9  ;;  %v880_v21 = vadd.f32 %v848_v10, %v58_v8 }
  0xf7   :  { %v914_v12 = vld [vmem:[#allocation2 + $0x20] sm:$0xff]  ;;  %v752_v15 = vpop.f32.mrf.mxu2 }
  0xf8   :  { %v934_v16 = vadd.f32 %v1883_v1, %v914_v12  ;;  %896 = vst.msk [vmem:[#allocation2 + $0x28] sm:$0xff] %vm36_vm0, %v880_v21  ;;  %v753_v17 = vadd.f32 %v752_v15, %v704_v11  ;;  %v62_v11 = vld [vmem:[#allocation2 + $0x48] sm:$0xff] }
  0xf9   :  { %v801_v19 = vpop.f32.mrf.mxu3  ;;  %v705_v22 = vpop.f32.mrf.mxu1 }
  0xfa   :  { %v966_v23 = vadd.f32 %v950_v13, %v934_v16  ;;  %v802_v24 = vadd.f32 %v801_v19, %v753_v17  ;;  %v706_v29 = vadd.f32 %v705_v22, %v1876_v41  ;;  %v954_v17 = vld [vmem:[%s2043_s3 + $0x40] sm:$0xff] }
  0xfb   :  { %v852_v25 = vpop.f32.mrf.mxu0 }
  0xfc   :  { %v982_v27 = vmax.f32 %v966_v23, 0.0  ;;  %v851_v28 = vadd.f32 %v850_v7, %v802_v24 }
  0xfe   :  { %998 = vst.msk [vmem:[%s2044_s4 + $0x20] sm:$0xff] %vm36_vm0, %v982_v27  ;;  %v881_v35 = vadd.f32 %v851_v28, %v59_v26  ;;  %v63_v28 = vld [vmem:[#allocation2 + $0x50] sm:$0xff] }
  0xff   :  { %v915_v30 = vld [vmem:[#allocation2 + $0x28] sm:$0xff]  ;;  %v754_v34 = vpop.f32.mrf.mxu2 }
 0x100   :  { %v935_v36 = vadd.f32 %v1883_v1, %v915_v30  ;;  %897 = vst.msk [vmem:[#allocation2 + $0x30] sm:$0xff] %vm36_vm0, %v881_v35  ;;  %v755_v37 = vadd.f32 %v754_v34, %v706_v29 }
 0x101   :  { %v803_v38 = vpop.f32.mrf.mxu3  ;;  %v708_v45 = vpop.f32.mrf.mxu1 }
 0x102   :  { %v967_v42 = vadd.f32 %v951_v33, %v935_v36  ;;  %v804_v46 = vadd.f32 %v803_v38, %v755_v37  ;;  %v709_v51 = vadd.f32 %v708_v45, %v1819_v18  ;;  %v955_v36 = vld [vmem:[%s2043_s3 + $0x48] sm:$0xff] }
 0x103   :  { %v855_v47 = vpop.f32.mrf.mxu0 }
 0x104   :  { %v983_v49 = vmax.f32 %v967_v42, 0.0  ;;  %v853_v50 = vadd.f32 %v852_v25, %v804_v46 }
 0x106   :  { %999 = vst.msk [vmem:[%s2044_s4 + $0x28] sm:$0xff] %vm36_vm0, %v983_v49  ;;  %v882_v41 = vadd.f32 %v853_v50, %v60_v48  ;;  %v64_v49 = vld [vmem:[#allocation2 + $0x58] sm:$0xff] }
 0x107   :  { %v916_v52 = vld [vmem:[#allocation2 + $0x30] sm:$0xff]  ;;  %v757_v54 = vpop.f32.mrf.mxu2 }
 0x108   :  { %v936_v55 = vadd.f32 %v1883_v1, %v916_v52  ;;  %898 = vst.msk [vmem:[#allocation2 + $0x38] sm:$0xff] %vm36_vm0, %v882_v41  ;;  %v758_v56 = vadd.f32 %v757_v54, %v709_v51  ;;  %v956_v54 = vld [vmem:[%s2043_s3 + $0x50] sm:$0xff] }
 0x109   :  { %v806_v57 = vpop.f32.mrf.mxu3  ;;  %v710_v58 = vpop.f32.mrf.mxu1 }
 0x10a   :  { %v968_v59 = vadd.f32 %v952_v53, %v936_v55  ;;  %v807_v14 = vadd.f32 %v806_v57, %v758_v56  ;;  %v711_v0 = vadd.f32 %v710_v58, %v1857_v31 }
 0x10b   :  { %v857_v60 = vpop.f32.mrf.mxu0 }
 0x10c   :  { %v984_v62 = vmax.f32 %v968_v59, 0.0  ;;  %v856_v63 = vadd.f32 %v855_v47, %v807_v14 }
 0x10e   :  { %1000 = vst.msk [vmem:[%s2044_s4 + $0x30] sm:$0xff] %vm36_vm0, %v984_v62  ;;  %v883_v18 = vadd.f32 %v856_v63, %v61_v61  ;;  %v65_v61 = vld [vmem:[#allocation2 + $0x60] sm:$0xff] }
 0x10f   :  { %v917_v2 = vld [vmem:[#allocation2 + $0x38] sm:$0xff]  ;;  %v759_v4 = vpop.f32.mrf.mxu2 }
 0x110   :  { %v937_v5 = vadd.f32 %v1883_v1, %v917_v2  ;;  %899 = vst.msk [vmem:[#allocation2 + $0x40] sm:$0xff] %vm36_vm0, %v883_v18  ;;  %v760_v6 = vadd.f32 %v759_v4, %v711_v0  ;;  %v957_v2 = vld [vmem:[%s2043_s3 + $0x58] sm:$0xff] }
 0x111   :  { %v808_v7 = vpop.f32.mrf.mxu3  ;;  %v713_v8 = vpop.f32.mrf.mxu1 }
 0x112   :  { %v969_v9 = vadd.f32 %v953_v3, %v937_v5  ;;  %v809_v10 = vadd.f32 %v808_v7, %v760_v6  ;;  %v714_v15 = vadd.f32 %v713_v8, %v1872_v39 }
 0x113   :  { %v860_v21 = vpop.f32.mrf.mxu0 }
 0x114   :  { %v985_v12 = vmax.f32 %v969_v9, 0.0  ;;  %v858_v13 = vadd.f32 %v857_v60, %v809_v10 }
 0x116   :  { %1001 = vst.msk [vmem:[%s2044_s4 + $0x38] sm:$0xff] %vm36_vm0, %v985_v12  ;;  %v884_v31 = vadd.f32 %v858_v13, %v62_v11 }
 0x117   :  { %v918_v16 = vld [vmem:[#allocation2 + $0x40] sm:$0xff]  ;;  %v762_v19 = vpop.f32.mrf.mxu2 }
 0x118   :  { %v938_v22 = vadd.f32 %v1883_v1, %v918_v16  ;;  %900 = vst.msk [vmem:[#allocation2 + $0x48] sm:$0xff] %vm36_vm0, %v884_v31  ;;  %v763_v23 = vadd.f32 %v762_v19, %v714_v15  ;;  %v958_v15 = vld [vmem:[%s2043_s3 + $0x60] sm:$0xff] }
 0x119   :  { %v811_v24 = vpop.f32.mrf.mxu3  ;;  %v715_v25 = vpop.f32.mrf.mxu1 }
 0x11a   :  { %v970_v26 = vadd.f32 %v954_v17, %v938_v22  ;;  %v812_v27 = vadd.f32 %v811_v24, %v763_v23  ;;  %v716_v33 = vadd.f32 %v715_v25, %v1878_v43 }
 0x11b   :  { %v862_v35 = vpop.f32.mrf.mxu0 }
 0x11c   :  { %v986_v29 = vmax.f32 %v970_v26, 0.0  ;;  %v861_v30 = vadd.f32 %v860_v21, %v812_v27  ;;  %v66_v21 = vld [vmem:[#allocation2 + $0x68] sm:$0xff]  ;;  %v67_v26 = vld [vmem:[#allocation2 + $0x70] sm:$0xff] }
 0x11e   :  { %1002 = vst.msk [vmem:[%s2044_s4 + $0x40] sm:$0xff] %vm36_vm0, %v986_v29  ;;  %v885_v39 = vadd.f32 %v861_v30, %v63_v28 }
 0x11f   :  { %v919_v34 = vld [vmem:[#allocation2 + $0x48] sm:$0xff]  ;;  %v764_v37 = vpop.f32.mrf.mxu2 }
 0x120   :  { %v939_v38 = vadd.f32 %v1883_v1, %v919_v34  ;;  %901 = vst.msk [vmem:[#allocation2 + $0x50] sm:$0xff] %vm36_vm0, %v885_v39  ;;  %v765_v45 = vadd.f32 %v764_v37, %v716_v33  ;;  %v959_v39 = vld [vmem:[%s2043_s3 + $0x68] sm:$0xff] }
 0x121   :  { %v813_v42 = vpop.f32.mrf.mxu3  ;;  %v718_v46 = vpop.f32.mrf.mxu1 }
 0x122   :  { %v971_v47 = vadd.f32 %v955_v36, %v939_v38  ;;  %v814_v48 = vadd.f32 %v813_v42, %v765_v45  ;;  %v719_v52 = vadd.f32 %v718_v46, %v1822_v20  ;;  %v68_v46 = vld [vmem:[#allocation2 + $0x78] sm:$0xff] }
 0x123   :  { %v865_v51 = vpop.f32.mrf.mxu0 }
 0x124   :  { %v987_v50 = vmax.f32 %v971_v47, 0.0  ;;  %v863_v41 = vadd.f32 %v862_v35, %v814_v48 }
 0x126   :  { %1003 = vst.msk [vmem:[%s2044_s4 + $0x48] sm:$0xff] %vm36_vm0, %v987_v50  ;;  %v886_v43 = vadd.f32 %v863_v41, %v64_v49  ;;  %v960_v50 = vld [vmem:[%s2043_s3 + $0x70] sm:$0xff] }
 0x127   :  { %v920_v53 = vld [vmem:[#allocation2 + $0x50] sm:$0xff]  ;;  %v767_v55 = vpop.f32.mrf.mxu2 }
 0x128   :  { %v940_v56 = vadd.f32 %v1883_v1, %v920_v53  ;;  %902 = vst.msk [vmem:[#allocation2 + $0x58] sm:$0xff] %vm36_vm0, %v886_v43  ;;  %v768_v57 = vadd.f32 %v767_v55, %v719_v52  ;;  %v961_v53 = vld [vmem:[%s2043_s3 + $0x78] sm:$0xff] }
 0x129   :  { %v816_v58 = vpop.f32.mrf.mxu3  ;;  %v720_v59 = vpop.f32.mrf.mxu1 }
 0x12a   :  { %v972_v14 = vadd.f32 %v956_v54, %v940_v56  ;;  %v817_v60 = vadd.f32 %v816_v58, %v768_v57  ;;  %v721_v18 = vadd.f32 %v720_v59, %v1860_v32 }
 0x12b   :  { %v867_v3 = vpop.f32.mrf.mxu0 }
 0x12c   :  { %v988_v62 = vmax.f32 %v972_v14, 0.0  ;;  %v866_v63 = vadd.f32 %v865_v51, %v817_v60 }
 0x12e   :  { %1004 = vst.msk [vmem:[%s2044_s4 + $0x50] sm:$0xff] %vm36_vm0, %v988_v62  ;;  %v887_v20 = vadd.f32 %v866_v63, %v65_v61 }
 0x12f   :  { %v921_v0 = vld [vmem:[#allocation2 + $0x58] sm:$0xff]  ;;  %v769_v4 = vpop.f32.mrf.mxu2 }
 0x130   :  { %v941_v5 = vadd.f32 %v1883_v1, %v921_v0  ;;  %903 = vst.msk [vmem:[#allocation2 + $0x60] sm:$0xff] %vm36_vm0, %v887_v20  ;;  %v770_v6 = vadd.f32 %v769_v4, %v721_v18 }
 0x131   :  { %v818_v7 = vpop.f32.mrf.mxu3  ;;  %v723_v8 = vpop.f32.mrf.mxu1 }
 0x132   :  { %v973_v9 = vadd.f32 %v957_v2, %v941_v5  ;;  %v819_v10 = vadd.f32 %v818_v7, %v770_v6  ;;  %v724_v13 = vadd.f32 %v723_v8, %v1874_v40 }
 0x133   :  { %v870_v23 = vpop.f32.mrf.mxu0 }
 0x134   :  { %v989_v11 = vmax.f32 %v973_v9, 0.0  ;;  %v868_v12 = vadd.f32 %v867_v3, %v819_v10 }
 0x136   :  { %1005 = vst.msk [vmem:[%s2044_s4 + $0x58] sm:$0xff] %vm36_vm0, %v989_v11  ;;  %v888_v32 = vadd.f32 %v868_v12, %v66_v21 }
 0x137   :  { %v922_v31 = vld [vmem:[#allocation2 + $0x60] sm:$0xff]  ;;  %v772_v16 = vpop.f32.mrf.mxu2 }
 0x138   :  { %v942_v17 = vadd.f32 %v1883_v1, %v922_v31  ;;  %904 = vst.msk [vmem:[#allocation2 + $0x68] sm:$0xff] %vm36_vm0, %v888_v32  ;;  %v773_v19 = vadd.f32 %v772_v16, %v724_v13 }
 0x139   :  { %v821_v22 = vpop.f32.mrf.mxu3  ;;  %v725_v27 = vpop.f32.mrf.mxu1 }
 0x13a   :  { %v974_v24 = vadd.f32 %v958_v15, %v942_v17  ;;  %v822_v25 = vadd.f32 %v821_v22, %v773_v19  ;;  %v726_v29 = vadd.f32 %v725_v27, %v1880_v44 }
 0x13b   :  { %v872_v42 = vpop.f32.mrf.mxu0 }
 0x13c   :  { %v990_v28 = vmax.f32 %v974_v24, 0.0  ;;  %v871_v35 = vadd.f32 %v870_v23, %v822_v25 }
 0x13e   :  { %1006 = vst.msk [vmem:[%s2044_s4 + $0x60] sm:$0xff] %vm36_vm0, %v990_v28  ;;  %v889_v40 = vadd.f32 %v871_v35, %v67_v26 }
 0x13f   :  { %v923_v30 = vld [vmem:[#allocation2 + $0x68] sm:$0xff]  ;;  %v774_v33 = vpop.f32.mrf.mxu2 }
 0x140   :  { %v943_v34 = vadd.f32 %v1883_v1, %v923_v30  ;;  %905 = vst.msk [vmem:[#allocation2 + $0x70] sm:$0xff] %vm36_vm0, %v889_v40  ;;  %v775_v36 = vadd.f32 %v774_v33, %v726_v29 }
 0x141   :  { %v823_v37 = vpop.f32.mrf.mxu3 }
 0x142   :  { %v975_v38 = vadd.f32 %v959_v39, %v943_v34  ;;  %v824_v45 = vadd.f32 %v823_v37, %v775_v36 }
 0x144   :  { %v991_v47 = vmax.f32 %v975_v38, 0.0  ;;  %v873_v48 = vadd.f32 %v872_v42, %v824_v45 }
 0x146   :  { %1007 = vst.msk [vmem:[%s2044_s4 + $0x68] sm:$0xff] %vm36_vm0, %v991_v47  ;;  %v890_v44 = vadd.f32 %v873_v48, %v68_v46 }
 0x147   :  { %v924_v49 = vld [vmem:[#allocation2 + $0x70] sm:$0xff] }
 0x148   :  { %v944_v41 = vadd.f32 %v1883_v1, %v924_v49  ;;  %906 = vst.msk [vmem:[#allocation2 + $0x78] sm:$0xff] %vm36_vm0, %v890_v44 }
 0x14a   :  { %v976_v51 = vadd.f32 %v960_v50, %v944_v41 }
 0x14c   :  { %v992_v43 = vmax.f32 %v976_v51, 0.0 }
 0x14e   :  { %1008 = vst.msk [vmem:[%s2044_s4 + $0x70] sm:$0xff] %vm36_vm0, %v992_v43 }
 0x14f   :  { %v925_v52 = vld [vmem:[#allocation2 + $0x78] sm:$0xff] }
 0x150   :  { %v945_v54 = vadd.f32 %v1883_v1, %v925_v52 }
 0x152   :  { %v977_v55 = vadd.f32 %v961_v53, %v945_v54 }
 0x154   :  { %v993_v56 = vmax.f32 %v977_v55, 0.0 }
 0x156   :  { %1009 = vst.msk [vmem:[%s2044_s4 + $0x78] sm:$0xff] %vm36_vm0, %v993_v56 }
 0x157   :  { %1014 = vsyncpa [#allocation4], 1 }

// kernel: custom_resnet_forward.27
= control target key start
LH: loop header
LB: loop body
LE: loop exit
PB: predicated region body
PF: predicated region fallthrough
CT: control target
= control target key end

     0   :  { %8 = vsyncpa [#allocation4], 0  ;;  %s793_s15 = smov [#allocation3]   ;;  %s997_s0 = inlined_call_operand.vmem [shape: bf16[32,576], index: 0, kind: input, shape index: {}]   ;;  %s998_s1 = inlined_call_operand.vmem [shape: bf16[576,128], index: 1, kind: input, shape index: {}]   ;;  %s999_s2 = inlined_call_operand.hbm [shape: f32[1,128], index: 2, kind: input, shape index: {}]   ;;  %s1000_s3 = inlined_call_operand.vmem [shape: f32[32,128], index: 3, kind: output, shape index: {}]  }
   0x1   :  { %s18_s14 = sshll.u32 %s999_s2, 4  ;;  %s20_s16 = sshll.u32 %s793_s15, 4  ;;  %s19_s14 = int_to_ptr.hbm [resolvable:$true] %s18_s14  ;;  %s21_s16 = int_to_ptr.vmem [resolvable:$true] %s20_s16 }
   0x2   :  { %23 = dma.hbm_to_vmem [thread:$0]  %s19_s14, 16, %s21_s16, [#allocation4]  }
   0x3   :  { %791 = dma.done.wait [#allocation4], 16  }
   0x4   :  { %792 = vsyncadd [#allocation4], 4294967280  ;;  %v732_v0 = vld [vmem:[%s998_s1 + $0x38] sm:$0xff]  ;;  %v731_v4 = vld [vmem:[%s998_s1 + $0x30] sm:$0xff]  ;;  %vm391_vm0 = vcmask 523264  }
   0x5   :  { %v740_v1 = vld [vmem:[%s998_s1 + $0x78] sm:$0xff]  ;;  %398 = vmatpush.bf16.msra.mxu0 %v732_v0  ;;  %v739_v5 = vld [vmem:[%s998_s1 + $0x70] sm:$0xff]  ;;  %v730_v8 = vld [vmem:[%s998_s1 + $0x28] sm:$0xff] }
   0x6   :  { %v748_v2 = vld [vmem:[%s998_s1 + $0xb8] sm:$0xff]  ;;  %417 = vmatpush.bf16.msra.mxu1 %v740_v1  ;;  %v747_v6 = vld [vmem:[%s998_s1 + $0xb0] sm:$0xff]  ;;  %v738_v9 = vld [vmem:[%s998_s1 + $0x68] sm:$0xff] }
   0x7   :  { %v756_v3 = vld [vmem:[%s998_s1 + $0xf8] sm:$0xff]  ;;  %436 = vmatpush.bf16.msra.mxu2 %v748_v2  ;;  %v755_v7 = vld [vmem:[%s998_s1 + $0xf0] sm:$0xff]  ;;  %v746_v10 = vld [vmem:[%s998_s1 + $0xa8] sm:$0xff] }
   0x8   :  { %455 = vmatpush.bf16.msra.mxu3 %v756_v3  ;;  %v754_v11 = vld [vmem:[%s998_s1 + $0xe8] sm:$0xff]  ;;  %v729_v12 = vld [vmem:[%s998_s1 + $0x20] sm:$0xff]  ;;  %v728_v16 = vld [vmem:[%s998_s1 + $0x18] sm:$0xff] }
   0x9   :  { %399 = vmatpush.bf16.msra.mxu0 %v731_v4  ;;  %v737_v13 = vld [vmem:[%s998_s1 + $0x60] sm:$0xff]  ;;  %v736_v17 = vld [vmem:[%s998_s1 + $0x58] sm:$0xff]  ;;  %v727_v20 = vld [vmem:[%s998_s1 + $0x10] sm:$0xff] }
   0xa   :  { %418 = vmatpush.bf16.msra.mxu1 %v739_v5  ;;  %v745_v14 = vld [vmem:[%s998_s1 + $0xa0] sm:$0xff]  ;;  %v744_v18 = vld [vmem:[%s998_s1 + $0x98] sm:$0xff]  ;;  %v735_v21 = vld [vmem:[%s998_s1 + $0x50] sm:$0xff] }
   0xb   :  { %437 = vmatpush.bf16.msra.mxu2 %v747_v6  ;;  %v753_v15 = vld [vmem:[%s998_s1 + $0xe0] sm:$0xff]  ;;  %v752_v19 = vld [vmem:[%s998_s1 + $0xd8] sm:$0xff]  ;;  %v743_v22 = vld [vmem:[%s998_s1 + $0x90] sm:$0xff] }
   0xc   :  { %456 = vmatpush.bf16.msra.mxu3 %v755_v7  ;;  %v751_v23 = vld [vmem:[%s998_s1 + $0xd0] sm:$0xff]  ;;  %v726_v24 = vld [vmem:[%s998_s1 + $0x8] sm:$0xff]  ;;  %v725_v28 = vld [vmem:[%s998_s1] sm:$0xff] }
   0xd   :  { %400 = vmatpush.bf16.msra.mxu0 %v730_v8  ;;  %v734_v25 = vld [vmem:[%s998_s1 + $0x48] sm:$0xff]  ;;  %v733_v29 = vld [vmem:[%s998_s1 + $0x40] sm:$0xff]  ;;  %v717_v33 = vld [vmem:[%s997_s0 + $0x10] sm:$0xf0] }
   0xe   :  { %419 = vmatpush.bf16.msra.mxu1 %v738_v9  ;;  %v742_v26 = vld [vmem:[%s998_s1 + $0x88] sm:$0xff]  ;;  %v741_v30 = vld [vmem:[%s998_s1 + $0x80] sm:$0xff]  ;;  %v533_v35 = vld [vmem:[%s997_s0 + $0x14] sm:$0xf0] }
   0xf   :  { %438 = vmatpush.bf16.msra.mxu2 %v746_v10  ;;  %v750_v27 = vld [vmem:[%s998_s1 + $0xc8] sm:$0xff]  ;;  %v749_v31 = vld [vmem:[%s998_s1 + $0xc0] sm:$0xff]  ;;  %v718_v37 = vld [vmem:[%s997_s0 + $0x18] sm:$0xf0] }
  0x10   :  { %457 = vmatpush.bf16.msra.mxu3 %v754_v11  ;;  %v531_v32 = vld [vmem:[%s997_s0] sm:$0xf]  ;;  %v715_v34 = vld [vmem:[%s997_s0 + $0x4] sm:$0xf]  ;;  %v539_v36 = vld [vmem:[%s997_s0 + $0x8] sm:$0xf] }
  0x11   :  { %401 = vmatpush.bf16.msra.mxu0 %v729_v12  ;;  %v716_v38 = vld [vmem:[%s997_s0 + $0xc] sm:$0xf]  ;;  %v541_v39 = vld [vmem:[%s997_s0 + $0x1c] sm:$0xf0]  ;;  %v760_v40 = vld [vmem:[%s998_s1 + $0x118] sm:$0xff]  ;;  %v532_v41 = vor.u32 %v717_v33, %v531_v32  ;;  %v536_v42 = vor.u32 %v715_v34, %v533_v35  ;;  %v540_v43 = vor.u32 %v718_v37, %v539_v36 }
  0x12   :  { %420 = vmatpush.bf16.msra.mxu1 %v737_v13  ;;  %v544_v44 = vor.u32 %v716_v38, %v541_v39  ;;  %v759_v45 = vld [vmem:[%s998_s1 + $0x110] sm:$0xff]  ;;  %v758_v46 = vld [vmem:[%s998_s1 + $0x108] sm:$0xff]  ;;  %v757_v47 = vld [vmem:[%s998_s1 + $0x100] sm:$0xff] }
  0x13   :  { %439 = vmatpush.bf16.msra.mxu2 %v745_v14  ;;  %v551_v48 = vld [vmem:[%s997_s0 + $0x28] sm:$0xf]  ;;  %v722_v49 = vld [vmem:[%s997_s0 + $0x38] sm:$0xf0]  ;;  %v720_v50 = vld [vmem:[%s997_s0 + $0x2c] sm:$0xf] }
  0x14   :  { %458 = vmatpush.bf16.msra.mxu3 %v753_v15  ;;  %v553_v51 = vld [vmem:[%s997_s0 + $0x3c] sm:$0xf0]  ;;  %v559_v52 = vld [vmem:[%s997_s0 + $0x30] sm:$0xf]  ;;  %v723_v53 = vld [vmem:[%s997_s0 + $0x40] sm:$0xf0]  ;;  %v552_v56 = vor.u32 %v722_v49, %v551_v48 }
  0x15   :  { %402 = vmatpush.bf16.msra.mxu0 %v728_v16  ;;  %v721_v54 = vld [vmem:[%s997_s0 + $0x34] sm:$0xf]  ;;  %v561_v55 = vld [vmem:[%s997_s0 + $0x44] sm:$0xf0]  ;;  %v556_v57 = vor.u32 %v720_v50, %v553_v51  ;;  %v560_v58 = vor.u32 %v723_v53, %v559_v52  ;;  %v547_v60 = vld [vmem:[%s997_s0 + $0x10] sm:$0xf] }
  0x16   :  { %421 = vmatpush.bf16.msra.mxu1 %v736_v17  ;;  %v564_v59 = vor.u32 %v721_v54, %v561_v55  ;;  %v719_v61 = vld [vmem:[%s997_s0 + $0x20] sm:$0xf0]  ;;  %v567_v62 = vld [vmem:[%s997_s0 + $0x38] sm:$0xf]  ;;  %v724_v63 = vld [vmem:[%s997_s0 + $0x48] sm:$0xf0] }
  0x17   :  { %440 = vmatpush.bf16.msra.mxu2 %v744_v18  ;;  %v548_v0 = vor.u32 %v719_v61, %v547_v60  ;;  %v568_v1 = vor.u32 %v724_v63, %v567_v62 }
  0x18   :  { %459 = vmatpush.bf16.msra.mxu3 %v752_v19 }
  0x19   :  { %403 = vmatpush.bf16.msra.mxu0 %v727_v20 }
  0x1a   :  { %422 = vmatpush.bf16.msra.mxu1 %v735_v21 }
  0x1b   :  { %441 = vmatpush.bf16.msra.mxu2 %v743_v22 }
  0x1c   :  { %460 = vmatpush.bf16.msra.mxu3 %v751_v23  ;;  %v766_v23 = vld [vmem:[#allocation3] ss:$0 sm:$0xff] }
  0x1d   :  { %404 = vmatpush.bf16.msra.mxu0 %v726_v24 }
  0x1e   :  { %423 = vmatpush.bf16.msra.mxu1 %v734_v25 }
  0x1f   :  { %442 = vmatpush.bf16.msra.mxu2 %v742_v26 }
  0x20   :  { %461 = vmatpush.bf16.msra.mxu3 %v750_v27 }
  0x21   :  { %405 = vmatpush.bf16.msra.mxu0 %v725_v28 }
  0x22   :  { %424 = vmatpush.bf16.msra.mxu1 %v733_v29 }
  0x23   :  { %443 = vmatpush.bf16.msra.mxu2 %v741_v30 }
  0x24   :  { %462 = vmatpush.bf16.msra.mxu3 %v749_v31  ;;  %406 = vmatmul.bf16.vlgmr.msra.gmra.mxu0 %v532_v41 }
  0x25   :  { %478 = vmatpush.bf16.msrb.mxu0 %v760_v40  ;;  %425 = vmatmul.bf16.vlgmr.msra.gmra.mxu1 %v536_v42 }
  0x26   :  { %761 = vmatpush.bf16.msrb.mxu1 %v760_v40  ;;  %444 = vmatmul.bf16.vlgmr.msra.gmra.mxu2 %v540_v43 }
  0x27   :  { %463 = vmatmul.bf16.vlgmr.msra.gmra.mxu3 %v544_v44 }
  0x29   :  { %479 = vmatpush.bf16.msrb.mxu0 %v759_v45 }
  0x2a   :  { %762 = vmatpush.bf16.msrb.mxu1 %v759_v45 }
  0x2d   :  { %480 = vmatpush.bf16.msrb.mxu0 %v758_v46 }
  0x2e   :  { %763 = vmatpush.bf16.msrb.mxu1 %v758_v46 }
  0x31   :  { %481 = vmatpush.bf16.msrb.mxu0 %v757_v47 }
  0x32   :  { %764 = vmatpush.bf16.msrb.mxu1 %v757_v47 }
  0x34   :  { %411 = vmatmul.bf16.gmra.mxu0 %v552_v56 }
  0x35   :  { %430 = vmatmul.bf16.gmra.mxu1 %v556_v57 }
  0x36   :  { %449 = vmatmul.bf16.gmra.mxu2 %v560_v58 }
  0x37   :  { %468 = vmatmul.bf16.gmra.mxu3 %v564_v59 }
  0x44   :  { %713 = vmatmul.msk.bf16.vlgmr.msrb.gmra.mxu0 %vm391_vm0, %v548_v0 }
  0x45   :  { %714 = vmatmul.msk.bf16.vlgmr.msrb.gmra.mxu1 %vm391_vm0, %v568_v1 }
  0xa1   :  { %v407_v2 = vpop.f32.mrf.mxu0 }
  0xa2   :  { %v426_v3 = vpop.f32.mrf.mxu1 }
  0xa3   :  { %v427_v15 = vadd.f32 %v426_v3, %v407_v2 }
  0xa9   :  { %v445_v4 = vpop.f32.mrf.mxu2  ;;  %v409_v6 = vpop.f32.mrf.mxu0 }
  0xaa   :  { %v464_v5 = vpop.f32.mrf.mxu3  ;;  %v428_v7 = vpop.f32.mrf.mxu1  ;;  %v446_v17 = vadd.f32 %v445_v4, %v427_v15 }
  0xab   :  { %v429_v26 = vadd.f32 %v428_v7, %v409_v6 }
  0xac   :  { %v465_v20 = vadd.f32 %v464_v5, %v446_v17 }
  0xb1   :  { %v447_v8 = vpop.f32.mrf.mxu2  ;;  %v412_v9 = vpop.f32.mrf.mxu0 }
  0xb2   :  { %v431_v10 = vpop.f32.mrf.mxu1  ;;  %v466_v11 = vpop.f32.mrf.mxu3  ;;  %v448_v30 = vadd.f32 %v447_v8, %v429_v26 }
  0xb3   :  { %v432_v16 = vadd.f32 %v431_v10, %v412_v9 }
  0xb4   :  { %v467_v37 = vadd.f32 %v466_v11, %v448_v30 }
  0xb9   :  { %v450_v12 = vpop.f32.mrf.mxu2  ;;  %v414_v13 = vpop.f32.mrf.mxu0 }
  0xba   :  { %v433_v14 = vpop.f32.mrf.mxu1  ;;  %v451_v18 = vadd.f32 %v450_v12, %v432_v16  ;;  %v469_v19 = vpop.f32.mrf.mxu3 }
  0xbb   :  { %v434_v27 = vadd.f32 %v433_v14, %v414_v13 }
  0xbc   :  { %v470_v21 = vadd.f32 %v469_v19, %v451_v18 }
  0xc1   :  { %v452_v22 = vpop.f32.mrf.mxu2  ;;  %v483_v24 = vpop.f32.mrf.mxu0 }
  0xc2   :  { %v488_v25 = vpop.f32.mrf.mxu1  ;;  %v484_v28 = vadd.f32 %v483_v24, %v465_v20  ;;  %v453_v31 = vadd.f32 %v452_v22, %v434_v27  ;;  %v471_v36 = vpop.f32.mrf.mxu3 }
  0xc3   :  { %v489_v29 = vadd.f32 %v488_v25, %v470_v21 }
  0xc4   :  { %v512_v32 = vadd.f32 %v766_v23, %v484_v28  ;;  %v472_v38 = vadd.f32 %v471_v36, %v453_v31 }
  0xc5   :  { %v514_v33 = vadd.f32 %v766_v23, %v489_v29 }
  0xc6   :  { %v516_v34 = vmax.f32 %v512_v32, 0.0 }
  0xc7   :  { %v518_v35 = vmax.f32 %v514_v33, 0.0 }
  0xc8   :  { %520 = vst [vmem:[%s1000_s3] sm:$0xff] %v516_v34 }
  0xc9   :  { %522 = vst [vmem:[%s1000_s3 + $0x10] sm:$0xff] %v518_v35  ;;  %v485_v39 = vpop.f32.mrf.mxu0 }
  0xca   :  { %v490_v40 = vpop.f32.mrf.mxu1  ;;  %v486_v41 = vadd.f32 %v485_v39, %v467_v37 }
  0xcb   :  { %v491_v42 = vadd.f32 %v490_v40, %v472_v38 }
  0xcc   :  { %v513_v43 = vadd.f32 %v766_v23, %v486_v41 }
  0xcd   :  { %v515_v44 = vadd.f32 %v766_v23, %v491_v42 }
  0xce   :  { %v517_v45 = vmax.f32 %v513_v43, 0.0 }
  0xcf   :  { %v519_v46 = vmax.f32 %v515_v44, 0.0 }
  0xd0   :  { %521 = vst [vmem:[%s1000_s3 + $0x8] sm:$0xff] %v517_v45 }
  0xd1   :  { %523 = vst [vmem:[%s1000_s3 + $0x18] sm:$0xff] %v519_v46 }
  0xd2   :  { %528 = vsyncpa [#allocation4], 1 }

// kernel: custom_resnet_forward.28
= control target key start
LH: loop header
LB: loop body
LE: loop exit
PB: predicated region body
PF: predicated region fallthrough
CT: control target
= control target key end

     0   :  { %8 = vsyncpa [#allocation4], 0  ;;  %s209_s15 = smov [#allocation3]   ;;  %s263_s0 = inlined_call_operand.vmem [shape: bf16[32,64], index: 0, kind: input, shape index: {}]   ;;  %s264_s1 = inlined_call_operand.vmem [shape: bf16[64,128], index: 1, kind: input, shape index: {}]   ;;  %s265_s2 = inlined_call_operand.hbm [shape: f32[1,128], index: 2, kind: input, shape index: {}]   ;;  %s266_s3 = inlined_call_operand.vmem [shape: f32[32,128], index: 3, kind: output, shape index: {}]  }
   0x1   :  { %s18_s14 = sshll.u32 %s265_s2, 4  ;;  %s20_s16 = sshll.u32 %s209_s15, 4  ;;  %s19_s14 = int_to_ptr.hbm [resolvable:$true] %s18_s14  ;;  %s21_s16 = int_to_ptr.vmem [resolvable:$true] %s20_s16 }
   0x2   :  { %23 = dma.hbm_to_vmem [thread:$0]  %s19_s14, 16, %s21_s16, [#allocation4]  }
   0x3   :  { %207 = dma.done.wait [#allocation4], 16  }
   0x4   :  { %208 = vsyncadd [#allocation4], 4294967280  ;;  %v176_v0 = vld [vmem:[%s264_s1 + $0x18] sm:$0xff]  ;;  %v175_v1 = vld [vmem:[%s264_s1 + $0x10] sm:$0xff]  ;;  %vm87_vm0 = vcmask 523264  }
   0x5   :  { %98 = vmatpush.bf16.msra.mxu0 %v176_v0  ;;  %177 = vmatpush.bf16.msra.mxu1 %v176_v0  ;;  %v174_v2 = vld [vmem:[%s264_s1 + $0x8] sm:$0xff]  ;;  %v173_v3 = vld [vmem:[%s264_s1] sm:$0xff] }
   0x6   :  { %v171_v4 = vld [vmem:[%s263_s0] sm:$0xff]  ;;  %v172_v5 = vld [vmem:[%s263_s0 + $0x8] sm:$0xff] }
   0x7   :  { %v182_v6 = vld [vmem:[#allocation3] ss:$0 sm:$0xff] }
   0x9   :  { %99 = vmatpush.bf16.msra.mxu0 %v175_v1  ;;  %178 = vmatpush.bf16.msra.mxu1 %v175_v1 }
   0xd   :  { %100 = vmatpush.bf16.msra.mxu0 %v174_v2  ;;  %179 = vmatpush.bf16.msra.mxu1 %v174_v2 }
  0x11   :  { %101 = vmatpush.bf16.msra.mxu0 %v173_v3  ;;  %180 = vmatpush.bf16.msra.mxu1 %v173_v3 }
  0x14   :  { %169 = vmatmul.msk.bf16.vlgmr.msra.gmra.mxu0 %vm87_vm0, %v171_v4  ;;  %170 = vmatmul.msk.bf16.vlgmr.msra.gmra.mxu1 %vm87_vm0, %v172_v5 }
  0x91   :  { %v103_v7 = vpop.f32.mrf.mxu0  ;;  %v108_v8 = vpop.f32.mrf.mxu1 }
  0x92   :  { %v132_v9 = vadd.f32 %v182_v6, %v103_v7  ;;  %v134_v10 = vadd.f32 %v182_v6, %v108_v8 }
  0x94   :  { %136 = vst [vmem:[%s266_s3] sm:$0xff] %v132_v9 }
  0x95   :  { %138 = vst [vmem:[%s266_s3 + $0x10] sm:$0xff] %v134_v10 }
  0x99   :  { %v105_v11 = vpop.f32.mrf.mxu0  ;;  %v110_v12 = vpop.f32.mrf.mxu1 }
  0x9a   :  { %v133_v13 = vadd.f32 %v182_v6, %v105_v11  ;;  %v135_v14 = vadd.f32 %v182_v6, %v110_v12 }
  0x9c   :  { %137 = vst [vmem:[%s266_s3 + $0x8] sm:$0xff] %v133_v13 }
  0x9d   :  { %139 = vst [vmem:[%s266_s3 + $0x18] sm:$0xff] %v135_v14 }
  0x9e   :  { %144 = vsyncpa [#allocation4], 1 }

// kernel: custom_resnet_forward.29
= control target key start
LH: loop header
LB: loop body
LE: loop exit
PB: predicated region body
PF: predicated region fallthrough
CT: control target
= control target key end

     0   :  { %9 = vsyncpa [#allocation5], 0  ;;  %s884_s15 = smov 0   ;;  %s886_s16 = smov 0   ;;  %s1010_s0 = inlined_call_operand.vmem [shape: bf16[32,1152], index: 0, kind: input, shape index: {}]   ;;  %s1011_s1 = inlined_call_operand.vmem [shape: bf16[1152,128], index: 1, kind: input, shape index: {}]   ;;  %s1012_s2 = inlined_call_operand.hbm [shape: f32[1,128], index: 2, kind: input, shape index: {}]   ;;  %s1013_s3 = inlined_call_operand.vmem [shape: f32[32,128], index: 3, kind: input, shape index: {}]   ;;  %s1014_s4 = inlined_call_operand.vmem [shape: f32[32,128], index: 4, kind: output, shape index: {}]  }
   0x1   :  { %s888_s17 = smov 0   ;;  %s890_s18 = smov 0  }
   0x2   :  { %s892_s19 = smov 0  }
   0x3 LB: > { %s654_s20 = sadd.s32 4294967295, %s855_s19   ;;  %s27_s21 = sadd.s32 1, %s851_s18  ;;  %s855_s19 = sphi %s892_s19, %s15_s19   ;;  %s851_s18 = sphi %s890_s18, %s1021_s18   ;;  %s847_s17 = sphi %s888_s17, %s1020_s17   ;;  %s843_s16 = sphi %s886_s16, %s1019_s16   ;;  %s839_s15 = sphi %s884_s15, %s1018_s15  }
   0x4   : > { %p28_p0 = scmp.ge.s32.totalorder %s27_s21, 9  ;;  %s43_s22 = sadd.s32 1, %s843_s16 }
   0x5   : > { %p50_p1 = scmp.ne.s32.totalorder %s843_s16, %s839_s15  ;;  %p51_p2 = scmp.eq.s32.totalorder %s855_s19, 0 }
   0x6   : > { %s1023_s21 = smov (%p28_p0, %s27_s21), 0  ;;  %p655_p4 = scmp.ge.s32.totalorder %s855_s19, 1 }
   0x7   : > { %p917_p3 = por %p51_p2, %p50_p1  ;;  %s39_s24 = ssub.s32 %s851_s18, %s1023_s21 }
   0x8   : > { %p177_p5 = scmp.lt.s32.totalorder %s855_s19, 10  ;;  %p41_p6 = scmp.eq.s32.totalorder %s39_s24, 0 }
   0x9   : > { %p929_p8 = scmp.eq.s32.totalorder %s654_s20, 0  ;;  %s190_s30 = sshll.u32 %s1012_s2, 4  ;;  %s191_s30 = int_to_ptr.hbm [resolvable:$true] %s190_s30 }
   0xa   : > { %p925_p7 = pnand %p655_p4, %p177_p5  ;;  %s857_s5 = smov [#allocation4]  }
   0xb   : > { %s934_s27 = scalar_select %p41_p6, %s843_s16, %s43_s22  }
   0xc   : > { %p734_p9 = pneg %p925_p7  ;;  %s192_s6 = sshll.u32 %s857_s5, 4  ;;  %s193_s6 = int_to_ptr.vmem [resolvable:$true] %s192_s6 }
   0xd   : > { %p658_p11 = scmp.ge.s32.totalorder %s855_s19, 9 }
   0xe   : > { %p735_p10 = pnand %p929_p8, %p734_p9 }
   0xf   : > { %211 = sbr.rel (%p658_p11) target bundleno = 28 (0x1c), region = 24 }
  0x10   : > { %737 = dma.hbm_to_vmem [thread:$0]  (!%p735_p10), %s191_s30, 16, %s193_s6, [#allocation5]  }
  0x14   : > { %214 = sbr.rel (!%p917_p3) target bundleno = 28 (0x1c), region = 28  ;;  %s216_s7 = sand.u32 (%p917_p3), 1, %s843_s16  }
  0x15   : > { %s660_s8 = sshll.u32 (%p917_p3), %s851_s18, 2  ;;  %s659_s9 = sshll.u32 (%p917_p3), %s216_s7, 4 }
  0x16   : > { %s223_s12 = scalar_lea.vmem (%p917_p3), %s1010_s0, %s660_s8  ;;  %s218_s13 = scalar_lea.vmem (%p917_p3), [#allocation3], %s659_s9 }
  0x17   : > { %v240_v0 = vld [vmem:[%s223_s12] sm:$0xf] (%p917_p3)  ;;  %v242_v1 = vld [vmem:[%s223_s12 + $0x24] sm:$0xf] (%p917_p3)  ;;  %v244_v2 = vld [vmem:[%s223_s12 + $0x48] sm:$0xf] (%p917_p3) }
  0x18   : > { %241 = vst [vmem:[%s218_s13] sm:$0xf] (%p917_p3), %v240_v0  ;;  %v246_v3 = vld [vmem:[%s223_s12 + $0x6c] sm:$0xf] (%p917_p3) }
  0x19   : > { %243 = vst [vmem:[%s218_s13 + $0x4] sm:$0xf] %v242_v1 }
  0x1a   : > { %245 = vst [vmem:[%s218_s13 + $0x8] sm:$0xf] %v244_v2 }
  0x1b   : > { %247 = vst [vmem:[%s218_s13 + $0xc] sm:$0xf] %v246_v3 }
  0x1c PF: > { %294 = sbr.rel (%p925_p7) target bundleno = 230 (0xe6), region = 73  ;;  %s297_s14 = sand.u32 (!%p925_p7), 1, %s839_s15  }
  0x1d   : > { %s954_s20 = sshll.u32 (!%p925_p7), %s297_s14, 4 }
  0x1e   : > { %s299_s22 = scalar_lea.vmem (!%p925_p7), [#allocation3], %s954_s20 }
  0x21   : > { %834 = dma.done.wait (%p929_p8), [#allocation5], 16  }
  0x22   : > { %836 = vsyncadd (%p929_p8), [#allocation5], 4294967280  ;;  %s664_s23 = sshll.u32 %s847_s17, 4  ;;  %p666_p13 = scmp.ne.s32.totalorder %s847_s17, 0 }
  0x23   : > { %p348_p12 = scmp.lt.s32.totalorder %s664_s23, 143 }
  0x24   : > { %377 = sbr.rel (%p666_p13) target bundleno = 46 (0x2e), region = 85 }
  0x25   : > { %s1025_s23 = smov (!%p348_p12, %s664_s23), 143 }
  0x26   : > { %s665_s24 = sshll.u32 %s1025_s23, 2 }
  0x27   : > { %s354_s29 = scalar_lea.vmem %s1011_s1, %s665_s24 }
  0x29   : > { %v858_v4 = vmov 0.0  }
  0x2a   : > { %378 = vst [vmem:[#allocation2 + $0x10] sm:$0xff] %v858_v4 }
  0x2b   : > { %379 = vst [vmem:[#allocation2] sm:$0xff] %v858_v4 }
  0x2c   : > { %380 = vst [vmem:[#allocation2 + $0x18] sm:$0xff] %v858_v4 }
  0x2d   : > { %381 = vst [vmem:[#allocation2 + $0x8] sm:$0xff] %v858_v4 }
  0x2e PF: > { %v721_v5 = vld [vmem:[%s354_s29 + $0x38] sm:$0xff]  ;;  %v720_v6 = vld [vmem:[%s354_s29 + $0x30] sm:$0xff]  ;;  %v719_v7 = vld [vmem:[%s354_s29 + $0x28] sm:$0xff]  ;;  %p707_p0 = scmp.ne.s32.totalorder %s847_s17, 8 }
  0x2f   : > { %466 = vmatpush.bf16.msra.mxu0 %v721_v5  ;;  %722 = vmatpush.bf16.msra.mxu1 %v721_v5  ;;  %v718_v8 = vld [vmem:[%s354_s29 + $0x20] sm:$0xff]  ;;  %v717_v9 = vld [vmem:[%s354_s29 + $0x18] sm:$0xff]  ;;  %v716_v10 = vld [vmem:[%s354_s29 + $0x10] sm:$0xff] }
  0x30   : > { %v715_v11 = vld [vmem:[%s354_s29 + $0x8] sm:$0xff]  ;;  %v714_v12 = vld [vmem:[%s354_s29] sm:$0xff] }
  0x31   : > { %v712_v13 = vld [vmem:[%s299_s22] sm:$0xff]  ;;  %v713_v14 = vld [vmem:[%s299_s22 + $0x8] sm:$0xff] }
  0x32   : > { %v382_v15 = vld [vmem:[#allocation2 + $0x10] sm:$0xff]  ;;  %v383_v21 = vld [vmem:[#allocation2] sm:$0xff] }
  0x33   : > { %467 = vmatpush.bf16.msra.mxu0 %v720_v6  ;;  %723 = vmatpush.bf16.msra.mxu1 %v720_v6  ;;  %v384_v16 = vld [vmem:[#allocation2 + $0x18] sm:$0xff] }
  0x34   : > { %v385_v22 = vld [vmem:[#allocation2 + $0x8] sm:$0xff] }
  0x37   : > { %468 = vmatpush.bf16.msra.mxu0 %v719_v7  ;;  %724 = vmatpush.bf16.msra.mxu1 %v719_v7 }
  0x3b   : > { %469 = vmatpush.bf16.msra.mxu0 %v718_v8  ;;  %725 = vmatpush.bf16.msra.mxu1 %v718_v8 }
  0x3f   : > { %470 = vmatpush.bf16.msra.mxu0 %v717_v9  ;;  %726 = vmatpush.bf16.msra.mxu1 %v717_v9 }
  0x43   : > { %471 = vmatpush.bf16.msra.mxu0 %v716_v10  ;;  %727 = vmatpush.bf16.msra.mxu1 %v716_v10 }
  0x47   : > { %472 = vmatpush.bf16.msra.mxu0 %v715_v11  ;;  %728 = vmatpush.bf16.msra.mxu1 %v715_v11 }
  0x4b   : > { %473 = vmatpush.bf16.msra.mxu0 %v714_v12  ;;  %729 = vmatpush.bf16.msra.mxu1 %v714_v12 }
  0x4e   : > { %474 = vmatmul.bf16.vlgmr.msra.gmra.mxu0 %v712_v13  ;;  %479 = vmatmul.bf16.vlgmr.msra.gmra.mxu1 %v713_v14 }
  0xcb   : > { %v475_v17 = vpop.f32.mrf.mxu0  ;;  %v480_v18 = vpop.f32.mrf.mxu1 }
  0xcc   : > { %v485_v19 = vadd.f32 %v475_v17, %v382_v15  ;;  %v487_v20 = vadd.f32 %v480_v18, %v384_v16 }
  0xce   : > { %489 = vst [vmem:[#allocation2 + $0x10] sm:$0xff] %v485_v19 }
  0xcf   : > { %491 = vst [vmem:[#allocation2 + $0x18] sm:$0xff] %v487_v20 }
  0xd3   : > { %v477_v23 = vpop.f32.mrf.mxu0  ;;  %v482_v24 = vpop.f32.mrf.mxu1  ;;  %496 = sbr.rel (%p707_p0) target bundleno = 230 (0xe6), region = 89 }
  0xd4   : > { %v486_v25 = vadd.f32 %v477_v23, %v383_v21  ;;  %v488_v26 = vadd.f32 %v482_v24, %v385_v22 }
  0xd6   : > { %490 = vst [vmem:[#allocation2] sm:$0xff] %v486_v25 }
  0xd7   : > { %492 = vst [vmem:[#allocation2 + $0x8] sm:$0xff] %v488_v26 }
  0xd8   : > { %v497_v27 = vld [vmem:[#allocation2 + $0x10] sm:$0xff]  ;;  %v782_v28 = vld [vmem:[#allocation4] ss:$0 sm:$0xff]  ;;  %v510_v31 = vld [vmem:[%s1013_s3 + $0x8] sm:$0xff] }
  0xd9   : > { %v509_v29 = vld [vmem:[%s1013_s3] sm:$0xff]  ;;  %v505_v32 = vadd.f32 %v782_v28, %v497_v27  ;;  %v499_v34 = vld [vmem:[#allocation2 + $0x18] sm:$0xff]  ;;  %v511_v35 = vld [vmem:[%s1013_s3 + $0x10] sm:$0xff] }
  0xda   : > { %v507_v37 = vadd.f32 %v782_v28, %v499_v34  ;;  %v512_v39 = vld [vmem:[%s1013_s3 + $0x18] sm:$0xff] }
  0xdb   : > { %v513_v40 = vadd.f32 %v509_v29, %v505_v32 }
  0xdc   : > { %v515_v42 = vadd.f32 %v511_v35, %v507_v37 }
  0xdd   : > { %v498_v30 = vld [vmem:[#allocation2] sm:$0xff]  ;;  %v517_v44 = vmax.f32 %v513_v40, 0.0 }
  0xde   : > { %v506_v33 = vadd.f32 %v782_v28, %v498_v30  ;;  %v500_v36 = vld [vmem:[#allocation2 + $0x8] sm:$0xff]  ;;  %v519_v46 = vmax.f32 %v515_v42, 0.0 }
  0xdf   : > { %v508_v38 = vadd.f32 %v782_v28, %v500_v36  ;;  %521 = vst [vmem:[%s1014_s4] sm:$0xff] %v517_v44 }
  0xe0   : > { %v514_v41 = vadd.f32 %v510_v31, %v506_v33  ;;  %523 = vst [vmem:[%s1014_s4 + $0x10] sm:$0xff] %v519_v46 }
  0xe1   : > { %v516_v43 = vadd.f32 %v512_v39, %v508_v38 }
  0xe2   : > { %v518_v45 = vmax.f32 %v514_v41, 0.0 }
  0xe3   : > { %v520_v47 = vmax.f32 %v516_v43, 0.0 }
  0xe4   : > { %522 = vst [vmem:[%s1014_s4 + $0x8] sm:$0xff] %v518_v45 }
  0xe5   : > { %524 = vst [vmem:[%s1014_s4 + $0x18] sm:$0xff] %v520_v47 }
  0xe6 PF: > { %s15_s19 = sadd.s32 1, %s855_s19   ;;  %s1018_s15 = smov %s843_s16 }
  0xe7   : > { %p12_p1 = scmp.ge.s32.totalorder %s15_s19, 11   ;;  %s1019_s16 = smov %s934_s27 }
  0xe8   : > { %s1020_s17 = smov %s851_s18  ;;  %s1021_s18 = smov %s1023_s21 }
  0xe9   :  { %14 = sbr.rel (!%p12_p1) target bundleno = 3 (0x3), region = 132 }
  0xee   :  { %553 = vsyncpa [#allocation5], 1 }
  0xef   :  { %555 = vsyncpa [#allocation5 + $0x1], 1 }

// kernel: custom_resnet_forward.30
= control target key start
LH: loop header
LB: loop body
LE: loop exit
PB: predicated region body
PF: predicated region fallthrough
CT: control target
= control target key end

     0   :  { %8 = vsyncpa [#allocation5], 0  ;;  %s792_s12 = smov 0   ;;  %s794_s13 = smov 0   ;;  %s906_s0 = inlined_call_operand.vmem [shape: bf16[32,1152], index: 0, kind: input, shape index: {}]   ;;  %s907_s1 = inlined_call_operand.vmem [shape: bf16[1152,128], index: 1, kind: input, shape index: {}]   ;;  %s908_s2 = inlined_call_operand.hbm [shape: f32[1,128], index: 2, kind: input, shape index: {}]   ;;  %s909_s3 = inlined_call_operand.vmem [shape: f32[32,128], index: 3, kind: output, shape index: {}]  }
   0x1   :  { %s796_s14 = smov 0   ;;  %s798_s15 = smov 0  }
   0x2   :  { %s800_s16 = smov 0  }
   0x3 LB: > { %s568_s17 = sadd.s32 4294967295, %s768_s16   ;;  %s26_s18 = sadd.s32 1, %s764_s15  ;;  %s768_s16 = sphi %s800_s16, %s14_s16   ;;  %s764_s15 = sphi %s798_s15, %s916_s15   ;;  %s760_s14 = sphi %s796_s14, %s915_s14   ;;  %s756_s13 = sphi %s794_s13, %s914_s13   ;;  %s752_s12 = sphi %s792_s12, %s913_s12  }
   0x4   : > { %p27_p0 = scmp.ge.s32.totalorder %s26_s18, 9  ;;  %s42_s19 = sadd.s32 1, %s756_s13 }
   0x5   : > { %p49_p1 = scmp.ne.s32.totalorder %s756_s13, %s752_s12  ;;  %p50_p2 = scmp.eq.s32.totalorder %s768_s16, 0 }
   0x6   : > { %s918_s18 = smov (%p27_p0, %s26_s18), 0  ;;  %p569_p4 = scmp.ge.s32.totalorder %s768_s16, 1 }
   0x7   : > { %p825_p3 = por %p50_p2, %p49_p1  ;;  %s38_s21 = ssub.s32 %s764_s15, %s918_s18 }
   0x8   : > { %p148_p5 = scmp.lt.s32.totalorder %s768_s16, 10  ;;  %p40_p6 = scmp.eq.s32.totalorder %s38_s21, 0 }
   0x9   : > { %p837_p8 = scmp.eq.s32.totalorder %s568_s17, 0  ;;  %s161_s27 = sshll.u32 %s908_s2, 4  ;;  %s162_s27 = int_to_ptr.hbm [resolvable:$true] %s161_s27 }
   0xa   : > { %p833_p7 = pnand %p569_p4, %p148_p5  ;;  %s770_s28 = smov [#allocation4]  }
   0xb   : > { %s842_s24 = scalar_select %p40_p6, %s756_s13, %s42_s19  }
   0xc   : > { %p647_p9 = pneg %p833_p7  ;;  %s163_s29 = sshll.u32 %s770_s28, 4  ;;  %s164_s29 = int_to_ptr.vmem [resolvable:$true] %s163_s29 }
   0xd   : > { %p571_p11 = scmp.ge.s32.totalorder %s768_s16, 9 }
   0xe   : > { %p648_p10 = pnand %p837_p8, %p647_p9 }
   0xf   : > { %170 = sbr.rel (%p571_p11) target bundleno = 28 (0x1c), region = 20 }
  0x10   : > { %650 = dma.hbm_to_vmem [thread:$0]  (!%p648_p10), %s162_s27, 16, %s164_s29, [#allocation5]  }
  0x14   : > { %173 = sbr.rel (!%p825_p3) target bundleno = 28 (0x1c), region = 24  ;;  %s175_s30 = sand.u32 (%p825_p3), 1, %s756_s13  }
  0x15   : > { %s573_s4 = sshll.u32 (%p825_p3), %s764_s15, 2  ;;  %s572_s5 = sshll.u32 (%p825_p3), %s175_s30, 4 }
  0x16   : > { %s182_s8 = scalar_lea.vmem (%p825_p3), %s906_s0, %s573_s4  ;;  %s177_s9 = scalar_lea.vmem (%p825_p3), [#allocation3], %s572_s5 }
  0x17   : > { %v199_v0 = vld [vmem:[%s182_s8] sm:$0xf] (%p825_p3)  ;;  %v201_v1 = vld [vmem:[%s182_s8 + $0x24] sm:$0xf] (%p825_p3)  ;;  %v203_v2 = vld [vmem:[%s182_s8 + $0x48] sm:$0xf] (%p825_p3) }
  0x18   : > { %200 = vst [vmem:[%s177_s9] sm:$0xf] (%p825_p3), %v199_v0  ;;  %v205_v3 = vld [vmem:[%s182_s8 + $0x6c] sm:$0xf] (%p825_p3) }
  0x19   : > { %202 = vst [vmem:[%s177_s9 + $0x4] sm:$0xf] %v201_v1 }
  0x1a   : > { %204 = vst [vmem:[%s177_s9 + $0x8] sm:$0xf] %v203_v2 }
  0x1b   : > { %206 = vst [vmem:[%s177_s9 + $0xc] sm:$0xf] %v205_v3 }
  0x1c PF: > { %253 = sbr.rel (%p833_p7) target bundleno = 228 (0xe4), region = 69  ;;  %s256_s10 = sand.u32 (!%p833_p7), 1, %s752_s12  }
  0x1d   : > { %s862_s11 = sshll.u32 (!%p833_p7), %s256_s10, 4 }
  0x1e   : > { %s258_s17 = scalar_lea.vmem (!%p833_p7), [#allocation3], %s862_s11 }
  0x21   : > { %747 = dma.done.wait (%p837_p8), [#allocation5], 16  }
  0x22   : > { %749 = vsyncadd (%p837_p8), [#allocation5], 4294967280  ;;  %s577_s19 = sshll.u32 %s760_s14, 4  ;;  %p579_p13 = scmp.ne.s32.totalorder %s760_s14, 0 }
  0x23   : > { %p297_p12 = scmp.lt.s32.totalorder %s577_s19, 143 }
  0x24   : > { %317 = sbr.rel (%p579_p13) target bundleno = 46 (0x2e), region = 81 }
  0x25   : > { %s920_s19 = smov (!%p297_p12, %s577_s19), 143 }
  0x26   : > { %s578_s20 = sshll.u32 %s920_s19, 2 }
  0x27   : > { %s303_s25 = scalar_lea.vmem %s907_s1, %s578_s20 }
  0x29   : > { %v771_v4 = vmov 0.0  }
  0x2a   : > { %318 = vst [vmem:[#allocation2 + $0x10] sm:$0xff] %v771_v4 }
  0x2b   : > { %319 = vst [vmem:[#allocation2] sm:$0xff] %v771_v4 }
  0x2c   : > { %320 = vst [vmem:[#allocation2 + $0x18] sm:$0xff] %v771_v4 }
  0x2d   : > { %321 = vst [vmem:[#allocation2 + $0x8] sm:$0xff] %v771_v4 }
  0x2e PF: > { %v634_v5 = vld [vmem:[%s303_s25 + $0x38] sm:$0xff]  ;;  %v633_v6 = vld [vmem:[%s303_s25 + $0x30] sm:$0xff]  ;;  %v632_v7 = vld [vmem:[%s303_s25 + $0x28] sm:$0xff]  ;;  %p620_p0 = scmp.ne.s32.totalorder %s760_s14, 8 }
  0x2f   : > { %406 = vmatpush.bf16.msra.mxu0 %v634_v5  ;;  %635 = vmatpush.bf16.msra.mxu1 %v634_v5  ;;  %v631_v8 = vld [vmem:[%s303_s25 + $0x20] sm:$0xff]  ;;  %v630_v9 = vld [vmem:[%s303_s25 + $0x18] sm:$0xff]  ;;  %v629_v10 = vld [vmem:[%s303_s25 + $0x10] sm:$0xff] }
  0x30   : > { %v628_v11 = vld [vmem:[%s303_s25 + $0x8] sm:$0xff]  ;;  %v627_v12 = vld [vmem:[%s303_s25] sm:$0xff] }
  0x31   : > { %v625_v13 = vld [vmem:[%s258_s17] sm:$0xff]  ;;  %v626_v14 = vld [vmem:[%s258_s17 + $0x8] sm:$0xff] }
  0x32   : > { %v322_v15 = vld [vmem:[#allocation2 + $0x10] sm:$0xff]  ;;  %v323_v21 = vld [vmem:[#allocation2] sm:$0xff] }
  0x33   : > { %407 = vmatpush.bf16.msra.mxu0 %v633_v6  ;;  %636 = vmatpush.bf16.msra.mxu1 %v633_v6  ;;  %v324_v16 = vld [vmem:[#allocation2 + $0x18] sm:$0xff] }
  0x34   : > { %v325_v22 = vld [vmem:[#allocation2 + $0x8] sm:$0xff] }
  0x37   : > { %408 = vmatpush.bf16.msra.mxu0 %v632_v7  ;;  %637 = vmatpush.bf16.msra.mxu1 %v632_v7 }
  0x3b   : > { %409 = vmatpush.bf16.msra.mxu0 %v631_v8  ;;  %638 = vmatpush.bf16.msra.mxu1 %v631_v8 }
  0x3f   : > { %410 = vmatpush.bf16.msra.mxu0 %v630_v9  ;;  %639 = vmatpush.bf16.msra.mxu1 %v630_v9 }
  0x43   : > { %411 = vmatpush.bf16.msra.mxu0 %v629_v10  ;;  %640 = vmatpush.bf16.msra.mxu1 %v629_v10 }
  0x47   : > { %412 = vmatpush.bf16.msra.mxu0 %v628_v11  ;;  %641 = vmatpush.bf16.msra.mxu1 %v628_v11 }
  0x4b   : > { %413 = vmatpush.bf16.msra.mxu0 %v627_v12  ;;  %642 = vmatpush.bf16.msra.mxu1 %v627_v12 }
  0x4e   : > { %414 = vmatmul.bf16.vlgmr.msra.gmra.mxu0 %v625_v13  ;;  %419 = vmatmul.bf16.vlgmr.msra.gmra.mxu1 %v626_v14 }
  0xcb   : > { %v415_v17 = vpop.f32.mrf.mxu0  ;;  %v420_v18 = vpop.f32.mrf.mxu1 }
  0xcc   : > { %v425_v19 = vadd.f32 %v415_v17, %v322_v15  ;;  %v427_v20 = vadd.f32 %v420_v18, %v324_v16 }
  0xce   : > { %429 = vst [vmem:[#allocation2 + $0x10] sm:$0xff] %v425_v19 }
  0xcf   : > { %431 = vst [vmem:[#allocation2 + $0x18] sm:$0xff] %v427_v20 }
  0xd3   : > { %v417_v23 = vpop.f32.mrf.mxu0  ;;  %v422_v24 = vpop.f32.mrf.mxu1  ;;  %436 = sbr.rel (%p620_p0) target bundleno = 228 (0xe4), region = 85 }
  0xd4   : > { %v426_v25 = vadd.f32 %v417_v23, %v323_v21  ;;  %v428_v26 = vadd.f32 %v422_v24, %v325_v22 }
  0xd6   : > { %430 = vst [vmem:[#allocation2] sm:$0xff] %v426_v25 }
  0xd7   : > { %432 = vst [vmem:[#allocation2 + $0x8] sm:$0xff] %v428_v26 }
  0xd8   : > { %v437_v27 = vld [vmem:[#allocation2 + $0x10] sm:$0xff]  ;;  %v695_v28 = vld [vmem:[#allocation4] ss:$0 sm:$0xff]  ;;  %v439_v30 = vld [vmem:[#allocation2 + $0x18] sm:$0xff] }
  0xd9   : > { %v445_v32 = vadd.f32 %v695_v28, %v437_v27  ;;  %v447_v34 = vadd.f32 %v695_v28, %v439_v30 }
  0xdb   : > { %v449_v36 = vmax.f32 %v445_v32, 0.0  ;;  %v451_v38 = vmax.f32 %v447_v34, 0.0 }
  0xdd   : > { %v438_v29 = vld [vmem:[#allocation2] sm:$0xff]  ;;  %453 = vst [vmem:[%s909_s3] sm:$0xff] %v449_v36 }
  0xde   : > { %v440_v31 = vld [vmem:[#allocation2 + $0x8] sm:$0xff]  ;;  %v446_v33 = vadd.f32 %v695_v28, %v438_v29  ;;  %455 = vst [vmem:[%s909_s3 + $0x10] sm:$0xff] %v451_v38 }
  0xdf   : > { %v448_v35 = vadd.f32 %v695_v28, %v440_v31 }
  0xe0   : > { %v450_v37 = vmax.f32 %v446_v33, 0.0 }
  0xe1   : > { %v452_v39 = vmax.f32 %v448_v35, 0.0 }
  0xe2   : > { %454 = vst [vmem:[%s909_s3 + $0x8] sm:$0xff] %v450_v37 }
  0xe3   : > { %456 = vst [vmem:[%s909_s3 + $0x18] sm:$0xff] %v452_v39 }
  0xe4 PF: > { %s14_s16 = sadd.s32 1, %s768_s16   ;;  %s913_s12 = smov %s756_s13 }
  0xe5   : > { %p11_p1 = scmp.ge.s32.totalorder %s14_s16, 11   ;;  %s914_s13 = smov %s842_s24 }
  0xe6   : > { %s915_s14 = smov %s764_s15  ;;  %s916_s15 = smov %s918_s18 }
  0xe7   :  { %13 = sbr.rel (!%p11_p1) target bundleno = 3 (0x3), region = 125 }
  0xec   :  { %485 = vsyncpa [#allocation5], 1 }
  0xed   :  { %487 = vsyncpa [#allocation5 + $0x1], 1 }

// kernel: custom_resnet_forward.32
= control target key start
LH: loop header
LB: loop body
LE: loop exit
PB: predicated region body
PF: predicated region fallthrough
CT: control target
= control target key end

     0   :  { %s708_s12 = smov 0   ;;  %s710_s13 = smov 0   ;;  %s794_s0 = inlined_call_operand.vmem [shape: bf16[8,1152], index: 0, kind: input, shape index: {}]   ;;  %s795_s1 = inlined_call_operand.vmem [shape: bf16[1152,256], index: 1, kind: input, shape index: {}]   ;;  %s796_s2 = inlined_call_operand.vmem [shape: f32[1,256], index: 2, kind: input, shape index: {}]   ;;  %s797_s3 = inlined_call_operand.vmem [shape: f32[8,256], index: 3, kind: output, shape index: {}]  }
   0x1   :  { %s712_s14 = smov 0  }
   0x2 LB: > { %s25_s15 = sadd.s32 1, %s681_s13  ;;  %p546_p0 = scmp.ge.s32.totalorder %s685_s14, 1  ;;  %s685_s14 = sphi %s712_s14, %s13_s14   ;;  %s681_s13 = sphi %s710_s13, %s799_s13   ;;  %s677_s12 = sphi %s708_s12, %s798_s12  }
   0x3   : > { %p26_p1 = scmp.ge.s32.totalorder %s25_s15, 9  ;;  %p192_p2 = scmp.lt.s32.totalorder %s685_s14, 10 }
   0x5   : > { %s801_s15 = smov (%p26_p1, %s25_s15), 0  ;;  %p193_p3 = pnand %p546_p0, %p192_p2 }
   0x6   : > { %p239_p4 = scmp.lt.s32.totalorder (!%p193_p3), %s677_s12, 8  ;;  %s548_s16 = sshll.u32 (!%p193_p3), %s677_s12, 4 }
   0x7   : > { %196 = sbr.rel (%p193_p3) target bundleno = 200 (0xc8), region = 32  ;;  %p247_p5 = scmp.lt.s32.totalorder (!%p193_p3), %s548_s16, 143 }
   0x8   : > { %p551_p6 = scmp.ne.s32.totalorder (!%p193_p3), %s677_s12, 0 }
   0xc   : > { %s240_s17 = scalar_select %p239_p4, %s677_s12, 8 }
   0xd   : > { %s803_s16 = smov (!%p247_p5, %s548_s16), 143  ;;  %275 = sbr.rel (%p551_p6) target bundleno = 21 (0x15), region = 36 }
   0xe   : > { %s547_s18 = sshll.u32 %s240_s17, 2  ;;  %s621_s22 = sshll.u32 %s803_s16, 3 }
   0xf   : > { %s734_s21 = scalar_lea.vmem %s794_s0, %s547_s18  ;;  %s739_s25 = scalar_lea.vmem %s795_s1, %s621_s22 }
  0x12   : > { %v687_v0 = vmov 0.0  }
  0x13   : > { %276 = vst [vmem:[#allocation2] sm:$0xff] %v687_v0 }
  0x14   : > { %277 = vst [vmem:[#allocation2 + $0x8] sm:$0xff] %v687_v0 }
  0x15 PF: > { %v610_v1 = vld [vmem:[%s739_s25 + $0x70] sm:$0xf]  ;;  %v637_v2 = vld [vmem:[%s739_s25 + $0x74] sm:$0xf0]  ;;  %v636_v3 = vld [vmem:[%s739_s25 + $0x74] sm:$0xf] }
  0x16   : > { %v611_v4 = vor.u32 %v637_v2, %v610_v1  ;;  %v612_v5 = vld [vmem:[%s739_s25 + $0x78] sm:$0xf0]  ;;  %v602_v6 = vld [vmem:[%s739_s25 + $0x60] sm:$0xf]  ;;  %v635_v7 = vld [vmem:[%s739_s25 + $0x64] sm:$0xf0] }
  0x17   : > { %v615_v8 = vor.u32 %v636_v3, %v612_v5  ;;  %v634_v9 = vld [vmem:[%s739_s25 + $0x64] sm:$0xf]  ;;  %v604_v10 = vld [vmem:[%s739_s25 + $0x68] sm:$0xf0]  ;;  %v603_v11 = vor.u32 %v635_v7, %v602_v6  ;;  %v594_v13 = vld [vmem:[%s739_s25 + $0x50] sm:$0xf] }
  0x18   : > { %377 = vmatpush.bf16.msra.mxu0 %v611_v4  ;;  %v607_v12 = vor.u32 %v634_v9, %v604_v10  ;;  %v633_v14 = vld [vmem:[%s739_s25 + $0x54] sm:$0xf0]  ;;  %v632_v15 = vld [vmem:[%s739_s25 + $0x54] sm:$0xf]  ;;  %v596_v16 = vld [vmem:[%s739_s25 + $0x58] sm:$0xf0] }
  0x19   : > { %390 = vmatpush.bf16.msra.mxu1 %v615_v8  ;;  %v595_v17 = vor.u32 %v633_v14, %v594_v13  ;;  %v599_v18 = vor.u32 %v632_v15, %v596_v16  ;;  %v586_v19 = vld [vmem:[%s739_s25 + $0x40] sm:$0xf]  ;;  %v631_v20 = vld [vmem:[%s739_s25 + $0x44] sm:$0xf0]  ;;  %v630_v21 = vld [vmem:[%s739_s25 + $0x44] sm:$0xf] }
  0x1a   : > { %v588_v22 = vld [vmem:[%s739_s25 + $0x48] sm:$0xf0]  ;;  %v587_v23 = vor.u32 %v631_v20, %v586_v19  ;;  %v578_v25 = vld [vmem:[%s739_s25 + $0x30] sm:$0xf]  ;;  %v629_v26 = vld [vmem:[%s739_s25 + $0x34] sm:$0xf0] }
  0x1b   : > { %v591_v24 = vor.u32 %v630_v21, %v588_v22  ;;  %v628_v27 = vld [vmem:[%s739_s25 + $0x34] sm:$0xf]  ;;  %v580_v28 = vld [vmem:[%s739_s25 + $0x38] sm:$0xf0]  ;;  %v579_v29 = vor.u32 %v629_v26, %v578_v25  ;;  %v570_v31 = vld [vmem:[%s739_s25 + $0x20] sm:$0xf] }
  0x1c   : > { %378 = vmatpush.bf16.msra.mxu0 %v603_v11  ;;  %v583_v30 = vor.u32 %v628_v27, %v580_v28  ;;  %v627_v32 = vld [vmem:[%s739_s25 + $0x24] sm:$0xf0]  ;;  %v626_v33 = vld [vmem:[%s739_s25 + $0x24] sm:$0xf]  ;;  %v572_v34 = vld [vmem:[%s739_s25 + $0x28] sm:$0xf0] }
  0x1d   : > { %391 = vmatpush.bf16.msra.mxu1 %v607_v12  ;;  %v571_v35 = vor.u32 %v627_v32, %v570_v31  ;;  %v575_v36 = vor.u32 %v626_v33, %v572_v34  ;;  %v562_v37 = vld [vmem:[%s739_s25 + $0x10] sm:$0xf]  ;;  %v625_v38 = vld [vmem:[%s739_s25 + $0x14] sm:$0xf0]  ;;  %v624_v39 = vld [vmem:[%s739_s25 + $0x14] sm:$0xf] }
  0x1e   : > { %v564_v40 = vld [vmem:[%s739_s25 + $0x18] sm:$0xf0]  ;;  %v563_v41 = vor.u32 %v625_v38, %v562_v37  ;;  %v554_v43 = vld [vmem:[%s739_s25] sm:$0xf]  ;;  %v623_v44 = vld [vmem:[%s739_s25 + $0x4] sm:$0xf0] }
  0x1f   : > { %v567_v42 = vor.u32 %v624_v39, %v564_v40  ;;  %v622_v45 = vld [vmem:[%s739_s25 + $0x4] sm:$0xf]  ;;  %v556_v46 = vld [vmem:[%s739_s25 + $0x8] sm:$0xf0]  ;;  %v555_v47 = vor.u32 %v623_v44, %v554_v43  ;;  %v280_v49 = vld [vmem:[%s734_s21] sm:$0xf] }
  0x20   : > { %379 = vmatpush.bf16.msra.mxu0 %v595_v17  ;;  %v559_v48 = vor.u32 %v622_v45, %v556_v46  ;;  %v278_v50 = vld [vmem:[#allocation2] sm:$0xff]  ;;  %v279_v51 = vld [vmem:[#allocation2 + $0x8] sm:$0xff]  ;;  %p616_p7 = scmp.ne.s32.totalorder %s677_s12, 8 }
  0x21   : > { %392 = vmatpush.bf16.msra.mxu1 %v599_v18 }
  0x24   : > { %380 = vmatpush.bf16.msra.mxu0 %v587_v23 }
  0x25   : > { %393 = vmatpush.bf16.msra.mxu1 %v591_v24 }
  0x28   : > { %381 = vmatpush.bf16.msra.mxu0 %v579_v29 }
  0x29   : > { %394 = vmatpush.bf16.msra.mxu1 %v583_v30 }
  0x2c   : > { %382 = vmatpush.bf16.msra.mxu0 %v571_v35 }
  0x2d   : > { %395 = vmatpush.bf16.msra.mxu1 %v575_v36 }
  0x30   : > { %383 = vmatpush.bf16.msra.mxu0 %v563_v41 }
  0x31   : > { %396 = vmatpush.bf16.msra.mxu1 %v567_v42 }
  0x34   : > { %384 = vmatpush.bf16.msra.mxu0 %v555_v47 }
  0x35   : > { %397 = vmatpush.bf16.msra.mxu1 %v559_v48 }
  0x37   : > { %385 = vmatmul.bf16.vlgmr.msra.gmra.mxu0 %v280_v49 }
  0x38   : > { %398 = vmatmul.bf16.vlgmr.msra.gmra.mxu1 %v280_v49 }
  0xb4   : > { %v386_v52 = vpop.f32.mrf.mxu0 }
  0xb5   : > { %v403_v53 = vadd.f32 %v386_v52, %v278_v50  ;;  %v399_v54 = vpop.f32.mrf.mxu1 }
  0xb6   : > { %v404_v55 = vadd.f32 %v399_v54, %v279_v51 }
  0xb7   : > { %405 = vst [vmem:[#allocation2] sm:$0xff] %v403_v53 }
  0xb8   : > { %406 = vst [vmem:[#allocation2 + $0x8] sm:$0xff] %v404_v55 }
  0xb9   : > { %410 = sbr.rel (%p616_p7) target bundleno = 200 (0xc8), region = 40 }
  0xbc   : > { %v388_v56 = vpop.f32.mrf.mxu0 }
  0xbd   : > { %v401_v57 = vpop.f32.mrf.mxu1 }
  0xbe   : > { %v411_v58 = vld [vmem:[#allocation2] sm:$0xff] }
  0xbf   : > { %v413_v59 = vld [vmem:[%s796_s2] sm:$0x3]  ;;  %v412_v60 = vld [vmem:[#allocation2 + $0x8] sm:$0xff] }
  0xc0   : > { %v415_v61 = vperm.slane %v413_v59, 0  ;;  %v416_v62 = vperm.slane %v413_v59, 1 }
  0xc2   : > { %v419_v63 = vadd.f32 %v415_v61, %v411_v58  ;;  %v420_v0 = vadd.f32 %v416_v62, %v412_v60 }
  0xc4   : > { %v421_v1 = vmax.f32 %v419_v63, 0.0  ;;  %v422_v2 = vmax.f32 %v420_v0, 0.0 }
  0xc6   : > { %423 = vst [vmem:[%s797_s3] sm:$0xff] %v421_v1 }
  0xc7   : > { %424 = vst [vmem:[%s797_s3 + $0x8] sm:$0xff] %v422_v2 }
  0xc8 PF: > { %s13_s14 = sadd.s32 1, %s685_s14   ;;  %s798_s12 = smov %s681_s13 }
  0xc9   : > { %p10_p8 = scmp.ge.s32.totalorder %s13_s14, 11   ;;  %s799_s13 = smov %s801_s15 }
  0xcb   :  { %12 = sbr.rel (!%p10_p8) target bundleno = 2 (0x2), region = 76 }

// kernel: custom_resnet_forward.35
= control target key start
LH: loop header
LB: loop body
LE: loop exit
PB: predicated region body
PF: predicated region fallthrough
CT: control target
= control target key end

     0   :  { %8 = vsyncpa [#allocation4], 0  ;;  %s976_s12 = smov 0   ;;  %s978_s13 = smov 0   ;;  %s1094_s0 = inlined_call_operand.vmem [shape: bf16[8,2304], index: 0, kind: input, shape index: {}]   ;;  %s1095_s1 = inlined_call_operand.vmem [shape: bf16[2304,256], index: 1, kind: input, shape index: {}]   ;;  %s1096_s2 = inlined_call_operand.hbm [shape: f32[1,256], index: 2, kind: input, shape index: {}]   ;;  %s1097_s3 = inlined_call_operand.vmem [shape: f32[8,256], index: 3, kind: output, shape index: {}]  }
   0x1   :  { %s980_s14 = smov 0  }
   0x2 LB: > { %s682_s15 = sadd.s32 4294967295, %s952_s14   ;;  %s26_s16 = sadd.s32 1, %s948_s13  ;;  %s952_s14 = sphi %s980_s14, %s14_s14   ;;  %s948_s13 = sphi %s978_s13, %s1099_s13   ;;  %s944_s12 = sphi %s976_s12, %s1098_s12  }
   0x3   : > { %p27_p0 = scmp.ge.s32.totalorder %s26_s16, 9  ;;  %p683_p1 = scmp.ge.s32.totalorder %s952_s14, 1 }
   0x4   : > { %p148_p2 = scmp.lt.s32.totalorder %s952_s14, 10  ;;  %p868_p4 = scmp.eq.s32.totalorder %s682_s15, 0 }
   0x5   : > { %s1101_s16 = smov (%p27_p0, %s26_s16), 0  ;;  %s162_s19 = sshll.u32 %s1096_s2, 4  ;;  %s163_s19 = int_to_ptr.hbm [resolvable:$true] %s162_s19 }
   0x6   : > { %p149_p3 = pnand %p683_p1, %p148_p2  ;;  %s954_s20 = smov [#allocation3]  }
   0x7   : > { %s164_s21 = sshll.u32 %s954_s20, 4  ;;  %s165_s21 = int_to_ptr.vmem [resolvable:$true] %s164_s21 }
   0x8   : > { %p864_p5 = pneg %p149_p3  ;;  %205 = sbr.rel (%p149_p3) target bundleno = 213 (0xd5), region = 32 }
   0xa   : > { %p865_p6 = pnand %p868_p4, %p864_p5 }
   0xc   : > { %867 = dma.hbm_to_vmem [thread:$0]  (!%p865_p6), %s163_s19, 32, %s165_s21, [#allocation4]  }
   0xd   : > { %939 = dma.done.wait (%p868_p4), [#allocation4], 32  }
   0xe   : > { %941 = vsyncadd (%p868_p4), [#allocation4], 4294967264  ;;  %s688_s22 = sshll.u32 %s944_s12, 1  ;;  %s690_s23 = sshll.u32 %s944_s12, 5 }
   0xf   : > { %p251_p7 = scmp.lt.s32.totalorder %s688_s22, 17  ;;  %p260_p8 = scmp.lt.s32.totalorder %s690_s23, 287 }
  0x10   : > { %p693_p9 = scmp.ne.s32.totalorder %s944_s12, 0 }
  0x11   : > { %s1103_s22 = smov (!%p251_p7, %s688_s22), 17  ;;  %s1105_s23 = smov (!%p260_p8, %s690_s23), 287 }
  0x12   : > { %s689_s24 = sshll.u32 %s1103_s22, 2  ;;  %s827_s28 = sshll.u32 %s1105_s23, 3 }
  0x13   : > { %s1005_s27 = scalar_lea.vmem %s1094_s0, %s689_s24  ;;  %s1010_s4 = scalar_lea.vmem %s1095_s1, %s827_s28 }
  0x14   : > { %284 = sbr.rel (%p693_p9) target bundleno = 28 (0x1c), region = 40 }
  0x19   : > { %v955_v0 = vmov 0.0  }
  0x1a   : > { %285 = vst [vmem:[#allocation2] sm:$0xff] %v955_v0 }
  0x1b   : > { %286 = vst [vmem:[#allocation2 + $0x8] sm:$0xff] %v955_v0 }
  0x1c PF: > { %v752_v1 = vld [vmem:[%s1010_s4 + $0x70] sm:$0xf]  ;;  %v843_v2 = vld [vmem:[%s1010_s4 + $0x74] sm:$0xf0]  ;;  %v842_v6 = vld [vmem:[%s1010_s4 + $0x74] sm:$0xf] }
  0x1d   : > { %v816_v3 = vld [vmem:[%s1010_s4 + $0xf0] sm:$0xf]  ;;  %v753_v4 = vor.u32 %v843_v2, %v752_v1  ;;  %v859_v5 = vld [vmem:[%s1010_s4 + $0xf4] sm:$0xf0]  ;;  %v754_v7 = vld [vmem:[%s1010_s4 + $0x78] sm:$0xf0] }
  0x1e   : > { %v817_v8 = vor.u32 %v859_v5, %v816_v3  ;;  %v757_v9 = vor.u32 %v842_v6, %v754_v7  ;;  %v858_v10 = vld [vmem:[%s1010_s4 + $0xf4] sm:$0xf]  ;;  %v818_v11 = vld [vmem:[%s1010_s4 + $0xf8] sm:$0xf0]  ;;  %v744_v12 = vld [vmem:[%s1010_s4 + $0x60] sm:$0xf] }
  0x1f   : > { %489 = vmatpush.bf16.msra.mxu0 %v753_v4  ;;  %v821_v13 = vor.u32 %v858_v10, %v818_v11  ;;  %v841_v14 = vld [vmem:[%s1010_s4 + $0x64] sm:$0xf0]  ;;  %v808_v15 = vld [vmem:[%s1010_s4 + $0xe0] sm:$0xf]  ;;  %v840_v19 = vld [vmem:[%s1010_s4 + $0x64] sm:$0xf] }
  0x20   : > { %v857_v16 = vld [vmem:[%s1010_s4 + $0xe4] sm:$0xf0]  ;;  %502 = vmatpush.bf16.msra.mxu1 %v817_v8  ;;  %515 = vmatpush.bf16.msra.mxu2 %v757_v9  ;;  %v745_v17 = vor.u32 %v841_v14, %v744_v12  ;;  %v746_v20 = vld [vmem:[%s1010_s4 + $0x68] sm:$0xf0]  ;;  %v856_v21 = vld [vmem:[%s1010_s4 + $0xe4] sm:$0xf] }
  0x21   : > { %v809_v18 = vor.u32 %v857_v16, %v808_v15  ;;  %528 = vmatpush.bf16.msra.mxu3 %v821_v13  ;;  %v749_v22 = vor.u32 %v840_v19, %v746_v20  ;;  %v810_v23 = vld [vmem:[%s1010_s4 + $0xe8] sm:$0xf0]  ;;  %v736_v24 = vld [vmem:[%s1010_s4 + $0x50] sm:$0xf]  ;;  %v839_v25 = vld [vmem:[%s1010_s4 + $0x54] sm:$0xf0] }
  0x22   : > { %v813_v26 = vor.u32 %v856_v21, %v810_v23  ;;  %v800_v27 = vld [vmem:[%s1010_s4 + $0xd0] sm:$0xf]  ;;  %v855_v28 = vld [vmem:[%s1010_s4 + $0xd4] sm:$0xf0]  ;;  %v838_v29 = vld [vmem:[%s1010_s4 + $0x54] sm:$0xf]  ;;  %v737_v30 = vor.u32 %v839_v25, %v736_v24 }
  0x23   : > { %490 = vmatpush.bf16.msra.mxu0 %v745_v17  ;;  %v738_v31 = vld [vmem:[%s1010_s4 + $0x58] sm:$0xf0]  ;;  %v854_v32 = vld [vmem:[%s1010_s4 + $0xd4] sm:$0xf]  ;;  %v801_v34 = vor.u32 %v855_v28, %v800_v27  ;;  %v728_v36 = vld [vmem:[%s1010_s4 + $0x40] sm:$0xf] }
  0x24   : > { %v802_v33 = vld [vmem:[%s1010_s4 + $0xd8] sm:$0xf0]  ;;  %503 = vmatpush.bf16.msra.mxu1 %v809_v18  ;;  %516 = vmatpush.bf16.msra.mxu2 %v749_v22  ;;  %v741_v35 = vor.u32 %v838_v29, %v738_v31  ;;  %v837_v37 = vld [vmem:[%s1010_s4 + $0x44] sm:$0xf0]  ;;  %v792_v38 = vld [vmem:[%s1010_s4 + $0xc0] sm:$0xf] }
  0x25   : > { %529 = vmatpush.bf16.msra.mxu3 %v813_v26  ;;  %v805_v39 = vor.u32 %v854_v32, %v802_v33  ;;  %v853_v40 = vld [vmem:[%s1010_s4 + $0xc4] sm:$0xf0]  ;;  %v836_v41 = vld [vmem:[%s1010_s4 + $0x44] sm:$0xf]  ;;  %v730_v42 = vld [vmem:[%s1010_s4 + $0x48] sm:$0xf0]  ;;  %v729_v45 = vor.u32 %v837_v37, %v728_v36 }
  0x26   : > { %v852_v43 = vld [vmem:[%s1010_s4 + $0xc4] sm:$0xf]  ;;  %v794_v44 = vld [vmem:[%s1010_s4 + $0xc8] sm:$0xf0]  ;;  %v793_v46 = vor.u32 %v853_v40, %v792_v38  ;;  %v733_v47 = vor.u32 %v836_v41, %v730_v42  ;;  %v720_v48 = vld [vmem:[%s1010_s4 + $0x30] sm:$0xf] }
  0x27   : > { %491 = vmatpush.bf16.msra.mxu0 %v737_v30  ;;  %v835_v49 = vld [vmem:[%s1010_s4 + $0x34] sm:$0xf0]  ;;  %v784_v50 = vld [vmem:[%s1010_s4 + $0xb0] sm:$0xf]  ;;  %v797_v51 = vor.u32 %v852_v43, %v794_v44  ;;  %v834_v53 = vld [vmem:[%s1010_s4 + $0x34] sm:$0xf] }
  0x28   : > { %504 = vmatpush.bf16.msra.mxu1 %v801_v34  ;;  %517 = vmatpush.bf16.msra.mxu2 %v741_v35  ;;  %v851_v52 = vld [vmem:[%s1010_s4 + $0xb4] sm:$0xf0]  ;;  %v722_v54 = vld [vmem:[%s1010_s4 + $0x38] sm:$0xf0]  ;;  %v850_v55 = vld [vmem:[%s1010_s4 + $0xb4] sm:$0xf]  ;;  %v721_v57 = vor.u32 %v835_v49, %v720_v48 }
  0x29   : > { %530 = vmatpush.bf16.msra.mxu3 %v805_v39  ;;  %v786_v56 = vld [vmem:[%s1010_s4 + $0xb8] sm:$0xf0]  ;;  %v785_v58 = vor.u32 %v851_v52, %v784_v50  ;;  %v725_v59 = vor.u32 %v834_v53, %v722_v54  ;;  %v712_v60 = vld [vmem:[%s1010_s4 + $0x20] sm:$0xf]  ;;  %v833_v61 = vld [vmem:[%s1010_s4 + $0x24] sm:$0xf0] }
  0x2a   : > { %v776_v62 = vld [vmem:[%s1010_s4 + $0xa0] sm:$0xf]  ;;  %v789_v63 = vor.u32 %v850_v55, %v786_v56  ;;  %v849_v0 = vld [vmem:[%s1010_s4 + $0xa4] sm:$0xf0]  ;;  %v832_v1 = vld [vmem:[%s1010_s4 + $0x24] sm:$0xf]  ;;  %v713_v5 = vor.u32 %v833_v61, %v712_v60 }
  0x2b   : > { %492 = vmatpush.bf16.msra.mxu0 %v729_v45  ;;  %v714_v2 = vld [vmem:[%s1010_s4 + $0x28] sm:$0xf0]  ;;  %v848_v3 = vld [vmem:[%s1010_s4 + $0xa4] sm:$0xf]  ;;  %v777_v6 = vor.u32 %v849_v0, %v776_v62  ;;  %v704_v8 = vld [vmem:[%s1010_s4 + $0x10] sm:$0xf] }
  0x2c   : > { %505 = vmatpush.bf16.msra.mxu1 %v793_v46  ;;  %518 = vmatpush.bf16.msra.mxu2 %v733_v47  ;;  %v778_v4 = vld [vmem:[%s1010_s4 + $0xa8] sm:$0xf0]  ;;  %v717_v7 = vor.u32 %v832_v1, %v714_v2  ;;  %v831_v9 = vld [vmem:[%s1010_s4 + $0x14] sm:$0xf0]  ;;  %v768_v10 = vld [vmem:[%s1010_s4 + $0x90] sm:$0xf] }
  0x2d   : > { %531 = vmatpush.bf16.msra.mxu3 %v797_v51  ;;  %v781_v11 = vor.u32 %v848_v3, %v778_v4  ;;  %v847_v12 = vld [vmem:[%s1010_s4 + $0x94] sm:$0xf0]  ;;  %v830_v13 = vld [vmem:[%s1010_s4 + $0x14] sm:$0xf]  ;;  %v706_v14 = vld [vmem:[%s1010_s4 + $0x18] sm:$0xf0]  ;;  %v705_v17 = vor.u32 %v831_v9, %v704_v8 }
  0x2e   : > { %v846_v15 = vld [vmem:[%s1010_s4 + $0x94] sm:$0xf]  ;;  %v770_v16 = vld [vmem:[%s1010_s4 + $0x98] sm:$0xf0]  ;;  %v289_v18 = vld [vmem:[%s1005_s27] sm:$0xff]  ;;  %v769_v19 = vor.u32 %v847_v12, %v768_v10  ;;  %v709_v20 = vor.u32 %v830_v13, %v706_v14  ;;  %p822_p10 = scmp.ne.s32.totalorder %s944_s12, 8 }
  0x2f   : > { %493 = vmatpush.bf16.msra.mxu0 %v721_v57  ;;  %v696_v21 = vld [vmem:[%s1010_s4] sm:$0xf]  ;;  %v829_v22 = vld [vmem:[%s1010_s4 + $0x4] sm:$0xf0]  ;;  %v773_v24 = vor.u32 %v846_v15, %v770_v16  ;;  %v828_v26 = vld [vmem:[%s1010_s4 + $0x4] sm:$0xf]  ;;  %v323_v30 = vunpack.c.l.b16 %v289_v18  ;;  %v324_v32 = vunpack.c.h.b16 %v289_v18 }
  0x30   : > { %506 = vmatpush.bf16.msra.mxu1 %v785_v58  ;;  %519 = vmatpush.bf16.msra.mxu2 %v725_v59  ;;  %v760_v23 = vld [vmem:[%s1010_s4 + $0x80] sm:$0xf]  ;;  %v845_v25 = vld [vmem:[%s1010_s4 + $0x84] sm:$0xf0]  ;;  %v698_v27 = vld [vmem:[%s1010_s4 + $0x8] sm:$0xf0]  ;;  %v697_v31 = vor.u32 %v829_v22, %v696_v21 }
  0x31   : > { %532 = vmatpush.bf16.msra.mxu3 %v789_v63  ;;  %v844_v28 = vld [vmem:[%s1010_s4 + $0x84] sm:$0xf]  ;;  %v762_v29 = vld [vmem:[%s1010_s4 + $0x88] sm:$0xf0]  ;;  %v761_v33 = vor.u32 %v845_v25, %v760_v23  ;;  %v701_v34 = vor.u32 %v828_v26, %v698_v27  ;;  %v325_v36 = vpack.c.b16 %v323_v30, %v323_v30  ;;  %v326_v37 = vpack.c.b16 %v324_v32, %v324_v32 }
  0x32   : > { %v765_v35 = vor.u32 %v844_v28, %v762_v29  ;;  %v287_v39 = vld [vmem:[#allocation2] sm:$0xff]  ;;  %v288_v44 = vld [vmem:[#allocation2 + $0x8] sm:$0xff] }
  0x33   : > { %494 = vmatpush.bf16.msra.mxu0 %v713_v5 }
  0x34   : > { %507 = vmatpush.bf16.msra.mxu1 %v777_v6  ;;  %520 = vmatpush.bf16.msra.mxu2 %v717_v7 }
  0x35   : > { %533 = vmatpush.bf16.msra.mxu3 %v781_v11 }
  0x37   : > { %495 = vmatpush.bf16.msra.mxu0 %v705_v17 }
  0x38   : > { %508 = vmatpush.bf16.msra.mxu1 %v769_v19  ;;  %521 = vmatpush.bf16.msra.mxu2 %v709_v20 }
  0x39   : > { %534 = vmatpush.bf16.msra.mxu3 %v773_v24 }
  0x3b   : > { %496 = vmatpush.bf16.msra.mxu0 %v697_v31 }
  0x3c   : > { %509 = vmatpush.bf16.msra.mxu1 %v761_v33  ;;  %522 = vmatpush.bf16.msra.mxu2 %v701_v34 }
  0x3d   : > { %535 = vmatpush.bf16.msra.mxu3 %v765_v35 }
  0x3e   : > { %497 = vmatmul.bf16.vlgmr.msra.gmra.mxu0 %v325_v36 }
  0x3f   : > { %510 = vmatmul.bf16.vlgmr.msra.gmra.mxu1 %v326_v37  ;;  %523 = vmatmul.bf16.vlgmr.msra.gmra.mxu2 %v325_v36 }
  0x40   : > { %536 = vmatmul.bf16.vlgmr.msra.gmra.mxu3 %v326_v37 }
  0xbb   : > { %v498_v38 = vpop.f32.mrf.mxu0 }
  0xbc   : > { %v511_v40 = vpop.f32.mrf.mxu1 }
  0xbd   : > { %v512_v41 = vadd.f32 %v511_v40, %v498_v38 }
  0xbf   : > { %v541_v42 = vadd.f32 %v512_v41, %v287_v39 }
  0xc1   : > { %543 = vst [vmem:[#allocation2] sm:$0xff] %v541_v42 }
  0xc2   : > { %v524_v43 = vpop.f32.mrf.mxu2 }
  0xc3   : > { %v537_v45 = vpop.f32.mrf.mxu3  ;;  %v500_v46 = vpop.f32.mrf.mxu0 }
  0xc4   : > { %v538_v47 = vadd.f32 %v537_v45, %v524_v43  ;;  %v513_v48 = vpop.f32.mrf.mxu1 }
  0xc6   : > { %v542_v49 = vadd.f32 %v538_v47, %v288_v44 }
  0xc7   : > { %548 = sbr.rel (%p822_p10) target bundleno = 213 (0xd5), region = 44 }
  0xc8   : > { %544 = vst [vmem:[#allocation2 + $0x8] sm:$0xff] %v542_v49 }
  0xca   : > { %v526_v50 = vpop.f32.mrf.mxu2 }
  0xcb   : > { %v539_v51 = vpop.f32.mrf.mxu3 }
  0xcc   : > { %v549_v52 = vld [vmem:[#allocation2] sm:$0xff]  ;;  %v551_v53 = vld [vmem:[#allocation3] sm:$0x3] }
  0xcd   : > { %v553_v55 = vperm.slane %v551_v53, 0  ;;  %v554_v56 = vperm.slane %v551_v53, 1 }
  0xcf   : > { %v550_v54 = vld [vmem:[#allocation2 + $0x8] sm:$0xff]  ;;  %v557_v57 = vadd.f32 %v553_v55, %v549_v52 }
  0xd0   : > { %v558_v58 = vadd.f32 %v554_v56, %v550_v54 }
  0xd1   : > { %v559_v59 = vmax.f32 %v557_v57, 0.0 }
  0xd2   : > { %v560_v60 = vmax.f32 %v558_v58, 0.0 }
  0xd3   : > { %561 = vst [vmem:[%s1097_s3] sm:$0xff] %v559_v59 }
  0xd4   : > { %562 = vst [vmem:[%s1097_s3 + $0x8] sm:$0xff] %v560_v60 }
  0xd5 PF: > { %s14_s14 = sadd.s32 1, %s952_s14   ;;  %s1098_s12 = smov %s948_s13 }
  0xd6   : > { %p11_p11 = scmp.ge.s32.totalorder %s14_s14, 11   ;;  %s1099_s13 = smov %s1101_s16 }
  0xd8   :  { %13 = sbr.rel (!%p11_p11) target bundleno = 2 (0x2), region = 79 }
  0xdd   :  { %593 = vsyncpa [#allocation4], 1 }
  0xde   :  { %595 = vsyncpa [#allocation4 + $0x1], 1 }

// kernel: custom_resnet_forward.33
= control target key start
LH: loop header
LB: loop body
LE: loop exit
PB: predicated region body
PF: predicated region fallthrough
CT: control target
= control target key end

     0   :  { %8 = vsyncpa [#allocation4], 0  ;;  %s290_s15 = smov [#allocation3]   ;;  %s419_s0 = inlined_call_operand.vmem [shape: bf16[8,128], index: 0, kind: input, shape index: {}]   ;;  %s420_s1 = inlined_call_operand.vmem [shape: bf16[128,256], index: 1, kind: input, shape index: {}]   ;;  %s421_s2 = inlined_call_operand.hbm [shape: f32[1,256], index: 2, kind: input, shape index: {}]   ;;  %s422_s3 = inlined_call_operand.vmem [shape: f32[8,256], index: 3, kind: output, shape index: {}]  }
   0x1   :  { %s18_s14 = sshll.u32 %s421_s2, 4  ;;  %s20_s16 = sshll.u32 %s290_s15, 4  ;;  %s19_s14 = int_to_ptr.hbm [resolvable:$true] %s18_s14  ;;  %s21_s16 = int_to_ptr.vmem [resolvable:$true] %s20_s16 }
   0x2   :  { %23 = dma.hbm_to_vmem [thread:$0]  %s19_s14, 32, %s21_s16, [#allocation4]  }
   0x3   :  { %288 = dma.done.wait [#allocation4], 32  }
   0x4   :  { %289 = vsyncadd [#allocation4], 4294967264  ;;  %v241_v0 = vld [vmem:[%s420_s1 + $0x70] sm:$0xf]  ;;  %v262_v1 = vld [vmem:[%s420_s1 + $0x74] sm:$0xf0] }
   0x5   :  { %v261_v2 = vld [vmem:[%s420_s1 + $0x74] sm:$0xf]  ;;  %v242_v3 = vor.u32 %v262_v1, %v241_v0  ;;  %v243_v4 = vld [vmem:[%s420_s1 + $0x78] sm:$0xf0]  ;;  %v233_v5 = vld [vmem:[%s420_s1 + $0x60] sm:$0xf] }
   0x6   :  { %v260_v6 = vld [vmem:[%s420_s1 + $0x64] sm:$0xf0]  ;;  %v246_v7 = vor.u32 %v261_v2, %v243_v4  ;;  %v259_v8 = vld [vmem:[%s420_s1 + $0x64] sm:$0xf]  ;;  %v235_v9 = vld [vmem:[%s420_s1 + $0x68] sm:$0xf0] }
   0x7   :  { %133 = vmatpush.bf16.msra.mxu0 %v242_v3  ;;  %v234_v10 = vor.u32 %v260_v6, %v233_v5  ;;  %v238_v11 = vor.u32 %v259_v8, %v235_v9  ;;  %v225_v12 = vld [vmem:[%s420_s1 + $0x50] sm:$0xf]  ;;  %v258_v13 = vld [vmem:[%s420_s1 + $0x54] sm:$0xf0]  ;;  %v257_v14 = vld [vmem:[%s420_s1 + $0x54] sm:$0xf] }
   0x8   :  { %146 = vmatpush.bf16.msra.mxu1 %v246_v7  ;;  %v227_v15 = vld [vmem:[%s420_s1 + $0x58] sm:$0xf0]  ;;  %v226_v16 = vor.u32 %v258_v13, %v225_v12  ;;  %v217_v18 = vld [vmem:[%s420_s1 + $0x40] sm:$0xf]  ;;  %v256_v19 = vld [vmem:[%s420_s1 + $0x44] sm:$0xf0] }
   0x9   :  { %v230_v17 = vor.u32 %v257_v14, %v227_v15  ;;  %v255_v20 = vld [vmem:[%s420_s1 + $0x44] sm:$0xf]  ;;  %v219_v21 = vld [vmem:[%s420_s1 + $0x48] sm:$0xf0]  ;;  %v218_v22 = vor.u32 %v256_v19, %v217_v18  ;;  %v209_v24 = vld [vmem:[%s420_s1 + $0x30] sm:$0xf] }
   0xa   :  { %v222_v23 = vor.u32 %v255_v20, %v219_v21  ;;  %v254_v25 = vld [vmem:[%s420_s1 + $0x34] sm:$0xf0]  ;;  %v253_v26 = vld [vmem:[%s420_s1 + $0x34] sm:$0xf]  ;;  %v211_v27 = vld [vmem:[%s420_s1 + $0x38] sm:$0xf0] }
   0xb   :  { %134 = vmatpush.bf16.msra.mxu0 %v234_v10  ;;  %v210_v28 = vor.u32 %v254_v25, %v209_v24  ;;  %v214_v29 = vor.u32 %v253_v26, %v211_v27  ;;  %v201_v30 = vld [vmem:[%s420_s1 + $0x20] sm:$0xf]  ;;  %v252_v31 = vld [vmem:[%s420_s1 + $0x24] sm:$0xf0]  ;;  %v251_v32 = vld [vmem:[%s420_s1 + $0x24] sm:$0xf] }
   0xc   :  { %147 = vmatpush.bf16.msra.mxu1 %v238_v11  ;;  %v203_v33 = vld [vmem:[%s420_s1 + $0x28] sm:$0xf0]  ;;  %v202_v34 = vor.u32 %v252_v31, %v201_v30  ;;  %v193_v36 = vld [vmem:[%s420_s1 + $0x10] sm:$0xf]  ;;  %v250_v37 = vld [vmem:[%s420_s1 + $0x14] sm:$0xf0] }
   0xd   :  { %v206_v35 = vor.u32 %v251_v32, %v203_v33  ;;  %v249_v38 = vld [vmem:[%s420_s1 + $0x14] sm:$0xf]  ;;  %v195_v39 = vld [vmem:[%s420_s1 + $0x18] sm:$0xf0]  ;;  %v194_v40 = vor.u32 %v250_v37, %v193_v36  ;;  %v185_v42 = vld [vmem:[%s420_s1] sm:$0xf] }
   0xe   :  { %v198_v41 = vor.u32 %v249_v38, %v195_v39  ;;  %v248_v43 = vld [vmem:[%s420_s1 + $0x4] sm:$0xf0]  ;;  %v247_v44 = vld [vmem:[%s420_s1 + $0x4] sm:$0xf]  ;;  %v187_v45 = vld [vmem:[%s420_s1 + $0x8] sm:$0xf0] }
   0xf   :  { %135 = vmatpush.bf16.msra.mxu0 %v226_v16  ;;  %v186_v46 = vor.u32 %v248_v43, %v185_v42  ;;  %v190_v47 = vor.u32 %v247_v44, %v187_v45  ;;  %v36_v48 = vld [vmem:[%s419_s0] sm:$0xf] }
  0x10   :  { %148 = vmatpush.bf16.msra.mxu1 %v230_v17  ;;  %v168_v49 = vld [vmem:[#allocation3] sm:$0x3] }
  0x11   :  { %v170_v50 = vperm.slane %v168_v49, 0  ;;  %v171_v51 = vperm.slane %v168_v49, 1 }
  0x13   :  { %136 = vmatpush.bf16.msra.mxu0 %v218_v22 }
  0x14   :  { %149 = vmatpush.bf16.msra.mxu1 %v222_v23 }
  0x17   :  { %137 = vmatpush.bf16.msra.mxu0 %v210_v28 }
  0x18   :  { %150 = vmatpush.bf16.msra.mxu1 %v214_v29 }
  0x1b   :  { %138 = vmatpush.bf16.msra.mxu0 %v202_v34 }
  0x1c   :  { %151 = vmatpush.bf16.msra.mxu1 %v206_v35 }
  0x1f   :  { %139 = vmatpush.bf16.msra.mxu0 %v194_v40 }
  0x20   :  { %152 = vmatpush.bf16.msra.mxu1 %v198_v41 }
  0x23   :  { %140 = vmatpush.bf16.msra.mxu0 %v186_v46 }
  0x24   :  { %153 = vmatpush.bf16.msra.mxu1 %v190_v47 }
  0x26   :  { %141 = vmatmul.bf16.vlgmr.msra.gmra.mxu0 %v36_v48 }
  0x27   :  { %154 = vmatmul.bf16.vlgmr.msra.gmra.mxu1 %v36_v48 }
  0xa3   :  { %v142_v52 = vpop.f32.mrf.mxu0 }
  0xa4   :  { %v174_v53 = vadd.f32 %v170_v50, %v142_v52  ;;  %v155_v54 = vpop.f32.mrf.mxu1 }
  0xa5   :  { %v175_v55 = vadd.f32 %v171_v51, %v155_v54 }
  0xa6   :  { %176 = vst [vmem:[%s422_s3] sm:$0xff] %v174_v53 }
  0xa7   :  { %177 = vst [vmem:[%s422_s3 + $0x8] sm:$0xff] %v175_v55 }
  0xab   :  { %v144_v56 = vpop.f32.mrf.mxu0 }
  0xac   :  { %v157_v57 = vpop.f32.mrf.mxu1 }
  0xad   :  { %182 = vsyncpa [#allocation4], 1 }

// kernel: custom_resnet_forward.34
= control target key start
LH: loop header
LB: loop body
LE: loop exit
PB: predicated region body
PF: predicated region fallthrough
CT: control target
= control target key end

     0   :  { %9 = vsyncpa [#allocation4], 0  ;;  %s1070_s15 = smov 0   ;;  %s1072_s16 = smov 0   ;;  %s1194_s0 = inlined_call_operand.vmem [shape: bf16[8,2304], index: 0, kind: input, shape index: {}]   ;;  %s1195_s1 = inlined_call_operand.vmem [shape: bf16[2304,256], index: 1, kind: input, shape index: {}]   ;;  %s1196_s2 = inlined_call_operand.hbm [shape: f32[1,256], index: 2, kind: input, shape index: {}]   ;;  %s1197_s3 = inlined_call_operand.vmem [shape: f32[8,256], index: 3, kind: input, shape index: {}]   ;;  %s1198_s4 = inlined_call_operand.vmem [shape: f32[8,256], index: 4, kind: output, shape index: {}]  }
   0x1   :  { %s1074_s17 = smov 0  }
   0x2 LB: > { %s770_s18 = sadd.s32 4294967295, %s1041_s17   ;;  %s27_s19 = sadd.s32 1, %s1037_s16  ;;  %s1041_s17 = sphi %s1074_s17, %s15_s17   ;;  %s1037_s16 = sphi %s1072_s16, %s1200_s16   ;;  %s1033_s15 = sphi %s1070_s15, %s1199_s15  }
   0x3   : > { %p28_p0 = scmp.ge.s32.totalorder %s27_s19, 9  ;;  %p771_p1 = scmp.ge.s32.totalorder %s1041_s17, 1 }
   0x4   : > { %p177_p2 = scmp.lt.s32.totalorder %s1041_s17, 10  ;;  %p957_p4 = scmp.eq.s32.totalorder %s770_s18, 0 }
   0x5   : > { %s1202_s19 = smov (%p28_p0, %s27_s19), 0  ;;  %s191_s22 = sshll.u32 %s1196_s2, 4  ;;  %s192_s22 = int_to_ptr.hbm [resolvable:$true] %s191_s22 }
   0x6   : > { %p178_p3 = pnand %p771_p1, %p177_p2  ;;  %s1043_s23 = smov [#allocation3]  }
   0x7   : > { %s193_s24 = sshll.u32 %s1043_s23, 4  ;;  %s194_s24 = int_to_ptr.vmem [resolvable:$true] %s193_s24 }
   0x8   : > { %p953_p5 = pneg %p178_p3  ;;  %247 = sbr.rel (%p178_p3) target bundleno = 215 (0xd7), region = 36 }
   0xa   : > { %p954_p6 = pnand %p957_p4, %p953_p5 }
   0xc   : > { %956 = dma.hbm_to_vmem [thread:$0]  (!%p954_p6), %s192_s22, 32, %s194_s24, [#allocation4]  }
   0xd   : > { %1028 = dma.done.wait (%p957_p4), [#allocation4], 32  }
   0xe   : > { %1030 = vsyncadd (%p957_p4), [#allocation4], 4294967264  ;;  %s777_s25 = sshll.u32 %s1033_s15, 1  ;;  %s779_s26 = sshll.u32 %s1033_s15, 5 }
   0xf   : > { %p304_p7 = scmp.lt.s32.totalorder %s777_s25, 17  ;;  %p313_p8 = scmp.lt.s32.totalorder %s779_s26, 287 }
  0x10   : > { %p782_p9 = scmp.ne.s32.totalorder %s1033_s15, 0 }
  0x11   : > { %s1204_s25 = smov (!%p304_p7, %s777_s25), 17  ;;  %s1206_s26 = smov (!%p313_p8, %s779_s26), 287 }
  0x12   : > { %s778_s27 = sshll.u32 %s1204_s25, 2  ;;  %s916_s5 = sshll.u32 %s1206_s26, 3 }
  0x13   : > { %s1099_s30 = scalar_lea.vmem %s1194_s0, %s778_s27  ;;  %s1104_s8 = scalar_lea.vmem %s1195_s1, %s916_s5 }
  0x14   : > { %347 = sbr.rel (%p782_p9) target bundleno = 28 (0x1c), region = 44 }
  0x19   : > { %v1044_v0 = vmov 0.0  }
  0x1a   : > { %348 = vst [vmem:[#allocation2] sm:$0xff] %v1044_v0 }
  0x1b   : > { %349 = vst [vmem:[#allocation2 + $0x8] sm:$0xff] %v1044_v0 }
  0x1c PF: > { %v841_v1 = vld [vmem:[%s1104_s8 + $0x70] sm:$0xf]  ;;  %v932_v2 = vld [vmem:[%s1104_s8 + $0x74] sm:$0xf0]  ;;  %v931_v6 = vld [vmem:[%s1104_s8 + $0x74] sm:$0xf] }
  0x1d   : > { %v905_v3 = vld [vmem:[%s1104_s8 + $0xf0] sm:$0xf]  ;;  %v842_v4 = vor.u32 %v932_v2, %v841_v1  ;;  %v948_v5 = vld [vmem:[%s1104_s8 + $0xf4] sm:$0xf0]  ;;  %v843_v7 = vld [vmem:[%s1104_s8 + $0x78] sm:$0xf0] }
  0x1e   : > { %v906_v8 = vor.u32 %v948_v5, %v905_v3  ;;  %v846_v9 = vor.u32 %v931_v6, %v843_v7  ;;  %v947_v10 = vld [vmem:[%s1104_s8 + $0xf4] sm:$0xf]  ;;  %v907_v11 = vld [vmem:[%s1104_s8 + $0xf8] sm:$0xf0]  ;;  %v833_v12 = vld [vmem:[%s1104_s8 + $0x60] sm:$0xf] }
  0x1f   : > { %552 = vmatpush.bf16.msra.mxu0 %v842_v4  ;;  %v910_v13 = vor.u32 %v947_v10, %v907_v11  ;;  %v930_v14 = vld [vmem:[%s1104_s8 + $0x64] sm:$0xf0]  ;;  %v897_v15 = vld [vmem:[%s1104_s8 + $0xe0] sm:$0xf]  ;;  %v929_v19 = vld [vmem:[%s1104_s8 + $0x64] sm:$0xf] }
  0x20   : > { %v946_v16 = vld [vmem:[%s1104_s8 + $0xe4] sm:$0xf0]  ;;  %565 = vmatpush.bf16.msra.mxu1 %v906_v8  ;;  %578 = vmatpush.bf16.msra.mxu2 %v846_v9  ;;  %v834_v17 = vor.u32 %v930_v14, %v833_v12  ;;  %v835_v20 = vld [vmem:[%s1104_s8 + $0x68] sm:$0xf0]  ;;  %v945_v21 = vld [vmem:[%s1104_s8 + $0xe4] sm:$0xf] }
  0x21   : > { %v898_v18 = vor.u32 %v946_v16, %v897_v15  ;;  %591 = vmatpush.bf16.msra.mxu3 %v910_v13  ;;  %v838_v22 = vor.u32 %v929_v19, %v835_v20  ;;  %v899_v23 = vld [vmem:[%s1104_s8 + $0xe8] sm:$0xf0]  ;;  %v825_v24 = vld [vmem:[%s1104_s8 + $0x50] sm:$0xf]  ;;  %v928_v25 = vld [vmem:[%s1104_s8 + $0x54] sm:$0xf0] }
  0x22   : > { %v902_v26 = vor.u32 %v945_v21, %v899_v23  ;;  %v889_v27 = vld [vmem:[%s1104_s8 + $0xd0] sm:$0xf]  ;;  %v944_v28 = vld [vmem:[%s1104_s8 + $0xd4] sm:$0xf0]  ;;  %v927_v29 = vld [vmem:[%s1104_s8 + $0x54] sm:$0xf]  ;;  %v826_v30 = vor.u32 %v928_v25, %v825_v24 }
  0x23   : > { %553 = vmatpush.bf16.msra.mxu0 %v834_v17  ;;  %v827_v31 = vld [vmem:[%s1104_s8 + $0x58] sm:$0xf0]  ;;  %v943_v32 = vld [vmem:[%s1104_s8 + $0xd4] sm:$0xf]  ;;  %v890_v34 = vor.u32 %v944_v28, %v889_v27  ;;  %v817_v36 = vld [vmem:[%s1104_s8 + $0x40] sm:$0xf] }
  0x24   : > { %v891_v33 = vld [vmem:[%s1104_s8 + $0xd8] sm:$0xf0]  ;;  %566 = vmatpush.bf16.msra.mxu1 %v898_v18  ;;  %579 = vmatpush.bf16.msra.mxu2 %v838_v22  ;;  %v830_v35 = vor.u32 %v927_v29, %v827_v31  ;;  %v926_v37 = vld [vmem:[%s1104_s8 + $0x44] sm:$0xf0]  ;;  %v881_v38 = vld [vmem:[%s1104_s8 + $0xc0] sm:$0xf] }
  0x25   : > { %592 = vmatpush.bf16.msra.mxu3 %v902_v26  ;;  %v894_v39 = vor.u32 %v943_v32, %v891_v33  ;;  %v942_v40 = vld [vmem:[%s1104_s8 + $0xc4] sm:$0xf0]  ;;  %v925_v41 = vld [vmem:[%s1104_s8 + $0x44] sm:$0xf]  ;;  %v819_v42 = vld [vmem:[%s1104_s8 + $0x48] sm:$0xf0]  ;;  %v818_v45 = vor.u32 %v926_v37, %v817_v36 }
  0x26   : > { %v941_v43 = vld [vmem:[%s1104_s8 + $0xc4] sm:$0xf]  ;;  %v883_v44 = vld [vmem:[%s1104_s8 + $0xc8] sm:$0xf0]  ;;  %v882_v46 = vor.u32 %v942_v40, %v881_v38  ;;  %v822_v47 = vor.u32 %v925_v41, %v819_v42  ;;  %v809_v48 = vld [vmem:[%s1104_s8 + $0x30] sm:$0xf] }
  0x27   : > { %554 = vmatpush.bf16.msra.mxu0 %v826_v30  ;;  %v924_v49 = vld [vmem:[%s1104_s8 + $0x34] sm:$0xf0]  ;;  %v873_v50 = vld [vmem:[%s1104_s8 + $0xb0] sm:$0xf]  ;;  %v886_v51 = vor.u32 %v941_v43, %v883_v44  ;;  %v923_v53 = vld [vmem:[%s1104_s8 + $0x34] sm:$0xf] }
  0x28   : > { %567 = vmatpush.bf16.msra.mxu1 %v890_v34  ;;  %580 = vmatpush.bf16.msra.mxu2 %v830_v35  ;;  %v940_v52 = vld [vmem:[%s1104_s8 + $0xb4] sm:$0xf0]  ;;  %v811_v54 = vld [vmem:[%s1104_s8 + $0x38] sm:$0xf0]  ;;  %v939_v55 = vld [vmem:[%s1104_s8 + $0xb4] sm:$0xf]  ;;  %v810_v57 = vor.u32 %v924_v49, %v809_v48 }
  0x29   : > { %593 = vmatpush.bf16.msra.mxu3 %v894_v39  ;;  %v875_v56 = vld [vmem:[%s1104_s8 + $0xb8] sm:$0xf0]  ;;  %v874_v58 = vor.u32 %v940_v52, %v873_v50  ;;  %v814_v59 = vor.u32 %v923_v53, %v811_v54  ;;  %v801_v60 = vld [vmem:[%s1104_s8 + $0x20] sm:$0xf]  ;;  %v922_v61 = vld [vmem:[%s1104_s8 + $0x24] sm:$0xf0] }
  0x2a   : > { %v865_v62 = vld [vmem:[%s1104_s8 + $0xa0] sm:$0xf]  ;;  %v878_v63 = vor.u32 %v939_v55, %v875_v56  ;;  %v938_v0 = vld [vmem:[%s1104_s8 + $0xa4] sm:$0xf0]  ;;  %v921_v1 = vld [vmem:[%s1104_s8 + $0x24] sm:$0xf]  ;;  %v802_v5 = vor.u32 %v922_v61, %v801_v60 }
  0x2b   : > { %555 = vmatpush.bf16.msra.mxu0 %v818_v45  ;;  %v803_v2 = vld [vmem:[%s1104_s8 + $0x28] sm:$0xf0]  ;;  %v937_v3 = vld [vmem:[%s1104_s8 + $0xa4] sm:$0xf]  ;;  %v866_v6 = vor.u32 %v938_v0, %v865_v62  ;;  %v793_v8 = vld [vmem:[%s1104_s8 + $0x10] sm:$0xf] }
  0x2c   : > { %568 = vmatpush.bf16.msra.mxu1 %v882_v46  ;;  %581 = vmatpush.bf16.msra.mxu2 %v822_v47  ;;  %v867_v4 = vld [vmem:[%s1104_s8 + $0xa8] sm:$0xf0]  ;;  %v806_v7 = vor.u32 %v921_v1, %v803_v2  ;;  %v920_v9 = vld [vmem:[%s1104_s8 + $0x14] sm:$0xf0]  ;;  %v857_v10 = vld [vmem:[%s1104_s8 + $0x90] sm:$0xf] }
  0x2d   : > { %594 = vmatpush.bf16.msra.mxu3 %v886_v51  ;;  %v870_v11 = vor.u32 %v937_v3, %v867_v4  ;;  %v936_v12 = vld [vmem:[%s1104_s8 + $0x94] sm:$0xf0]  ;;  %v919_v13 = vld [vmem:[%s1104_s8 + $0x14] sm:$0xf]  ;;  %v795_v14 = vld [vmem:[%s1104_s8 + $0x18] sm:$0xf0]  ;;  %v794_v17 = vor.u32 %v920_v9, %v793_v8 }
  0x2e   : > { %v935_v15 = vld [vmem:[%s1104_s8 + $0x94] sm:$0xf]  ;;  %v859_v16 = vld [vmem:[%s1104_s8 + $0x98] sm:$0xf0]  ;;  %v352_v18 = vld [vmem:[%s1099_s30] sm:$0xff]  ;;  %v858_v19 = vor.u32 %v936_v12, %v857_v10  ;;  %v798_v20 = vor.u32 %v919_v13, %v795_v14  ;;  %p911_p10 = scmp.ne.s32.totalorder %s1033_s15, 8 }
  0x2f   : > { %556 = vmatpush.bf16.msra.mxu0 %v810_v57  ;;  %v785_v21 = vld [vmem:[%s1104_s8] sm:$0xf]  ;;  %v918_v22 = vld [vmem:[%s1104_s8 + $0x4] sm:$0xf0]  ;;  %v862_v24 = vor.u32 %v935_v15, %v859_v16  ;;  %v917_v26 = vld [vmem:[%s1104_s8 + $0x4] sm:$0xf]  ;;  %v386_v30 = vunpack.c.l.b16 %v352_v18  ;;  %v387_v32 = vunpack.c.h.b16 %v352_v18 }
  0x30   : > { %569 = vmatpush.bf16.msra.mxu1 %v874_v58  ;;  %582 = vmatpush.bf16.msra.mxu2 %v814_v59  ;;  %v849_v23 = vld [vmem:[%s1104_s8 + $0x80] sm:$0xf]  ;;  %v934_v25 = vld [vmem:[%s1104_s8 + $0x84] sm:$0xf0]  ;;  %v787_v27 = vld [vmem:[%s1104_s8 + $0x8] sm:$0xf0]  ;;  %v786_v31 = vor.u32 %v918_v22, %v785_v21 }
  0x31   : > { %595 = vmatpush.bf16.msra.mxu3 %v878_v63  ;;  %v933_v28 = vld [vmem:[%s1104_s8 + $0x84] sm:$0xf]  ;;  %v851_v29 = vld [vmem:[%s1104_s8 + $0x88] sm:$0xf0]  ;;  %v850_v33 = vor.u32 %v934_v25, %v849_v23  ;;  %v790_v34 = vor.u32 %v917_v26, %v787_v27  ;;  %v388_v36 = vpack.c.b16 %v386_v30, %v386_v30  ;;  %v389_v37 = vpack.c.b16 %v387_v32, %v387_v32 }
  0x32   : > { %v854_v35 = vor.u32 %v933_v28, %v851_v29  ;;  %v350_v39 = vld [vmem:[#allocation2] sm:$0xff]  ;;  %v351_v44 = vld [vmem:[#allocation2 + $0x8] sm:$0xff] }
  0x33   : > { %557 = vmatpush.bf16.msra.mxu0 %v802_v5 }
  0x34   : > { %570 = vmatpush.bf16.msra.mxu1 %v866_v6  ;;  %583 = vmatpush.bf16.msra.mxu2 %v806_v7 }
  0x35   : > { %596 = vmatpush.bf16.msra.mxu3 %v870_v11 }
  0x37   : > { %558 = vmatpush.bf16.msra.mxu0 %v794_v17 }
  0x38   : > { %571 = vmatpush.bf16.msra.mxu1 %v858_v19  ;;  %584 = vmatpush.bf16.msra.mxu2 %v798_v20 }
  0x39   : > { %597 = vmatpush.bf16.msra.mxu3 %v862_v24 }
  0x3b   : > { %559 = vmatpush.bf16.msra.mxu0 %v786_v31 }
  0x3c   : > { %572 = vmatpush.bf16.msra.mxu1 %v850_v33  ;;  %585 = vmatpush.bf16.msra.mxu2 %v790_v34 }
  0x3d   : > { %598 = vmatpush.bf16.msra.mxu3 %v854_v35 }
  0x3e   : > { %560 = vmatmul.bf16.vlgmr.msra.gmra.mxu0 %v388_v36 }
  0x3f   : > { %573 = vmatmul.bf16.vlgmr.msra.gmra.mxu1 %v389_v37  ;;  %586 = vmatmul.bf16.vlgmr.msra.gmra.mxu2 %v388_v36 }
  0x40   : > { %599 = vmatmul.bf16.vlgmr.msra.gmra.mxu3 %v389_v37 }
  0xbb   : > { %v561_v38 = vpop.f32.mrf.mxu0 }
  0xbc   : > { %v574_v40 = vpop.f32.mrf.mxu1 }
  0xbd   : > { %v575_v41 = vadd.f32 %v574_v40, %v561_v38 }
  0xbf   : > { %v604_v42 = vadd.f32 %v575_v41, %v350_v39 }
  0xc1   : > { %606 = vst [vmem:[#allocation2] sm:$0xff] %v604_v42 }
  0xc2   : > { %v587_v43 = vpop.f32.mrf.mxu2 }
  0xc3   : > { %v600_v45 = vpop.f32.mrf.mxu3  ;;  %v563_v46 = vpop.f32.mrf.mxu0 }
  0xc4   : > { %v601_v47 = vadd.f32 %v600_v45, %v587_v43  ;;  %v576_v48 = vpop.f32.mrf.mxu1 }
  0xc6   : > { %v605_v49 = vadd.f32 %v601_v47, %v351_v44 }
  0xc7   : > { %611 = sbr.rel (%p911_p10) target bundleno = 215 (0xd7), region = 48 }
  0xc8   : > { %607 = vst [vmem:[#allocation2 + $0x8] sm:$0xff] %v605_v49 }
  0xca   : > { %v589_v50 = vpop.f32.mrf.mxu2 }
  0xcb   : > { %v602_v51 = vpop.f32.mrf.mxu3 }
  0xcc   : > { %v612_v52 = vld [vmem:[#allocation2] sm:$0xff]  ;;  %v614_v53 = vld [vmem:[#allocation3] sm:$0x3]  ;;  %v623_v58 = vld [vmem:[%s1197_s3 + $0x8] sm:$0xff] }
  0xcd   : > { %v616_v54 = vperm.slane %v614_v53, 0  ;;  %v617_v56 = vperm.slane %v614_v53, 1  ;;  %v622_v57 = vld [vmem:[%s1197_s3] sm:$0xff] }
  0xcf   : > { %v613_v55 = vld [vmem:[#allocation2 + $0x8] sm:$0xff]  ;;  %v620_v59 = vadd.f32 %v616_v54, %v612_v52 }
  0xd0   : > { %v621_v60 = vadd.f32 %v617_v56, %v613_v55 }
  0xd1   : > { %v624_v61 = vadd.f32 %v622_v57, %v620_v59 }
  0xd2   : > { %v625_v62 = vadd.f32 %v623_v58, %v621_v60 }
  0xd3   : > { %v626_v63 = vmax.f32 %v624_v61, 0.0 }
  0xd4   : > { %v627_v0 = vmax.f32 %v625_v62, 0.0 }
  0xd5   : > { %628 = vst [vmem:[%s1198_s4] sm:$0xff] %v626_v63 }
  0xd6   : > { %629 = vst [vmem:[%s1198_s4 + $0x8] sm:$0xff] %v627_v0 }
  0xd7 PF: > { %s15_s17 = sadd.s32 1, %s1041_s17   ;;  %s1199_s15 = smov %s1037_s16 }
  0xd8   : > { %p12_p11 = scmp.ge.s32.totalorder %s15_s17, 11   ;;  %s1200_s16 = smov %s1202_s19 }
  0xda   :  { %14 = sbr.rel (!%p12_p11) target bundleno = 2 (0x2), region = 86 }
  0xdf   :  { %660 = vsyncpa [#allocation4], 1 }
  0xe0   :  { %662 = vsyncpa [#allocation4 + $0x1], 1 }

// kernel: custom_resnet_forward.38
= control target key start
LH: loop header
LB: loop body
LE: loop exit
PB: predicated region body
PF: predicated region fallthrough
CT: control target
= control target key end

     0   :  { %s1101_s12 = smov 0   ;;  %s1103_s13 = smov 0   ;;  %s1306_s0 = inlined_call_operand.vmem [shape: bf16[8,256], index: 0, kind: input, shape index: {}]   ;;  %s1307_s1 = inlined_call_operand.vmem [shape: bf16[256,512], index: 1, kind: input, shape index: {}]   ;;  %s1308_s2 = inlined_call_operand.vmem [shape: f32[1,512], index: 2, kind: input, shape index: {}]   ;;  %s1309_s3 = inlined_call_operand.vmem [shape: f32[8,512], index: 3, kind: output, shape index: {}]  }
   0x1   :  { %s1105_s14 = smov 0   ;;  %s1107_s15 = smov 0  }
   0x2   :  { %s1109_s16 = smov 0  }
   0x3 LB: > { %s28_s17 = sadd.s32 1, %s1075_s15  ;;  %p76_p1 = scmp.ne.s32.totalorder %s1067_s13, %s1063_s12  ;;  %s1079_s16 = sphi %s1109_s16, %s13_s16   ;;  %s1075_s15 = sphi %s1107_s15, %s1313_s15   ;;  %s1071_s14 = sphi %s1105_s14, %s1312_s14   ;;  %s1067_s13 = sphi %s1103_s13, %s1311_s13   ;;  %s1063_s12 = sphi %s1101_s12, %s1310_s12  }
   0x4   : > { %p30_p0 = scmp.ge.s32.totalorder %s28_s17, 2  ;;  %p77_p2 = scmp.eq.s32.totalorder %s1079_s16, 0 }
   0x5   : > { %s69_s19 = sadd.s32 1, %s1067_s13  ;;  %p829_p5 = scmp.ge.s32.totalorder %s1079_s16, 2 }
   0x6   : > { %s1315_s17 = smov (%p30_p0, %s28_s17), 0  ;;  %p78_p3 = por %p77_p2, %p76_p1 }
   0x7   : > { %s65_s18 = ssub.s32 %s1075_s15, %s1315_s17  ;;  %169 = sbr.rel (%p829_p5) target bundleno = 48 (0x30), region = 20 }
   0x8   : > { %p67_p4 = scmp.eq.s32.totalorder %s65_s18, 0 }
   0xa   : > { %s1136_s20 = scalar_select %p67_p4, %s1067_s13, %s69_s19  }
   0xc   : > { %172 = sbr.rel (!%p78_p3) target bundleno = 48 (0x30), region = 24  ;;  %s174_s21 = sand.u32 (%p78_p3), 1, %s1067_s13  }
   0xd   : > { %s968_s22 = sshll.u32 (%p78_p3), %s1075_s15, 3  ;;  %s830_s23 = sshll.u32 (%p78_p3), %s174_s21, 8 }
   0xe   : > { %s1144_s26 = scalar_lea.vmem (%p78_p3), %s1307_s1, %s968_s22  ;;  %s1149_s27 = scalar_lea.vmem (%p78_p3), [#allocation3], %s830_s23 }
   0xf   : > { %v273_v0 = vld [vmem:[%s1144_s26] sm:$0xff] (%p78_p3)  ;;  %v275_v1 = vld [vmem:[%s1144_s26 + $0x10] sm:$0xff] (%p78_p3) }
  0x10   : > { %v277_v2 = vld [vmem:[%s1144_s26 + $0x20] sm:$0xff] (%p78_p3)  ;;  %274 = vst [vmem:[%s1149_s27] sm:$0xff] (%p78_p3), %v273_v0  ;;  %v279_v3 = vld [vmem:[%s1144_s26 + $0x30] sm:$0xff] (%p78_p3) }
  0x11   : > { %276 = vst [vmem:[%s1149_s27 + $0x8] sm:$0xff] %v275_v1  ;;  %v281_v4 = vld [vmem:[%s1144_s26 + $0x40] sm:$0xff]  ;;  %v283_v5 = vld [vmem:[%s1144_s26 + $0x50] sm:$0xff] }
  0x12   : > { %278 = vst [vmem:[%s1149_s27 + $0x10] sm:$0xff] %v277_v2  ;;  %v285_v6 = vld [vmem:[%s1144_s26 + $0x60] sm:$0xff]  ;;  %v287_v7 = vld [vmem:[%s1144_s26 + $0x70] sm:$0xff] }
  0x13   : > { %280 = vst [vmem:[%s1149_s27 + $0x18] sm:$0xff] %v279_v3  ;;  %v289_v8 = vld [vmem:[%s1144_s26 + $0x80] sm:$0xff]  ;;  %v291_v9 = vld [vmem:[%s1144_s26 + $0x90] sm:$0xff] }
  0x14   : > { %282 = vst [vmem:[%s1149_s27 + $0x20] sm:$0xff] %v281_v4  ;;  %v293_v10 = vld [vmem:[%s1144_s26 + $0xa0] sm:$0xff]  ;;  %v295_v11 = vld [vmem:[%s1144_s26 + $0xb0] sm:$0xff] }
  0x15   : > { %284 = vst [vmem:[%s1149_s27 + $0x28] sm:$0xff] %v283_v5  ;;  %v297_v12 = vld [vmem:[%s1144_s26 + $0xc0] sm:$0xff]  ;;  %v299_v13 = vld [vmem:[%s1144_s26 + $0xd0] sm:$0xff] }
  0x16   : > { %286 = vst [vmem:[%s1149_s27 + $0x30] sm:$0xff] %v285_v6  ;;  %v301_v14 = vld [vmem:[%s1144_s26 + $0xe0] sm:$0xff]  ;;  %v303_v15 = vld [vmem:[%s1144_s26 + $0xf0] sm:$0xff] }
  0x17   : > { %288 = vst [vmem:[%s1149_s27 + $0x38] sm:$0xff] %v287_v7  ;;  %v305_v16 = vld [vmem:[%s1144_s26 + $0x100] sm:$0xff]  ;;  %v307_v17 = vld [vmem:[%s1144_s26 + $0x110] sm:$0xff] }
  0x18   : > { %290 = vst [vmem:[%s1149_s27 + $0x40] sm:$0xff] %v289_v8  ;;  %v309_v18 = vld [vmem:[%s1144_s26 + $0x120] sm:$0xff]  ;;  %v311_v19 = vld [vmem:[%s1144_s26 + $0x130] sm:$0xff] }
  0x19   : > { %292 = vst [vmem:[%s1149_s27 + $0x48] sm:$0xff] %v291_v9  ;;  %v313_v20 = vld [vmem:[%s1144_s26 + $0x140] sm:$0xff]  ;;  %v315_v21 = vld [vmem:[%s1144_s26 + $0x150] sm:$0xff] }
  0x1a   : > { %294 = vst [vmem:[%s1149_s27 + $0x50] sm:$0xff] %v293_v10  ;;  %v317_v22 = vld [vmem:[%s1144_s26 + $0x160] sm:$0xff]  ;;  %v319_v23 = vld [vmem:[%s1144_s26 + $0x170] sm:$0xff] }
  0x1b   : > { %296 = vst [vmem:[%s1149_s27 + $0x58] sm:$0xff] %v295_v11  ;;  %v321_v24 = vld [vmem:[%s1144_s26 + $0x180] sm:$0xff]  ;;  %v323_v25 = vld [vmem:[%s1144_s26 + $0x190] sm:$0xff] }
  0x1c   : > { %298 = vst [vmem:[%s1149_s27 + $0x60] sm:$0xff] %v297_v12  ;;  %v325_v26 = vld [vmem:[%s1144_s26 + $0x1a0] sm:$0xff]  ;;  %v327_v27 = vld [vmem:[%s1144_s26 + $0x1b0] sm:$0xff] }
  0x1d   : > { %300 = vst [vmem:[%s1149_s27 + $0x68] sm:$0xff] %v299_v13  ;;  %v329_v28 = vld [vmem:[%s1144_s26 + $0x1c0] sm:$0xff]  ;;  %v331_v29 = vld [vmem:[%s1144_s26 + $0x1d0] sm:$0xff] }
  0x1e   : > { %302 = vst [vmem:[%s1149_s27 + $0x70] sm:$0xff] %v301_v14  ;;  %v333_v30 = vld [vmem:[%s1144_s26 + $0x1e0] sm:$0xff]  ;;  %v335_v31 = vld [vmem:[%s1144_s26 + $0x1f0] sm:$0xff] }
  0x1f   : > { %304 = vst [vmem:[%s1149_s27 + $0x78] sm:$0xff] %v303_v15 }
  0x20   : > { %306 = vst [vmem:[%s1149_s27 + $0x80] sm:$0xff] %v305_v16 }
  0x21   : > { %308 = vst [vmem:[%s1149_s27 + $0x88] sm:$0xff] %v307_v17 }
  0x22   : > { %310 = vst [vmem:[%s1149_s27 + $0x90] sm:$0xff] %v309_v18 }
  0x23   : > { %312 = vst [vmem:[%s1149_s27 + $0x98] sm:$0xff] %v311_v19 }
  0x24   : > { %314 = vst [vmem:[%s1149_s27 + $0xa0] sm:$0xff] %v313_v20 }
  0x25   : > { %316 = vst [vmem:[%s1149_s27 + $0xa8] sm:$0xff] %v315_v21 }
  0x26   : > { %318 = vst [vmem:[%s1149_s27 + $0xb0] sm:$0xff] %v317_v22 }
  0x27   : > { %320 = vst [vmem:[%s1149_s27 + $0xb8] sm:$0xff] %v319_v23 }
  0x28   : > { %322 = vst [vmem:[%s1149_s27 + $0xc0] sm:$0xff] %v321_v24 }
  0x29   : > { %324 = vst [vmem:[%s1149_s27 + $0xc8] sm:$0xff] %v323_v25 }
  0x2a   : > { %326 = vst [vmem:[%s1149_s27 + $0xd0] sm:$0xff] %v325_v26 }
  0x2b   : > { %328 = vst [vmem:[%s1149_s27 + $0xd8] sm:$0xff] %v327_v27 }
  0x2c   : > { %330 = vst [vmem:[%s1149_s27 + $0xe0] sm:$0xff] %v329_v28 }
  0x2d   : > { %332 = vst [vmem:[%s1149_s27 + $0xe8] sm:$0xff] %v331_v29 }
  0x2e   : > { %334 = vst [vmem:[%s1149_s27 + $0xf0] sm:$0xff] %v333_v30 }
  0x2f   : > { %336 = vst [vmem:[%s1149_s27 + $0xf8] sm:$0xff] %v335_v31 }
  0x30 PF: > { %p833_p6 = scmp.ge.s32.totalorder %s1079_s16, 1  ;;  %p349_p7 = scmp.lt.s32.totalorder %s1079_s16, 3 }
  0x32   : > { %p350_p8 = pnand %p833_p6, %p349_p7 }
  0x33   : > { %s356_s28 = sand.u32 (!%p350_p8), 1, %s1063_s12   ;;  %s835_s6 = sshll.u32 (!%p350_p8), %s1071_s14, 1 }
  0x34   : > { %353 = sbr.rel (%p350_p8) target bundleno = 233 (0xe9), region = 66  ;;  %s834_s29 = sshll.u32 (!%p350_p8), %s356_s28, 8 }
  0x35   : > { %s1215_s30 = scalar_lea.vmem (!%p350_p8), [#allocation3], %s834_s29  ;;  %p409_p9 = scmp.lt.s32.totalorder (!%p350_p8), %s835_s6, 3 }
  0x39   : > { %v896_v32 = vld [vmem:[%s1215_s30 + $0x70] sm:$0xf]  ;;  %v984_v33 = vld [vmem:[%s1215_s30 + $0x74] sm:$0xf0]  ;;  %v983_v37 = vld [vmem:[%s1215_s30 + $0x74] sm:$0xf] }
  0x3a   : > { %v960_v34 = vld [vmem:[%s1215_s30 + $0xf0] sm:$0xf]  ;;  %v897_v35 = vor.u32 %v984_v33, %v896_v32  ;;  %v1000_v36 = vld [vmem:[%s1215_s30 + $0xf4] sm:$0xf0]  ;;  %v898_v38 = vld [vmem:[%s1215_s30 + $0x78] sm:$0xf0] }
  0x3b   : > { %v961_v39 = vor.u32 %v1000_v36, %v960_v34  ;;  %v901_v40 = vor.u32 %v983_v37, %v898_v38  ;;  %v999_v41 = vld [vmem:[%s1215_s30 + $0xf4] sm:$0xf]  ;;  %v962_v42 = vld [vmem:[%s1215_s30 + $0xf8] sm:$0xf0]  ;;  %v888_v43 = vld [vmem:[%s1215_s30 + $0x60] sm:$0xf] }
  0x3c   : > { %631 = vmatpush.bf16.msra.mxu0 %v897_v35  ;;  %v965_v44 = vor.u32 %v999_v41, %v962_v42  ;;  %v982_v45 = vld [vmem:[%s1215_s30 + $0x64] sm:$0xf0]  ;;  %v952_v46 = vld [vmem:[%s1215_s30 + $0xe0] sm:$0xf]  ;;  %v981_v50 = vld [vmem:[%s1215_s30 + $0x64] sm:$0xf] }
  0x3d   : > { %v998_v47 = vld [vmem:[%s1215_s30 + $0xe4] sm:$0xf0]  ;;  %644 = vmatpush.bf16.msra.mxu1 %v961_v39  ;;  %657 = vmatpush.bf16.msra.mxu2 %v901_v40  ;;  %v889_v48 = vor.u32 %v982_v45, %v888_v43  ;;  %v890_v51 = vld [vmem:[%s1215_s30 + $0x68] sm:$0xf0]  ;;  %v997_v52 = vld [vmem:[%s1215_s30 + $0xe4] sm:$0xf] }
  0x3e   : > { %v953_v49 = vor.u32 %v998_v47, %v952_v46  ;;  %670 = vmatpush.bf16.msra.mxu3 %v965_v44  ;;  %v893_v53 = vor.u32 %v981_v50, %v890_v51  ;;  %v954_v54 = vld [vmem:[%s1215_s30 + $0xe8] sm:$0xf0]  ;;  %v880_v55 = vld [vmem:[%s1215_s30 + $0x50] sm:$0xf]  ;;  %v980_v56 = vld [vmem:[%s1215_s30 + $0x54] sm:$0xf0] }
  0x3f   : > { %v957_v57 = vor.u32 %v997_v52, %v954_v54  ;;  %v944_v58 = vld [vmem:[%s1215_s30 + $0xd0] sm:$0xf]  ;;  %v996_v59 = vld [vmem:[%s1215_s30 + $0xd4] sm:$0xf0]  ;;  %v979_v60 = vld [vmem:[%s1215_s30 + $0x54] sm:$0xf]  ;;  %v881_v61 = vor.u32 %v980_v56, %v880_v55 }
  0x40   : > { %632 = vmatpush.bf16.msra.mxu0 %v889_v48  ;;  %v882_v62 = vld [vmem:[%s1215_s30 + $0x58] sm:$0xf0]  ;;  %v995_v63 = vld [vmem:[%s1215_s30 + $0xd4] sm:$0xf]  ;;  %v945_v1 = vor.u32 %v996_v59, %v944_v58  ;;  %v872_v3 = vld [vmem:[%s1215_s30 + $0x40] sm:$0xf] }
  0x41   : > { %v946_v0 = vld [vmem:[%s1215_s30 + $0xd8] sm:$0xf0]  ;;  %645 = vmatpush.bf16.msra.mxu1 %v953_v49  ;;  %658 = vmatpush.bf16.msra.mxu2 %v893_v53  ;;  %v885_v2 = vor.u32 %v979_v60, %v882_v62  ;;  %v978_v4 = vld [vmem:[%s1215_s30 + $0x44] sm:$0xf0]  ;;  %v936_v5 = vld [vmem:[%s1215_s30 + $0xc0] sm:$0xf] }
  0x42   : > { %671 = vmatpush.bf16.msra.mxu3 %v957_v57  ;;  %v949_v6 = vor.u32 %v995_v63, %v946_v0  ;;  %v994_v7 = vld [vmem:[%s1215_s30 + $0xc4] sm:$0xf0]  ;;  %v977_v8 = vld [vmem:[%s1215_s30 + $0x44] sm:$0xf]  ;;  %v874_v9 = vld [vmem:[%s1215_s30 + $0x48] sm:$0xf0]  ;;  %v873_v12 = vor.u32 %v978_v4, %v872_v3 }
  0x43   : > { %v993_v10 = vld [vmem:[%s1215_s30 + $0xc4] sm:$0xf]  ;;  %v938_v11 = vld [vmem:[%s1215_s30 + $0xc8] sm:$0xf0]  ;;  %v937_v13 = vor.u32 %v994_v7, %v936_v5  ;;  %v877_v14 = vor.u32 %v977_v8, %v874_v9  ;;  %v864_v15 = vld [vmem:[%s1215_s30 + $0x30] sm:$0xf] }
  0x44   : > { %633 = vmatpush.bf16.msra.mxu0 %v881_v61  ;;  %v976_v16 = vld [vmem:[%s1215_s30 + $0x34] sm:$0xf0]  ;;  %v928_v17 = vld [vmem:[%s1215_s30 + $0xb0] sm:$0xf]  ;;  %v941_v18 = vor.u32 %v993_v10, %v938_v11  ;;  %v975_v20 = vld [vmem:[%s1215_s30 + $0x34] sm:$0xf] }
  0x45   : > { %646 = vmatpush.bf16.msra.mxu1 %v945_v1  ;;  %659 = vmatpush.bf16.msra.mxu2 %v885_v2  ;;  %v992_v19 = vld [vmem:[%s1215_s30 + $0xb4] sm:$0xf0]  ;;  %v866_v21 = vld [vmem:[%s1215_s30 + $0x38] sm:$0xf0]  ;;  %v991_v22 = vld [vmem:[%s1215_s30 + $0xb4] sm:$0xf]  ;;  %v865_v24 = vor.u32 %v976_v16, %v864_v15 }
  0x46   : > { %672 = vmatpush.bf16.msra.mxu3 %v949_v6  ;;  %v930_v23 = vld [vmem:[%s1215_s30 + $0xb8] sm:$0xf0]  ;;  %v929_v25 = vor.u32 %v992_v19, %v928_v17  ;;  %v869_v26 = vor.u32 %v975_v20, %v866_v21  ;;  %v856_v27 = vld [vmem:[%s1215_s30 + $0x20] sm:$0xf]  ;;  %v974_v28 = vld [vmem:[%s1215_s30 + $0x24] sm:$0xf0] }
  0x47   : > { %v920_v29 = vld [vmem:[%s1215_s30 + $0xa0] sm:$0xf]  ;;  %v933_v30 = vor.u32 %v991_v22, %v930_v23  ;;  %v990_v31 = vld [vmem:[%s1215_s30 + $0xa4] sm:$0xf0]  ;;  %v973_v32 = vld [vmem:[%s1215_s30 + $0x24] sm:$0xf]  ;;  %v857_v36 = vor.u32 %v974_v28, %v856_v27 }
  0x48   : > { %634 = vmatpush.bf16.msra.mxu0 %v873_v12  ;;  %v858_v33 = vld [vmem:[%s1215_s30 + $0x28] sm:$0xf0]  ;;  %v989_v34 = vld [vmem:[%s1215_s30 + $0xa4] sm:$0xf]  ;;  %v921_v37 = vor.u32 %v990_v31, %v920_v29  ;;  %v848_v39 = vld [vmem:[%s1215_s30 + $0x10] sm:$0xf] }
  0x49   : > { %647 = vmatpush.bf16.msra.mxu1 %v937_v13  ;;  %660 = vmatpush.bf16.msra.mxu2 %v877_v14  ;;  %v922_v35 = vld [vmem:[%s1215_s30 + $0xa8] sm:$0xf0]  ;;  %v861_v38 = vor.u32 %v973_v32, %v858_v33  ;;  %v972_v40 = vld [vmem:[%s1215_s30 + $0x14] sm:$0xf0]  ;;  %v912_v41 = vld [vmem:[%s1215_s30 + $0x90] sm:$0xf] }
  0x4a   : > { %673 = vmatpush.bf16.msra.mxu3 %v941_v18  ;;  %v925_v42 = vor.u32 %v989_v34, %v922_v35  ;;  %v988_v43 = vld [vmem:[%s1215_s30 + $0x94] sm:$0xf0]  ;;  %v971_v44 = vld [vmem:[%s1215_s30 + $0x14] sm:$0xf]  ;;  %v850_v45 = vld [vmem:[%s1215_s30 + $0x18] sm:$0xf0]  ;;  %v849_v48 = vor.u32 %v972_v40, %v848_v39 }
  0x4b   : > { %v987_v46 = vld [vmem:[%s1215_s30 + $0x94] sm:$0xf]  ;;  %v914_v47 = vld [vmem:[%s1215_s30 + $0x98] sm:$0xf0]  ;;  %v431_v49 = vld [vmem:[%s1306_s0] sm:$0xff]  ;;  %v913_v50 = vor.u32 %v988_v43, %v912_v41  ;;  %v853_v51 = vor.u32 %v971_v44, %v850_v45  ;;  %s1317_s6 = smov (!%p409_p9, %s835_s6), 3 }
  0x4c   : > { %635 = vmatpush.bf16.msra.mxu0 %v865_v24  ;;  %v840_v52 = vld [vmem:[%s1215_s30] sm:$0xf]  ;;  %v970_v53 = vld [vmem:[%s1215_s30 + $0x4] sm:$0xf0]  ;;  %v917_v55 = vor.u32 %v987_v46, %v914_v47  ;;  %v969_v57 = vld [vmem:[%s1215_s30 + $0x4] sm:$0xf]  ;;  %v465_v61 = vunpack.c.l.b16 %v431_v49  ;;  %v466_v63 = vunpack.c.h.b16 %v431_v49  ;;  %s411_s9 = scalar_lea.vmem %s1308_s2, %s1317_s6 }
  0x4d   : > { %648 = vmatpush.bf16.msra.mxu1 %v929_v25  ;;  %661 = vmatpush.bf16.msra.mxu2 %v869_v26  ;;  %v904_v54 = vld [vmem:[%s1215_s30 + $0x80] sm:$0xf]  ;;  %v986_v56 = vld [vmem:[%s1215_s30 + $0x84] sm:$0xf0]  ;;  %v842_v58 = vld [vmem:[%s1215_s30 + $0x8] sm:$0xf0]  ;;  %v841_v62 = vor.u32 %v970_v53, %v840_v52 }
  0x4e   : > { %674 = vmatpush.bf16.msra.mxu3 %v933_v30  ;;  %v985_v59 = vld [vmem:[%s1215_s30 + $0x84] sm:$0xf]  ;;  %v906_v60 = vld [vmem:[%s1215_s30 + $0x88] sm:$0xf0]  ;;  %v905_v0 = vor.u32 %v986_v56, %v904_v54  ;;  %v845_v1 = vor.u32 %v969_v57, %v842_v58  ;;  %v467_v3 = vpack.c.b16 %v465_v61, %v465_v61  ;;  %v468_v4 = vpack.c.b16 %v466_v63, %v466_v63  ;;  %v692_v5 = vld [vmem:[%s411_s9] sm:$0x3] }
  0x4f   : > { %v909_v2 = vor.u32 %v985_v59, %v906_v60  ;;  %s837_s10 = sshll.u32 %s1317_s6, 3  ;;  %v694_v7 = vperm.slane %v692_v5, 0  ;;  %v695_v12 = vperm.slane %v692_v5, 1 }
  0x50   : > { %636 = vmatpush.bf16.msra.mxu0 %v857_v36  ;;  %s421_s18 = scalar_lea.vmem %s1309_s3, %s837_s10 }
  0x51   : > { %649 = vmatpush.bf16.msra.mxu1 %v921_v37  ;;  %662 = vmatpush.bf16.msra.mxu2 %v861_v38 }
  0x52   : > { %675 = vmatpush.bf16.msra.mxu3 %v925_v42 }
  0x54   : > { %637 = vmatpush.bf16.msra.mxu0 %v849_v48 }
  0x55   : > { %650 = vmatpush.bf16.msra.mxu1 %v913_v50  ;;  %663 = vmatpush.bf16.msra.mxu2 %v853_v51 }
  0x56   : > { %676 = vmatpush.bf16.msra.mxu3 %v917_v55 }
  0x58   : > { %638 = vmatpush.bf16.msra.mxu0 %v841_v62 }
  0x59   : > { %651 = vmatpush.bf16.msra.mxu1 %v905_v0  ;;  %664 = vmatpush.bf16.msra.mxu2 %v845_v1 }
  0x5a   : > { %677 = vmatpush.bf16.msra.mxu3 %v909_v2 }
  0x5b   : > { %639 = vmatmul.bf16.vlgmr.msra.gmra.mxu0 %v467_v3 }
  0x5c   : > { %652 = vmatmul.bf16.vlgmr.msra.gmra.mxu1 %v468_v4  ;;  %665 = vmatmul.bf16.vlgmr.msra.gmra.mxu2 %v467_v3 }
  0x5d   : > { %678 = vmatmul.bf16.vlgmr.msra.gmra.mxu3 %v468_v4 }
  0xd8   : > { %v640_v6 = vpop.f32.mrf.mxu0 }
  0xd9   : > { %v653_v8 = vpop.f32.mrf.mxu1 }
  0xda   : > { %v654_v9 = vadd.f32 %v653_v8, %v640_v6 }
  0xdc   : > { %v698_v10 = vadd.f32 %v694_v7, %v654_v9 }
  0xde   : > { %700 = vst [vmem:[%s421_s18] sm:$0xff] %v698_v10 }
  0xdf   : > { %v666_v11 = vpop.f32.mrf.mxu2 }
  0xe0   : > { %v679_v13 = vpop.f32.mrf.mxu3  ;;  %v642_v14 = vpop.f32.mrf.mxu0 }
  0xe1   : > { %v680_v15 = vadd.f32 %v679_v13, %v666_v11  ;;  %v655_v16 = vpop.f32.mrf.mxu1 }
  0xe3   : > { %v699_v17 = vadd.f32 %v695_v12, %v680_v15 }
  0xe5   : > { %701 = vst [vmem:[%s421_s18 + $0x8] sm:$0xff] %v699_v17 }
  0xe7   : > { %v668_v18 = vpop.f32.mrf.mxu2 }
  0xe8   : > { %v681_v19 = vpop.f32.mrf.mxu3 }
  0xe9 PF: > { %s13_s16 = sadd.s32 1, %s1079_s16   ;;  %s1310_s12 = smov %s1067_s13 }
  0xea   : > { %p10_p10 = scmp.ge.s32.totalorder %s13_s16, 4   ;;  %s1311_s13 = smov %s1136_s20 }
  0xeb   : > { %s1312_s14 = smov %s1075_s15  ;;  %s1313_s15 = smov %s1315_s17 }
  0xec   :  { %12 = sbr.rel (!%p10_p10) target bundleno = 3 (0x3), region = 119 }

// kernel: custom_resnet_forward.37
= control target key start
LH: loop header
LB: loop body
LE: loop exit
PB: predicated region body
PF: predicated region fallthrough
CT: control target
= control target key end

     0   :  { %s1143_s12 = smov 0   ;;  %s1145_s13 = smov 0   ;;  %s1390_s0 = inlined_call_operand.vmem [shape: bf16[8,2304], index: 0, kind: input, shape index: {}]   ;;  %s1391_s1 = inlined_call_operand.vmem [shape: bf16[2304,512], index: 1, kind: input, shape index: {}]   ;;  %s1392_s2 = inlined_call_operand.vmem [shape: f32[1,512], index: 2, kind: input, shape index: {}]   ;;  %s1393_s3 = inlined_call_operand.vmem [shape: f32[8,512], index: 3, kind: output, shape index: {}]  }
   0x1   :  { %s1147_s14 = smov 0   ;;  %s1149_s15 = smov 0  }
   0x2   :  { %s1151_s16 = smov 0   ;;  %s1153_s17 = smov 0  }
   0x3   :  { %s1155_s18 = smov 0  }
   0x4 LB: > { %s25_s19 = sadd.s32 1, %s1112_s16  ;;  %s28_s20 = sadd.s32 1, %s1116_s17  ;;  %s1120_s18 = sphi %s1155_s18, %s13_s18   ;;  %s1116_s17 = sphi %s1153_s17, %s1399_s17   ;;  %s1112_s16 = sphi %s1151_s16, %s1398_s16   ;;  %s1108_s15 = sphi %s1149_s15, %s1397_s15   ;;  %s1104_s14 = sphi %s1147_s14, %s1396_s14   ;;  %s1100_s13 = sphi %s1145_s13, %s1395_s13   ;;  %s1096_s12 = sphi %s1143_s12, %s1394_s12  }
   0x5   : > { %p26_p0 = scmp.ge.s32.totalorder %s25_s19, 9  ;;  %p76_p1 = scmp.ne.s32.totalorder %s1100_s13, %s1096_s12 }
   0x6   : > { %p77_p2 = scmp.eq.s32.totalorder %s1120_s18, 0  ;;  %s69_s24 = sadd.s32 1, %s1100_s13 }
   0x7   : > { %s1401_s19 = smov (%p26_p0, %s25_s19), 0  ;;  %s1403_s20 = smov (!%p26_p0, %s28_s20), %s1116_s17 }
   0x8   : > { %p78_p3 = por %p77_p2, %p76_p1  ;;  %p30_p4 = scmp.ge.s32.totalorder %s1403_s20, 2 }
   0x9   : > { %s64_s21 = ssub.s32 %s1112_s16, %s1401_s19  ;;  %p831_p6 = scmp.ge.s32.totalorder %s1120_s18, 18 }
   0xa   : > { %s1405_s20 = smov (%p30_p4, %s1403_s20), 0 }
   0xb   : > { %s65_s22 = ssub.s32 %s1116_s17, %s1405_s20  ;;  %156 = sbr.rel (%p831_p6) target bundleno = 55 (0x37), region = 16 }
   0xc   : > { %s66_s23 = sor.u32 %s65_s22, %s64_s21 }
   0xd   : > { %p67_p5 = scmp.eq.s32.totalorder %s66_s23, 0 }
   0xf   : > { %s1194_s25 = scalar_select %p67_p5, %s1100_s13, %s69_s24  }
  0x10   : > { %172 = sbr.rel (!%p78_p3) target bundleno = 55 (0x37), region = 24  ;;  %s174_s26 = sand.u32 (%p78_p3), 1, %s1100_s13  }
  0x11   : > { %s834_s27 = sshll.u32 (%p78_p3), %s1116_s17, 1  ;;  %s832_s28 = sshll.u32 (%p78_p3), %s174_s26, 8 }
  0x12   : > { %s976_s29 = sshll.u32 (%p78_p3), %s1112_s16, 7  ;;  %s1208_s8 = scalar_lea.vmem (%p78_p3), [#allocation3], %s832_s28 }
  0x13   : > { %s180_s30 = sadd.s32 (%p78_p3), %s976_s29, %s834_s27 }
  0x14   : > { %s836_s4 = sshll.u32 (%p78_p3), %s180_s30, 2 }
  0x15   : > { %s1203_s7 = scalar_lea.vmem %s1391_s1, %s836_s4 }
  0x16   : > { %v273_v0 = vld [vmem:[%s1203_s7] sm:$0xff]  ;;  %v275_v1 = vld [vmem:[%s1203_s7 + $0x10] sm:$0xff] }
  0x17   : > { %v277_v2 = vld [vmem:[%s1203_s7 + $0x20] sm:$0xff]  ;;  %274 = vst [vmem:[%s1208_s8] sm:$0xff] %v273_v0  ;;  %v279_v3 = vld [vmem:[%s1203_s7 + $0x30] sm:$0xff] }
  0x18   : > { %276 = vst [vmem:[%s1208_s8 + $0x8] sm:$0xff] %v275_v1  ;;  %v281_v4 = vld [vmem:[%s1203_s7 + $0x40] sm:$0xff]  ;;  %v283_v5 = vld [vmem:[%s1203_s7 + $0x50] sm:$0xff] }
  0x19   : > { %278 = vst [vmem:[%s1208_s8 + $0x10] sm:$0xff] %v277_v2  ;;  %v285_v6 = vld [vmem:[%s1203_s7 + $0x60] sm:$0xff]  ;;  %v287_v7 = vld [vmem:[%s1203_s7 + $0x70] sm:$0xff] }
  0x1a   : > { %280 = vst [vmem:[%s1208_s8 + $0x18] sm:$0xff] %v279_v3  ;;  %v289_v8 = vld [vmem:[%s1203_s7 + $0x80] sm:$0xff]  ;;  %v291_v9 = vld [vmem:[%s1203_s7 + $0x90] sm:$0xff] }
  0x1b   : > { %282 = vst [vmem:[%s1208_s8 + $0x20] sm:$0xff] %v281_v4  ;;  %v293_v10 = vld [vmem:[%s1203_s7 + $0xa0] sm:$0xff]  ;;  %v295_v11 = vld [vmem:[%s1203_s7 + $0xb0] sm:$0xff] }
  0x1c   : > { %284 = vst [vmem:[%s1208_s8 + $0x28] sm:$0xff] %v283_v5  ;;  %v297_v12 = vld [vmem:[%s1203_s7 + $0xc0] sm:$0xff]  ;;  %v299_v13 = vld [vmem:[%s1203_s7 + $0xd0] sm:$0xff] }
  0x1d   : > { %286 = vst [vmem:[%s1208_s8 + $0x30] sm:$0xff] %v285_v6  ;;  %v301_v14 = vld [vmem:[%s1203_s7 + $0xe0] sm:$0xff]  ;;  %v303_v15 = vld [vmem:[%s1203_s7 + $0xf0] sm:$0xff] }
  0x1e   : > { %288 = vst [vmem:[%s1208_s8 + $0x38] sm:$0xff] %v287_v7  ;;  %v305_v16 = vld [vmem:[%s1203_s7 + $0x100] sm:$0xff]  ;;  %v307_v17 = vld [vmem:[%s1203_s7 + $0x110] sm:$0xff] }
  0x1f   : > { %290 = vst [vmem:[%s1208_s8 + $0x40] sm:$0xff] %v289_v8  ;;  %v309_v18 = vld [vmem:[%s1203_s7 + $0x120] sm:$0xff]  ;;  %v311_v19 = vld [vmem:[%s1203_s7 + $0x130] sm:$0xff] }
  0x20   : > { %292 = vst [vmem:[%s1208_s8 + $0x48] sm:$0xff] %v291_v9  ;;  %v313_v20 = vld [vmem:[%s1203_s7 + $0x140] sm:$0xff]  ;;  %v315_v21 = vld [vmem:[%s1203_s7 + $0x150] sm:$0xff] }
  0x21   : > { %294 = vst [vmem:[%s1208_s8 + $0x50] sm:$0xff] %v293_v10  ;;  %v317_v22 = vld [vmem:[%s1203_s7 + $0x160] sm:$0xff]  ;;  %v319_v23 = vld [vmem:[%s1203_s7 + $0x170] sm:$0xff] }
  0x22   : > { %296 = vst [vmem:[%s1208_s8 + $0x58] sm:$0xff] %v295_v11  ;;  %v321_v24 = vld [vmem:[%s1203_s7 + $0x180] sm:$0xff]  ;;  %v323_v25 = vld [vmem:[%s1203_s7 + $0x190] sm:$0xff] }
  0x23   : > { %298 = vst [vmem:[%s1208_s8 + $0x60] sm:$0xff] %v297_v12  ;;  %v325_v26 = vld [vmem:[%s1203_s7 + $0x1a0] sm:$0xff]  ;;  %v327_v27 = vld [vmem:[%s1203_s7 + $0x1b0] sm:$0xff] }
  0x24   : > { %300 = vst [vmem:[%s1208_s8 + $0x68] sm:$0xff] %v299_v13  ;;  %v329_v28 = vld [vmem:[%s1203_s7 + $0x1c0] sm:$0xff]  ;;  %v331_v29 = vld [vmem:[%s1203_s7 + $0x1d0] sm:$0xff] }
  0x25   : > { %302 = vst [vmem:[%s1208_s8 + $0x70] sm:$0xff] %v301_v14  ;;  %v333_v30 = vld [vmem:[%s1203_s7 + $0x1e0] sm:$0xff]  ;;  %v335_v31 = vld [vmem:[%s1203_s7 + $0x1f0] sm:$0xff] }
  0x26   : > { %304 = vst [vmem:[%s1208_s8 + $0x78] sm:$0xff] %v303_v15 }
  0x27   : > { %306 = vst [vmem:[%s1208_s8 + $0x80] sm:$0xff] %v305_v16 }
  0x28   : > { %308 = vst [vmem:[%s1208_s8 + $0x88] sm:$0xff] %v307_v17 }
  0x29   : > { %310 = vst [vmem:[%s1208_s8 + $0x90] sm:$0xff] %v309_v18 }
  0x2a   : > { %312 = vst [vmem:[%s1208_s8 + $0x98] sm:$0xff] %v311_v19 }
  0x2b   : > { %314 = vst [vmem:[%s1208_s8 + $0xa0] sm:$0xff] %v313_v20 }
  0x2c   : > { %316 = vst [vmem:[%s1208_s8 + $0xa8] sm:$0xff] %v315_v21 }
  0x2d   : > { %318 = vst [vmem:[%s1208_s8 + $0xb0] sm:$0xff] %v317_v22 }
  0x2e   : > { %320 = vst [vmem:[%s1208_s8 + $0xb8] sm:$0xff] %v319_v23 }
  0x2f   : > { %322 = vst [vmem:[%s1208_s8 + $0xc0] sm:$0xff] %v321_v24 }
  0x30   : > { %324 = vst [vmem:[%s1208_s8 + $0xc8] sm:$0xff] %v323_v25 }
  0x31   : > { %326 = vst [vmem:[%s1208_s8 + $0xd0] sm:$0xff] %v325_v26 }
  0x32   : > { %328 = vst [vmem:[%s1208_s8 + $0xd8] sm:$0xff] %v327_v27 }
  0x33   : > { %330 = vst [vmem:[%s1208_s8 + $0xe0] sm:$0xff] %v329_v28 }
  0x34   : > { %332 = vst [vmem:[%s1208_s8 + $0xe8] sm:$0xff] %v331_v29 }
  0x35   : > { %334 = vst [vmem:[%s1208_s8 + $0xf0] sm:$0xff] %v333_v30 }
  0x36   : > { %336 = vst [vmem:[%s1208_s8 + $0xf8] sm:$0xff] %v335_v31 }
  0x37 PF: > { %p837_p7 = scmp.ge.s32.totalorder %s1120_s18, 1  ;;  %p349_p8 = scmp.lt.s32.totalorder %s1120_s18, 19 }
  0x39   : > { %p350_p9 = pnand %p837_p7, %p349_p8 }
  0x3a   : > { %s356_s9 = sand.u32 (!%p350_p9), 1, %s1096_s12   ;;  %s839_s10 = sshll.u32 (!%p350_p9), %s1104_s14, 1 }
  0x3b   : > { %353 = sbr.rel (%p350_p9) target bundleno = 261 (0x105), region = 66  ;;  %s838_s11 = sshll.u32 (!%p350_p9), %s356_s9, 8 }
  0x3c   : > { %p399_p10 = scmp.lt.s32.totalorder (!%p350_p9), %s839_s10, 17  ;;  %s841_s21 = sshll.u32 (!%p350_p9), %s1108_s15, 1 }
  0x3d   : > { %p409_p11 = scmp.lt.s32.totalorder (!%p350_p9), %s841_s21, 3  ;;  %s1293_s5 = scalar_lea.vmem (!%p350_p9), [#allocation3], %s838_s11 }
  0x3e   : > { %p844_p12 = scmp.ne.s32.totalorder (!%p350_p9), %s1104_s14, 0 }
  0x40   : > { %s1407_s10 = smov (!%p399_p10, %s839_s10), 17  ;;  %s1409_s21 = smov (!%p409_p11, %s841_s21), 3 }
  0x41   : > { %s840_s22 = sshll.u32 %s1407_s10, 2  ;;  %s411_s12 = scalar_lea.vmem %s1392_s2, %s1409_s21 }
  0x42   : > { %s1279_s26 = scalar_lea.vmem %s1390_s0, %s840_s22  ;;  %s843_s29 = sshll.u32 %s1409_s21, 3 }
  0x43   : > { %s1291_s15 = scalar_lea.vmem %s1393_s3, %s843_s29  ;;  %426 = sbr.rel (%p844_p12) target bundleno = 75 (0x4b), region = 74 }
  0x48   : > { %v1122_v32 = vmov 0.0  }
  0x49   : > { %427 = vst [vmem:[#allocation2] sm:$0xff] %v1122_v32 }
  0x4a   : > { %428 = vst [vmem:[#allocation2 + $0x8] sm:$0xff] %v1122_v32 }
  0x4b PF: > { %v903_v33 = vld [vmem:[%s1293_s5 + $0x70] sm:$0xf]  ;;  %v992_v34 = vld [vmem:[%s1293_s5 + $0x74] sm:$0xf0]  ;;  %v991_v38 = vld [vmem:[%s1293_s5 + $0x74] sm:$0xf] }
  0x4c   : > { %v967_v35 = vld [vmem:[%s1293_s5 + $0xf0] sm:$0xf]  ;;  %v904_v36 = vor.u32 %v992_v34, %v903_v33  ;;  %v1008_v37 = vld [vmem:[%s1293_s5 + $0xf4] sm:$0xf0]  ;;  %v905_v39 = vld [vmem:[%s1293_s5 + $0x78] sm:$0xf0] }
  0x4d   : > { %v968_v40 = vor.u32 %v1008_v37, %v967_v35  ;;  %v908_v41 = vor.u32 %v991_v38, %v905_v39  ;;  %v1007_v42 = vld [vmem:[%s1293_s5 + $0xf4] sm:$0xf]  ;;  %v969_v43 = vld [vmem:[%s1293_s5 + $0xf8] sm:$0xf0]  ;;  %v895_v44 = vld [vmem:[%s1293_s5 + $0x60] sm:$0xf] }
  0x4e   : > { %631 = vmatpush.bf16.msra.mxu0 %v904_v36  ;;  %v972_v45 = vor.u32 %v1007_v42, %v969_v43  ;;  %v990_v46 = vld [vmem:[%s1293_s5 + $0x64] sm:$0xf0]  ;;  %v959_v47 = vld [vmem:[%s1293_s5 + $0xe0] sm:$0xf]  ;;  %v989_v51 = vld [vmem:[%s1293_s5 + $0x64] sm:$0xf] }
  0x4f   : > { %v1006_v48 = vld [vmem:[%s1293_s5 + $0xe4] sm:$0xf0]  ;;  %644 = vmatpush.bf16.msra.mxu1 %v968_v40  ;;  %657 = vmatpush.bf16.msra.mxu2 %v908_v41  ;;  %v896_v49 = vor.u32 %v990_v46, %v895_v44  ;;  %v897_v52 = vld [vmem:[%s1293_s5 + $0x68] sm:$0xf0]  ;;  %v1005_v53 = vld [vmem:[%s1293_s5 + $0xe4] sm:$0xf] }
  0x50   : > { %v960_v50 = vor.u32 %v1006_v48, %v959_v47  ;;  %670 = vmatpush.bf16.msra.mxu3 %v972_v45  ;;  %v900_v54 = vor.u32 %v989_v51, %v897_v52  ;;  %v961_v55 = vld [vmem:[%s1293_s5 + $0xe8] sm:$0xf0]  ;;  %v887_v56 = vld [vmem:[%s1293_s5 + $0x50] sm:$0xf]  ;;  %v988_v57 = vld [vmem:[%s1293_s5 + $0x54] sm:$0xf0] }
  0x51   : > { %v964_v58 = vor.u32 %v1005_v53, %v961_v55  ;;  %v951_v59 = vld [vmem:[%s1293_s5 + $0xd0] sm:$0xf]  ;;  %v1004_v60 = vld [vmem:[%s1293_s5 + $0xd4] sm:$0xf0]  ;;  %v987_v61 = vld [vmem:[%s1293_s5 + $0x54] sm:$0xf]  ;;  %v888_v62 = vor.u32 %v988_v57, %v887_v56 }
  0x52   : > { %632 = vmatpush.bf16.msra.mxu0 %v896_v49  ;;  %v889_v63 = vld [vmem:[%s1293_s5 + $0x58] sm:$0xf0]  ;;  %v1003_v0 = vld [vmem:[%s1293_s5 + $0xd4] sm:$0xf]  ;;  %v952_v2 = vor.u32 %v1004_v60, %v951_v59  ;;  %v879_v4 = vld [vmem:[%s1293_s5 + $0x40] sm:$0xf] }
  0x53   : > { %v953_v1 = vld [vmem:[%s1293_s5 + $0xd8] sm:$0xf0]  ;;  %645 = vmatpush.bf16.msra.mxu1 %v960_v50  ;;  %658 = vmatpush.bf16.msra.mxu2 %v900_v54  ;;  %v892_v3 = vor.u32 %v987_v61, %v889_v63  ;;  %v986_v5 = vld [vmem:[%s1293_s5 + $0x44] sm:$0xf0]  ;;  %v943_v6 = vld [vmem:[%s1293_s5 + $0xc0] sm:$0xf] }
  0x54   : > { %671 = vmatpush.bf16.msra.mxu3 %v964_v58  ;;  %v956_v7 = vor.u32 %v1003_v0, %v953_v1  ;;  %v1002_v8 = vld [vmem:[%s1293_s5 + $0xc4] sm:$0xf0]  ;;  %v985_v9 = vld [vmem:[%s1293_s5 + $0x44] sm:$0xf]  ;;  %v881_v10 = vld [vmem:[%s1293_s5 + $0x48] sm:$0xf0]  ;;  %v880_v13 = vor.u32 %v986_v5, %v879_v4 }
  0x55   : > { %v1001_v11 = vld [vmem:[%s1293_s5 + $0xc4] sm:$0xf]  ;;  %v945_v12 = vld [vmem:[%s1293_s5 + $0xc8] sm:$0xf0]  ;;  %v944_v14 = vor.u32 %v1002_v8, %v943_v6  ;;  %v884_v15 = vor.u32 %v985_v9, %v881_v10  ;;  %v871_v16 = vld [vmem:[%s1293_s5 + $0x30] sm:$0xf] }
  0x56   : > { %633 = vmatpush.bf16.msra.mxu0 %v888_v62  ;;  %v984_v17 = vld [vmem:[%s1293_s5 + $0x34] sm:$0xf0]  ;;  %v935_v18 = vld [vmem:[%s1293_s5 + $0xb0] sm:$0xf]  ;;  %v948_v19 = vor.u32 %v1001_v11, %v945_v12  ;;  %v983_v21 = vld [vmem:[%s1293_s5 + $0x34] sm:$0xf] }
  0x57   : > { %646 = vmatpush.bf16.msra.mxu1 %v952_v2  ;;  %659 = vmatpush.bf16.msra.mxu2 %v892_v3  ;;  %v1000_v20 = vld [vmem:[%s1293_s5 + $0xb4] sm:$0xf0]  ;;  %v873_v22 = vld [vmem:[%s1293_s5 + $0x38] sm:$0xf0]  ;;  %v999_v23 = vld [vmem:[%s1293_s5 + $0xb4] sm:$0xf]  ;;  %v872_v25 = vor.u32 %v984_v17, %v871_v16 }
  0x58   : > { %672 = vmatpush.bf16.msra.mxu3 %v956_v7  ;;  %v937_v24 = vld [vmem:[%s1293_s5 + $0xb8] sm:$0xf0]  ;;  %v936_v26 = vor.u32 %v1000_v20, %v935_v18  ;;  %v876_v27 = vor.u32 %v983_v21, %v873_v22  ;;  %v863_v28 = vld [vmem:[%s1293_s5 + $0x20] sm:$0xf]  ;;  %v982_v29 = vld [vmem:[%s1293_s5 + $0x24] sm:$0xf0] }
  0x59   : > { %v927_v30 = vld [vmem:[%s1293_s5 + $0xa0] sm:$0xf]  ;;  %v940_v31 = vor.u32 %v999_v23, %v937_v24  ;;  %v998_v32 = vld [vmem:[%s1293_s5 + $0xa4] sm:$0xf0]  ;;  %v981_v33 = vld [vmem:[%s1293_s5 + $0x24] sm:$0xf]  ;;  %v864_v37 = vor.u32 %v982_v29, %v863_v28 }
  0x5a   : > { %634 = vmatpush.bf16.msra.mxu0 %v880_v13  ;;  %v865_v34 = vld [vmem:[%s1293_s5 + $0x28] sm:$0xf0]  ;;  %v997_v35 = vld [vmem:[%s1293_s5 + $0xa4] sm:$0xf]  ;;  %v928_v38 = vor.u32 %v998_v32, %v927_v30  ;;  %v855_v40 = vld [vmem:[%s1293_s5 + $0x10] sm:$0xf] }
  0x5b   : > { %647 = vmatpush.bf16.msra.mxu1 %v944_v14  ;;  %660 = vmatpush.bf16.msra.mxu2 %v884_v15  ;;  %v929_v36 = vld [vmem:[%s1293_s5 + $0xa8] sm:$0xf0]  ;;  %v868_v39 = vor.u32 %v981_v33, %v865_v34  ;;  %v980_v41 = vld [vmem:[%s1293_s5 + $0x14] sm:$0xf0]  ;;  %v919_v42 = vld [vmem:[%s1293_s5 + $0x90] sm:$0xf] }
  0x5c   : > { %673 = vmatpush.bf16.msra.mxu3 %v948_v19  ;;  %v932_v43 = vor.u32 %v997_v35, %v929_v36  ;;  %v996_v44 = vld [vmem:[%s1293_s5 + $0x94] sm:$0xf0]  ;;  %v979_v45 = vld [vmem:[%s1293_s5 + $0x14] sm:$0xf]  ;;  %v857_v46 = vld [vmem:[%s1293_s5 + $0x18] sm:$0xf0]  ;;  %v856_v49 = vor.u32 %v980_v41, %v855_v40 }
  0x5d   : > { %v995_v47 = vld [vmem:[%s1293_s5 + $0x94] sm:$0xf]  ;;  %v921_v48 = vld [vmem:[%s1293_s5 + $0x98] sm:$0xf0]  ;;  %v920_v51 = vor.u32 %v996_v44, %v919_v42  ;;  %v860_v52 = vor.u32 %v979_v45, %v857_v46  ;;  %v847_v53 = vld [vmem:[%s1293_s5] sm:$0xf] }
  0x5e   : > { %635 = vmatpush.bf16.msra.mxu0 %v872_v25  ;;  %v431_v50 = vld [vmem:[%s1279_s26] sm:$0xff]  ;;  %v978_v54 = vld [vmem:[%s1293_s5 + $0x4] sm:$0xf0]  ;;  %v911_v55 = vld [vmem:[%s1293_s5 + $0x80] sm:$0xf]  ;;  %v924_v56 = vor.u32 %v995_v47, %v921_v48  ;;  %p973_p13 = scmp.ne.s32.totalorder %s1104_s14, 8 }
  0x5f   : > { %648 = vmatpush.bf16.msra.mxu1 %v936_v26  ;;  %661 = vmatpush.bf16.msra.mxu2 %v876_v27  ;;  %v994_v57 = vld [vmem:[%s1293_s5 + $0x84] sm:$0xf0]  ;;  %v977_v58 = vld [vmem:[%s1293_s5 + $0x4] sm:$0xf]  ;;  %v849_v59 = vld [vmem:[%s1293_s5 + $0x8] sm:$0xf0]  ;;  %v465_v62 = vunpack.c.l.b16 %v431_v50  ;;  %v848_v63 = vor.u32 %v978_v54, %v847_v53  ;;  %v466_v0 = vunpack.c.h.b16 %v431_v50 }
  0x60   : > { %674 = vmatpush.bf16.msra.mxu3 %v940_v31  ;;  %v993_v60 = vld [vmem:[%s1293_s5 + $0x84] sm:$0xf]  ;;  %v913_v61 = vld [vmem:[%s1293_s5 + $0x88] sm:$0xf0]  ;;  %v912_v1 = vor.u32 %v994_v57, %v911_v55  ;;  %v852_v2 = vor.u32 %v977_v58, %v849_v59  ;;  %v429_v7 = vld [vmem:[#allocation2] sm:$0xff] }
  0x61   : > { %v916_v3 = vor.u32 %v993_v60, %v913_v61  ;;  %v467_v4 = vpack.c.b16 %v465_v62, %v465_v62  ;;  %v468_v5 = vpack.c.b16 %v466_v0, %v466_v0  ;;  %v430_v12 = vld [vmem:[#allocation2 + $0x8] sm:$0xff] }
  0x62   : > { %636 = vmatpush.bf16.msra.mxu0 %v864_v37 }
  0x63   : > { %649 = vmatpush.bf16.msra.mxu1 %v928_v38  ;;  %662 = vmatpush.bf16.msra.mxu2 %v868_v39 }
  0x64   : > { %675 = vmatpush.bf16.msra.mxu3 %v932_v43 }
  0x66   : > { %637 = vmatpush.bf16.msra.mxu0 %v856_v49 }
  0x67   : > { %650 = vmatpush.bf16.msra.mxu1 %v920_v51  ;;  %663 = vmatpush.bf16.msra.mxu2 %v860_v52 }
  0x68   : > { %676 = vmatpush.bf16.msra.mxu3 %v924_v56 }
  0x6a   : > { %638 = vmatpush.bf16.msra.mxu0 %v848_v63 }
  0x6b   : > { %651 = vmatpush.bf16.msra.mxu1 %v912_v1  ;;  %664 = vmatpush.bf16.msra.mxu2 %v852_v2 }
  0x6c   : > { %677 = vmatpush.bf16.msra.mxu3 %v916_v3 }
  0x6d   : > { %639 = vmatmul.bf16.vlgmr.msra.gmra.mxu0 %v467_v4 }
  0x6e   : > { %652 = vmatmul.bf16.vlgmr.msra.gmra.mxu1 %v468_v5  ;;  %665 = vmatmul.bf16.vlgmr.msra.gmra.mxu2 %v467_v4 }
  0x6f   : > { %678 = vmatmul.bf16.vlgmr.msra.gmra.mxu3 %v468_v5 }
  0xea   : > { %v640_v6 = vpop.f32.mrf.mxu0 }
  0xeb   : > { %v653_v8 = vpop.f32.mrf.mxu1 }
  0xec   : > { %v654_v9 = vadd.f32 %v653_v8, %v640_v6 }
  0xee   : > { %v683_v10 = vadd.f32 %v654_v9, %v429_v7 }
  0xf0   : > { %685 = vst [vmem:[#allocation2] sm:$0xff] %v683_v10 }
  0xf1   : > { %v666_v11 = vpop.f32.mrf.mxu2 }
  0xf2   : > { %v679_v13 = vpop.f32.mrf.mxu3  ;;  %v642_v14 = vpop.f32.mrf.mxu0 }
  0xf3   : > { %v680_v15 = vadd.f32 %v679_v13, %v666_v11  ;;  %v655_v16 = vpop.f32.mrf.mxu1 }
  0xf5   : > { %v684_v17 = vadd.f32 %v680_v15, %v430_v12 }
  0xf6   : > { %690 = sbr.rel (%p973_p13) target bundleno = 261 (0x105), region = 78 }
  0xf7   : > { %686 = vst [vmem:[#allocation2 + $0x8] sm:$0xff] %v684_v17 }
  0xf9   : > { %v668_v18 = vpop.f32.mrf.mxu2 }
  0xfa   : > { %v681_v19 = vpop.f32.mrf.mxu3 }
  0xfb   : > { %v691_v20 = vld [vmem:[#allocation2] sm:$0xff] }
  0xfc   : > { %v693_v21 = vld [vmem:[%s411_s12] sm:$0x3] }
  0xfd   : > { %v695_v23 = vperm.slane %v693_v21, 0  ;;  %v696_v24 = vperm.slane %v693_v21, 1 }
  0xfe   : > { %v692_v22 = vld [vmem:[#allocation2 + $0x8] sm:$0xff] }
  0xff   : > { %v699_v25 = vadd.f32 %v695_v23, %v691_v20  ;;  %v700_v26 = vadd.f32 %v696_v24, %v692_v22 }
 0x101   : > { %v701_v27 = vmax.f32 %v699_v25, 0.0  ;;  %v702_v28 = vmax.f32 %v700_v26, 0.0 }
 0x103   : > { %703 = vst [vmem:[%s1291_s15] sm:$0xff] %v701_v27 }
 0x104   : > { %704 = vst [vmem:[%s1291_s15 + $0x8] sm:$0xff] %v702_v28 }
 0x105 PF: > { %s13_s18 = sadd.s32 1, %s1120_s18   ;;  %s1394_s12 = smov %s1100_s13 }
 0x106   : > { %p10_p0 = scmp.ge.s32.totalorder %s13_s18, 20   ;;  %s1395_s13 = smov %s1194_s25 }
 0x107   : > { %s1396_s14 = smov %s1112_s16  ;;  %s1397_s15 = smov %s1116_s17 }
 0x108   : > { %s1398_s16 = smov %s1401_s19  ;;  %s1399_s17 = smov %s1405_s20 }
 0x109   :  { %12 = sbr.rel (!%p10_p0) target bundleno = 4 (0x4), region = 119 }

// kernel: custom_resnet_forward.39
= control target key start
LH: loop header
LB: loop body
LE: loop exit
PB: predicated region body
PF: predicated region fallthrough
CT: control target
= control target key end

     0   :  { %s1235_s15 = smov 0   ;;  %s1237_s16 = smov 0   ;;  %s1489_s0 = inlined_call_operand.vmem [shape: bf16[8,4608], index: 0, kind: input, shape index: {}]   ;;  %s1490_s1 = inlined_call_operand.vmem [shape: bf16[4608,512], index: 1, kind: input, shape index: {}]   ;;  %s1491_s2 = inlined_call_operand.vmem [shape: f32[1,512], index: 2, kind: input, shape index: {}]   ;;  %s1492_s3 = inlined_call_operand.vmem [shape: f32[8,512], index: 3, kind: input, shape index: {}]   ;;  %s1493_s4 = inlined_call_operand.vmem [shape: f32[8,512], index: 4, kind: output, shape index: {}]  }
   0x1   :  { %s1239_s17 = smov 0   ;;  %s1241_s18 = smov 0  }
   0x2   :  { %s1243_s19 = smov 0   ;;  %s1245_s20 = smov 0  }
   0x3   :  { %s1247_s21 = smov 0  }
   0x4 LB: > { %s26_s22 = sadd.s32 1, %s1199_s19  ;;  %s29_s23 = sadd.s32 1, %s1203_s20  ;;  %s1207_s21 = sphi %s1247_s21, %s14_s21   ;;  %s1203_s20 = sphi %s1245_s20, %s1499_s20   ;;  %s1199_s19 = sphi %s1243_s19, %s1498_s19   ;;  %s1195_s18 = sphi %s1241_s18, %s1497_s18   ;;  %s1191_s17 = sphi %s1239_s17, %s1496_s17   ;;  %s1187_s16 = sphi %s1237_s16, %s1495_s16   ;;  %s1183_s15 = sphi %s1235_s15, %s1494_s15  }
   0x5   : > { %p27_p0 = scmp.ge.s32.totalorder %s26_s22, 18  ;;  %p77_p1 = scmp.ne.s32.totalorder %s1187_s16, %s1183_s15 }
   0x6   : > { %p78_p2 = scmp.eq.s32.totalorder %s1207_s21, 0  ;;  %s70_s27 = sadd.s32 1, %s1187_s16 }
   0x7   : > { %s1501_s22 = smov (%p27_p0, %s26_s22), 0  ;;  %s1503_s23 = smov (!%p27_p0, %s29_s23), %s1203_s20 }
   0x8   : > { %p79_p3 = por %p78_p2, %p77_p1  ;;  %p31_p4 = scmp.ge.s32.totalorder %s1503_s23, 2 }
   0x9   : > { %s65_s24 = ssub.s32 %s1199_s19, %s1501_s22  ;;  %p916_p6 = scmp.ge.s32.totalorder %s1207_s21, 36 }
   0xa   : > { %s1505_s23 = smov (%p31_p4, %s1503_s23), 0 }
   0xb   : > { %s66_s25 = ssub.s32 %s1203_s20, %s1505_s23  ;;  %185 = sbr.rel (%p916_p6) target bundleno = 55 (0x37), region = 16 }
   0xc   : > { %s67_s26 = sor.u32 %s66_s25, %s65_s24 }
   0xd   : > { %p68_p5 = scmp.eq.s32.totalorder %s67_s26, 0 }
   0xf   : > { %s1286_s28 = scalar_select %p68_p5, %s1187_s16, %s70_s27  }
  0x10   : > { %201 = sbr.rel (!%p79_p3) target bundleno = 55 (0x37), region = 24  ;;  %s203_s29 = sand.u32 (%p79_p3), 1, %s1187_s16  }
  0x11   : > { %s919_s30 = sshll.u32 (%p79_p3), %s1203_s20, 1  ;;  %s917_s5 = sshll.u32 (%p79_p3), %s203_s29, 8 }
  0x12   : > { %s1063_s6 = sshll.u32 (%p79_p3), %s1199_s19, 7  ;;  %s1300_s12 = scalar_lea.vmem (%p79_p3), [#allocation3], %s917_s5 }
  0x13   : > { %s209_s7 = sadd.s32 (%p79_p3), %s1063_s6, %s919_s30 }
  0x14   : > { %s921_s8 = sshll.u32 (%p79_p3), %s209_s7, 2 }
  0x15   : > { %s1295_s11 = scalar_lea.vmem %s1490_s1, %s921_s8 }
  0x16   : > { %v302_v0 = vld [vmem:[%s1295_s11] sm:$0xff]  ;;  %v304_v1 = vld [vmem:[%s1295_s11 + $0x10] sm:$0xff] }
  0x17   : > { %v306_v2 = vld [vmem:[%s1295_s11 + $0x20] sm:$0xff]  ;;  %303 = vst [vmem:[%s1300_s12] sm:$0xff] %v302_v0  ;;  %v308_v3 = vld [vmem:[%s1295_s11 + $0x30] sm:$0xff] }
  0x18   : > { %305 = vst [vmem:[%s1300_s12 + $0x8] sm:$0xff] %v304_v1  ;;  %v310_v4 = vld [vmem:[%s1295_s11 + $0x40] sm:$0xff]  ;;  %v312_v5 = vld [vmem:[%s1295_s11 + $0x50] sm:$0xff] }
  0x19   : > { %307 = vst [vmem:[%s1300_s12 + $0x10] sm:$0xff] %v306_v2  ;;  %v314_v6 = vld [vmem:[%s1295_s11 + $0x60] sm:$0xff]  ;;  %v316_v7 = vld [vmem:[%s1295_s11 + $0x70] sm:$0xff] }
  0x1a   : > { %309 = vst [vmem:[%s1300_s12 + $0x18] sm:$0xff] %v308_v3  ;;  %v318_v8 = vld [vmem:[%s1295_s11 + $0x80] sm:$0xff]  ;;  %v320_v9 = vld [vmem:[%s1295_s11 + $0x90] sm:$0xff] }
  0x1b   : > { %311 = vst [vmem:[%s1300_s12 + $0x20] sm:$0xff] %v310_v4  ;;  %v322_v10 = vld [vmem:[%s1295_s11 + $0xa0] sm:$0xff]  ;;  %v324_v11 = vld [vmem:[%s1295_s11 + $0xb0] sm:$0xff] }
  0x1c   : > { %313 = vst [vmem:[%s1300_s12 + $0x28] sm:$0xff] %v312_v5  ;;  %v326_v12 = vld [vmem:[%s1295_s11 + $0xc0] sm:$0xff]  ;;  %v328_v13 = vld [vmem:[%s1295_s11 + $0xd0] sm:$0xff] }
  0x1d   : > { %315 = vst [vmem:[%s1300_s12 + $0x30] sm:$0xff] %v314_v6  ;;  %v330_v14 = vld [vmem:[%s1295_s11 + $0xe0] sm:$0xff]  ;;  %v332_v15 = vld [vmem:[%s1295_s11 + $0xf0] sm:$0xff] }
  0x1e   : > { %317 = vst [vmem:[%s1300_s12 + $0x38] sm:$0xff] %v316_v7  ;;  %v334_v16 = vld [vmem:[%s1295_s11 + $0x100] sm:$0xff]  ;;  %v336_v17 = vld [vmem:[%s1295_s11 + $0x110] sm:$0xff] }
  0x1f   : > { %319 = vst [vmem:[%s1300_s12 + $0x40] sm:$0xff] %v318_v8  ;;  %v338_v18 = vld [vmem:[%s1295_s11 + $0x120] sm:$0xff]  ;;  %v340_v19 = vld [vmem:[%s1295_s11 + $0x130] sm:$0xff] }
  0x20   : > { %321 = vst [vmem:[%s1300_s12 + $0x48] sm:$0xff] %v320_v9  ;;  %v342_v20 = vld [vmem:[%s1295_s11 + $0x140] sm:$0xff]  ;;  %v344_v21 = vld [vmem:[%s1295_s11 + $0x150] sm:$0xff] }
  0x21   : > { %323 = vst [vmem:[%s1300_s12 + $0x50] sm:$0xff] %v322_v10  ;;  %v346_v22 = vld [vmem:[%s1295_s11 + $0x160] sm:$0xff]  ;;  %v348_v23 = vld [vmem:[%s1295_s11 + $0x170] sm:$0xff] }
  0x22   : > { %325 = vst [vmem:[%s1300_s12 + $0x58] sm:$0xff] %v324_v11  ;;  %v350_v24 = vld [vmem:[%s1295_s11 + $0x180] sm:$0xff]  ;;  %v352_v25 = vld [vmem:[%s1295_s11 + $0x190] sm:$0xff] }
  0x23   : > { %327 = vst [vmem:[%s1300_s12 + $0x60] sm:$0xff] %v326_v12  ;;  %v354_v26 = vld [vmem:[%s1295_s11 + $0x1a0] sm:$0xff]  ;;  %v356_v27 = vld [vmem:[%s1295_s11 + $0x1b0] sm:$0xff] }
  0x24   : > { %329 = vst [vmem:[%s1300_s12 + $0x68] sm:$0xff] %v328_v13  ;;  %v358_v28 = vld [vmem:[%s1295_s11 + $0x1c0] sm:$0xff]  ;;  %v360_v29 = vld [vmem:[%s1295_s11 + $0x1d0] sm:$0xff] }
  0x25   : > { %331 = vst [vmem:[%s1300_s12 + $0x70] sm:$0xff] %v330_v14  ;;  %v362_v30 = vld [vmem:[%s1295_s11 + $0x1e0] sm:$0xff]  ;;  %v364_v31 = vld [vmem:[%s1295_s11 + $0x1f0] sm:$0xff] }
  0x26   : > { %333 = vst [vmem:[%s1300_s12 + $0x78] sm:$0xff] %v332_v15 }
  0x27   : > { %335 = vst [vmem:[%s1300_s12 + $0x80] sm:$0xff] %v334_v16 }
  0x28   : > { %337 = vst [vmem:[%s1300_s12 + $0x88] sm:$0xff] %v336_v17 }
  0x29   : > { %339 = vst [vmem:[%s1300_s12 + $0x90] sm:$0xff] %v338_v18 }
  0x2a   : > { %341 = vst [vmem:[%s1300_s12 + $0x98] sm:$0xff] %v340_v19 }
  0x2b   : > { %343 = vst [vmem:[%s1300_s12 + $0xa0] sm:$0xff] %v342_v20 }
  0x2c   : > { %345 = vst [vmem:[%s1300_s12 + $0xa8] sm:$0xff] %v344_v21 }
  0x2d   : > { %347 = vst [vmem:[%s1300_s12 + $0xb0] sm:$0xff] %v346_v22 }
  0x2e   : > { %349 = vst [vmem:[%s1300_s12 + $0xb8] sm:$0xff] %v348_v23 }
  0x2f   : > { %351 = vst [vmem:[%s1300_s12 + $0xc0] sm:$0xff] %v350_v24 }
  0x30   : > { %353 = vst [vmem:[%s1300_s12 + $0xc8] sm:$0xff] %v352_v25 }
  0x31   : > { %355 = vst [vmem:[%s1300_s12 + $0xd0] sm:$0xff] %v354_v26 }
  0x32   : > { %357 = vst [vmem:[%s1300_s12 + $0xd8] sm:$0xff] %v356_v27 }
  0x33   : > { %359 = vst [vmem:[%s1300_s12 + $0xe0] sm:$0xff] %v358_v28 }
  0x34   : > { %361 = vst [vmem:[%s1300_s12 + $0xe8] sm:$0xff] %v360_v29 }
  0x35   : > { %363 = vst [vmem:[%s1300_s12 + $0xf0] sm:$0xff] %v362_v30 }
  0x36   : > { %365 = vst [vmem:[%s1300_s12 + $0xf8] sm:$0xff] %v364_v31 }
  0x37 PF: > { %p922_p7 = scmp.ge.s32.totalorder %s1207_s21, 1  ;;  %p391_p8 = scmp.lt.s32.totalorder %s1207_s21, 37 }
  0x39   : > { %p392_p9 = pnand %p922_p7, %p391_p8 }
  0x3a   : > { %s398_s13 = sand.u32 (!%p392_p9), 1, %s1183_s15   ;;  %s924_s14 = sshll.u32 (!%p392_p9), %s1191_s17, 1 }
  0x3b   : > { %395 = sbr.rel (%p392_p9) target bundleno = 264 (0x108), region = 70  ;;  %s923_s24 = sshll.u32 (!%p392_p9), %s398_s13, 8 }
  0x3c   : > { %p452_p10 = scmp.lt.s32.totalorder (!%p392_p9), %s924_s14, 35  ;;  %s926_s25 = sshll.u32 (!%p392_p9), %s1195_s18, 1 }
  0x3d   : > { %p462_p11 = scmp.lt.s32.totalorder (!%p392_p9), %s926_s25, 3  ;;  %s1390_s13 = scalar_lea.vmem (!%p392_p9), [#allocation3], %s923_s24 }
  0x3e   : > { %p931_p12 = scmp.ne.s32.totalorder (!%p392_p9), %s1191_s17, 0 }
  0x40   : > { %s1507_s14 = smov (!%p452_p10, %s924_s14), 35  ;;  %s1509_s25 = smov (!%p462_p11, %s926_s25), 3 }
  0x41   : > { %s925_s26 = sshll.u32 %s1507_s14, 2  ;;  %s464_s15 = scalar_lea.vmem %s1491_s2, %s1509_s25 }
  0x42   : > { %s1371_s30 = scalar_lea.vmem %s1489_s0, %s925_s26  ;;  %s928_s7 = sshll.u32 %s1509_s25, 3 }
  0x43   : > { %s1383_s18 = scalar_lea.vmem %s1492_s3, %s928_s7  ;;  %s1388_s12 = scalar_lea.vmem %s1493_s4, %s928_s7 }
  0x44   : > { %489 = sbr.rel (%p931_p12) target bundleno = 76 (0x4c), region = 78 }
  0x49   : > { %v1209_v32 = vmov 0.0  }
  0x4a   : > { %490 = vst [vmem:[#allocation2] sm:$0xff] %v1209_v32 }
  0x4b   : > { %491 = vst [vmem:[#allocation2 + $0x8] sm:$0xff] %v1209_v32 }
  0x4c PF: > { %v990_v33 = vld [vmem:[%s1390_s13 + $0x70] sm:$0xf]  ;;  %v1079_v34 = vld [vmem:[%s1390_s13 + $0x74] sm:$0xf0]  ;;  %v1078_v38 = vld [vmem:[%s1390_s13 + $0x74] sm:$0xf] }
  0x4d   : > { %v1054_v35 = vld [vmem:[%s1390_s13 + $0xf0] sm:$0xf]  ;;  %v991_v36 = vor.u32 %v1079_v34, %v990_v33  ;;  %v1095_v37 = vld [vmem:[%s1390_s13 + $0xf4] sm:$0xf0]  ;;  %v992_v39 = vld [vmem:[%s1390_s13 + $0x78] sm:$0xf0] }
  0x4e   : > { %v1055_v40 = vor.u32 %v1095_v37, %v1054_v35  ;;  %v995_v41 = vor.u32 %v1078_v38, %v992_v39  ;;  %v1094_v42 = vld [vmem:[%s1390_s13 + $0xf4] sm:$0xf]  ;;  %v1056_v43 = vld [vmem:[%s1390_s13 + $0xf8] sm:$0xf0]  ;;  %v982_v44 = vld [vmem:[%s1390_s13 + $0x60] sm:$0xf] }
  0x4f   : > { %694 = vmatpush.bf16.msra.mxu0 %v991_v36  ;;  %v1059_v45 = vor.u32 %v1094_v42, %v1056_v43  ;;  %v1077_v46 = vld [vmem:[%s1390_s13 + $0x64] sm:$0xf0]  ;;  %v1046_v47 = vld [vmem:[%s1390_s13 + $0xe0] sm:$0xf]  ;;  %v1076_v51 = vld [vmem:[%s1390_s13 + $0x64] sm:$0xf] }
  0x50   : > { %v1093_v48 = vld [vmem:[%s1390_s13 + $0xe4] sm:$0xf0]  ;;  %707 = vmatpush.bf16.msra.mxu1 %v1055_v40  ;;  %720 = vmatpush.bf16.msra.mxu2 %v995_v41  ;;  %v983_v49 = vor.u32 %v1077_v46, %v982_v44  ;;  %v984_v52 = vld [vmem:[%s1390_s13 + $0x68] sm:$0xf0]  ;;  %v1092_v53 = vld [vmem:[%s1390_s13 + $0xe4] sm:$0xf] }
  0x51   : > { %v1047_v50 = vor.u32 %v1093_v48, %v1046_v47  ;;  %733 = vmatpush.bf16.msra.mxu3 %v1059_v45  ;;  %v987_v54 = vor.u32 %v1076_v51, %v984_v52  ;;  %v1048_v55 = vld [vmem:[%s1390_s13 + $0xe8] sm:$0xf0]  ;;  %v974_v56 = vld [vmem:[%s1390_s13 + $0x50] sm:$0xf]  ;;  %v1075_v57 = vld [vmem:[%s1390_s13 + $0x54] sm:$0xf0] }
  0x52   : > { %v1051_v58 = vor.u32 %v1092_v53, %v1048_v55  ;;  %v1038_v59 = vld [vmem:[%s1390_s13 + $0xd0] sm:$0xf]  ;;  %v1091_v60 = vld [vmem:[%s1390_s13 + $0xd4] sm:$0xf0]  ;;  %v1074_v61 = vld [vmem:[%s1390_s13 + $0x54] sm:$0xf]  ;;  %v975_v62 = vor.u32 %v1075_v57, %v974_v56 }
  0x53   : > { %695 = vmatpush.bf16.msra.mxu0 %v983_v49  ;;  %v976_v63 = vld [vmem:[%s1390_s13 + $0x58] sm:$0xf0]  ;;  %v1090_v0 = vld [vmem:[%s1390_s13 + $0xd4] sm:$0xf]  ;;  %v1039_v2 = vor.u32 %v1091_v60, %v1038_v59  ;;  %v966_v4 = vld [vmem:[%s1390_s13 + $0x40] sm:$0xf] }
  0x54   : > { %v1040_v1 = vld [vmem:[%s1390_s13 + $0xd8] sm:$0xf0]  ;;  %708 = vmatpush.bf16.msra.mxu1 %v1047_v50  ;;  %721 = vmatpush.bf16.msra.mxu2 %v987_v54  ;;  %v979_v3 = vor.u32 %v1074_v61, %v976_v63  ;;  %v1073_v5 = vld [vmem:[%s1390_s13 + $0x44] sm:$0xf0]  ;;  %v1030_v6 = vld [vmem:[%s1390_s13 + $0xc0] sm:$0xf] }
  0x55   : > { %734 = vmatpush.bf16.msra.mxu3 %v1051_v58  ;;  %v1043_v7 = vor.u32 %v1090_v0, %v1040_v1  ;;  %v1089_v8 = vld [vmem:[%s1390_s13 + $0xc4] sm:$0xf0]  ;;  %v1072_v9 = vld [vmem:[%s1390_s13 + $0x44] sm:$0xf]  ;;  %v968_v10 = vld [vmem:[%s1390_s13 + $0x48] sm:$0xf0]  ;;  %v967_v13 = vor.u32 %v1073_v5, %v966_v4 }
  0x56   : > { %v1088_v11 = vld [vmem:[%s1390_s13 + $0xc4] sm:$0xf]  ;;  %v1032_v12 = vld [vmem:[%s1390_s13 + $0xc8] sm:$0xf0]  ;;  %v1031_v14 = vor.u32 %v1089_v8, %v1030_v6  ;;  %v971_v15 = vor.u32 %v1072_v9, %v968_v10  ;;  %v958_v16 = vld [vmem:[%s1390_s13 + $0x30] sm:$0xf] }
  0x57   : > { %696 = vmatpush.bf16.msra.mxu0 %v975_v62  ;;  %v1071_v17 = vld [vmem:[%s1390_s13 + $0x34] sm:$0xf0]  ;;  %v1022_v18 = vld [vmem:[%s1390_s13 + $0xb0] sm:$0xf]  ;;  %v1035_v19 = vor.u32 %v1088_v11, %v1032_v12  ;;  %v1070_v21 = vld [vmem:[%s1390_s13 + $0x34] sm:$0xf] }
  0x58   : > { %709 = vmatpush.bf16.msra.mxu1 %v1039_v2  ;;  %722 = vmatpush.bf16.msra.mxu2 %v979_v3  ;;  %v1087_v20 = vld [vmem:[%s1390_s13 + $0xb4] sm:$0xf0]  ;;  %v960_v22 = vld [vmem:[%s1390_s13 + $0x38] sm:$0xf0]  ;;  %v1086_v23 = vld [vmem:[%s1390_s13 + $0xb4] sm:$0xf]  ;;  %v959_v25 = vor.u32 %v1071_v17, %v958_v16 }
  0x59   : > { %735 = vmatpush.bf16.msra.mxu3 %v1043_v7  ;;  %v1024_v24 = vld [vmem:[%s1390_s13 + $0xb8] sm:$0xf0]  ;;  %v1023_v26 = vor.u32 %v1087_v20, %v1022_v18  ;;  %v963_v27 = vor.u32 %v1070_v21, %v960_v22  ;;  %v950_v28 = vld [vmem:[%s1390_s13 + $0x20] sm:$0xf]  ;;  %v1069_v29 = vld [vmem:[%s1390_s13 + $0x24] sm:$0xf0] }
  0x5a   : > { %v1014_v30 = vld [vmem:[%s1390_s13 + $0xa0] sm:$0xf]  ;;  %v1027_v31 = vor.u32 %v1086_v23, %v1024_v24  ;;  %v1085_v32 = vld [vmem:[%s1390_s13 + $0xa4] sm:$0xf0]  ;;  %v1068_v33 = vld [vmem:[%s1390_s13 + $0x24] sm:$0xf]  ;;  %v951_v37 = vor.u32 %v1069_v29, %v950_v28 }
  0x5b   : > { %697 = vmatpush.bf16.msra.mxu0 %v967_v13  ;;  %v952_v34 = vld [vmem:[%s1390_s13 + $0x28] sm:$0xf0]  ;;  %v1084_v35 = vld [vmem:[%s1390_s13 + $0xa4] sm:$0xf]  ;;  %v1015_v38 = vor.u32 %v1085_v32, %v1014_v30  ;;  %v942_v40 = vld [vmem:[%s1390_s13 + $0x10] sm:$0xf] }
  0x5c   : > { %710 = vmatpush.bf16.msra.mxu1 %v1031_v14  ;;  %723 = vmatpush.bf16.msra.mxu2 %v971_v15  ;;  %v1016_v36 = vld [vmem:[%s1390_s13 + $0xa8] sm:$0xf0]  ;;  %v955_v39 = vor.u32 %v1068_v33, %v952_v34  ;;  %v1067_v41 = vld [vmem:[%s1390_s13 + $0x14] sm:$0xf0]  ;;  %v1006_v42 = vld [vmem:[%s1390_s13 + $0x90] sm:$0xf] }
  0x5d   : > { %736 = vmatpush.bf16.msra.mxu3 %v1035_v19  ;;  %v1019_v43 = vor.u32 %v1084_v35, %v1016_v36  ;;  %v1083_v44 = vld [vmem:[%s1390_s13 + $0x94] sm:$0xf0]  ;;  %v1066_v45 = vld [vmem:[%s1390_s13 + $0x14] sm:$0xf]  ;;  %v944_v46 = vld [vmem:[%s1390_s13 + $0x18] sm:$0xf0]  ;;  %v943_v49 = vor.u32 %v1067_v41, %v942_v40 }
  0x5e   : > { %v1082_v47 = vld [vmem:[%s1390_s13 + $0x94] sm:$0xf]  ;;  %v1008_v48 = vld [vmem:[%s1390_s13 + $0x98] sm:$0xf0]  ;;  %v1007_v51 = vor.u32 %v1083_v44, %v1006_v42  ;;  %v947_v52 = vor.u32 %v1066_v45, %v944_v46  ;;  %v934_v53 = vld [vmem:[%s1390_s13] sm:$0xf] }
  0x5f   : > { %698 = vmatpush.bf16.msra.mxu0 %v959_v25  ;;  %v494_v50 = vld [vmem:[%s1371_s30] sm:$0xff]  ;;  %v1065_v54 = vld [vmem:[%s1390_s13 + $0x4] sm:$0xf0]  ;;  %v998_v55 = vld [vmem:[%s1390_s13 + $0x80] sm:$0xf]  ;;  %v1011_v56 = vor.u32 %v1082_v47, %v1008_v48  ;;  %p1060_p13 = scmp.ne.s32.totalorder %s1191_s17, 17 }
  0x60   : > { %711 = vmatpush.bf16.msra.mxu1 %v1023_v26  ;;  %724 = vmatpush.bf16.msra.mxu2 %v963_v27  ;;  %v1081_v57 = vld [vmem:[%s1390_s13 + $0x84] sm:$0xf0]  ;;  %v1064_v58 = vld [vmem:[%s1390_s13 + $0x4] sm:$0xf]  ;;  %v936_v59 = vld [vmem:[%s1390_s13 + $0x8] sm:$0xf0]  ;;  %v528_v62 = vunpack.c.l.b16 %v494_v50  ;;  %v935_v63 = vor.u32 %v1065_v54, %v934_v53  ;;  %v529_v0 = vunpack.c.h.b16 %v494_v50 }
  0x61   : > { %737 = vmatpush.bf16.msra.mxu3 %v1027_v31  ;;  %v1080_v60 = vld [vmem:[%s1390_s13 + $0x84] sm:$0xf]  ;;  %v1000_v61 = vld [vmem:[%s1390_s13 + $0x88] sm:$0xf0]  ;;  %v999_v1 = vor.u32 %v1081_v57, %v998_v55  ;;  %v939_v2 = vor.u32 %v1064_v58, %v936_v59  ;;  %v492_v7 = vld [vmem:[#allocation2] sm:$0xff] }
  0x62   : > { %v1003_v3 = vor.u32 %v1080_v60, %v1000_v61  ;;  %v530_v4 = vpack.c.b16 %v528_v62, %v528_v62  ;;  %v531_v5 = vpack.c.b16 %v529_v0, %v529_v0  ;;  %v493_v12 = vld [vmem:[#allocation2 + $0x8] sm:$0xff] }
  0x63   : > { %699 = vmatpush.bf16.msra.mxu0 %v951_v37 }
  0x64   : > { %712 = vmatpush.bf16.msra.mxu1 %v1015_v38  ;;  %725 = vmatpush.bf16.msra.mxu2 %v955_v39 }
  0x65   : > { %738 = vmatpush.bf16.msra.mxu3 %v1019_v43 }
  0x67   : > { %700 = vmatpush.bf16.msra.mxu0 %v943_v49 }
  0x68   : > { %713 = vmatpush.bf16.msra.mxu1 %v1007_v51  ;;  %726 = vmatpush.bf16.msra.mxu2 %v947_v52 }
  0x69   : > { %739 = vmatpush.bf16.msra.mxu3 %v1011_v56 }
  0x6b   : > { %701 = vmatpush.bf16.msra.mxu0 %v935_v63 }
  0x6c   : > { %714 = vmatpush.bf16.msra.mxu1 %v999_v1  ;;  %727 = vmatpush.bf16.msra.mxu2 %v939_v2 }
  0x6d   : > { %740 = vmatpush.bf16.msra.mxu3 %v1003_v3 }
  0x6e   : > { %702 = vmatmul.bf16.vlgmr.msra.gmra.mxu0 %v530_v4 }
  0x6f   : > { %715 = vmatmul.bf16.vlgmr.msra.gmra.mxu1 %v531_v5  ;;  %728 = vmatmul.bf16.vlgmr.msra.gmra.mxu2 %v530_v4 }
  0x70   : > { %741 = vmatmul.bf16.vlgmr.msra.gmra.mxu3 %v531_v5 }
  0xeb   : > { %v703_v6 = vpop.f32.mrf.mxu0 }
  0xec   : > { %v716_v8 = vpop.f32.mrf.mxu1 }
  0xed   : > { %v717_v9 = vadd.f32 %v716_v8, %v703_v6 }
  0xef   : > { %v746_v10 = vadd.f32 %v717_v9, %v492_v7 }
  0xf1   : > { %748 = vst [vmem:[#allocation2] sm:$0xff] %v746_v10 }
  0xf2   : > { %v729_v11 = vpop.f32.mrf.mxu2 }
  0xf3   : > { %v742_v13 = vpop.f32.mrf.mxu3  ;;  %v705_v14 = vpop.f32.mrf.mxu0 }
  0xf4   : > { %v743_v15 = vadd.f32 %v742_v13, %v729_v11  ;;  %v718_v16 = vpop.f32.mrf.mxu1 }
  0xf6   : > { %v747_v17 = vadd.f32 %v743_v15, %v493_v12 }
  0xf7   : > { %753 = sbr.rel (%p1060_p13) target bundleno = 264 (0x108), region = 82 }
  0xf8   : > { %749 = vst [vmem:[#allocation2 + $0x8] sm:$0xff] %v747_v17 }
  0xfa   : > { %v731_v18 = vpop.f32.mrf.mxu2 }
  0xfb   : > { %v744_v19 = vpop.f32.mrf.mxu3 }
  0xfc   : > { %v754_v20 = vld [vmem:[#allocation2] sm:$0xff]  ;;  %v765_v26 = vld [vmem:[%s1383_s18 + $0x8] sm:$0xff] }
  0xfd   : > { %v756_v21 = vld [vmem:[%s464_s15] sm:$0x3] }
  0xfe   : > { %v758_v22 = vperm.slane %v756_v21, 0  ;;  %v759_v24 = vperm.slane %v756_v21, 1  ;;  %v764_v25 = vld [vmem:[%s1383_s18] sm:$0xff] }
  0xff   : > { %v755_v23 = vld [vmem:[#allocation2 + $0x8] sm:$0xff] }
 0x100   : > { %v762_v27 = vadd.f32 %v758_v22, %v754_v20  ;;  %v763_v28 = vadd.f32 %v759_v24, %v755_v23 }
 0x102   : > { %v766_v29 = vadd.f32 %v764_v25, %v762_v27  ;;  %v767_v30 = vadd.f32 %v765_v26, %v763_v28 }
 0x104   : > { %v768_v31 = vmax.f32 %v766_v29, 0.0  ;;  %v769_v32 = vmax.f32 %v767_v30, 0.0 }
 0x106   : > { %770 = vst [vmem:[%s1388_s12] sm:$0xff] %v768_v31 }
 0x107   : > { %771 = vst [vmem:[%s1388_s12 + $0x8] sm:$0xff] %v769_v32 }
 0x108 PF: > { %s14_s21 = sadd.s32 1, %s1207_s21   ;;  %s1494_s15 = smov %s1187_s16 }
 0x109   : > { %p11_p0 = scmp.ge.s32.totalorder %s14_s21, 38   ;;  %s1495_s16 = smov %s1286_s28 }
 0x10a   : > { %s1496_s17 = smov %s1199_s19  ;;  %s1497_s18 = smov %s1203_s20 }
 0x10b   : > { %s1498_s19 = smov %s1501_s22  ;;  %s1499_s20 = smov %s1505_s23 }
 0x10c   :  { %13 = sbr.rel (!%p11_p0) target bundleno = 4 (0x4), region = 126 }

// kernel: custom_resnet_forward.40
= control target key start
LH: loop header
LB: loop body
LE: loop exit
PB: predicated region body
PF: predicated region fallthrough
CT: control target
= control target key end

     0   :  { %s1143_s12 = smov 0   ;;  %s1145_s13 = smov 0   ;;  %s1390_s0 = inlined_call_operand.vmem [shape: bf16[8,4608], index: 0, kind: input, shape index: {}]   ;;  %s1391_s1 = inlined_call_operand.vmem [shape: bf16[4608,512], index: 1, kind: input, shape index: {}]   ;;  %s1392_s2 = inlined_call_operand.vmem [shape: f32[1,512], index: 2, kind: input, shape index: {}]   ;;  %s1393_s3 = inlined_call_operand.vmem [shape: f32[8,512], index: 3, kind: output, shape index: {}]  }
   0x1   :  { %s1147_s14 = smov 0   ;;  %s1149_s15 = smov 0  }
   0x2   :  { %s1151_s16 = smov 0   ;;  %s1153_s17 = smov 0  }
   0x3   :  { %s1155_s18 = smov 0  }
   0x4 LB: > { %s25_s19 = sadd.s32 1, %s1112_s16  ;;  %s28_s20 = sadd.s32 1, %s1116_s17  ;;  %s1120_s18 = sphi %s1155_s18, %s13_s18   ;;  %s1116_s17 = sphi %s1153_s17, %s1399_s17   ;;  %s1112_s16 = sphi %s1151_s16, %s1398_s16   ;;  %s1108_s15 = sphi %s1149_s15, %s1397_s15   ;;  %s1104_s14 = sphi %s1147_s14, %s1396_s14   ;;  %s1100_s13 = sphi %s1145_s13, %s1395_s13   ;;  %s1096_s12 = sphi %s1143_s12, %s1394_s12  }
   0x5   : > { %p26_p0 = scmp.ge.s32.totalorder %s25_s19, 18  ;;  %p76_p1 = scmp.ne.s32.totalorder %s1100_s13, %s1096_s12 }
   0x6   : > { %p77_p2 = scmp.eq.s32.totalorder %s1120_s18, 0  ;;  %s69_s24 = sadd.s32 1, %s1100_s13 }
   0x7   : > { %s1401_s19 = smov (%p26_p0, %s25_s19), 0  ;;  %s1403_s20 = smov (!%p26_p0, %s28_s20), %s1116_s17 }
   0x8   : > { %p78_p3 = por %p77_p2, %p76_p1  ;;  %p30_p4 = scmp.ge.s32.totalorder %s1403_s20, 2 }
   0x9   : > { %s64_s21 = ssub.s32 %s1112_s16, %s1401_s19  ;;  %p831_p6 = scmp.ge.s32.totalorder %s1120_s18, 36 }
   0xa   : > { %s1405_s20 = smov (%p30_p4, %s1403_s20), 0 }
   0xb   : > { %s65_s22 = ssub.s32 %s1116_s17, %s1405_s20  ;;  %156 = sbr.rel (%p831_p6) target bundleno = 55 (0x37), region = 16 }
   0xc   : > { %s66_s23 = sor.u32 %s65_s22, %s64_s21 }
   0xd   : > { %p67_p5 = scmp.eq.s32.totalorder %s66_s23, 0 }
   0xf   : > { %s1194_s25 = scalar_select %p67_p5, %s1100_s13, %s69_s24  }
  0x10   : > { %172 = sbr.rel (!%p78_p3) target bundleno = 55 (0x37), region = 24  ;;  %s174_s26 = sand.u32 (%p78_p3), 1, %s1100_s13  }
  0x11   : > { %s834_s27 = sshll.u32 (%p78_p3), %s1116_s17, 1  ;;  %s832_s28 = sshll.u32 (%p78_p3), %s174_s26, 8 }
  0x12   : > { %s976_s29 = sshll.u32 (%p78_p3), %s1112_s16, 7  ;;  %s1208_s8 = scalar_lea.vmem (%p78_p3), [#allocation3], %s832_s28 }
  0x13   : > { %s180_s30 = sadd.s32 (%p78_p3), %s976_s29, %s834_s27 }
  0x14   : > { %s836_s4 = sshll.u32 (%p78_p3), %s180_s30, 2 }
  0x15   : > { %s1203_s7 = scalar_lea.vmem %s1391_s1, %s836_s4 }
  0x16   : > { %v273_v0 = vld [vmem:[%s1203_s7] sm:$0xff]  ;;  %v275_v1 = vld [vmem:[%s1203_s7 + $0x10] sm:$0xff] }
  0x17   : > { %v277_v2 = vld [vmem:[%s1203_s7 + $0x20] sm:$0xff]  ;;  %274 = vst [vmem:[%s1208_s8] sm:$0xff] %v273_v0  ;;  %v279_v3 = vld [vmem:[%s1203_s7 + $0x30] sm:$0xff] }
  0x18   : > { %276 = vst [vmem:[%s1208_s8 + $0x8] sm:$0xff] %v275_v1  ;;  %v281_v4 = vld [vmem:[%s1203_s7 + $0x40] sm:$0xff]  ;;  %v283_v5 = vld [vmem:[%s1203_s7 + $0x50] sm:$0xff] }
  0x19   : > { %278 = vst [vmem:[%s1208_s8 + $0x10] sm:$0xff] %v277_v2  ;;  %v285_v6 = vld [vmem:[%s1203_s7 + $0x60] sm:$0xff]  ;;  %v287_v7 = vld [vmem:[%s1203_s7 + $0x70] sm:$0xff] }
  0x1a   : > { %280 = vst [vmem:[%s1208_s8 + $0x18] sm:$0xff] %v279_v3  ;;  %v289_v8 = vld [vmem:[%s1203_s7 + $0x80] sm:$0xff]  ;;  %v291_v9 = vld [vmem:[%s1203_s7 + $0x90] sm:$0xff] }
  0x1b   : > { %282 = vst [vmem:[%s1208_s8 + $0x20] sm:$0xff] %v281_v4  ;;  %v293_v10 = vld [vmem:[%s1203_s7 + $0xa0] sm:$0xff]  ;;  %v295_v11 = vld [vmem:[%s1203_s7 + $0xb0] sm:$0xff] }
  0x1c   : > { %284 = vst [vmem:[%s1208_s8 + $0x28] sm:$0xff] %v283_v5  ;;  %v297_v12 = vld [vmem:[%s1203_s7 + $0xc0] sm:$0xff]  ;;  %v299_v13 = vld [vmem:[%s1203_s7 + $0xd0] sm:$0xff] }
  0x1d   : > { %286 = vst [vmem:[%s1208_s8 + $0x30] sm:$0xff] %v285_v6  ;;  %v301_v14 = vld [vmem:[%s1203_s7 + $0xe0] sm:$0xff]  ;;  %v303_v15 = vld [vmem:[%s1203_s7 + $0xf0] sm:$0xff] }
  0x1e   : > { %288 = vst [vmem:[%s1208_s8 + $0x38] sm:$0xff] %v287_v7  ;;  %v305_v16 = vld [vmem:[%s1203_s7 + $0x100] sm:$0xff]  ;;  %v307_v17 = vld [vmem:[%s1203_s7 + $0x110] sm:$0xff] }
  0x1f   : > { %290 = vst [vmem:[%s1208_s8 + $0x40] sm:$0xff] %v289_v8  ;;  %v309_v18 = vld [vmem:[%s1203_s7 + $0x120] sm:$0xff]  ;;  %v311_v19 = vld [vmem:[%s1203_s7 + $0x130] sm:$0xff] }
  0x20   : > { %292 = vst [vmem:[%s1208_s8 + $0x48] sm:$0xff] %v291_v9  ;;  %v313_v20 = vld [vmem:[%s1203_s7 + $0x140] sm:$0xff]  ;;  %v315_v21 = vld [vmem:[%s1203_s7 + $0x150] sm:$0xff] }
  0x21   : > { %294 = vst [vmem:[%s1208_s8 + $0x50] sm:$0xff] %v293_v10  ;;  %v317_v22 = vld [vmem:[%s1203_s7 + $0x160] sm:$0xff]  ;;  %v319_v23 = vld [vmem:[%s1203_s7 + $0x170] sm:$0xff] }
  0x22   : > { %296 = vst [vmem:[%s1208_s8 + $0x58] sm:$0xff] %v295_v11  ;;  %v321_v24 = vld [vmem:[%s1203_s7 + $0x180] sm:$0xff]  ;;  %v323_v25 = vld [vmem:[%s1203_s7 + $0x190] sm:$0xff] }
  0x23   : > { %298 = vst [vmem:[%s1208_s8 + $0x60] sm:$0xff] %v297_v12  ;;  %v325_v26 = vld [vmem:[%s1203_s7 + $0x1a0] sm:$0xff]  ;;  %v327_v27 = vld [vmem:[%s1203_s7 + $0x1b0] sm:$0xff] }
  0x24   : > { %300 = vst [vmem:[%s1208_s8 + $0x68] sm:$0xff] %v299_v13  ;;  %v329_v28 = vld [vmem:[%s1203_s7 + $0x1c0] sm:$0xff]  ;;  %v331_v29 = vld [vmem:[%s1203_s7 + $0x1d0] sm:$0xff] }
  0x25   : > { %302 = vst [vmem:[%s1208_s8 + $0x70] sm:$0xff] %v301_v14  ;;  %v333_v30 = vld [vmem:[%s1203_s7 + $0x1e0] sm:$0xff]  ;;  %v335_v31 = vld [vmem:[%s1203_s7 + $0x1f0] sm:$0xff] }
  0x26   : > { %304 = vst [vmem:[%s1208_s8 + $0x78] sm:$0xff] %v303_v15 }
  0x27   : > { %306 = vst [vmem:[%s1208_s8 + $0x80] sm:$0xff] %v305_v16 }
  0x28   : > { %308 = vst [vmem:[%s1208_s8 + $0x88] sm:$0xff] %v307_v17 }
  0x29   : > { %310 = vst [vmem:[%s1208_s8 + $0x90] sm:$0xff] %v309_v18 }
  0x2a   : > { %312 = vst [vmem:[%s1208_s8 + $0x98] sm:$0xff] %v311_v19 }
  0x2b   : > { %314 = vst [vmem:[%s1208_s8 + $0xa0] sm:$0xff] %v313_v20 }
  0x2c   : > { %316 = vst [vmem:[%s1208_s8 + $0xa8] sm:$0xff] %v315_v21 }
  0x2d   : > { %318 = vst [vmem:[%s1208_s8 + $0xb0] sm:$0xff] %v317_v22 }
  0x2e   : > { %320 = vst [vmem:[%s1208_s8 + $0xb8] sm:$0xff] %v319_v23 }
  0x2f   : > { %322 = vst [vmem:[%s1208_s8 + $0xc0] sm:$0xff] %v321_v24 }
  0x30   : > { %324 = vst [vmem:[%s1208_s8 + $0xc8] sm:$0xff] %v323_v25 }
  0x31   : > { %326 = vst [vmem:[%s1208_s8 + $0xd0] sm:$0xff] %v325_v26 }
  0x32   : > { %328 = vst [vmem:[%s1208_s8 + $0xd8] sm:$0xff] %v327_v27 }
  0x33   : > { %330 = vst [vmem:[%s1208_s8 + $0xe0] sm:$0xff] %v329_v28 }
  0x34   : > { %332 = vst [vmem:[%s1208_s8 + $0xe8] sm:$0xff] %v331_v29 }
  0x35   : > { %334 = vst [vmem:[%s1208_s8 + $0xf0] sm:$0xff] %v333_v30 }
  0x36   : > { %336 = vst [vmem:[%s1208_s8 + $0xf8] sm:$0xff] %v335_v31 }
  0x37 PF: > { %p837_p7 = scmp.ge.s32.totalorder %s1120_s18, 1  ;;  %p349_p8 = scmp.lt.s32.totalorder %s1120_s18, 37 }
  0x39   : > { %p350_p9 = pnand %p837_p7, %p349_p8 }
  0x3a   : > { %s356_s9 = sand.u32 (!%p350_p9), 1, %s1096_s12   ;;  %s839_s10 = sshll.u32 (!%p350_p9), %s1104_s14, 1 }
  0x3b   : > { %353 = sbr.rel (%p350_p9) target bundleno = 261 (0x105), region = 66  ;;  %s838_s11 = sshll.u32 (!%p350_p9), %s356_s9, 8 }
  0x3c   : > { %p399_p10 = scmp.lt.s32.totalorder (!%p350_p9), %s839_s10, 35  ;;  %s841_s21 = sshll.u32 (!%p350_p9), %s1108_s15, 1 }
  0x3d   : > { %p409_p11 = scmp.lt.s32.totalorder (!%p350_p9), %s841_s21, 3  ;;  %s1293_s5 = scalar_lea.vmem (!%p350_p9), [#allocation3], %s838_s11 }
  0x3e   : > { %p844_p12 = scmp.ne.s32.totalorder (!%p350_p9), %s1104_s14, 0 }
  0x40   : > { %s1407_s10 = smov (!%p399_p10, %s839_s10), 35  ;;  %s1409_s21 = smov (!%p409_p11, %s841_s21), 3 }
  0x41   : > { %s840_s22 = sshll.u32 %s1407_s10, 2  ;;  %s411_s12 = scalar_lea.vmem %s1392_s2, %s1409_s21 }
  0x42   : > { %s1279_s26 = scalar_lea.vmem %s1390_s0, %s840_s22  ;;  %s843_s29 = sshll.u32 %s1409_s21, 3 }
  0x43   : > { %s1291_s15 = scalar_lea.vmem %s1393_s3, %s843_s29  ;;  %426 = sbr.rel (%p844_p12) target bundleno = 75 (0x4b), region = 74 }
  0x48   : > { %v1122_v32 = vmov 0.0  }
  0x49   : > { %427 = vst [vmem:[#allocation2] sm:$0xff] %v1122_v32 }
  0x4a   : > { %428 = vst [vmem:[#allocation2 + $0x8] sm:$0xff] %v1122_v32 }
  0x4b PF: > { %v903_v33 = vld [vmem:[%s1293_s5 + $0x70] sm:$0xf]  ;;  %v992_v34 = vld [vmem:[%s1293_s5 + $0x74] sm:$0xf0]  ;;  %v991_v38 = vld [vmem:[%s1293_s5 + $0x74] sm:$0xf] }
  0x4c   : > { %v967_v35 = vld [vmem:[%s1293_s5 + $0xf0] sm:$0xf]  ;;  %v904_v36 = vor.u32 %v992_v34, %v903_v33  ;;  %v1008_v37 = vld [vmem:[%s1293_s5 + $0xf4] sm:$0xf0]  ;;  %v905_v39 = vld [vmem:[%s1293_s5 + $0x78] sm:$0xf0] }
  0x4d   : > { %v968_v40 = vor.u32 %v1008_v37, %v967_v35  ;;  %v908_v41 = vor.u32 %v991_v38, %v905_v39  ;;  %v1007_v42 = vld [vmem:[%s1293_s5 + $0xf4] sm:$0xf]  ;;  %v969_v43 = vld [vmem:[%s1293_s5 + $0xf8] sm:$0xf0]  ;;  %v895_v44 = vld [vmem:[%s1293_s5 + $0x60] sm:$0xf] }
  0x4e   : > { %631 = vmatpush.bf16.msra.mxu0 %v904_v36  ;;  %v972_v45 = vor.u32 %v1007_v42, %v969_v43  ;;  %v990_v46 = vld [vmem:[%s1293_s5 + $0x64] sm:$0xf0]  ;;  %v959_v47 = vld [vmem:[%s1293_s5 + $0xe0] sm:$0xf]  ;;  %v989_v51 = vld [vmem:[%s1293_s5 + $0x64] sm:$0xf] }
  0x4f   : > { %v1006_v48 = vld [vmem:[%s1293_s5 + $0xe4] sm:$0xf0]  ;;  %644 = vmatpush.bf16.msra.mxu1 %v968_v40  ;;  %657 = vmatpush.bf16.msra.mxu2 %v908_v41  ;;  %v896_v49 = vor.u32 %v990_v46, %v895_v44  ;;  %v897_v52 = vld [vmem:[%s1293_s5 + $0x68] sm:$0xf0]  ;;  %v1005_v53 = vld [vmem:[%s1293_s5 + $0xe4] sm:$0xf] }
  0x50   : > { %v960_v50 = vor.u32 %v1006_v48, %v959_v47  ;;  %670 = vmatpush.bf16.msra.mxu3 %v972_v45  ;;  %v900_v54 = vor.u32 %v989_v51, %v897_v52  ;;  %v961_v55 = vld [vmem:[%s1293_s5 + $0xe8] sm:$0xf0]  ;;  %v887_v56 = vld [vmem:[%s1293_s5 + $0x50] sm:$0xf]  ;;  %v988_v57 = vld [vmem:[%s1293_s5 + $0x54] sm:$0xf0] }
  0x51   : > { %v964_v58 = vor.u32 %v1005_v53, %v961_v55  ;;  %v951_v59 = vld [vmem:[%s1293_s5 + $0xd0] sm:$0xf]  ;;  %v1004_v60 = vld [vmem:[%s1293_s5 + $0xd4] sm:$0xf0]  ;;  %v987_v61 = vld [vmem:[%s1293_s5 + $0x54] sm:$0xf]  ;;  %v888_v62 = vor.u32 %v988_v57, %v887_v56 }
  0x52   : > { %632 = vmatpush.bf16.msra.mxu0 %v896_v49  ;;  %v889_v63 = vld [vmem:[%s1293_s5 + $0x58] sm:$0xf0]  ;;  %v1003_v0 = vld [vmem:[%s1293_s5 + $0xd4] sm:$0xf]  ;;  %v952_v2 = vor.u32 %v1004_v60, %v951_v59  ;;  %v879_v4 = vld [vmem:[%s1293_s5 + $0x40] sm:$0xf] }
  0x53   : > { %v953_v1 = vld [vmem:[%s1293_s5 + $0xd8] sm:$0xf0]  ;;  %645 = vmatpush.bf16.msra.mxu1 %v960_v50  ;;  %658 = vmatpush.bf16.msra.mxu2 %v900_v54  ;;  %v892_v3 = vor.u32 %v987_v61, %v889_v63  ;;  %v986_v5 = vld [vmem:[%s1293_s5 + $0x44] sm:$0xf0]  ;;  %v943_v6 = vld [vmem:[%s1293_s5 + $0xc0] sm:$0xf] }
  0x54   : > { %671 = vmatpush.bf16.msra.mxu3 %v964_v58  ;;  %v956_v7 = vor.u32 %v1003_v0, %v953_v1  ;;  %v1002_v8 = vld [vmem:[%s1293_s5 + $0xc4] sm:$0xf0]  ;;  %v985_v9 = vld [vmem:[%s1293_s5 + $0x44] sm:$0xf]  ;;  %v881_v10 = vld [vmem:[%s1293_s5 + $0x48] sm:$0xf0]  ;;  %v880_v13 = vor.u32 %v986_v5, %v879_v4 }
  0x55   : > { %v1001_v11 = vld [vmem:[%s1293_s5 + $0xc4] sm:$0xf]  ;;  %v945_v12 = vld [vmem:[%s1293_s5 + $0xc8] sm:$0xf0]  ;;  %v944_v14 = vor.u32 %v1002_v8, %v943_v6  ;;  %v884_v15 = vor.u32 %v985_v9, %v881_v10  ;;  %v871_v16 = vld [vmem:[%s1293_s5 + $0x30] sm:$0xf] }
  0x56   : > { %633 = vmatpush.bf16.msra.mxu0 %v888_v62  ;;  %v984_v17 = vld [vmem:[%s1293_s5 + $0x34] sm:$0xf0]  ;;  %v935_v18 = vld [vmem:[%s1293_s5 + $0xb0] sm:$0xf]  ;;  %v948_v19 = vor.u32 %v1001_v11, %v945_v12  ;;  %v983_v21 = vld [vmem:[%s1293_s5 + $0x34] sm:$0xf] }
  0x57   : > { %646 = vmatpush.bf16.msra.mxu1 %v952_v2  ;;  %659 = vmatpush.bf16.msra.mxu2 %v892_v3  ;;  %v1000_v20 = vld [vmem:[%s1293_s5 + $0xb4] sm:$0xf0]  ;;  %v873_v22 = vld [vmem:[%s1293_s5 + $0x38] sm:$0xf0]  ;;  %v999_v23 = vld [vmem:[%s1293_s5 + $0xb4] sm:$0xf]  ;;  %v872_v25 = vor.u32 %v984_v17, %v871_v16 }
  0x58   : > { %672 = vmatpush.bf16.msra.mxu3 %v956_v7  ;;  %v937_v24 = vld [vmem:[%s1293_s5 + $0xb8] sm:$0xf0]  ;;  %v936_v26 = vor.u32 %v1000_v20, %v935_v18  ;;  %v876_v27 = vor.u32 %v983_v21, %v873_v22  ;;  %v863_v28 = vld [vmem:[%s1293_s5 + $0x20] sm:$0xf]  ;;  %v982_v29 = vld [vmem:[%s1293_s5 + $0x24] sm:$0xf0] }
  0x59   : > { %v927_v30 = vld [vmem:[%s1293_s5 + $0xa0] sm:$0xf]  ;;  %v940_v31 = vor.u32 %v999_v23, %v937_v24  ;;  %v998_v32 = vld [vmem:[%s1293_s5 + $0xa4] sm:$0xf0]  ;;  %v981_v33 = vld [vmem:[%s1293_s5 + $0x24] sm:$0xf]  ;;  %v864_v37 = vor.u32 %v982_v29, %v863_v28 }
  0x5a   : > { %634 = vmatpush.bf16.msra.mxu0 %v880_v13  ;;  %v865_v34 = vld [vmem:[%s1293_s5 + $0x28] sm:$0xf0]  ;;  %v997_v35 = vld [vmem:[%s1293_s5 + $0xa4] sm:$0xf]  ;;  %v928_v38 = vor.u32 %v998_v32, %v927_v30  ;;  %v855_v40 = vld [vmem:[%s1293_s5 + $0x10] sm:$0xf] }
  0x5b   : > { %647 = vmatpush.bf16.msra.mxu1 %v944_v14  ;;  %660 = vmatpush.bf16.msra.mxu2 %v884_v15  ;;  %v929_v36 = vld [vmem:[%s1293_s5 + $0xa8] sm:$0xf0]  ;;  %v868_v39 = vor.u32 %v981_v33, %v865_v34  ;;  %v980_v41 = vld [vmem:[%s1293_s5 + $0x14] sm:$0xf0]  ;;  %v919_v42 = vld [vmem:[%s1293_s5 + $0x90] sm:$0xf] }
  0x5c   : > { %673 = vmatpush.bf16.msra.mxu3 %v948_v19  ;;  %v932_v43 = vor.u32 %v997_v35, %v929_v36  ;;  %v996_v44 = vld [vmem:[%s1293_s5 + $0x94] sm:$0xf0]  ;;  %v979_v45 = vld [vmem:[%s1293_s5 + $0x14] sm:$0xf]  ;;  %v857_v46 = vld [vmem:[%s1293_s5 + $0x18] sm:$0xf0]  ;;  %v856_v49 = vor.u32 %v980_v41, %v855_v40 }
  0x5d   : > { %v995_v47 = vld [vmem:[%s1293_s5 + $0x94] sm:$0xf]  ;;  %v921_v48 = vld [vmem:[%s1293_s5 + $0x98] sm:$0xf0]  ;;  %v920_v51 = vor.u32 %v996_v44, %v919_v42  ;;  %v860_v52 = vor.u32 %v979_v45, %v857_v46  ;;  %v847_v53 = vld [vmem:[%s1293_s5] sm:$0xf] }
  0x5e   : > { %635 = vmatpush.bf16.msra.mxu0 %v872_v25  ;;  %v431_v50 = vld [vmem:[%s1279_s26] sm:$0xff]  ;;  %v978_v54 = vld [vmem:[%s1293_s5 + $0x4] sm:$0xf0]  ;;  %v911_v55 = vld [vmem:[%s1293_s5 + $0x80] sm:$0xf]  ;;  %v924_v56 = vor.u32 %v995_v47, %v921_v48  ;;  %p973_p13 = scmp.ne.s32.totalorder %s1104_s14, 17 }
  0x5f   : > { %648 = vmatpush.bf16.msra.mxu1 %v936_v26  ;;  %661 = vmatpush.bf16.msra.mxu2 %v876_v27  ;;  %v994_v57 = vld [vmem:[%s1293_s5 + $0x84] sm:$0xf0]  ;;  %v977_v58 = vld [vmem:[%s1293_s5 + $0x4] sm:$0xf]  ;;  %v849_v59 = vld [vmem:[%s1293_s5 + $0x8] sm:$0xf0]  ;;  %v465_v62 = vunpack.c.l.b16 %v431_v50  ;;  %v848_v63 = vor.u32 %v978_v54, %v847_v53  ;;  %v466_v0 = vunpack.c.h.b16 %v431_v50 }
  0x60   : > { %674 = vmatpush.bf16.msra.mxu3 %v940_v31  ;;  %v993_v60 = vld [vmem:[%s1293_s5 + $0x84] sm:$0xf]  ;;  %v913_v61 = vld [vmem:[%s1293_s5 + $0x88] sm:$0xf0]  ;;  %v912_v1 = vor.u32 %v994_v57, %v911_v55  ;;  %v852_v2 = vor.u32 %v977_v58, %v849_v59  ;;  %v429_v7 = vld [vmem:[#allocation2] sm:$0xff] }
  0x61   : > { %v916_v3 = vor.u32 %v993_v60, %v913_v61  ;;  %v467_v4 = vpack.c.b16 %v465_v62, %v465_v62  ;;  %v468_v5 = vpack.c.b16 %v466_v0, %v466_v0  ;;  %v430_v12 = vld [vmem:[#allocation2 + $0x8] sm:$0xff] }
  0x62   : > { %636 = vmatpush.bf16.msra.mxu0 %v864_v37 }
  0x63   : > { %649 = vmatpush.bf16.msra.mxu1 %v928_v38  ;;  %662 = vmatpush.bf16.msra.mxu2 %v868_v39 }
  0x64   : > { %675 = vmatpush.bf16.msra.mxu3 %v932_v43 }
  0x66   : > { %637 = vmatpush.bf16.msra.mxu0 %v856_v49 }
  0x67   : > { %650 = vmatpush.bf16.msra.mxu1 %v920_v51  ;;  %663 = vmatpush.bf16.msra.mxu2 %v860_v52 }
  0x68   : > { %676 = vmatpush.bf16.msra.mxu3 %v924_v56 }
  0x6a   : > { %638 = vmatpush.bf16.msra.mxu0 %v848_v63 }
  0x6b   : > { %651 = vmatpush.bf16.msra.mxu1 %v912_v1  ;;  %664 = vmatpush.bf16.msra.mxu2 %v852_v2 }
  0x6c   : > { %677 = vmatpush.bf16.msra.mxu3 %v916_v3 }
  0x6d   : > { %639 = vmatmul.bf16.vlgmr.msra.gmra.mxu0 %v467_v4 }
  0x6e   : > { %652 = vmatmul.bf16.vlgmr.msra.gmra.mxu1 %v468_v5  ;;  %665 = vmatmul.bf16.vlgmr.msra.gmra.mxu2 %v467_v4 }
  0x6f   : > { %678 = vmatmul.bf16.vlgmr.msra.gmra.mxu3 %v468_v5 }
  0xea   : > { %v640_v6 = vpop.f32.mrf.mxu0 }
  0xeb   : > { %v653_v8 = vpop.f32.mrf.mxu1 }
  0xec   : > { %v654_v9 = vadd.f32 %v653_v8, %v640_v6 }
  0xee   : > { %v683_v10 = vadd.f32 %v654_v9, %v429_v7 }
  0xf0   : > { %685 = vst [vmem:[#allocation2] sm:$0xff] %v683_v10 }
  0xf1   : > { %v666_v11 = vpop.f32.mrf.mxu2 }
  0xf2   : > { %v679_v13 = vpop.f32.mrf.mxu3  ;;  %v642_v14 = vpop.f32.mrf.mxu0 }
  0xf3   : > { %v680_v15 = vadd.f32 %v679_v13, %v666_v11  ;;  %v655_v16 = vpop.f32.mrf.mxu1 }
  0xf5   : > { %v684_v17 = vadd.f32 %v680_v15, %v430_v12 }
  0xf6   : > { %690 = sbr.rel (%p973_p13) target bundleno = 261 (0x105), region = 78 }
  0xf7   : > { %686 = vst [vmem:[#allocation2 + $0x8] sm:$0xff] %v684_v17 }
  0xf9   : > { %v668_v18 = vpop.f32.mrf.mxu2 }
  0xfa   : > { %v681_v19 = vpop.f32.mrf.mxu3 }
  0xfb   : > { %v691_v20 = vld [vmem:[#allocation2] sm:$0xff] }
  0xfc   : > { %v693_v21 = vld [vmem:[%s411_s12] sm:$0x3] }
  0xfd   : > { %v695_v23 = vperm.slane %v693_v21, 0  ;;  %v696_v24 = vperm.slane %v693_v21, 1 }
  0xfe   : > { %v692_v22 = vld [vmem:[#allocation2 + $0x8] sm:$0xff] }
  0xff   : > { %v699_v25 = vadd.f32 %v695_v23, %v691_v20  ;;  %v700_v26 = vadd.f32 %v696_v24, %v692_v22 }
 0x101   : > { %v701_v27 = vmax.f32 %v699_v25, 0.0  ;;  %v702_v28 = vmax.f32 %v700_v26, 0.0 }
 0x103   : > { %703 = vst [vmem:[%s1291_s15] sm:$0xff] %v701_v27 }
 0x104   : > { %704 = vst [vmem:[%s1291_s15 + $0x8] sm:$0xff] %v702_v28 }
 0x105 PF: > { %s13_s18 = sadd.s32 1, %s1120_s18   ;;  %s1394_s12 = smov %s1100_s13 }
 0x106   : > { %p10_p0 = scmp.ge.s32.totalorder %s13_s18, 38   ;;  %s1395_s13 = smov %s1194_s25 }
 0x107   : > { %s1396_s14 = smov %s1112_s16  ;;  %s1397_s15 = smov %s1116_s17 }
 0x108   : > { %s1398_s16 = smov %s1401_s19  ;;  %s1399_s17 = smov %s1405_s20 }
 0x109   :  { %12 = sbr.rel (!%p10_p0) target bundleno = 4 (0x4), region = 119 }

// kernel: custom_resnet_forward.42
= control target key start
LH: loop header
LB: loop body
LE: loop exit
PB: predicated region body
PF: predicated region fallthrough
CT: control target
= control target key end

     0   :  { %s193_s6 = smov 0   ;;  %s213_s0 = inlined_call_operand.vmem [shape: f32[2,1,512], index: 0, kind: input, shape index: {}]   ;;  %s214_s1 = inlined_call_operand.vmem [shape: f32[2,1,512], index: 1, kind: output, shape index: {}]  }
   0x1 LB: > { %s172_s7 = sadd.s32 4294967295, %s195_s6   ;;  %p176_p0 = scmp.ge.s32.totalorder %s195_s6, 1  ;;  %s195_s6 = sphi %s193_s6, %s11_s6  }
   0x2   : > { %p86_p1 = scmp.lt.s32.totalorder %s195_s6, 3 }
   0x4   : > { %p87_p2 = pnand %p176_p0, %p86_p1 }
   0x5   : > { %p104_p3 = scmp.lt.s32.totalorder (!%p87_p2), %s172_s7, 1 }
   0x6   : > { %90 = sbr.rel (%p87_p2) target bundleno = 16 (0x10), region = 24 }
   0xb   : > { %v114_v0 = vlaneseq  ;;  %s216_s7 = smov (!%p104_p3, %s172_s7), 1 }
   0xc   : > { %s177_s8 = sshll.u32 %s216_s7, 2 }
   0xd   : > { %vm116_vm0 = vcmp.lt.s32.totalorder %v114_v0, 512  ;;  %s107_s11 = scalar_lea.vmem %s213_s0, %s177_s8  ;;  %s111_s14 = scalar_lea.vmem %s214_s1, %s177_s8 }
   0xe   : > { %v112_v1 = vld [vmem:[%s107_s11] sm:$0xf] }
   0xf   : > { %118 = vst.msk [vmem:[%s111_s14] sm:$0xf] %vm116_vm0, %v112_v1 }
  0x10 PF: > { %s11_s6 = sadd.s32 1, %s195_s6  }
  0x11   : > { %p8_p4 = scmp.ge.s32.totalorder %s11_s6, 4  }
  0x13   :  { %10 = sbr.rel (!%p8_p4) target bundleno = 1 (0x1), region = 54 }

// kernel: custom_resnet_forward.43
= control target key start
LH: loop header
LB: loop body
LE: loop exit
PB: predicated region body
PF: predicated region fallthrough
CT: control target
= control target key end

     0   :  { %s710_s12 = smov 0   ;;  %s712_s13 = smov 0   ;;  %s776_s0 = inlined_call_operand.vmem [shape: bf16[8,512], index: 0, kind: input, shape index: {}]   ;;  %s777_s1 = inlined_call_operand.vmem [shape: bf16[512,128], index: 1, kind: input, shape index: {}]   ;;  %s778_s2 = inlined_call_operand.vmem [shape: f32[1,128], index: 2, kind: input, shape index: {}]   ;;  %s779_s3 = inlined_call_operand.vmem [shape: f32[8,128], index: 3, kind: output, shape index: {}]  }
   0x1   :  { %s714_s14 = smov 0  }
   0x2 LB: > { %s25_s15 = sadd.s32 1, %s683_s13  ;;  %p549_p0 = scmp.ge.s32.totalorder %s687_s14, 1  ;;  %s687_s14 = sphi %s714_s14, %s13_s14   ;;  %s683_s13 = sphi %s712_s13, %s781_s13   ;;  %s679_s12 = sphi %s710_s12, %s780_s12  }
   0x3   : > { %p26_p1 = scmp.ge.s32.totalorder %s25_s15, 2  ;;  %p189_p2 = scmp.lt.s32.totalorder %s687_s14, 3 }
   0x5   : > { %s783_s15 = smov (%p26_p1, %s25_s15), 0  ;;  %p190_p3 = pnand %p549_p0, %p189_p2 }
   0x6   : > { %s550_s16 = sshll.u32 (!%p190_p3), %s679_s12, 1  ;;  %s552_s17 = sshll.u32 (!%p190_p3), %s679_s12, 5 }
   0x7   : > { %193 = sbr.rel (%p190_p3) target bundleno = 196 (0xc4), region = 32  ;;  %p233_p4 = scmp.lt.s32.totalorder (!%p190_p3), %s550_s16, 3 }
   0x8   : > { %p241_p5 = scmp.lt.s32.totalorder (!%p190_p3), %s552_s17, 63  ;;  %p554_p6 = scmp.ne.s32.totalorder (!%p190_p3), %s679_s12, 0 }
   0xc   : > { %s785_s16 = smov (!%p233_p4, %s550_s16), 3  ;;  %s787_s17 = smov (!%p241_p5, %s552_s17), 63 }
   0xd   : > { %s551_s18 = sshll.u32 %s785_s16, 2  ;;  %s553_s22 = sshll.u32 %s787_s17, 2 }
   0xe   : > { %s735_s21 = scalar_lea.vmem %s776_s0, %s551_s18  ;;  %s740_s25 = scalar_lea.vmem %s777_s1, %s553_s22 }
   0xf   : > { %262 = sbr.rel (%p554_p6) target bundleno = 22 (0x16), region = 36 }
  0x14   : > { %v689_v0 = vmov 0.0  }
  0x15   : > { %263 = vst [vmem:[#allocation2] sm:$0xff] %v689_v0 }
  0x16 PF: > { %v630_v1 = vld [vmem:[%s740_s25 + $0x38] sm:$0xff]  ;;  %v629_v3 = vld [vmem:[%s740_s25 + $0x30] sm:$0xff]  ;;  %v628_v5 = vld [vmem:[%s740_s25 + $0x28] sm:$0xff]  ;;  %p619_p7 = scmp.ne.s32.totalorder %s679_s12, 1 }
  0x17   : > { %v638_v2 = vld [vmem:[%s740_s25 + $0x78] sm:$0xff]  ;;  %401 = vmatpush.bf16.msra.mxu0 %v630_v1  ;;  %v637_v4 = vld [vmem:[%s740_s25 + $0x70] sm:$0xff]  ;;  %v636_v6 = vld [vmem:[%s740_s25 + $0x68] sm:$0xff] }
  0x18   : > { %414 = vmatpush.bf16.msra.mxu1 %v638_v2  ;;  %v627_v7 = vld [vmem:[%s740_s25 + $0x20] sm:$0xff]  ;;  %v626_v9 = vld [vmem:[%s740_s25 + $0x18] sm:$0xff]  ;;  %v625_v11 = vld [vmem:[%s740_s25 + $0x10] sm:$0xff] }
  0x19   : > { %v635_v8 = vld [vmem:[%s740_s25 + $0x60] sm:$0xff]  ;;  %v634_v10 = vld [vmem:[%s740_s25 + $0x58] sm:$0xff]  ;;  %v633_v12 = vld [vmem:[%s740_s25 + $0x50] sm:$0xff] }
  0x1a   : > { %v624_v13 = vld [vmem:[%s740_s25 + $0x8] sm:$0xff]  ;;  %v265_v15 = vld [vmem:[%s735_s21] sm:$0xff] }
  0x1b   : > { %402 = vmatpush.bf16.msra.mxu0 %v629_v3  ;;  %v632_v14 = vld [vmem:[%s740_s25 + $0x48] sm:$0xff]  ;;  %v299_v16 = vunpack.c.l.b16 %v265_v15  ;;  %v300_v17 = vunpack.c.h.b16 %v265_v15  ;;  %v623_v18 = vld [vmem:[%s740_s25] sm:$0xff] }
  0x1c   : > { %415 = vmatpush.bf16.msra.mxu1 %v637_v4  ;;  %v631_v19 = vld [vmem:[%s740_s25 + $0x40] sm:$0xff] }
  0x1d   : > { %v301_v20 = vpack.c.b16 %v299_v16, %v299_v16  ;;  %v302_v21 = vpack.c.b16 %v300_v17, %v300_v17  ;;  %v264_v23 = vld [vmem:[#allocation2] sm:$0xff] }
  0x1f   : > { %403 = vmatpush.bf16.msra.mxu0 %v628_v5 }
  0x20   : > { %416 = vmatpush.bf16.msra.mxu1 %v636_v6 }
  0x23   : > { %404 = vmatpush.bf16.msra.mxu0 %v627_v7 }
  0x24   : > { %417 = vmatpush.bf16.msra.mxu1 %v635_v8 }
  0x27   : > { %405 = vmatpush.bf16.msra.mxu0 %v626_v9 }
  0x28   : > { %418 = vmatpush.bf16.msra.mxu1 %v634_v10 }
  0x2b   : > { %406 = vmatpush.bf16.msra.mxu0 %v625_v11 }
  0x2c   : > { %419 = vmatpush.bf16.msra.mxu1 %v633_v12 }
  0x2f   : > { %407 = vmatpush.bf16.msra.mxu0 %v624_v13 }
  0x30   : > { %420 = vmatpush.bf16.msra.mxu1 %v632_v14 }
  0x33   : > { %408 = vmatpush.bf16.msra.mxu0 %v623_v18 }
  0x34   : > { %421 = vmatpush.bf16.msra.mxu1 %v631_v19 }
  0x36   : > { %409 = vmatmul.bf16.vlgmr.msra.gmra.mxu0 %v301_v20 }
  0x37   : > { %422 = vmatmul.bf16.vlgmr.msra.gmra.mxu1 %v302_v21 }
  0xb3   : > { %v410_v22 = vpop.f32.mrf.mxu0 }
  0xb4   : > { %v423_v24 = vpop.f32.mrf.mxu1 }
  0xb5   : > { %v424_v25 = vadd.f32 %v423_v24, %v410_v22 }
  0xb7   : > { %v427_v26 = vadd.f32 %v424_v25, %v264_v23 }
  0xb8   : > { %432 = sbr.rel (%p619_p7) target bundleno = 196 (0xc4), region = 40 }
  0xb9   : > { %428 = vst [vmem:[#allocation2] sm:$0xff] %v427_v26 }
  0xbb   : > { %v412_v27 = vpop.f32.mrf.mxu0 }
  0xbc   : > { %v425_v28 = vpop.f32.mrf.mxu1 }
  0xbd   : > { %v664_v30 = vld [vmem:[%s778_s2] ss:$0 sm:$0xff] }
  0xc0   : > { %v433_v29 = vld [vmem:[#allocation2] sm:$0xff] }
  0xc1   : > { %v438_v31 = vadd.f32 %v664_v30, %v433_v29 }
  0xc3   : > { %439 = vst [vmem:[%s779_s3] sm:$0xff] %v438_v31 }
  0xc4 PF: > { %s13_s14 = sadd.s32 1, %s687_s14   ;;  %s780_s12 = smov %s683_s13 }
  0xc5   : > { %p10_p8 = scmp.ge.s32.totalorder %s13_s14, 4   ;;  %s781_s13 = smov %s783_s15 }
  0xc7   :  { %12 = sbr.rel (!%p10_p8) target bundleno = 2 (0x2), region = 76 }

</bundles_post_ra>
